<compile_context>
chip_gen: v7x
topology: tpu7x:2x2x1
jax: 0.10.0
libtpu: 0.0.40
codegen_flags: <defaults>
</compile_context>

<pallas_src>
import functools

import jax
import jax.numpy as jnp
from jax.experimental import pallas as pl
from jax.experimental.pallas import tpu as pltpu


# ---------------------------------------------------------------------------
# In-kernel helpers: zero-padded shifts (pltpu.roll + 1-D iota masks) and
# log-doubling running max for separable dilation.
# ---------------------------------------------------------------------------
def _shift_fwd(x, s, axis, idx, n):
    """y[i] = x[i + s] along `axis`; positions past the end are 0."""
    if s == 0:
        return x
    rolled = pltpu.roll(x, (n - s) % n, axis=axis)     # np.roll semantics
    return jnp.where(idx < (n - s), rolled, 0.0)


def _shift_bwd(x, s, axis, idx, n):
    """y[i] = x[i - s] along `axis`; positions before the start are 0."""
    if s == 0:
        return x
    rolled = pltpu.roll(x, s, axis=axis)
    return jnp.where(idx >= s, rolled, 0.0)


def _window_max(x, win, shift_fn):
    """max over a one-sided window of `win` elements via log-doubling."""
    cur = x
    size = 1
    while size * 2 <= win:
        cur = jnp.maximum(cur, shift_fn(cur, size))
        size *= 2
    if size < win:
        cur = jnp.maximum(cur, shift_fn(cur, win - size))
    return cur


def _dilate_axis(x, ksize, axis, idx, n):
    """cv2-style dilation (ones kernel, centered anchor) along one axis."""
    pad_l = ksize // 2              # backward reach (cv2 anchor = ksize // 2)
    pad_r = ksize - 1 - pad_l       # forward reach
    fwd = _window_max(x, pad_r + 1, lambda v, s: _shift_fwd(v, s, axis, idx, n))
    bwd = _window_max(x, pad_l + 1, lambda v, s: _shift_bwd(v, s, axis, idx, n))
    return jnp.maximum(fwd, bwd)


# ---------------------------------------------------------------------------
# Fused kernel: per grid step, process `frames_per_step` frames:
# select mask -> dilate -> write mask + bbox, carrying the dilated ref mask
# as a value within the step and in VMEM scratch across steps.
# ---------------------------------------------------------------------------
def _fused_kernel(key_idx_ref, masks_ref, mask_out_ref, box_ref, ref_scratch,
                  *, frames_per_step, num_cands, height, width, dilate_ksize):
    step = pl.program_id(0)

    @pl.when(step == 0)
    def _():
        ref_scratch[...] = jnp.zeros_like(ref_scratch)

    # Small 1-D iotas, broadcast lazily at compare time (low vreg pressure).
    row_idx = jax.lax.broadcasted_iota(jnp.int32, (height, 1), 0)
    col_idx = jax.lax.broadcasted_iota(jnp.int32, (1, width), 1)

    ref = ref_scratch[...]                              # (H, W) f32, dilated

    for f in range(frames_per_step):
        t = step * frames_per_step + f

        # --- mask selection ------------------------------------------------
        # Binary masks: mse(m) ∝ sum(m) + sum(ref) - 2*sum(m*ref); sum(ref) is
        # constant over m, so rank by sum(m * (1 - 2*ref)).  (Exact only for
        # 0/1 masks, which SAM outputs are.)
        w = 1.0 - 2.0 * ref
        best = jnp.sum(masks_ref[f, 0].astype(jnp.float32) * w)
        mse_idx = jnp.int32(0)
        for m in range(1, num_cands):
            s = jnp.sum(masks_ref[f, m].astype(jnp.float32) * w)
            better = s < best                  # strict < keeps first min (np.argmin)
            mse_idx = jnp.where(better, jnp.int32(m), mse_idx)
            best = jnp.where(better, s, best)

        # Key frame uses the (prefetched) score-argmax / explicit index.
        idx = jnp.where(t == 0, key_idx_ref[0], mse_idx)

        # Single dynamic-index load of the winning candidate plane.
        sel = masks_ref[f, idx].astype(jnp.float32)

        # --- dilation (separable log-doubling max; rolls go to the XLU) -----
        if dilate_ksize is not None and dilate_ksize > 1:
            sel = _dilate_axis(sel, dilate_ksize, 0, row_idx, height)
            sel = _dilate_axis(sel, dilate_ksize, 1, col_idx, width)

        ref = sel                                        # ref_mask for next frame
        mask_out_ref[f] = sel.astype(mask_out_ref.dtype)

        # --- bounding box (cv2.boundingRect -> x, y, w, h) -------------------
        # Collapse to presence vectors first, then reduce the tiny vectors.
        col_pres = jnp.max(sel, axis=0, keepdims=True) > 0.5   # (1, W)
        row_pres = jnp.max(sel, axis=1, keepdims=True) > 0.5   # (H, 1)
        big = jnp.int32(2 ** 30)
        xmin = jnp.min(jnp.where(col_pres, col_idx, big))
        xmax = jnp.max(jnp.where(col_pres, col_idx, jnp.int32(-1)))
        ymin = jnp.min(jnp.where(row_pres, row_idx, big))
        ymax = jnp.max(jnp.where(row_pres, row_idx, jnp.int32(-1)))
        nonempty = xmax >= 0
        base = 4 * t
        box_ref[base + 0] = jnp.where(nonempty, xmin, 0)
        box_ref[base + 1] = jnp.where(nonempty, ymin, 0)
        box_ref[base + 2] = jnp.where(nonempty, xmax - xmin + 1, 0)
        box_ref[base + 3] = jnp.where(nonempty, ymax - ymin + 1, 0)

    ref_scratch[...] = ref                               # carry across grid steps


# ---------------------------------------------------------------------------
# Tiling selection: frames per grid step from a VMEM budget (safe on v5e/v7x).
# ---------------------------------------------------------------------------
def _round_up(x, m):
    return ((x + m - 1) // m) * m


def _choose_frames_per_step(T, M, H, W):
    Hp, Wp = _round_up(H, 8), _round_up(W, 128)
    # bf16 input (double-buffered) + bf16 output (double-buffered) per frame.
    per_frame = 2 * M * Hp * Wp * 2 + 2 * Hp * Wp * 2
    fixed = Hp * Wp * 4 + (2 << 20)          # f32 ref scratch + slack
    budget = 40 << 20                        # keeps headroom under v7x's 64 MiB
    best = 1
    for f in range(1, min(T, 8) + 1):
        if T % f == 0 and f * per_frame + fixed <= budget:
            best = f
    needed = best * per_frame + fixed
    return best, needed


# ---------------------------------------------------------------------------
# Forward pass (mirrors RemoveAnythingVideo.forward control flow), fully
# on-device: a single fused pallas_call over all frames.
# ---------------------------------------------------------------------------
@functools.partial(
    jax.jit,
    static_argnames=("key_frame_idx", "key_frame_mask_idx", "dilate_kernel_size"))
def remove_anything_video_forward(frames, cand_masks, cand_scores,
                                  key_frame_idx=0, key_frame_mask_idx=None,
                                  dilate_kernel_size=15):
    """
    frames:      [T, H, W, 3] float32 (0..255)   — passed through (inpainter external)
    cand_masks:  [T, M, H, W] 0/1                — stand-in for SAM segmentor masks
    cand_scores: [T, M]       float32            — stand-in for SAM scores
    """
    assert key_frame_idx == 0, "Only support key frame at the beginning."
    T, M, H, W = cand_masks.shape
    if dilate_kernel_size is not None:
        assert dilate_kernel_size <= min(H, W), "dilate kernel larger than mask"

    # Binary masks are exact in bf16: halves HBM read + VMEM double buffers.
    cand_masks = cand_masks.astype(jnp.bfloat16)

    # Key-frame candidate index, computed on device (no host sync).
    if key_frame_mask_idx is not None:
        key_idx = jnp.full((1,), key_frame_mask_idx, dtype=jnp.int32)
    else:
        key_idx = jnp.argmax(cand_scores[0]).astype(jnp.int32).reshape(1)

    F, vmem_needed = _choose_frames_per_step(T, M, H, W)
    vmem_limit = int(min(max(2 * vmem_needed, 16 << 20), 60 << 20))

    kernel = functools.partial(
        _fused_kernel, frames_per_step=F, num_cands=M, height=H, width=W,
        dilate_ksize=dilate_kernel_size)

    masks_out, boxes_flat = pl.pallas_call(
        kernel,
        out_shape=(jax.ShapeDtypeStruct((T, H, W), jnp.bfloat16),
                   jax.ShapeDtypeStruct((4 * T,), jnp.int32)),
        grid_spec=pltpu.PrefetchScalarGridSpec(
            num_scalar_prefetch=1,                     # key_idx -> SMEM
            grid=(T // F,),
            in_specs=[pl.BlockSpec((F, M, H, W), lambda s, kidx: (s, 0, 0, 0))],
            out_specs=(
                pl.BlockSpec((F, H, W), lambda s, kidx: (s, 0, 0)),
                pl.BlockSpec(memory_space=pltpu.MemorySpace.SMEM),   # (4*T,) flat
            ),
            scratch_shapes=[pltpu.VMEM((H, W), jnp.float32)],        # carried ref_mask
        ),
        # ref_mask dependency across steps -> the step axis must stay sequential.
        # TODO(synk): on v7x the lane (W) axis could be split across the 2 TCs
        # with a ksize//2-column halo; not done here (no-op on v5e/v6e).
        compiler_params=pltpu.CompilerParams(
            dimension_semantics=("arbitrary",),
            vmem_limit_bytes=vmem_limit),
    )(key_idx, cand_masks)

    boxes = boxes_flat.reshape(T, 4)

    # TODO(synk): OSTrack tracker, SAM2 segmentor and STTN/LaMa inpainter are
    # external pretrained backbones (file-path configs, image I/O) with no
    # architecture defined in this module; frames are returned unmodified and
    # boxes come from the selected masks instead of the tracker.
    return frames, masks_out, boxes


# ---------------------------------------------------------------------------
if __name__ == "__main__":
    T, M, H, W = 4, 3, 128, 128
    key = jax.random.PRNGKey(0)
    kf, kc, ks, ksc = jax.random.split(key, 4)

    frames = (jax.random.uniform(kf, (T, H, W, 3)) * 255.0).astype(jnp.float32)

    # Deterministic synthetic candidate masks: axis-aligned rectangles.
    centers = jax.random.randint(kc, (T, M, 2), 32, H - 32)
    half = jax.random.randint(ks, (T, M, 2), 8, 24)
    yy = jnp.arange(H).reshape(1, 1, H, 1)
    xx = jnp.arange(W).reshape(1, 1, 1, W)
    cy = centers[..., 0][..., None, None]
    cx = centers[..., 1][..., None, None]
    hy = half[..., 0][..., None, None]
    hx = half[..., 1][..., None, None]
    cand_masks = ((jnp.abs(yy - cy) <= hy) & (jnp.abs(xx - cx) <= hx)).astype(jnp.float32)
    cand_scores = jax.random.uniform(ksc, (T, M), dtype=jnp.float32)

    out_frames, out_masks, out_boxes = remove_anything_video_forward(
        frames, cand_masks, cand_scores,
        key_frame_idx=0, key_frame_mask_idx=None, dilate_kernel_size=15)

    jax.block_until_ready((out_frames, out_masks, out_boxes))
    print("KERNEL_OK")
</pallas_src>

<mosaic_0001>
module attributes {stable_mosaic.version = 11 : i64} {
  func.func @_fused_kernel(%arg0: i32, %arg1: memref<1xi32, #tpu.memory_space<smem>>, %arg2: memref<4x3x128x128xbf16, #tpu.memory_space<vmem>>, %arg3: memref<4x128x128xbf16, #tpu.memory_space<vmem>>, %arg4: memref<16xi32, #tpu.memory_space<smem>>, %arg5: memref<128x128xf32, #tpu.memory_space<vmem>>) attributes {dimension_semantics = [#tpu.dimension_semantics<arbitrary>], iteration_bounds = array<i64: 1>, scalar_prefetch = 1 : i64, scratch_operands = 1 : i64, tpu.core_type = #tpu.core_type<tc>, window_params = [{transform_indices = @transform_0, window_bounds = array<i64: 4, 3, 128, 128>}, {transform_indices = @transform_1, window_bounds = array<i64: 4, 128, 128>}, {transform_indices = @transform_2, window_bounds = array<i64: 16>}]} {
    %c0_i32 = arith.constant 0 : i32
    %0 = arith.cmpi eq, %arg0, %c0_i32 : i32
    %1 = arith.extui %0 : i1 to i32
    %c0_i32_0 = arith.constant 0 : i32
    %2 = arith.cmpi ne, %1, %c0_i32_0 : i32
    scf.if %2 {
      %cst_351 = arith.constant 0.000000e+00 : f32
      %799 = vector.broadcast %cst_351 : f32 to vector<128x128xf32>
      %c0_352 = arith.constant 0 : index
      %c0_353 = arith.constant 0 : index
      %800 = vector.load %arg5[%c0_352, %c0_353] : memref<128x128xf32, #tpu.memory_space<vmem>>, vector<128x128xf32>
      tpu.vector_store %arg5[%c0_352, %c0_353], %799 {strides = array<i32>} : memref<128x128xf32, #tpu.memory_space<vmem>>, vector<128x128xf32>,
    } else {
    }
    %3 = tpu.iota {dimensions = array<i32: 0>} : vector<128x1xi32>
    %4 = tpu.iota {dimensions = array<i32: 1>} : vector<1x128xi32>
    %c0 = arith.constant 0 : index
    %c0_1 = arith.constant 0 : index
    %5 = vector.load %arg5[%c0, %c0_1] : memref<128x128xf32, #tpu.memory_space<vmem>>, vector<128x128xf32>
    %c4_i32 = arith.constant 4 : i32
    %6 = arith.muli %arg0, %c4_i32 : i32
    %c0_i32_2 = arith.constant 0 : i32
    %7 = arith.addi %6, %c0_i32_2 : i32
    %cst = arith.constant 2.000000e+00 : f32
    %8 = vector.broadcast %cst : f32 to vector<128x128xf32>
    %9 = arith.mulf %8, %5 : vector<128x128xf32>
    %cst_3 = arith.constant 1.000000e+00 : f32
    %10 = vector.broadcast %cst_3 : f32 to vector<128x128xf32>
    %11 = arith.subf %10, %9 : vector<128x128xf32>
    %c0_4 = arith.constant 0 : index
    %c0_5 = arith.constant 0 : index
    %c0_6 = arith.constant 0 : index
    %c0_7 = arith.constant 0 : index
    %12 = vector.load %arg2[%c0_4, %c0_5, %c0_6, %c0_7] : memref<4x3x128x128xbf16, #tpu.memory_space<vmem>>, vector<1x1x128x128xbf16>
    %13 = vector.shape_cast %12 : vector<1x1x128x128xbf16> to vector<128x128xbf16>
    %14 = arith.extf %13 : vector<128x128xbf16> to vector<128x128xf32>
    %15 = arith.mulf %14, %11 : vector<128x128xf32>
    %16 = vector.shape_cast %15 : vector<128x128xf32> to vector<1x128x128xf32>
    %cst_8 = arith.constant dense<0.000000e+00> : vector<1xf32>
    %17 = vector.multi_reduction <add>, %16, %cst_8 [1, 2] : vector<1x128x128xf32> to vector<1xf32>
    %18 = vector.shape_cast %17 : vector<1xf32> to vector<1x1x1xf32>
    %19 = vector.extract %18[0, 0, 0] : f32 from vector<1x1x1xf32>
    %c0_9 = arith.constant 0 : index
    %c1 = arith.constant 1 : index
    %c0_10 = arith.constant 0 : index
    %c0_11 = arith.constant 0 : index
    %20 = vector.load %arg2[%c0_9, %c1, %c0_10, %c0_11] : memref<4x3x128x128xbf16, #tpu.memory_space<vmem>>, vector<1x1x128x128xbf16>
    %21 = vector.shape_cast %20 : vector<1x1x128x128xbf16> to vector<128x128xbf16>
    %22 = arith.extf %21 : vector<128x128xbf16> to vector<128x128xf32>
    %23 = arith.mulf %22, %11 : vector<128x128xf32>
    %24 = vector.shape_cast %23 : vector<128x128xf32> to vector<1x128x128xf32>
    %cst_12 = arith.constant dense<0.000000e+00> : vector<1xf32>
    %25 = vector.multi_reduction <add>, %24, %cst_12 [1, 2] : vector<1x128x128xf32> to vector<1xf32>
    %26 = vector.shape_cast %25 : vector<1xf32> to vector<1x1x1xf32>
    %27 = vector.extract %26[0, 0, 0] : f32 from vector<1x1x1xf32>
    %28 = arith.cmpf olt, %27, %19 : f32
    %c1_i32 = arith.constant 1 : i32
    %c0_i32_13 = arith.constant 0 : i32
    %29 = arith.select %28, %c1_i32, %c0_i32_13 : i32
    %30 = arith.select %28, %27, %19 : f32
    %c0_14 = arith.constant 0 : index
    %c2 = arith.constant 2 : index
    %c0_15 = arith.constant 0 : index
    %c0_16 = arith.constant 0 : index
    %31 = vector.load %arg2[%c0_14, %c2, %c0_15, %c0_16] : memref<4x3x128x128xbf16, #tpu.memory_space<vmem>>, vector<1x1x128x128xbf16>
    %32 = vector.shape_cast %31 : vector<1x1x128x128xbf16> to vector<128x128xbf16>
    %33 = arith.extf %32 : vector<128x128xbf16> to vector<128x128xf32>
    %34 = arith.mulf %33, %11 : vector<128x128xf32>
    %35 = vector.shape_cast %34 : vector<128x128xf32> to vector<1x128x128xf32>
    %cst_17 = arith.constant dense<0.000000e+00> : vector<1xf32>
    %36 = vector.multi_reduction <add>, %35, %cst_17 [1, 2] : vector<1x128x128xf32> to vector<1xf32>
    %37 = vector.shape_cast %36 : vector<1xf32> to vector<1x1x1xf32>
    %38 = vector.extract %37[0, 0, 0] : f32 from vector<1x1x1xf32>
    %39 = arith.cmpf olt, %38, %30 : f32
    %c2_i32 = arith.constant 2 : i32
    %40 = arith.select %39, %c2_i32, %29 : i32
    %c0_i32_18 = arith.constant 0 : i32
    %41 = arith.cmpi eq, %7, %c0_i32_18 : i32
    %c0_19 = arith.constant 0 : index
    %42 = memref.load %arg1[%c0_19] : memref<1xi32, #tpu.memory_space<smem>>
    %43 = arith.select %41, %42, %40 : i32
    %c0_20 = arith.constant 0 : index
    %44 = arith.index_cast %43 : i32 to index
    %c0_21 = arith.constant 0 : index
    %c0_22 = arith.constant 0 : index
    %45 = vector.load %arg2[%c0_20, %44, %c0_21, %c0_22] : memref<4x3x128x128xbf16, #tpu.memory_space<vmem>>, vector<1x1x128x128xbf16>
    %46 = vector.shape_cast %45 : vector<1x1x128x128xbf16> to vector<128x128xbf16>
    %47 = arith.extf %46 : vector<128x128xbf16> to vector<128x128xf32>
    %c127_i32 = arith.constant 127 : i32
    %48 = tpu.dynamic_rotate %47 by %c127_i32 dim 0 : vector<128x128xf32>, i32 -> vector<128x128xf32>
    %c127_i32_23 = arith.constant 127 : i32
    %49 = vector.broadcast %c127_i32_23 : i32 to vector<128x1xi32>
    %50 = arith.cmpi slt, %3, %49 : vector<128x1xi32>
    %cst_24 = arith.constant 0.000000e+00 : f32
    %51 = vector.shape_cast %50 : vector<128x1xi1> to vector<128x1xi1>
    %52 = vector.broadcast %51 : vector<128x1xi1> to vector<128x128xi1>
    %53 = vector.broadcast %cst_24 : f32 to vector<128x128xf32>
    %54 = arith.select %52, %48, %53 : vector<128x128xi1>, vector<128x128xf32>
    %55 = arith.maximumf %47, %54 : vector<128x128xf32>
    %c126_i32 = arith.constant 126 : i32
    %56 = tpu.dynamic_rotate %55 by %c126_i32 dim 0 : vector<128x128xf32>, i32 -> vector<128x128xf32>
    %c126_i32_25 = arith.constant 126 : i32
    %57 = vector.broadcast %c126_i32_25 : i32 to vector<128x1xi32>
    %58 = arith.cmpi slt, %3, %57 : vector<128x1xi32>
    %cst_26 = arith.constant 0.000000e+00 : f32
    %59 = vector.shape_cast %58 : vector<128x1xi1> to vector<128x1xi1>
    %60 = vector.broadcast %59 : vector<128x1xi1> to vector<128x128xi1>
    %61 = vector.broadcast %cst_26 : f32 to vector<128x128xf32>
    %62 = arith.select %60, %56, %61 : vector<128x128xi1>, vector<128x128xf32>
    %63 = arith.maximumf %55, %62 : vector<128x128xf32>
    %c124_i32 = arith.constant 124 : i32
    %64 = tpu.dynamic_rotate %63 by %c124_i32 dim 0 : vector<128x128xf32>, i32 -> vector<128x128xf32>
    %c124_i32_27 = arith.constant 124 : i32
    %65 = vector.broadcast %c124_i32_27 : i32 to vector<128x1xi32>
    %66 = arith.cmpi slt, %3, %65 : vector<128x1xi32>
    %cst_28 = arith.constant 0.000000e+00 : f32
    %67 = vector.shape_cast %66 : vector<128x1xi1> to vector<128x1xi1>
    %68 = vector.broadcast %67 : vector<128x1xi1> to vector<128x128xi1>
    %69 = vector.broadcast %cst_28 : f32 to vector<128x128xf32>
    %70 = arith.select %68, %64, %69 : vector<128x128xi1>, vector<128x128xf32>
    %71 = arith.maximumf %63, %70 : vector<128x128xf32>
    %c1_i32_29 = arith.constant 1 : i32
    %72 = tpu.dynamic_rotate %47 by %c1_i32_29 dim 0 : vector<128x128xf32>, i32 -> vector<128x128xf32>
    %c1_i32_30 = arith.constant 1 : i32
    %73 = vector.broadcast %c1_i32_30 : i32 to vector<128x1xi32>
    %74 = arith.cmpi sge, %3, %73 : vector<128x1xi32>
    %cst_31 = arith.constant 0.000000e+00 : f32
    %75 = vector.shape_cast %74 : vector<128x1xi1> to vector<128x1xi1>
    %76 = vector.broadcast %75 : vector<128x1xi1> to vector<128x128xi1>
    %77 = vector.broadcast %cst_31 : f32 to vector<128x128xf32>
    %78 = arith.select %76, %72, %77 : vector<128x128xi1>, vector<128x128xf32>
    %79 = arith.maximumf %47, %78 : vector<128x128xf32>
    %c2_i32_32 = arith.constant 2 : i32
    %80 = tpu.dynamic_rotate %79 by %c2_i32_32 dim 0 : vector<128x128xf32>, i32 -> vector<128x128xf32>
    %c2_i32_33 = arith.constant 2 : i32
    %81 = vector.broadcast %c2_i32_33 : i32 to vector<128x1xi32>
    %82 = arith.cmpi sge, %3, %81 : vector<128x1xi32>
    %cst_34 = arith.constant 0.000000e+00 : f32
    %83 = vector.shape_cast %82 : vector<128x1xi1> to vector<128x1xi1>
    %84 = vector.broadcast %83 : vector<128x1xi1> to vector<128x128xi1>
    %85 = vector.broadcast %cst_34 : f32 to vector<128x128xf32>
    %86 = arith.select %84, %80, %85 : vector<128x128xi1>, vector<128x128xf32>
    %87 = arith.maximumf %79, %86 : vector<128x128xf32>
    %c4_i32_35 = arith.constant 4 : i32
    %88 = tpu.dynamic_rotate %87 by %c4_i32_35 dim 0 : vector<128x128xf32>, i32 -> vector<128x128xf32>
    %c4_i32_36 = arith.constant 4 : i32
    %89 = vector.broadcast %c4_i32_36 : i32 to vector<128x1xi32>
    %90 = arith.cmpi sge, %3, %89 : vector<128x1xi32>
    %cst_37 = arith.constant 0.000000e+00 : f32
    %91 = vector.shape_cast %90 : vector<128x1xi1> to vector<128x1xi1>
    %92 = vector.broadcast %91 : vector<128x1xi1> to vector<128x128xi1>
    %93 = vector.broadcast %cst_37 : f32 to vector<128x128xf32>
    %94 = arith.select %92, %88, %93 : vector<128x128xi1>, vector<128x128xf32>
    %95 = arith.maximumf %87, %94 : vector<128x128xf32>
    %96 = arith.maximumf %71, %95 : vector<128x128xf32>
    %c127_i32_38 = arith.constant 127 : i32
    %97 = tpu.dynamic_rotate %96 by %c127_i32_38 dim 1 : vector<128x128xf32>, i32 -> vector<128x128xf32>
    %c127_i32_39 = arith.constant 127 : i32
    %98 = vector.broadcast %c127_i32_39 : i32 to vector<1x128xi32>
    %99 = arith.cmpi slt, %4, %98 : vector<1x128xi32>
    %cst_40 = arith.constant 0.000000e+00 : f32
    %100 = vector.shape_cast %99 : vector<1x128xi1> to vector<1x128xi1>
    %101 = vector.broadcast %100 : vector<1x128xi1> to vector<128x128xi1>
    %102 = vector.broadcast %cst_40 : f32 to vector<128x128xf32>
    %103 = arith.select %101, %97, %102 : vector<128x128xi1>, vector<128x128xf32>
    %104 = arith.maximumf %96, %103 : vector<128x128xf32>
    %c126_i32_41 = arith.constant 126 : i32
    %105 = tpu.dynamic_rotate %104 by %c126_i32_41 dim 1 : vector<128x128xf32>, i32 -> vector<128x128xf32>
    %c126_i32_42 = arith.constant 126 : i32
    %106 = vector.broadcast %c126_i32_42 : i32 to vector<1x128xi32>
    %107 = arith.cmpi slt, %4, %106 : vector<1x128xi32>
    %cst_43 = arith.constant 0.000000e+00 : f32
    %108 = vector.shape_cast %107 : vector<1x128xi1> to vector<1x128xi1>
    %109 = vector.broadcast %108 : vector<1x128xi1> to vector<128x128xi1>
    %110 = vector.broadcast %cst_43 : f32 to vector<128x128xf32>
    %111 = arith.select %109, %105, %110 : vector<128x128xi1>, vector<128x128xf32>
    %112 = arith.maximumf %104, %111 : vector<128x128xf32>
    %c124_i32_44 = arith.constant 124 : i32
    %113 = tpu.dynamic_rotate %112 by %c124_i32_44 dim 1 : vector<128x128xf32>, i32 -> vector<128x128xf32>
    %c124_i32_45 = arith.constant 124 : i32
    %114 = vector.broadcast %c124_i32_45 : i32 to vector<1x128xi32>
    %115 = arith.cmpi slt, %4, %114 : vector<1x128xi32>
    %cst_46 = arith.constant 0.000000e+00 : f32
    %116 = vector.shape_cast %115 : vector<1x128xi1> to vector<1x128xi1>
    %117 = vector.broadcast %116 : vector<1x128xi1> to vector<128x128xi1>
    %118 = vector.broadcast %cst_46 : f32 to vector<128x128xf32>
    %119 = arith.select %117, %113, %118 : vector<128x128xi1>, vector<128x128xf32>
    %120 = arith.maximumf %112, %119 : vector<128x128xf32>
    %c1_i32_47 = arith.constant 1 : i32
    %121 = tpu.dynamic_rotate %96 by %c1_i32_47 dim 1 : vector<128x128xf32>, i32 -> vector<128x128xf32>
    %c1_i32_48 = arith.constant 1 : i32
    %122 = vector.broadcast %c1_i32_48 : i32 to vector<1x128xi32>
    %123 = arith.cmpi sge, %4, %122 : vector<1x128xi32>
    %cst_49 = arith.constant 0.000000e+00 : f32
    %124 = vector.shape_cast %123 : vector<1x128xi1> to vector<1x128xi1>
    %125 = vector.broadcast %124 : vector<1x128xi1> to vector<128x128xi1>
    %126 = vector.broadcast %cst_49 : f32 to vector<128x128xf32>
    %127 = arith.select %125, %121, %126 : vector<128x128xi1>, vector<128x128xf32>
    %128 = arith.maximumf %96, %127 : vector<128x128xf32>
    %c2_i32_50 = arith.constant 2 : i32
    %129 = tpu.dynamic_rotate %128 by %c2_i32_50 dim 1 : vector<128x128xf32>, i32 -> vector<128x128xf32>
    %c2_i32_51 = arith.constant 2 : i32
    %130 = vector.broadcast %c2_i32_51 : i32 to vector<1x128xi32>
    %131 = arith.cmpi sge, %4, %130 : vector<1x128xi32>
    %cst_52 = arith.constant 0.000000e+00 : f32
    %132 = vector.shape_cast %131 : vector<1x128xi1> to vector<1x128xi1>
    %133 = vector.broadcast %132 : vector<1x128xi1> to vector<128x128xi1>
    %134 = vector.broadcast %cst_52 : f32 to vector<128x128xf32>
    %135 = arith.select %133, %129, %134 : vector<128x128xi1>, vector<128x128xf32>
    %136 = arith.maximumf %128, %135 : vector<128x128xf32>
    %c4_i32_53 = arith.constant 4 : i32
    %137 = tpu.dynamic_rotate %136 by %c4_i32_53 dim 1 : vector<128x128xf32>, i32 -> vector<128x128xf32>
    %c4_i32_54 = arith.constant 4 : i32
    %138 = vector.broadcast %c4_i32_54 : i32 to vector<1x128xi32>
    %139 = arith.cmpi sge, %4, %138 : vector<1x128xi32>
    %cst_55 = arith.constant 0.000000e+00 : f32
    %140 = vector.shape_cast %139 : vector<1x128xi1> to vector<1x128xi1>
    %141 = vector.broadcast %140 : vector<1x128xi1> to vector<128x128xi1>
    %142 = vector.broadcast %cst_55 : f32 to vector<128x128xf32>
    %143 = arith.select %141, %137, %142 : vector<128x128xi1>, vector<128x128xf32>
    %144 = arith.maximumf %136, %143 : vector<128x128xf32>
    %145 = arith.maximumf %120, %144 : vector<128x128xf32>
    %146 = arith.truncf %145 : vector<128x128xf32> to vector<128x128xbf16>
    %c0_56 = arith.constant 0 : index
    %c0_57 = arith.constant 0 : index
    %c0_58 = arith.constant 0 : index
    %147 = vector.load %arg3[%c0_56, %c0_57, %c0_58] : memref<4x128x128xbf16, #tpu.memory_space<vmem>>, vector<1x128x128xbf16>
    %148 = vector.shape_cast %147 : vector<1x128x128xbf16> to vector<128x128xbf16>
    %149 = vector.shape_cast %146 : vector<128x128xbf16> to vector<1x128x128xbf16>
    tpu.vector_store %arg3[%c0_56, %c0_57, %c0_58], %149 {strides = array<i32>} : memref<4x128x128xbf16, #tpu.memory_space<vmem>>, vector<1x128x128xbf16>,
    %cst_59 = arith.constant dense<0xFF800000> : vector<128xf32>
    %150 = vector.multi_reduction <maximumf>, %145, %cst_59 [0] : vector<128x128xf32> to vector<128xf32>
    %151 = vector.shape_cast %150 : vector<128xf32> to vector<1x128xf32>
    %cst_60 = arith.constant 5.000000e-01 : f32
    %152 = vector.broadcast %cst_60 : f32 to vector<1x128xf32>
    %153 = arith.cmpf ogt, %151, %152 : vector<1x128xf32>
    %cst_61 = arith.constant dense<0xFF800000> : vector<128xf32>
    %154 = vector.multi_reduction <maximumf>, %145, %cst_61 [1] : vector<128x128xf32> to vector<128xf32>
    %155 = vector.shape_cast %154 : vector<128xf32> to vector<128x1xf32>
    %cst_62 = arith.constant 5.000000e-01 : f32
    %156 = vector.broadcast %cst_62 : f32 to vector<128x1xf32>
    %157 = arith.cmpf ogt, %155, %156 : vector<128x1xf32>
    %c1073741824_i32 = arith.constant 1073741824 : i32
    %158 = vector.broadcast %c1073741824_i32 : i32 to vector<1x128xi32>
    %159 = arith.select %153, %4, %158 : vector<1x128xi1>, vector<1x128xi32>
    %160 = vector.shape_cast %159 : vector<1x128xi32> to vector<1x1x128xi32>
    %cst_63 = arith.constant dense<2147483647> : vector<1xi32>
    %161 = vector.multi_reduction <minsi>, %160, %cst_63 [1, 2] : vector<1x1x128xi32> to vector<1xi32>
    %162 = vector.shape_cast %161 : vector<1xi32> to vector<1x1x1xi32>
    %163 = vector.extract %162[0, 0, 0] : i32 from vector<1x1x1xi32>
    %c-1_i32 = arith.constant -1 : i32
    %164 = vector.broadcast %c-1_i32 : i32 to vector<1x128xi32>
    %165 = arith.select %153, %4, %164 : vector<1x128xi1>, vector<1x128xi32>
    %166 = vector.shape_cast %165 : vector<1x128xi32> to vector<1x1x128xi32>
    %cst_64 = arith.constant dense<-2147483648> : vector<1xi32>
    %167 = vector.multi_reduction <maxsi>, %166, %cst_64 [1, 2] : vector<1x1x128xi32> to vector<1xi32>
    %168 = vector.shape_cast %167 : vector<1xi32> to vector<1x1x1xi32>
    %169 = vector.extract %168[0, 0, 0] : i32 from vector<1x1x1xi32>
    %c1073741824_i32_65 = arith.constant 1073741824 : i32
    %170 = vector.broadcast %c1073741824_i32_65 : i32 to vector<128x1xi32>
    %171 = arith.select %157, %3, %170 : vector<128x1xi1>, vector<128x1xi32>
    %172 = vector.shape_cast %171 : vector<128x1xi32> to vector<1x128x1xi32>
    %cst_66 = arith.constant dense<2147483647> : vector<1xi32>
    %173 = vector.multi_reduction <minsi>, %172, %cst_66 [1, 2] : vector<1x128x1xi32> to vector<1xi32>
    %174 = vector.shape_cast %173 : vector<1xi32> to vector<1x1x1xi32>
    %175 = vector.extract %174[0, 0, 0] : i32 from vector<1x1x1xi32>
    %c-1_i32_67 = arith.constant -1 : i32
    %176 = vector.broadcast %c-1_i32_67 : i32 to vector<128x1xi32>
    %177 = arith.select %157, %3, %176 : vector<128x1xi1>, vector<128x1xi32>
    %178 = vector.shape_cast %177 : vector<128x1xi32> to vector<1x128x1xi32>
    %cst_68 = arith.constant dense<-2147483648> : vector<1xi32>
    %179 = vector.multi_reduction <maxsi>, %178, %cst_68 [1, 2] : vector<1x128x1xi32> to vector<1xi32>
    %180 = vector.shape_cast %179 : vector<1xi32> to vector<1x1x1xi32>
    %181 = vector.extract %180[0, 0, 0] : i32 from vector<1x1x1xi32>
    %c0_i32_69 = arith.constant 0 : i32
    %182 = arith.cmpi sge, %169, %c0_i32_69 : i32
    %c4_i32_70 = arith.constant 4 : i32
    %183 = arith.muli %c4_i32_70, %7 : i32
    %c0_i32_71 = arith.constant 0 : i32
    %184 = arith.select %182, %163, %c0_i32_71 : i32
    %c0_i32_72 = arith.constant 0 : i32
    %185 = arith.addi %183, %c0_i32_72 : i32
    %186 = arith.index_cast %185 : i32 to index
    %187 = memref.load %arg4[%186] : memref<16xi32, #tpu.memory_space<smem>>
    memref.store %184, %arg4[%186] : memref<16xi32, #tpu.memory_space<smem>>
    %c0_i32_73 = arith.constant 0 : i32
    %188 = arith.select %182, %175, %c0_i32_73 : i32
    %c1_i32_74 = arith.constant 1 : i32
    %189 = arith.addi %183, %c1_i32_74 : i32
    %190 = arith.index_cast %189 : i32 to index
    %191 = memref.load %arg4[%190] : memref<16xi32, #tpu.memory_space<smem>>
    memref.store %188, %arg4[%190] : memref<16xi32, #tpu.memory_space<smem>>
    %192 = arith.subi %169, %163 : i32
    %c1_i32_75 = arith.constant 1 : i32
    %193 = arith.addi %192, %c1_i32_75 : i32
    %c0_i32_76 = arith.constant 0 : i32
    %194 = arith.select %182, %193, %c0_i32_76 : i32
    %c2_i32_77 = arith.constant 2 : i32
    %195 = arith.addi %183, %c2_i32_77 : i32
    %196 = arith.index_cast %195 : i32 to index
    %197 = memref.load %arg4[%196] : memref<16xi32, #tpu.memory_space<smem>>
    memref.store %194, %arg4[%196] : memref<16xi32, #tpu.memory_space<smem>>
    %198 = arith.subi %181, %175 : i32
    %c1_i32_78 = arith.constant 1 : i32
    %199 = arith.addi %198, %c1_i32_78 : i32
    %c0_i32_79 = arith.constant 0 : i32
    %200 = arith.select %182, %199, %c0_i32_79 : i32
    %c3_i32 = arith.constant 3 : i32
    %201 = arith.addi %183, %c3_i32 : i32
    %202 = arith.index_cast %201 : i32 to index
    %203 = memref.load %arg4[%202] : memref<16xi32, #tpu.memory_space<smem>>
    memref.store %200, %arg4[%202] : memref<16xi32, #tpu.memory_space<smem>>
    %c4_i32_80 = arith.constant 4 : i32
    %204 = arith.muli %arg0, %c4_i32_80 : i32
    %c1_i32_81 = arith.constant 1 : i32
    %205 = arith.addi %204, %c1_i32_81 : i32
    %cst_82 = arith.constant 2.000000e+00 : f32
    %206 = vector.broadcast %cst_82 : f32 to vector<128x128xf32>
    %207 = arith.mulf %206, %145 : vector<128x128xf32>
    %cst_83 = arith.constant 1.000000e+00 : f32
    %208 = vector.broadcast %cst_83 : f32 to vector<128x128xf32>
    %209 = arith.subf %208, %207 : vector<128x128xf32>
    %c1_84 = arith.constant 1 : index
    %c0_85 = arith.constant 0 : index
    %c0_86 = arith.constant 0 : index
    %c0_87 = arith.constant 0 : index
    %210 = vector.load %arg2[%c1_84, %c0_85, %c0_86, %c0_87] : memref<4x3x128x128xbf16, #tpu.memory_space<vmem>>, vector<1x1x128x128xbf16>
    %211 = vector.shape_cast %210 : vector<1x1x128x128xbf16> to vector<128x128xbf16>
    %212 = arith.extf %211 : vector<128x128xbf16> to vector<128x128xf32>
    %213 = arith.mulf %212, %209 : vector<128x128xf32>
    %214 = vector.shape_cast %213 : vector<128x128xf32> to vector<1x128x128xf32>
    %cst_88 = arith.constant dense<0.000000e+00> : vector<1xf32>
    %215 = vector.multi_reduction <add>, %214, %cst_88 [1, 2] : vector<1x128x128xf32> to vector<1xf32>
    %216 = vector.shape_cast %215 : vector<1xf32> to vector<1x1x1xf32>
    %217 = vector.extract %216[0, 0, 0] : f32 from vector<1x1x1xf32>
    %c1_89 = arith.constant 1 : index
    %c1_90 = arith.constant 1 : index
    %c0_91 = arith.constant 0 : index
    %c0_92 = arith.constant 0 : index
    %218 = vector.load %arg2[%c1_89, %c1_90, %c0_91, %c0_92] : memref<4x3x128x128xbf16, #tpu.memory_space<vmem>>, vector<1x1x128x128xbf16>
    %219 = vector.shape_cast %218 : vector<1x1x128x128xbf16> to vector<128x128xbf16>
    %220 = arith.extf %219 : vector<128x128xbf16> to vector<128x128xf32>
    %221 = arith.mulf %220, %209 : vector<128x128xf32>
    %222 = vector.shape_cast %221 : vector<128x128xf32> to vector<1x128x128xf32>
    %cst_93 = arith.constant dense<0.000000e+00> : vector<1xf32>
    %223 = vector.multi_reduction <add>, %222, %cst_93 [1, 2] : vector<1x128x128xf32> to vector<1xf32>
    %224 = vector.shape_cast %223 : vector<1xf32> to vector<1x1x1xf32>
    %225 = vector.extract %224[0, 0, 0] : f32 from vector<1x1x1xf32>
    %226 = arith.cmpf olt, %225, %217 : f32
    %c1_i32_94 = arith.constant 1 : i32
    %c0_i32_95 = arith.constant 0 : i32
    %227 = arith.select %226, %c1_i32_94, %c0_i32_95 : i32
    %228 = arith.select %226, %225, %217 : f32
    %c1_96 = arith.constant 1 : index
    %c2_97 = arith.constant 2 : index
    %c0_98 = arith.constant 0 : index
    %c0_99 = arith.constant 0 : index
    %229 = vector.load %arg2[%c1_96, %c2_97, %c0_98, %c0_99] : memref<4x3x128x128xbf16, #tpu.memory_space<vmem>>, vector<1x1x128x128xbf16>
    %230 = vector.shape_cast %229 : vector<1x1x128x128xbf16> to vector<128x128xbf16>
    %231 = arith.extf %230 : vector<128x128xbf16> to vector<128x128xf32>
    %232 = arith.mulf %231, %209 : vector<128x128xf32>
    %233 = vector.shape_cast %232 : vector<128x128xf32> to vector<1x128x128xf32>
    %cst_100 = arith.constant dense<0.000000e+00> : vector<1xf32>
    %234 = vector.multi_reduction <add>, %233, %cst_100 [1, 2] : vector<1x128x128xf32> to vector<1xf32>
    %235 = vector.shape_cast %234 : vector<1xf32> to vector<1x1x1xf32>
    %236 = vector.extract %235[0, 0, 0] : f32 from vector<1x1x1xf32>
    %237 = arith.cmpf olt, %236, %228 : f32
    %c2_i32_101 = arith.constant 2 : i32
    %238 = arith.select %237, %c2_i32_101, %227 : i32
    %c0_i32_102 = arith.constant 0 : i32
    %239 = arith.cmpi eq, %205, %c0_i32_102 : i32
    %c0_103 = arith.constant 0 : index
    %240 = memref.load %arg1[%c0_103] : memref<1xi32, #tpu.memory_space<smem>>
    %241 = arith.select %239, %240, %238 : i32
    %c1_104 = arith.constant 1 : index
    %242 = arith.index_cast %241 : i32 to index
    %c0_105 = arith.constant 0 : index
    %c0_106 = arith.constant 0 : index
    %243 = vector.load %arg2[%c1_104, %242, %c0_105, %c0_106] : memref<4x3x128x128xbf16, #tpu.memory_space<vmem>>, vector<1x1x128x128xbf16>
    %244 = vector.shape_cast %243 : vector<1x1x128x128xbf16> to vector<128x128xbf16>
    %245 = arith.extf %244 : vector<128x128xbf16> to vector<128x128xf32>
    %c127_i32_107 = arith.constant 127 : i32
    %246 = tpu.dynamic_rotate %245 by %c127_i32_107 dim 0 : vector<128x128xf32>, i32 -> vector<128x128xf32>
    %c127_i32_108 = arith.constant 127 : i32
    %247 = vector.broadcast %c127_i32_108 : i32 to vector<128x1xi32>
    %248 = arith.cmpi slt, %3, %247 : vector<128x1xi32>
    %cst_109 = arith.constant 0.000000e+00 : f32
    %249 = vector.shape_cast %248 : vector<128x1xi1> to vector<128x1xi1>
    %250 = vector.broadcast %249 : vector<128x1xi1> to vector<128x128xi1>
    %251 = vector.broadcast %cst_109 : f32 to vector<128x128xf32>
    %252 = arith.select %250, %246, %251 : vector<128x128xi1>, vector<128x128xf32>
    %253 = arith.maximumf %245, %252 : vector<128x128xf32>
    %c126_i32_110 = arith.constant 126 : i32
    %254 = tpu.dynamic_rotate %253 by %c126_i32_110 dim 0 : vector<128x128xf32>, i32 -> vector<128x128xf32>
    %c126_i32_111 = arith.constant 126 : i32
    %255 = vector.broadcast %c126_i32_111 : i32 to vector<128x1xi32>
    %256 = arith.cmpi slt, %3, %255 : vector<128x1xi32>
    %cst_112 = arith.constant 0.000000e+00 : f32
    %257 = vector.shape_cast %256 : vector<128x1xi1> to vector<128x1xi1>
    %258 = vector.broadcast %257 : vector<128x1xi1> to vector<128x128xi1>
    %259 = vector.broadcast %cst_112 : f32 to vector<128x128xf32>
    %260 = arith.select %258, %254, %259 : vector<128x128xi1>, vector<128x128xf32>
    %261 = arith.maximumf %253, %260 : vector<128x128xf32>
    %c124_i32_113 = arith.constant 124 : i32
    %262 = tpu.dynamic_rotate %261 by %c124_i32_113 dim 0 : vector<128x128xf32>, i32 -> vector<128x128xf32>
    %c124_i32_114 = arith.constant 124 : i32
    %263 = vector.broadcast %c124_i32_114 : i32 to vector<128x1xi32>
    %264 = arith.cmpi slt, %3, %263 : vector<128x1xi32>
    %cst_115 = arith.constant 0.000000e+00 : f32
    %265 = vector.shape_cast %264 : vector<128x1xi1> to vector<128x1xi1>
    %266 = vector.broadcast %265 : vector<128x1xi1> to vector<128x128xi1>
    %267 = vector.broadcast %cst_115 : f32 to vector<128x128xf32>
    %268 = arith.select %266, %262, %267 : vector<128x128xi1>, vector<128x128xf32>
    %269 = arith.maximumf %261, %268 : vector<128x128xf32>
    %c1_i32_116 = arith.constant 1 : i32
    %270 = tpu.dynamic_rotate %245 by %c1_i32_116 dim 0 : vector<128x128xf32>, i32 -> vector<128x128xf32>
    %c1_i32_117 = arith.constant 1 : i32
    %271 = vector.broadcast %c1_i32_117 : i32 to vector<128x1xi32>
    %272 = arith.cmpi sge, %3, %271 : vector<128x1xi32>
    %cst_118 = arith.constant 0.000000e+00 : f32
    %273 = vector.shape_cast %272 : vector<128x1xi1> to vector<128x1xi1>
    %274 = vector.broadcast %273 : vector<128x1xi1> to vector<128x128xi1>
    %275 = vector.broadcast %cst_118 : f32 to vector<128x128xf32>
    %276 = arith.select %274, %270, %275 : vector<128x128xi1>, vector<128x128xf32>
    %277 = arith.maximumf %245, %276 : vector<128x128xf32>
    %c2_i32_119 = arith.constant 2 : i32
    %278 = tpu.dynamic_rotate %277 by %c2_i32_119 dim 0 : vector<128x128xf32>, i32 -> vector<128x128xf32>
    %c2_i32_120 = arith.constant 2 : i32
    %279 = vector.broadcast %c2_i32_120 : i32 to vector<128x1xi32>
    %280 = arith.cmpi sge, %3, %279 : vector<128x1xi32>
    %cst_121 = arith.constant 0.000000e+00 : f32
    %281 = vector.shape_cast %280 : vector<128x1xi1> to vector<128x1xi1>
    %282 = vector.broadcast %281 : vector<128x1xi1> to vector<128x128xi1>
    %283 = vector.broadcast %cst_121 : f32 to vector<128x128xf32>
    %284 = arith.select %282, %278, %283 : vector<128x128xi1>, vector<128x128xf32>
    %285 = arith.maximumf %277, %284 : vector<128x128xf32>
    %c4_i32_122 = arith.constant 4 : i32
    %286 = tpu.dynamic_rotate %285 by %c4_i32_122 dim 0 : vector<128x128xf32>, i32 -> vector<128x128xf32>
    %c4_i32_123 = arith.constant 4 : i32
    %287 = vector.broadcast %c4_i32_123 : i32 to vector<128x1xi32>
    %288 = arith.cmpi sge, %3, %287 : vector<128x1xi32>
    %cst_124 = arith.constant 0.000000e+00 : f32
    %289 = vector.shape_cast %288 : vector<128x1xi1> to vector<128x1xi1>
    %290 = vector.broadcast %289 : vector<128x1xi1> to vector<128x128xi1>
    %291 = vector.broadcast %cst_124 : f32 to vector<128x128xf32>
    %292 = arith.select %290, %286, %291 : vector<128x128xi1>, vector<128x128xf32>
    %293 = arith.maximumf %285, %292 : vector<128x128xf32>
    %294 = arith.maximumf %269, %293 : vector<128x128xf32>
    %c127_i32_125 = arith.constant 127 : i32
    %295 = tpu.dynamic_rotate %294 by %c127_i32_125 dim 1 : vector<128x128xf32>, i32 -> vector<128x128xf32>
    %c127_i32_126 = arith.constant 127 : i32
    %296 = vector.broadcast %c127_i32_126 : i32 to vector<1x128xi32>
    %297 = arith.cmpi slt, %4, %296 : vector<1x128xi32>
    %cst_127 = arith.constant 0.000000e+00 : f32
    %298 = vector.shape_cast %297 : vector<1x128xi1> to vector<1x128xi1>
    %299 = vector.broadcast %298 : vector<1x128xi1> to vector<128x128xi1>
    %300 = vector.broadcast %cst_127 : f32 to vector<128x128xf32>
    %301 = arith.select %299, %295, %300 : vector<128x128xi1>, vector<128x128xf32>
    %302 = arith.maximumf %294, %301 : vector<128x128xf32>
    %c126_i32_128 = arith.constant 126 : i32
    %303 = tpu.dynamic_rotate %302 by %c126_i32_128 dim 1 : vector<128x128xf32>, i32 -> vector<128x128xf32>
    %c126_i32_129 = arith.constant 126 : i32
    %304 = vector.broadcast %c126_i32_129 : i32 to vector<1x128xi32>
    %305 = arith.cmpi slt, %4, %304 : vector<1x128xi32>
    %cst_130 = arith.constant 0.000000e+00 : f32
    %306 = vector.shape_cast %305 : vector<1x128xi1> to vector<1x128xi1>
    %307 = vector.broadcast %306 : vector<1x128xi1> to vector<128x128xi1>
    %308 = vector.broadcast %cst_130 : f32 to vector<128x128xf32>
    %309 = arith.select %307, %303, %308 : vector<128x128xi1>, vector<128x128xf32>
    %310 = arith.maximumf %302, %309 : vector<128x128xf32>
    %c124_i32_131 = arith.constant 124 : i32
    %311 = tpu.dynamic_rotate %310 by %c124_i32_131 dim 1 : vector<128x128xf32>, i32 -> vector<128x128xf32>
    %c124_i32_132 = arith.constant 124 : i32
    %312 = vector.broadcast %c124_i32_132 : i32 to vector<1x128xi32>
    %313 = arith.cmpi slt, %4, %312 : vector<1x128xi32>
    %cst_133 = arith.constant 0.000000e+00 : f32
    %314 = vector.shape_cast %313 : vector<1x128xi1> to vector<1x128xi1>
    %315 = vector.broadcast %314 : vector<1x128xi1> to vector<128x128xi1>
    %316 = vector.broadcast %cst_133 : f32 to vector<128x128xf32>
    %317 = arith.select %315, %311, %316 : vector<128x128xi1>, vector<128x128xf32>
    %318 = arith.maximumf %310, %317 : vector<128x128xf32>
    %c1_i32_134 = arith.constant 1 : i32
    %319 = tpu.dynamic_rotate %294 by %c1_i32_134 dim 1 : vector<128x128xf32>, i32 -> vector<128x128xf32>
    %c1_i32_135 = arith.constant 1 : i32
    %320 = vector.broadcast %c1_i32_135 : i32 to vector<1x128xi32>
    %321 = arith.cmpi sge, %4, %320 : vector<1x128xi32>
    %cst_136 = arith.constant 0.000000e+00 : f32
    %322 = vector.shape_cast %321 : vector<1x128xi1> to vector<1x128xi1>
    %323 = vector.broadcast %322 : vector<1x128xi1> to vector<128x128xi1>
    %324 = vector.broadcast %cst_136 : f32 to vector<128x128xf32>
    %325 = arith.select %323, %319, %324 : vector<128x128xi1>, vector<128x128xf32>
    %326 = arith.maximumf %294, %325 : vector<128x128xf32>
    %c2_i32_137 = arith.constant 2 : i32
    %327 = tpu.dynamic_rotate %326 by %c2_i32_137 dim 1 : vector<128x128xf32>, i32 -> vector<128x128xf32>
    %c2_i32_138 = arith.constant 2 : i32
    %328 = vector.broadcast %c2_i32_138 : i32 to vector<1x128xi32>
    %329 = arith.cmpi sge, %4, %328 : vector<1x128xi32>
    %cst_139 = arith.constant 0.000000e+00 : f32
    %330 = vector.shape_cast %329 : vector<1x128xi1> to vector<1x128xi1>
    %331 = vector.broadcast %330 : vector<1x128xi1> to vector<128x128xi1>
    %332 = vector.broadcast %cst_139 : f32 to vector<128x128xf32>
    %333 = arith.select %331, %327, %332 : vector<128x128xi1>, vector<128x128xf32>
    %334 = arith.maximumf %326, %333 : vector<128x128xf32>
    %c4_i32_140 = arith.constant 4 : i32
    %335 = tpu.dynamic_rotate %334 by %c4_i32_140 dim 1 : vector<128x128xf32>, i32 -> vector<128x128xf32>
    %c4_i32_141 = arith.constant 4 : i32
    %336 = vector.broadcast %c4_i32_141 : i32 to vector<1x128xi32>
    %337 = arith.cmpi sge, %4, %336 : vector<1x128xi32>
    %cst_142 = arith.constant 0.000000e+00 : f32
    %338 = vector.shape_cast %337 : vector<1x128xi1> to vector<1x128xi1>
    %339 = vector.broadcast %338 : vector<1x128xi1> to vector<128x128xi1>
    %340 = vector.broadcast %cst_142 : f32 to vector<128x128xf32>
    %341 = arith.select %339, %335, %340 : vector<128x128xi1>, vector<128x128xf32>
    %342 = arith.maximumf %334, %341 : vector<128x128xf32>
    %343 = arith.maximumf %318, %342 : vector<128x128xf32>
    %344 = arith.truncf %343 : vector<128x128xf32> to vector<128x128xbf16>
    %c1_143 = arith.constant 1 : index
    %c0_144 = arith.constant 0 : index
    %c0_145 = arith.constant 0 : index
    %345 = vector.load %arg3[%c1_143, %c0_144, %c0_145] : memref<4x128x128xbf16, #tpu.memory_space<vmem>>, vector<1x128x128xbf16>
    %346 = vector.shape_cast %345 : vector<1x128x128xbf16> to vector<128x128xbf16>
    %347 = vector.shape_cast %344 : vector<128x128xbf16> to vector<1x128x128xbf16>
    tpu.vector_store %arg3[%c1_143, %c0_144, %c0_145], %347 {strides = array<i32>} : memref<4x128x128xbf16, #tpu.memory_space<vmem>>, vector<1x128x128xbf16>,
    %cst_146 = arith.constant dense<0xFF800000> : vector<128xf32>
    %348 = vector.multi_reduction <maximumf>, %343, %cst_146 [0] : vector<128x128xf32> to vector<128xf32>
    %349 = vector.shape_cast %348 : vector<128xf32> to vector<1x128xf32>
    %cst_147 = arith.constant 5.000000e-01 : f32
    %350 = vector.broadcast %cst_147 : f32 to vector<1x128xf32>
    %351 = arith.cmpf ogt, %349, %350 : vector<1x128xf32>
    %cst_148 = arith.constant dense<0xFF800000> : vector<128xf32>
    %352 = vector.multi_reduction <maximumf>, %343, %cst_148 [1] : vector<128x128xf32> to vector<128xf32>
    %353 = vector.shape_cast %352 : vector<128xf32> to vector<128x1xf32>
    %cst_149 = arith.constant 5.000000e-01 : f32
    %354 = vector.broadcast %cst_149 : f32 to vector<128x1xf32>
    %355 = arith.cmpf ogt, %353, %354 : vector<128x1xf32>
    %c1073741824_i32_150 = arith.constant 1073741824 : i32
    %356 = vector.broadcast %c1073741824_i32_150 : i32 to vector<1x128xi32>
    %357 = arith.select %351, %4, %356 : vector<1x128xi1>, vector<1x128xi32>
    %358 = vector.shape_cast %357 : vector<1x128xi32> to vector<1x1x128xi32>
    %cst_151 = arith.constant dense<2147483647> : vector<1xi32>
    %359 = vector.multi_reduction <minsi>, %358, %cst_151 [1, 2] : vector<1x1x128xi32> to vector<1xi32>
    %360 = vector.shape_cast %359 : vector<1xi32> to vector<1x1x1xi32>
    %361 = vector.extract %360[0, 0, 0] : i32 from vector<1x1x1xi32>
    %c-1_i32_152 = arith.constant -1 : i32
    %362 = vector.broadcast %c-1_i32_152 : i32 to vector<1x128xi32>
    %363 = arith.select %351, %4, %362 : vector<1x128xi1>, vector<1x128xi32>
    %364 = vector.shape_cast %363 : vector<1x128xi32> to vector<1x1x128xi32>
    %cst_153 = arith.constant dense<-2147483648> : vector<1xi32>
    %365 = vector.multi_reduction <maxsi>, %364, %cst_153 [1, 2] : vector<1x1x128xi32> to vector<1xi32>
    %366 = vector.shape_cast %365 : vector<1xi32> to vector<1x1x1xi32>
    %367 = vector.extract %366[0, 0, 0] : i32 from vector<1x1x1xi32>
    %c1073741824_i32_154 = arith.constant 1073741824 : i32
    %368 = vector.broadcast %c1073741824_i32_154 : i32 to vector<128x1xi32>
    %369 = arith.select %355, %3, %368 : vector<128x1xi1>, vector<128x1xi32>
    %370 = vector.shape_cast %369 : vector<128x1xi32> to vector<1x128x1xi32>
    %cst_155 = arith.constant dense<2147483647> : vector<1xi32>
    %371 = vector.multi_reduction <minsi>, %370, %cst_155 [1, 2] : vector<1x128x1xi32> to vector<1xi32>
    %372 = vector.shape_cast %371 : vector<1xi32> to vector<1x1x1xi32>
    %373 = vector.extract %372[0, 0, 0] : i32 from vector<1x1x1xi32>
    %c-1_i32_156 = arith.constant -1 : i32
    %374 = vector.broadcast %c-1_i32_156 : i32 to vector<128x1xi32>
    %375 = arith.select %355, %3, %374 : vector<128x1xi1>, vector<128x1xi32>
    %376 = vector.shape_cast %375 : vector<128x1xi32> to vector<1x128x1xi32>
    %cst_157 = arith.constant dense<-2147483648> : vector<1xi32>
    %377 = vector.multi_reduction <maxsi>, %376, %cst_157 [1, 2] : vector<1x128x1xi32> to vector<1xi32>
    %378 = vector.shape_cast %377 : vector<1xi32> to vector<1x1x1xi32>
    %379 = vector.extract %378[0, 0, 0] : i32 from vector<1x1x1xi32>
    %c0_i32_158 = arith.constant 0 : i32
    %380 = arith.cmpi sge, %367, %c0_i32_158 : i32
    %c4_i32_159 = arith.constant 4 : i32
    %381 = arith.muli %c4_i32_159, %205 : i32
    %c0_i32_160 = arith.constant 0 : i32
    %382 = arith.select %380, %361, %c0_i32_160 : i32
    %c0_i32_161 = arith.constant 0 : i32
    %383 = arith.addi %381, %c0_i32_161 : i32
    %384 = arith.index_cast %383 : i32 to index
    %385 = memref.load %arg4[%384] : memref<16xi32, #tpu.memory_space<smem>>
    memref.store %382, %arg4[%384] : memref<16xi32, #tpu.memory_space<smem>>
    %c0_i32_162 = arith.constant 0 : i32
    %386 = arith.select %380, %373, %c0_i32_162 : i32
    %c1_i32_163 = arith.constant 1 : i32
    %387 = arith.addi %381, %c1_i32_163 : i32
    %388 = arith.index_cast %387 : i32 to index
    %389 = memref.load %arg4[%388] : memref<16xi32, #tpu.memory_space<smem>>
    memref.store %386, %arg4[%388] : memref<16xi32, #tpu.memory_space<smem>>
    %390 = arith.subi %367, %361 : i32
    %c1_i32_164 = arith.constant 1 : i32
    %391 = arith.addi %390, %c1_i32_164 : i32
    %c0_i32_165 = arith.constant 0 : i32
    %392 = arith.select %380, %391, %c0_i32_165 : i32
    %c2_i32_166 = arith.constant 2 : i32
    %393 = arith.addi %381, %c2_i32_166 : i32
    %394 = arith.index_cast %393 : i32 to index
    %395 = memref.load %arg4[%394] : memref<16xi32, #tpu.memory_space<smem>>
    memref.store %392, %arg4[%394] : memref<16xi32, #tpu.memory_space<smem>>
    %396 = arith.subi %379, %373 : i32
    %c1_i32_167 = arith.constant 1 : i32
    %397 = arith.addi %396, %c1_i32_167 : i32
    %c0_i32_168 = arith.constant 0 : i32
    %398 = arith.select %380, %397, %c0_i32_168 : i32
    %c3_i32_169 = arith.constant 3 : i32
    %399 = arith.addi %381, %c3_i32_169 : i32
    %400 = arith.index_cast %399 : i32 to index
    %401 = memref.load %arg4[%400] : memref<16xi32, #tpu.memory_space<smem>>
    memref.store %398, %arg4[%400] : memref<16xi32, #tpu.memory_space<smem>>
    %c4_i32_170 = arith.constant 4 : i32
    %402 = arith.muli %arg0, %c4_i32_170 : i32
    %c2_i32_171 = arith.constant 2 : i32
    %403 = arith.addi %402, %c2_i32_171 : i32
    %cst_172 = arith.constant 2.000000e+00 : f32
    %404 = vector.broadcast %cst_172 : f32 to vector<128x128xf32>
    %405 = arith.mulf %404, %343 : vector<128x128xf32>
    %cst_173 = arith.constant 1.000000e+00 : f32
    %406 = vector.broadcast %cst_173 : f32 to vector<128x128xf32>
    %407 = arith.subf %406, %405 : vector<128x128xf32>
    %c2_174 = arith.constant 2 : index
    %c0_175 = arith.constant 0 : index
    %c0_176 = arith.constant 0 : index
    %c0_177 = arith.constant 0 : index
    %408 = vector.load %arg2[%c2_174, %c0_175, %c0_176, %c0_177] : memref<4x3x128x128xbf16, #tpu.memory_space<vmem>>, vector<1x1x128x128xbf16>
    %409 = vector.shape_cast %408 : vector<1x1x128x128xbf16> to vector<128x128xbf16>
    %410 = arith.extf %409 : vector<128x128xbf16> to vector<128x128xf32>
    %411 = arith.mulf %410, %407 : vector<128x128xf32>
    %412 = vector.shape_cast %411 : vector<128x128xf32> to vector<1x128x128xf32>
    %cst_178 = arith.constant dense<0.000000e+00> : vector<1xf32>
    %413 = vector.multi_reduction <add>, %412, %cst_178 [1, 2] : vector<1x128x128xf32> to vector<1xf32>
    %414 = vector.shape_cast %413 : vector<1xf32> to vector<1x1x1xf32>
    %415 = vector.extract %414[0, 0, 0] : f32 from vector<1x1x1xf32>
    %c2_179 = arith.constant 2 : index
    %c1_180 = arith.constant 1 : index
    %c0_181 = arith.constant 0 : index
    %c0_182 = arith.constant 0 : index
    %416 = vector.load %arg2[%c2_179, %c1_180, %c0_181, %c0_182] : memref<4x3x128x128xbf16, #tpu.memory_space<vmem>>, vector<1x1x128x128xbf16>
    %417 = vector.shape_cast %416 : vector<1x1x128x128xbf16> to vector<128x128xbf16>
    %418 = arith.extf %417 : vector<128x128xbf16> to vector<128x128xf32>
    %419 = arith.mulf %418, %407 : vector<128x128xf32>
    %420 = vector.shape_cast %419 : vector<128x128xf32> to vector<1x128x128xf32>
    %cst_183 = arith.constant dense<0.000000e+00> : vector<1xf32>
    %421 = vector.multi_reduction <add>, %420, %cst_183 [1, 2] : vector<1x128x128xf32> to vector<1xf32>
    %422 = vector.shape_cast %421 : vector<1xf32> to vector<1x1x1xf32>
    %423 = vector.extract %422[0, 0, 0] : f32 from vector<1x1x1xf32>
    %424 = arith.cmpf olt, %423, %415 : f32
    %c1_i32_184 = arith.constant 1 : i32
    %c0_i32_185 = arith.constant 0 : i32
    %425 = arith.select %424, %c1_i32_184, %c0_i32_185 : i32
    %426 = arith.select %424, %423, %415 : f32
    %c2_186 = arith.constant 2 : index
    %c2_187 = arith.constant 2 : index
    %c0_188 = arith.constant 0 : index
    %c0_189 = arith.constant 0 : index
    %427 = vector.load %arg2[%c2_186, %c2_187, %c0_188, %c0_189] : memref<4x3x128x128xbf16, #tpu.memory_space<vmem>>, vector<1x1x128x128xbf16>
    %428 = vector.shape_cast %427 : vector<1x1x128x128xbf16> to vector<128x128xbf16>
    %429 = arith.extf %428 : vector<128x128xbf16> to vector<128x128xf32>
    %430 = arith.mulf %429, %407 : vector<128x128xf32>
    %431 = vector.shape_cast %430 : vector<128x128xf32> to vector<1x128x128xf32>
    %cst_190 = arith.constant dense<0.000000e+00> : vector<1xf32>
    %432 = vector.multi_reduction <add>, %431, %cst_190 [1, 2] : vector<1x128x128xf32> to vector<1xf32>
    %433 = vector.shape_cast %432 : vector<1xf32> to vector<1x1x1xf32>
    %434 = vector.extract %433[0, 0, 0] : f32 from vector<1x1x1xf32>
    %435 = arith.cmpf olt, %434, %426 : f32
    %c2_i32_191 = arith.constant 2 : i32
    %436 = arith.select %435, %c2_i32_191, %425 : i32
    %c0_i32_192 = arith.constant 0 : i32
    %437 = arith.cmpi eq, %403, %c0_i32_192 : i32
    %c0_193 = arith.constant 0 : index
    %438 = memref.load %arg1[%c0_193] : memref<1xi32, #tpu.memory_space<smem>>
    %439 = arith.select %437, %438, %436 : i32
    %c2_194 = arith.constant 2 : index
    %440 = arith.index_cast %439 : i32 to index
    %c0_195 = arith.constant 0 : index
    %c0_196 = arith.constant 0 : index
    %441 = vector.load %arg2[%c2_194, %440, %c0_195, %c0_196] : memref<4x3x128x128xbf16, #tpu.memory_space<vmem>>, vector<1x1x128x128xbf16>
    %442 = vector.shape_cast %441 : vector<1x1x128x128xbf16> to vector<128x128xbf16>
    %443 = arith.extf %442 : vector<128x128xbf16> to vector<128x128xf32>
    %c127_i32_197 = arith.constant 127 : i32
    %444 = tpu.dynamic_rotate %443 by %c127_i32_197 dim 0 : vector<128x128xf32>, i32 -> vector<128x128xf32>
    %c127_i32_198 = arith.constant 127 : i32
    %445 = vector.broadcast %c127_i32_198 : i32 to vector<128x1xi32>
    %446 = arith.cmpi slt, %3, %445 : vector<128x1xi32>
    %cst_199 = arith.constant 0.000000e+00 : f32
    %447 = vector.shape_cast %446 : vector<128x1xi1> to vector<128x1xi1>
    %448 = vector.broadcast %447 : vector<128x1xi1> to vector<128x128xi1>
    %449 = vector.broadcast %cst_199 : f32 to vector<128x128xf32>
    %450 = arith.select %448, %444, %449 : vector<128x128xi1>, vector<128x128xf32>
    %451 = arith.maximumf %443, %450 : vector<128x128xf32>
    %c126_i32_200 = arith.constant 126 : i32
    %452 = tpu.dynamic_rotate %451 by %c126_i32_200 dim 0 : vector<128x128xf32>, i32 -> vector<128x128xf32>
    %c126_i32_201 = arith.constant 126 : i32
    %453 = vector.broadcast %c126_i32_201 : i32 to vector<128x1xi32>
    %454 = arith.cmpi slt, %3, %453 : vector<128x1xi32>
    %cst_202 = arith.constant 0.000000e+00 : f32
    %455 = vector.shape_cast %454 : vector<128x1xi1> to vector<128x1xi1>
    %456 = vector.broadcast %455 : vector<128x1xi1> to vector<128x128xi1>
    %457 = vector.broadcast %cst_202 : f32 to vector<128x128xf32>
    %458 = arith.select %456, %452, %457 : vector<128x128xi1>, vector<128x128xf32>
    %459 = arith.maximumf %451, %458 : vector<128x128xf32>
    %c124_i32_203 = arith.constant 124 : i32
    %460 = tpu.dynamic_rotate %459 by %c124_i32_203 dim 0 : vector<128x128xf32>, i32 -> vector<128x128xf32>
    %c124_i32_204 = arith.constant 124 : i32
    %461 = vector.broadcast %c124_i32_204 : i32 to vector<128x1xi32>
    %462 = arith.cmpi slt, %3, %461 : vector<128x1xi32>
    %cst_205 = arith.constant 0.000000e+00 : f32
    %463 = vector.shape_cast %462 : vector<128x1xi1> to vector<128x1xi1>
    %464 = vector.broadcast %463 : vector<128x1xi1> to vector<128x128xi1>
    %465 = vector.broadcast %cst_205 : f32 to vector<128x128xf32>
    %466 = arith.select %464, %460, %465 : vector<128x128xi1>, vector<128x128xf32>
    %467 = arith.maximumf %459, %466 : vector<128x128xf32>
    %c1_i32_206 = arith.constant 1 : i32
    %468 = tpu.dynamic_rotate %443 by %c1_i32_206 dim 0 : vector<128x128xf32>, i32 -> vector<128x128xf32>
    %c1_i32_207 = arith.constant 1 : i32
    %469 = vector.broadcast %c1_i32_207 : i32 to vector<128x1xi32>
    %470 = arith.cmpi sge, %3, %469 : vector<128x1xi32>
    %cst_208 = arith.constant 0.000000e+00 : f32
    %471 = vector.shape_cast %470 : vector<128x1xi1> to vector<128x1xi1>
    %472 = vector.broadcast %471 : vector<128x1xi1> to vector<128x128xi1>
    %473 = vector.broadcast %cst_208 : f32 to vector<128x128xf32>
    %474 = arith.select %472, %468, %473 : vector<128x128xi1>, vector<128x128xf32>
    %475 = arith.maximumf %443, %474 : vector<128x128xf32>
    %c2_i32_209 = arith.constant 2 : i32
    %476 = tpu.dynamic_rotate %475 by %c2_i32_209 dim 0 : vector<128x128xf32>, i32 -> vector<128x128xf32>
    %c2_i32_210 = arith.constant 2 : i32
    %477 = vector.broadcast %c2_i32_210 : i32 to vector<128x1xi32>
    %478 = arith.cmpi sge, %3, %477 : vector<128x1xi32>
    %cst_211 = arith.constant 0.000000e+00 : f32
    %479 = vector.shape_cast %478 : vector<128x1xi1> to vector<128x1xi1>
    %480 = vector.broadcast %479 : vector<128x1xi1> to vector<128x128xi1>
    %481 = vector.broadcast %cst_211 : f32 to vector<128x128xf32>
    %482 = arith.select %480, %476, %481 : vector<128x128xi1>, vector<128x128xf32>
    %483 = arith.maximumf %475, %482 : vector<128x128xf32>
    %c4_i32_212 = arith.constant 4 : i32
    %484 = tpu.dynamic_rotate %483 by %c4_i32_212 dim 0 : vector<128x128xf32>, i32 -> vector<128x128xf32>
    %c4_i32_213 = arith.constant 4 : i32
    %485 = vector.broadcast %c4_i32_213 : i32 to vector<128x1xi32>
    %486 = arith.cmpi sge, %3, %485 : vector<128x1xi32>
    %cst_214 = arith.constant 0.000000e+00 : f32
    %487 = vector.shape_cast %486 : vector<128x1xi1> to vector<128x1xi1>
    %488 = vector.broadcast %487 : vector<128x1xi1> to vector<128x128xi1>
    %489 = vector.broadcast %cst_214 : f32 to vector<128x128xf32>
    %490 = arith.select %488, %484, %489 : vector<128x128xi1>, vector<128x128xf32>
    %491 = arith.maximumf %483, %490 : vector<128x128xf32>
    %492 = arith.maximumf %467, %491 : vector<128x128xf32>
    %c127_i32_215 = arith.constant 127 : i32
    %493 = tpu.dynamic_rotate %492 by %c127_i32_215 dim 1 : vector<128x128xf32>, i32 -> vector<128x128xf32>
    %c127_i32_216 = arith.constant 127 : i32
    %494 = vector.broadcast %c127_i32_216 : i32 to vector<1x128xi32>
    %495 = arith.cmpi slt, %4, %494 : vector<1x128xi32>
    %cst_217 = arith.constant 0.000000e+00 : f32
    %496 = vector.shape_cast %495 : vector<1x128xi1> to vector<1x128xi1>
    %497 = vector.broadcast %496 : vector<1x128xi1> to vector<128x128xi1>
    %498 = vector.broadcast %cst_217 : f32 to vector<128x128xf32>
    %499 = arith.select %497, %493, %498 : vector<128x128xi1>, vector<128x128xf32>
    %500 = arith.maximumf %492, %499 : vector<128x128xf32>
    %c126_i32_218 = arith.constant 126 : i32
    %501 = tpu.dynamic_rotate %500 by %c126_i32_218 dim 1 : vector<128x128xf32>, i32 -> vector<128x128xf32>
    %c126_i32_219 = arith.constant 126 : i32
    %502 = vector.broadcast %c126_i32_219 : i32 to vector<1x128xi32>
    %503 = arith.cmpi slt, %4, %502 : vector<1x128xi32>
    %cst_220 = arith.constant 0.000000e+00 : f32
    %504 = vector.shape_cast %503 : vector<1x128xi1> to vector<1x128xi1>
    %505 = vector.broadcast %504 : vector<1x128xi1> to vector<128x128xi1>
    %506 = vector.broadcast %cst_220 : f32 to vector<128x128xf32>
    %507 = arith.select %505, %501, %506 : vector<128x128xi1>, vector<128x128xf32>
    %508 = arith.maximumf %500, %507 : vector<128x128xf32>
    %c124_i32_221 = arith.constant 124 : i32
    %509 = tpu.dynamic_rotate %508 by %c124_i32_221 dim 1 : vector<128x128xf32>, i32 -> vector<128x128xf32>
    %c124_i32_222 = arith.constant 124 : i32
    %510 = vector.broadcast %c124_i32_222 : i32 to vector<1x128xi32>
    %511 = arith.cmpi slt, %4, %510 : vector<1x128xi32>
    %cst_223 = arith.constant 0.000000e+00 : f32
    %512 = vector.shape_cast %511 : vector<1x128xi1> to vector<1x128xi1>
    %513 = vector.broadcast %512 : vector<1x128xi1> to vector<128x128xi1>
    %514 = vector.broadcast %cst_223 : f32 to vector<128x128xf32>
    %515 = arith.select %513, %509, %514 : vector<128x128xi1>, vector<128x128xf32>
    %516 = arith.maximumf %508, %515 : vector<128x128xf32>
    %c1_i32_224 = arith.constant 1 : i32
    %517 = tpu.dynamic_rotate %492 by %c1_i32_224 dim 1 : vector<128x128xf32>, i32 -> vector<128x128xf32>
    %c1_i32_225 = arith.constant 1 : i32
    %518 = vector.broadcast %c1_i32_225 : i32 to vector<1x128xi32>
    %519 = arith.cmpi sge, %4, %518 : vector<1x128xi32>
    %cst_226 = arith.constant 0.000000e+00 : f32
    %520 = vector.shape_cast %519 : vector<1x128xi1> to vector<1x128xi1>
    %521 = vector.broadcast %520 : vector<1x128xi1> to vector<128x128xi1>
    %522 = vector.broadcast %cst_226 : f32 to vector<128x128xf32>
    %523 = arith.select %521, %517, %522 : vector<128x128xi1>, vector<128x128xf32>
    %524 = arith.maximumf %492, %523 : vector<128x128xf32>
    %c2_i32_227 = arith.constant 2 : i32
    %525 = tpu.dynamic_rotate %524 by %c2_i32_227 dim 1 : vector<128x128xf32>, i32 -> vector<128x128xf32>
    %c2_i32_228 = arith.constant 2 : i32
    %526 = vector.broadcast %c2_i32_228 : i32 to vector<1x128xi32>
    %527 = arith.cmpi sge, %4, %526 : vector<1x128xi32>
    %cst_229 = arith.constant 0.000000e+00 : f32
    %528 = vector.shape_cast %527 : vector<1x128xi1> to vector<1x128xi1>
    %529 = vector.broadcast %528 : vector<1x128xi1> to vector<128x128xi1>
    %530 = vector.broadcast %cst_229 : f32 to vector<128x128xf32>
    %531 = arith.select %529, %525, %530 : vector<128x128xi1>, vector<128x128xf32>
    %532 = arith.maximumf %524, %531 : vector<128x128xf32>
    %c4_i32_230 = arith.constant 4 : i32
    %533 = tpu.dynamic_rotate %532 by %c4_i32_230 dim 1 : vector<128x128xf32>, i32 -> vector<128x128xf32>
    %c4_i32_231 = arith.constant 4 : i32
    %534 = vector.broadcast %c4_i32_231 : i32 to vector<1x128xi32>
    %535 = arith.cmpi sge, %4, %534 : vector<1x128xi32>
    %cst_232 = arith.constant 0.000000e+00 : f32
    %536 = vector.shape_cast %535 : vector<1x128xi1> to vector<1x128xi1>
    %537 = vector.broadcast %536 : vector<1x128xi1> to vector<128x128xi1>
    %538 = vector.broadcast %cst_232 : f32 to vector<128x128xf32>
    %539 = arith.select %537, %533, %538 : vector<128x128xi1>, vector<128x128xf32>
    %540 = arith.maximumf %532, %539 : vector<128x128xf32>
    %541 = arith.maximumf %516, %540 : vector<128x128xf32>
    %542 = arith.truncf %541 : vector<128x128xf32> to vector<128x128xbf16>
    %c2_233 = arith.constant 2 : index
    %c0_234 = arith.constant 0 : index
    %c0_235 = arith.constant 0 : index
    %543 = vector.load %arg3[%c2_233, %c0_234, %c0_235] : memref<4x128x128xbf16, #tpu.memory_space<vmem>>, vector<1x128x128xbf16>
    %544 = vector.shape_cast %543 : vector<1x128x128xbf16> to vector<128x128xbf16>
    %545 = vector.shape_cast %542 : vector<128x128xbf16> to vector<1x128x128xbf16>
    tpu.vector_store %arg3[%c2_233, %c0_234, %c0_235], %545 {strides = array<i32>} : memref<4x128x128xbf16, #tpu.memory_space<vmem>>, vector<1x128x128xbf16>,
    %cst_236 = arith.constant dense<0xFF800000> : vector<128xf32>
    %546 = vector.multi_reduction <maximumf>, %541, %cst_236 [0] : vector<128x128xf32> to vector<128xf32>
    %547 = vector.shape_cast %546 : vector<128xf32> to vector<1x128xf32>
    %cst_237 = arith.constant 5.000000e-01 : f32
    %548 = vector.broadcast %cst_237 : f32 to vector<1x128xf32>
    %549 = arith.cmpf ogt, %547, %548 : vector<1x128xf32>
    %cst_238 = arith.constant dense<0xFF800000> : vector<128xf32>
    %550 = vector.multi_reduction <maximumf>, %541, %cst_238 [1] : vector<128x128xf32> to vector<128xf32>
    %551 = vector.shape_cast %550 : vector<128xf32> to vector<128x1xf32>
    %cst_239 = arith.constant 5.000000e-01 : f32
    %552 = vector.broadcast %cst_239 : f32 to vector<128x1xf32>
    %553 = arith.cmpf ogt, %551, %552 : vector<128x1xf32>
    %c1073741824_i32_240 = arith.constant 1073741824 : i32
    %554 = vector.broadcast %c1073741824_i32_240 : i32 to vector<1x128xi32>
    %555 = arith.select %549, %4, %554 : vector<1x128xi1>, vector<1x128xi32>
    %556 = vector.shape_cast %555 : vector<1x128xi32> to vector<1x1x128xi32>
    %cst_241 = arith.constant dense<2147483647> : vector<1xi32>
    %557 = vector.multi_reduction <minsi>, %556, %cst_241 [1, 2] : vector<1x1x128xi32> to vector<1xi32>
    %558 = vector.shape_cast %557 : vector<1xi32> to vector<1x1x1xi32>
    %559 = vector.extract %558[0, 0, 0] : i32 from vector<1x1x1xi32>
    %c-1_i32_242 = arith.constant -1 : i32
    %560 = vector.broadcast %c-1_i32_242 : i32 to vector<1x128xi32>
    %561 = arith.select %549, %4, %560 : vector<1x128xi1>, vector<1x128xi32>
    %562 = vector.shape_cast %561 : vector<1x128xi32> to vector<1x1x128xi32>
    %cst_243 = arith.constant dense<-2147483648> : vector<1xi32>
    %563 = vector.multi_reduction <maxsi>, %562, %cst_243 [1, 2] : vector<1x1x128xi32> to vector<1xi32>
    %564 = vector.shape_cast %563 : vector<1xi32> to vector<1x1x1xi32>
    %565 = vector.extract %564[0, 0, 0] : i32 from vector<1x1x1xi32>
    %c1073741824_i32_244 = arith.constant 1073741824 : i32
    %566 = vector.broadcast %c1073741824_i32_244 : i32 to vector<128x1xi32>
    %567 = arith.select %553, %3, %566 : vector<128x1xi1>, vector<128x1xi32>
    %568 = vector.shape_cast %567 : vector<128x1xi32> to vector<1x128x1xi32>
    %cst_245 = arith.constant dense<2147483647> : vector<1xi32>
    %569 = vector.multi_reduction <minsi>, %568, %cst_245 [1, 2] : vector<1x128x1xi32> to vector<1xi32>
    %570 = vector.shape_cast %569 : vector<1xi32> to vector<1x1x1xi32>
    %571 = vector.extract %570[0, 0, 0] : i32 from vector<1x1x1xi32>
    %c-1_i32_246 = arith.constant -1 : i32
    %572 = vector.broadcast %c-1_i32_246 : i32 to vector<128x1xi32>
    %573 = arith.select %553, %3, %572 : vector<128x1xi1>, vector<128x1xi32>
    %574 = vector.shape_cast %573 : vector<128x1xi32> to vector<1x128x1xi32>
    %cst_247 = arith.constant dense<-2147483648> : vector<1xi32>
    %575 = vector.multi_reduction <maxsi>, %574, %cst_247 [1, 2] : vector<1x128x1xi32> to vector<1xi32>
    %576 = vector.shape_cast %575 : vector<1xi32> to vector<1x1x1xi32>
    %577 = vector.extract %576[0, 0, 0] : i32 from vector<1x1x1xi32>
    %c0_i32_248 = arith.constant 0 : i32
    %578 = arith.cmpi sge, %565, %c0_i32_248 : i32
    %c4_i32_249 = arith.constant 4 : i32
    %579 = arith.muli %c4_i32_249, %403 : i32
    %c0_i32_250 = arith.constant 0 : i32
    %580 = arith.select %578, %559, %c0_i32_250 : i32
    %c0_i32_251 = arith.constant 0 : i32
    %581 = arith.addi %579, %c0_i32_251 : i32
    %582 = arith.index_cast %581 : i32 to index
    %583 = memref.load %arg4[%582] : memref<16xi32, #tpu.memory_space<smem>>
    memref.store %580, %arg4[%582] : memref<16xi32, #tpu.memory_space<smem>>
    %c0_i32_252 = arith.constant 0 : i32
    %584 = arith.select %578, %571, %c0_i32_252 : i32
    %c1_i32_253 = arith.constant 1 : i32
    %585 = arith.addi %579, %c1_i32_253 : i32
    %586 = arith.index_cast %585 : i32 to index
    %587 = memref.load %arg4[%586] : memref<16xi32, #tpu.memory_space<smem>>
    memref.store %584, %arg4[%586] : memref<16xi32, #tpu.memory_space<smem>>
    %588 = arith.subi %565, %559 : i32
    %c1_i32_254 = arith.constant 1 : i32
    %589 = arith.addi %588, %c1_i32_254 : i32
    %c0_i32_255 = arith.constant 0 : i32
    %590 = arith.select %578, %589, %c0_i32_255 : i32
    %c2_i32_256 = arith.constant 2 : i32
    %591 = arith.addi %579, %c2_i32_256 : i32
    %592 = arith.index_cast %591 : i32 to index
    %593 = memref.load %arg4[%592] : memref<16xi32, #tpu.memory_space<smem>>
    memref.store %590, %arg4[%592] : memref<16xi32, #tpu.memory_space<smem>>
    %594 = arith.subi %577, %571 : i32
    %c1_i32_257 = arith.constant 1 : i32
    %595 = arith.addi %594, %c1_i32_257 : i32
    %c0_i32_258 = arith.constant 0 : i32
    %596 = arith.select %578, %595, %c0_i32_258 : i32
    %c3_i32_259 = arith.constant 3 : i32
    %597 = arith.addi %579, %c3_i32_259 : i32
    %598 = arith.index_cast %597 : i32 to index
    %599 = memref.load %arg4[%598] : memref<16xi32, #tpu.memory_space<smem>>
    memref.store %596, %arg4[%598] : memref<16xi32, #tpu.memory_space<smem>>
    %c4_i32_260 = arith.constant 4 : i32
    %600 = arith.muli %arg0, %c4_i32_260 : i32
    %c3_i32_261 = arith.constant 3 : i32
    %601 = arith.addi %600, %c3_i32_261 : i32
    %cst_262 = arith.constant 2.000000e+00 : f32
    %602 = vector.broadcast %cst_262 : f32 to vector<128x128xf32>
    %603 = arith.mulf %602, %541 : vector<128x128xf32>
    %cst_263 = arith.constant 1.000000e+00 : f32
    %604 = vector.broadcast %cst_263 : f32 to vector<128x128xf32>
    %605 = arith.subf %604, %603 : vector<128x128xf32>
    %c3 = arith.constant 3 : index
    %c0_264 = arith.constant 0 : index
    %c0_265 = arith.constant 0 : index
    %c0_266 = arith.constant 0 : index
    %606 = vector.load %arg2[%c3, %c0_264, %c0_265, %c0_266] : memref<4x3x128x128xbf16, #tpu.memory_space<vmem>>, vector<1x1x128x128xbf16>
    %607 = vector.shape_cast %606 : vector<1x1x128x128xbf16> to vector<128x128xbf16>
    %608 = arith.extf %607 : vector<128x128xbf16> to vector<128x128xf32>
    %609 = arith.mulf %608, %605 : vector<128x128xf32>
    %610 = vector.shape_cast %609 : vector<128x128xf32> to vector<1x128x128xf32>
    %cst_267 = arith.constant dense<0.000000e+00> : vector<1xf32>
    %611 = vector.multi_reduction <add>, %610, %cst_267 [1, 2] : vector<1x128x128xf32> to vector<1xf32>
    %612 = vector.shape_cast %611 : vector<1xf32> to vector<1x1x1xf32>
    %613 = vector.extract %612[0, 0, 0] : f32 from vector<1x1x1xf32>
    %c3_268 = arith.constant 3 : index
    %c1_269 = arith.constant 1 : index
    %c0_270 = arith.constant 0 : index
    %c0_271 = arith.constant 0 : index
    %614 = vector.load %arg2[%c3_268, %c1_269, %c0_270, %c0_271] : memref<4x3x128x128xbf16, #tpu.memory_space<vmem>>, vector<1x1x128x128xbf16>
    %615 = vector.shape_cast %614 : vector<1x1x128x128xbf16> to vector<128x128xbf16>
    %616 = arith.extf %615 : vector<128x128xbf16> to vector<128x128xf32>
    %617 = arith.mulf %616, %605 : vector<128x128xf32>
    %618 = vector.shape_cast %617 : vector<128x128xf32> to vector<1x128x128xf32>
    %cst_272 = arith.constant dense<0.000000e+00> : vector<1xf32>
    %619 = vector.multi_reduction <add>, %618, %cst_272 [1, 2] : vector<1x128x128xf32> to vector<1xf32>
    %620 = vector.shape_cast %619 : vector<1xf32> to vector<1x1x1xf32>
    %621 = vector.extract %620[0, 0, 0] : f32 from vector<1x1x1xf32>
    %622 = arith.cmpf olt, %621, %613 : f32
    %c1_i32_273 = arith.constant 1 : i32
    %c0_i32_274 = arith.constant 0 : i32
    %623 = arith.select %622, %c1_i32_273, %c0_i32_274 : i32
    %624 = arith.select %622, %621, %613 : f32
    %c3_275 = arith.constant 3 : index
    %c2_276 = arith.constant 2 : index
    %c0_277 = arith.constant 0 : index
    %c0_278 = arith.constant 0 : index
    %625 = vector.load %arg2[%c3_275, %c2_276, %c0_277, %c0_278] : memref<4x3x128x128xbf16, #tpu.memory_space<vmem>>, vector<1x1x128x128xbf16>
    %626 = vector.shape_cast %625 : vector<1x1x128x128xbf16> to vector<128x128xbf16>
    %627 = arith.extf %626 : vector<128x128xbf16> to vector<128x128xf32>
    %628 = arith.mulf %627, %605 : vector<128x128xf32>
    %629 = vector.shape_cast %628 : vector<128x128xf32> to vector<1x128x128xf32>
    %cst_279 = arith.constant dense<0.000000e+00> : vector<1xf32>
    %630 = vector.multi_reduction <add>, %629, %cst_279 [1, 2] : vector<1x128x128xf32> to vector<1xf32>
    %631 = vector.shape_cast %630 : vector<1xf32> to vector<1x1x1xf32>
    %632 = vector.extract %631[0, 0, 0] : f32 from vector<1x1x1xf32>
    %633 = arith.cmpf olt, %632, %624 : f32
    %c2_i32_280 = arith.constant 2 : i32
    %634 = arith.select %633, %c2_i32_280, %623 : i32
    %c0_i32_281 = arith.constant 0 : i32
    %635 = arith.cmpi eq, %601, %c0_i32_281 : i32
    %c0_282 = arith.constant 0 : index
    %636 = memref.load %arg1[%c0_282] : memref<1xi32, #tpu.memory_space<smem>>
    %637 = arith.select %635, %636, %634 : i32
    %c3_283 = arith.constant 3 : index
    %638 = arith.index_cast %637 : i32 to index
    %c0_284 = arith.constant 0 : index
    %c0_285 = arith.constant 0 : index
    %639 = vector.load %arg2[%c3_283, %638, %c0_284, %c0_285] : memref<4x3x128x128xbf16, #tpu.memory_space<vmem>>, vector<1x1x128x128xbf16>
    %640 = vector.shape_cast %639 : vector<1x1x128x128xbf16> to vector<128x128xbf16>
    %641 = arith.extf %640 : vector<128x128xbf16> to vector<128x128xf32>
    %c127_i32_286 = arith.constant 127 : i32
    %642 = tpu.dynamic_rotate %641 by %c127_i32_286 dim 0 : vector<128x128xf32>, i32 -> vector<128x128xf32>
    %c127_i32_287 = arith.constant 127 : i32
    %643 = vector.broadcast %c127_i32_287 : i32 to vector<128x1xi32>
    %644 = arith.cmpi slt, %3, %643 : vector<128x1xi32>
    %cst_288 = arith.constant 0.000000e+00 : f32
    %645 = vector.shape_cast %644 : vector<128x1xi1> to vector<128x1xi1>
    %646 = vector.broadcast %645 : vector<128x1xi1> to vector<128x128xi1>
    %647 = vector.broadcast %cst_288 : f32 to vector<128x128xf32>
    %648 = arith.select %646, %642, %647 : vector<128x128xi1>, vector<128x128xf32>
    %649 = arith.maximumf %641, %648 : vector<128x128xf32>
    %c126_i32_289 = arith.constant 126 : i32
    %650 = tpu.dynamic_rotate %649 by %c126_i32_289 dim 0 : vector<128x128xf32>, i32 -> vector<128x128xf32>
    %c126_i32_290 = arith.constant 126 : i32
    %651 = vector.broadcast %c126_i32_290 : i32 to vector<128x1xi32>
    %652 = arith.cmpi slt, %3, %651 : vector<128x1xi32>
    %cst_291 = arith.constant 0.000000e+00 : f32
    %653 = vector.shape_cast %652 : vector<128x1xi1> to vector<128x1xi1>
    %654 = vector.broadcast %653 : vector<128x1xi1> to vector<128x128xi1>
    %655 = vector.broadcast %cst_291 : f32 to vector<128x128xf32>
    %656 = arith.select %654, %650, %655 : vector<128x128xi1>, vector<128x128xf32>
    %657 = arith.maximumf %649, %656 : vector<128x128xf32>
    %c124_i32_292 = arith.constant 124 : i32
    %658 = tpu.dynamic_rotate %657 by %c124_i32_292 dim 0 : vector<128x128xf32>, i32 -> vector<128x128xf32>
    %c124_i32_293 = arith.constant 124 : i32
    %659 = vector.broadcast %c124_i32_293 : i32 to vector<128x1xi32>
    %660 = arith.cmpi slt, %3, %659 : vector<128x1xi32>
    %cst_294 = arith.constant 0.000000e+00 : f32
    %661 = vector.shape_cast %660 : vector<128x1xi1> to vector<128x1xi1>
    %662 = vector.broadcast %661 : vector<128x1xi1> to vector<128x128xi1>
    %663 = vector.broadcast %cst_294 : f32 to vector<128x128xf32>
    %664 = arith.select %662, %658, %663 : vector<128x128xi1>, vector<128x128xf32>
    %665 = arith.maximumf %657, %664 : vector<128x128xf32>
    %c1_i32_295 = arith.constant 1 : i32
    %666 = tpu.dynamic_rotate %641 by %c1_i32_295 dim 0 : vector<128x128xf32>, i32 -> vector<128x128xf32>
    %c1_i32_296 = arith.constant 1 : i32
    %667 = vector.broadcast %c1_i32_296 : i32 to vector<128x1xi32>
    %668 = arith.cmpi sge, %3, %667 : vector<128x1xi32>
    %cst_297 = arith.constant 0.000000e+00 : f32
    %669 = vector.shape_cast %668 : vector<128x1xi1> to vector<128x1xi1>
    %670 = vector.broadcast %669 : vector<128x1xi1> to vector<128x128xi1>
    %671 = vector.broadcast %cst_297 : f32 to vector<128x128xf32>
    %672 = arith.select %670, %666, %671 : vector<128x128xi1>, vector<128x128xf32>
    %673 = arith.maximumf %641, %672 : vector<128x128xf32>
    %c2_i32_298 = arith.constant 2 : i32
    %674 = tpu.dynamic_rotate %673 by %c2_i32_298 dim 0 : vector<128x128xf32>, i32 -> vector<128x128xf32>
    %c2_i32_299 = arith.constant 2 : i32
    %675 = vector.broadcast %c2_i32_299 : i32 to vector<128x1xi32>
    %676 = arith.cmpi sge, %3, %675 : vector<128x1xi32>
    %cst_300 = arith.constant 0.000000e+00 : f32
    %677 = vector.shape_cast %676 : vector<128x1xi1> to vector<128x1xi1>
    %678 = vector.broadcast %677 : vector<128x1xi1> to vector<128x128xi1>
    %679 = vector.broadcast %cst_300 : f32 to vector<128x128xf32>
    %680 = arith.select %678, %674, %679 : vector<128x128xi1>, vector<128x128xf32>
    %681 = arith.maximumf %673, %680 : vector<128x128xf32>
    %c4_i32_301 = arith.constant 4 : i32
    %682 = tpu.dynamic_rotate %681 by %c4_i32_301 dim 0 : vector<128x128xf32>, i32 -> vector<128x128xf32>
    %c4_i32_302 = arith.constant 4 : i32
    %683 = vector.broadcast %c4_i32_302 : i32 to vector<128x1xi32>
    %684 = arith.cmpi sge, %3, %683 : vector<128x1xi32>
    %cst_303 = arith.constant 0.000000e+00 : f32
    %685 = vector.shape_cast %684 : vector<128x1xi1> to vector<128x1xi1>
    %686 = vector.broadcast %685 : vector<128x1xi1> to vector<128x128xi1>
    %687 = vector.broadcast %cst_303 : f32 to vector<128x128xf32>
    %688 = arith.select %686, %682, %687 : vector<128x128xi1>, vector<128x128xf32>
    %689 = arith.maximumf %681, %688 : vector<128x128xf32>
    %690 = arith.maximumf %665, %689 : vector<128x128xf32>
    %c127_i32_304 = arith.constant 127 : i32
    %691 = tpu.dynamic_rotate %690 by %c127_i32_304 dim 1 : vector<128x128xf32>, i32 -> vector<128x128xf32>
    %c127_i32_305 = arith.constant 127 : i32
    %692 = vector.broadcast %c127_i32_305 : i32 to vector<1x128xi32>
    %693 = arith.cmpi slt, %4, %692 : vector<1x128xi32>
    %cst_306 = arith.constant 0.000000e+00 : f32
    %694 = vector.shape_cast %693 : vector<1x128xi1> to vector<1x128xi1>
    %695 = vector.broadcast %694 : vector<1x128xi1> to vector<128x128xi1>
    %696 = vector.broadcast %cst_306 : f32 to vector<128x128xf32>
    %697 = arith.select %695, %691, %696 : vector<128x128xi1>, vector<128x128xf32>
    %698 = arith.maximumf %690, %697 : vector<128x128xf32>
    %c126_i32_307 = arith.constant 126 : i32
    %699 = tpu.dynamic_rotate %698 by %c126_i32_307 dim 1 : vector<128x128xf32>, i32 -> vector<128x128xf32>
    %c126_i32_308 = arith.constant 126 : i32
    %700 = vector.broadcast %c126_i32_308 : i32 to vector<1x128xi32>
    %701 = arith.cmpi slt, %4, %700 : vector<1x128xi32>
    %cst_309 = arith.constant 0.000000e+00 : f32
    %702 = vector.shape_cast %701 : vector<1x128xi1> to vector<1x128xi1>
    %703 = vector.broadcast %702 : vector<1x128xi1> to vector<128x128xi1>
    %704 = vector.broadcast %cst_309 : f32 to vector<128x128xf32>
    %705 = arith.select %703, %699, %704 : vector<128x128xi1>, vector<128x128xf32>
    %706 = arith.maximumf %698, %705 : vector<128x128xf32>
    %c124_i32_310 = arith.constant 124 : i32
    %707 = tpu.dynamic_rotate %706 by %c124_i32_310 dim 1 : vector<128x128xf32>, i32 -> vector<128x128xf32>
    %c124_i32_311 = arith.constant 124 : i32
    %708 = vector.broadcast %c124_i32_311 : i32 to vector<1x128xi32>
    %709 = arith.cmpi slt, %4, %708 : vector<1x128xi32>
    %cst_312 = arith.constant 0.000000e+00 : f32
    %710 = vector.shape_cast %709 : vector<1x128xi1> to vector<1x128xi1>
    %711 = vector.broadcast %710 : vector<1x128xi1> to vector<128x128xi1>
    %712 = vector.broadcast %cst_312 : f32 to vector<128x128xf32>
    %713 = arith.select %711, %707, %712 : vector<128x128xi1>, vector<128x128xf32>
    %714 = arith.maximumf %706, %713 : vector<128x128xf32>
    %c1_i32_313 = arith.constant 1 : i32
    %715 = tpu.dynamic_rotate %690 by %c1_i32_313 dim 1 : vector<128x128xf32>, i32 -> vector<128x128xf32>
    %c1_i32_314 = arith.constant 1 : i32
    %716 = vector.broadcast %c1_i32_314 : i32 to vector<1x128xi32>
    %717 = arith.cmpi sge, %4, %716 : vector<1x128xi32>
    %cst_315 = arith.constant 0.000000e+00 : f32
    %718 = vector.shape_cast %717 : vector<1x128xi1> to vector<1x128xi1>
    %719 = vector.broadcast %718 : vector<1x128xi1> to vector<128x128xi1>
    %720 = vector.broadcast %cst_315 : f32 to vector<128x128xf32>
    %721 = arith.select %719, %715, %720 : vector<128x128xi1>, vector<128x128xf32>
    %722 = arith.maximumf %690, %721 : vector<128x128xf32>
    %c2_i32_316 = arith.constant 2 : i32
    %723 = tpu.dynamic_rotate %722 by %c2_i32_316 dim 1 : vector<128x128xf32>, i32 -> vector<128x128xf32>
    %c2_i32_317 = arith.constant 2 : i32
    %724 = vector.broadcast %c2_i32_317 : i32 to vector<1x128xi32>
    %725 = arith.cmpi sge, %4, %724 : vector<1x128xi32>
    %cst_318 = arith.constant 0.000000e+00 : f32
    %726 = vector.shape_cast %725 : vector<1x128xi1> to vector<1x128xi1>
    %727 = vector.broadcast %726 : vector<1x128xi1> to vector<128x128xi1>
    %728 = vector.broadcast %cst_318 : f32 to vector<128x128xf32>
    %729 = arith.select %727, %723, %728 : vector<128x128xi1>, vector<128x128xf32>
    %730 = arith.maximumf %722, %729 : vector<128x128xf32>
    %c4_i32_319 = arith.constant 4 : i32
    %731 = tpu.dynamic_rotate %730 by %c4_i32_319 dim 1 : vector<128x128xf32>, i32 -> vector<128x128xf32>
    %c4_i32_320 = arith.constant 4 : i32
    %732 = vector.broadcast %c4_i32_320 : i32 to vector<1x128xi32>
    %733 = arith.cmpi sge, %4, %732 : vector<1x128xi32>
    %cst_321 = arith.constant 0.000000e+00 : f32
    %734 = vector.shape_cast %733 : vector<1x128xi1> to vector<1x128xi1>
    %735 = vector.broadcast %734 : vector<1x128xi1> to vector<128x128xi1>
    %736 = vector.broadcast %cst_321 : f32 to vector<128x128xf32>
    %737 = arith.select %735, %731, %736 : vector<128x128xi1>, vector<128x128xf32>
    %738 = arith.maximumf %730, %737 : vector<128x128xf32>
    %739 = arith.maximumf %714, %738 : vector<128x128xf32>
    %740 = arith.truncf %739 : vector<128x128xf32> to vector<128x128xbf16>
    %c3_322 = arith.constant 3 : index
    %c0_323 = arith.constant 0 : index
    %c0_324 = arith.constant 0 : index
    %741 = vector.load %arg3[%c3_322, %c0_323, %c0_324] : memref<4x128x128xbf16, #tpu.memory_space<vmem>>, vector<1x128x128xbf16>
    %742 = vector.shape_cast %741 : vector<1x128x128xbf16> to vector<128x128xbf16>
    %743 = vector.shape_cast %740 : vector<128x128xbf16> to vector<1x128x128xbf16>
    tpu.vector_store %arg3[%c3_322, %c0_323, %c0_324], %743 {strides = array<i32>} : memref<4x128x128xbf16, #tpu.memory_space<vmem>>, vector<1x128x128xbf16>,
    %cst_325 = arith.constant dense<0xFF800000> : vector<128xf32>
    %744 = vector.multi_reduction <maximumf>, %739, %cst_325 [0] : vector<128x128xf32> to vector<128xf32>
    %745 = vector.shape_cast %744 : vector<128xf32> to vector<1x128xf32>
    %cst_326 = arith.constant 5.000000e-01 : f32
    %746 = vector.broadcast %cst_326 : f32 to vector<1x128xf32>
    %747 = arith.cmpf ogt, %745, %746 : vector<1x128xf32>
    %cst_327 = arith.constant dense<0xFF800000> : vector<128xf32>
    %748 = vector.multi_reduction <maximumf>, %739, %cst_327 [1] : vector<128x128xf32> to vector<128xf32>
    %749 = vector.shape_cast %748 : vector<128xf32> to vector<128x1xf32>
    %cst_328 = arith.constant 5.000000e-01 : f32
    %750 = vector.broadcast %cst_328 : f32 to vector<128x1xf32>
    %751 = arith.cmpf ogt, %749, %750 : vector<128x1xf32>
    %c1073741824_i32_329 = arith.constant 1073741824 : i32
    %752 = vector.broadcast %c1073741824_i32_329 : i32 to vector<1x128xi32>
    %753 = arith.select %747, %4, %752 : vector<1x128xi1>, vector<1x128xi32>
    %754 = vector.shape_cast %753 : vector<1x128xi32> to vector<1x1x128xi32>
    %cst_330 = arith.constant dense<2147483647> : vector<1xi32>
    %755 = vector.multi_reduction <minsi>, %754, %cst_330 [1, 2] : vector<1x1x128xi32> to vector<1xi32>
    %756 = vector.shape_cast %755 : vector<1xi32> to vector<1x1x1xi32>
    %757 = vector.extract %756[0, 0, 0] : i32 from vector<1x1x1xi32>
    %c-1_i32_331 = arith.constant -1 : i32
    %758 = vector.broadcast %c-1_i32_331 : i32 to vector<1x128xi32>
    %759 = arith.select %747, %4, %758 : vector<1x128xi1>, vector<1x128xi32>
    %760 = vector.shape_cast %759 : vector<1x128xi32> to vector<1x1x128xi32>
    %cst_332 = arith.constant dense<-2147483648> : vector<1xi32>
    %761 = vector.multi_reduction <maxsi>, %760, %cst_332 [1, 2] : vector<1x1x128xi32> to vector<1xi32>
    %762 = vector.shape_cast %761 : vector<1xi32> to vector<1x1x1xi32>
    %763 = vector.extract %762[0, 0, 0] : i32 from vector<1x1x1xi32>
    %c1073741824_i32_333 = arith.constant 1073741824 : i32
    %764 = vector.broadcast %c1073741824_i32_333 : i32 to vector<128x1xi32>
    %765 = arith.select %751, %3, %764 : vector<128x1xi1>, vector<128x1xi32>
    %766 = vector.shape_cast %765 : vector<128x1xi32> to vector<1x128x1xi32>
    %cst_334 = arith.constant dense<2147483647> : vector<1xi32>
    %767 = vector.multi_reduction <minsi>, %766, %cst_334 [1, 2] : vector<1x128x1xi32> to vector<1xi32>
    %768 = vector.shape_cast %767 : vector<1xi32> to vector<1x1x1xi32>
    %769 = vector.extract %768[0, 0, 0] : i32 from vector<1x1x1xi32>
    %c-1_i32_335 = arith.constant -1 : i32
    %770 = vector.broadcast %c-1_i32_335 : i32 to vector<128x1xi32>
    %771 = arith.select %751, %3, %770 : vector<128x1xi1>, vector<128x1xi32>
    %772 = vector.shape_cast %771 : vector<128x1xi32> to vector<1x128x1xi32>
    %cst_336 = arith.constant dense<-2147483648> : vector<1xi32>
    %773 = vector.multi_reduction <maxsi>, %772, %cst_336 [1, 2] : vector<1x128x1xi32> to vector<1xi32>
    %774 = vector.shape_cast %773 : vector<1xi32> to vector<1x1x1xi32>
    %775 = vector.extract %774[0, 0, 0] : i32 from vector<1x1x1xi32>
    %c0_i32_337 = arith.constant 0 : i32
    %776 = arith.cmpi sge, %763, %c0_i32_337 : i32
    %c4_i32_338 = arith.constant 4 : i32
    %777 = arith.muli %c4_i32_338, %601 : i32
    %c0_i32_339 = arith.constant 0 : i32
    %778 = arith.select %776, %757, %c0_i32_339 : i32
    %c0_i32_340 = arith.constant 0 : i32
    %779 = arith.addi %777, %c0_i32_340 : i32
    %780 = arith.index_cast %779 : i32 to index
    %781 = memref.load %arg4[%780] : memref<16xi32, #tpu.memory_space<smem>>
    memref.store %778, %arg4[%780] : memref<16xi32, #tpu.memory_space<smem>>
    %c0_i32_341 = arith.constant 0 : i32
    %782 = arith.select %776, %769, %c0_i32_341 : i32
    %c1_i32_342 = arith.constant 1 : i32
    %783 = arith.addi %777, %c1_i32_342 : i32
    %784 = arith.index_cast %783 : i32 to index
    %785 = memref.load %arg4[%784] : memref<16xi32, #tpu.memory_space<smem>>
    memref.store %782, %arg4[%784] : memref<16xi32, #tpu.memory_space<smem>>
    %786 = arith.subi %763, %757 : i32
    %c1_i32_343 = arith.constant 1 : i32
    %787 = arith.addi %786, %c1_i32_343 : i32
    %c0_i32_344 = arith.constant 0 : i32
    %788 = arith.select %776, %787, %c0_i32_344 : i32
    %c2_i32_345 = arith.constant 2 : i32
    %789 = arith.addi %777, %c2_i32_345 : i32
    %790 = arith.index_cast %789 : i32 to index
    %791 = memref.load %arg4[%790] : memref<16xi32, #tpu.memory_space<smem>>
    memref.store %788, %arg4[%790] : memref<16xi32, #tpu.memory_space<smem>>
    %792 = arith.subi %775, %769 : i32
    %c1_i32_346 = arith.constant 1 : i32
    %793 = arith.addi %792, %c1_i32_346 : i32
    %c0_i32_347 = arith.constant 0 : i32
    %794 = arith.select %776, %793, %c0_i32_347 : i32
    %c3_i32_348 = arith.constant 3 : i32
    %795 = arith.addi %777, %c3_i32_348 : i32
    %796 = arith.index_cast %795 : i32 to index
    %797 = memref.load %arg4[%796] : memref<16xi32, #tpu.memory_space<smem>>
    memref.store %794, %arg4[%796] : memref<16xi32, #tpu.memory_space<smem>>
    %c0_349 = arith.constant 0 : index
    %c0_350 = arith.constant 0 : index
    %798 = vector.load %arg5[%c0_349, %c0_350] : memref<128x128xf32, #tpu.memory_space<vmem>>, vector<128x128xf32>
    tpu.vector_store %arg5[%c0_349, %c0_350], %739 {strides = array<i32>} : memref<128x128xf32, #tpu.memory_space<vmem>>, vector<128x128xf32>,
    return
  }
  func.func @transform_0(%arg0: i32, %arg1: memref<1xi32, #tpu.memory_space<smem>>) -> (i32, i32, i32, i32) {
    %c0_i32 = arith.constant 0 : i32
    %c0_i32_0 = arith.constant 0 : i32
    %c0_i32_1 = arith.constant 0 : i32
    %c0_i32_2 = arith.constant 0 : i32
    return %arg0, %c0_i32, %c0_i32_0, %c0_i32_1 : i32, i32, i32, i32
  }
  func.func @transform_1(%arg0: i32, %arg1: memref<1xi32, #tpu.memory_space<smem>>) -> (i32, i32, i32) {
    %c0_i32 = arith.constant 0 : i32
    %c0_i32_0 = arith.constant 0 : i32
    %c0_i32_1 = arith.constant 0 : i32
    return %arg0, %c0_i32, %c0_i32_0 : i32, i32, i32
  }
  func.func @transform_2(%arg0: i32, %arg1: memref<1xi32, #tpu.memory_space<smem>>) -> i32 {
    %c0_i32 = arith.constant 0 : i32
    %c0_i32_0 = arith.constant 0 : i32
    return %c0_i32 : i32
  }
}

</mosaic_0001>

<bundles_post_ra>
// kernel: remove_anything_video_forward.1
= control target key start
LH: loop header
LB: loop body
LE: loop exit
PB: predicated region body
PF: predicated region fallthrough
CT: control target
= control target key end

     0   :  { %10 = vsyncpa [#allocation6], 0  ;;  %v34_v0 = vlaneseq  ;;  %s13755_s0 = inlined_call_operand.<no memory space> [shape: s32[1], index: 0, kind: input, shape index: {}]   ;;  %s13756_s1 = inlined_call_operand.vmem [shape: bf16[4,3,128,128], index: 1, kind: input, shape index: {}]   ;;  %s13757_s2 = inlined_call_operand.hbm [shape: bf16[4,128,128], index: 2, kind: output, shape index: {0}]   ;;  %s13758_s3 = inlined_call_operand.vmem [shape: s32[16], index: 3, kind: output, shape index: {1}]  }
   0x1   :  { %s6397_s14 = sshll.u32 %s13755_s0, 6 }
   0x2   :  { %11 = vsyncpa [#allocation7], 0  ;;  %s8383_s17 = scalar_lea.vmem %s13756_s1, %s6397_s14  ;;  %v8386_v1 = vshrl.u32 %v34_v0, 7  ;;  %s8348_s0 = smov 1  }
   0x3   :  { %v8389_v2 = vld [vmem:[%s8383_s17] sm:$0xff]   ;;  %v7160_v3 = vld [vmem:[%s8383_s17 + $0x8] sm:$0xff]   ;;  %v7161_v4 = vld [vmem:[%s8383_s17 + $0x10] sm:$0xff]   ;;  %s8349_s18 = smov 127   ;;  %s8350_s19 = smov 126  }
   0x4   :  { %v8394_v5 = vunpack.c.h.bf16 %v8389_v2  ;;  %v8396_v6 = vunpack.c.l.bf16 %v7160_v3  ;;  %v8398_v7 = vunpack.c.h.bf16 %v7160_v3  ;;  %v8400_v8 = vunpack.c.l.bf16 %v7161_v4  ;;  %v7162_v9 = vld [vmem:[%s8383_s17 + $0x18] sm:$0xff]   ;;  %v7163_v10 = vld [vmem:[%s8383_s17 + $0x20] sm:$0xff]   ;;  %v7164_v42 = vld [vmem:[%s8383_s17 + $0x28] sm:$0xff]   ;;  %s8351_s20 = smov 2   ;;  %s8352_s21 = smov 124  }
   0x5   :  { %v8404_v11 = vunpack.c.h.bf16 %v7161_v4  ;;  %v8406_v12 = vunpack.c.l.bf16 %v7162_v9  ;;  %v8408_v13 = vunpack.c.h.bf16 %v7162_v9  ;;  %v8410_v14 = vunpack.c.l.bf16 %v7163_v10  ;;  %s8353_s22 = smov 4  }
   0x6   :  { %v367_v15 = vrot.slane %v8400_v8, 1  ;;  %vm13835_vm0 = vcmp.lt.s32.totalorder %v8386_v1, 7  ;;  %vm13771_vm1 = vcmp.lt.s32.totalorder %v8386_v1, 6  ;;  %vm13769_vm2 = vcmp.lt.s32.totalorder %v8386_v1, 4 }
   0x7   :  { %v368_v16 = vrot.slane %v8404_v11, 1  ;;  %v369_v17 = vrot.slane %v8406_v12, 1  ;;  %v370_v18 = vrot.slane %v8408_v13, 1  ;;  %v371_v19 = vrot.slane %v8410_v14, 1 }
   0x8   :  { %v703_v20 = vrot.slane %v8394_v5, 7  ;;  %v704_v21 = vrot.slane %v8396_v6, 7  ;;  %v705_v22 = vrot.slane %v8398_v7, 7  ;;  %v706_v23 = vrot.slane %v8400_v8, 7 }
   0x9   :  { %v387_v24 = vsel %vm13835_vm0, %v370_v18, %v371_v19  ;;  %v388_v25 = vsel %vm13835_vm0, %v369_v17, %v370_v18  ;;  %v389_v26 = vsel %vm13835_vm0, %v368_v16, %v369_v17  ;;  %v390_v27 = vsel %vm13835_vm0, %v367_v15, %v368_v16 }
   0xa   :  { %v8435_v28 = vmax.f32 %v8400_v8, %v390_v27  ;;  %v465_v29 = vmax.f32 %v8404_v11, %v389_v26  ;;  %v466_v30 = vmax.f32 %v8406_v12, %v388_v25  ;;  %v8440_v31 = vmax.f32 %v8408_v13, %v387_v24 }
   0xb   :  { %v707_v32 = vrot.slane %v8404_v11, 7  ;;  %vm13773_vm3 = vcmp.lt.s32.totalorder %v8386_v1, 1  ;;  %vm13770_vm4 = vcmp.lt.s32.totalorder %v8386_v1, 2  ;;  %v8445_v33 = vunpack.c.h.bf16 %v7163_v10 }
   0xc   :  { %v480_v34 = vrot.slane %v8435_v28, 2  ;;  %v481_v35 = vrot.slane %v465_v29, 2  ;;  %v482_v36 = vrot.slane %v466_v30, 2  ;;  %v483_v37 = vrot.slane %v8440_v31, 2 }
   0xd   :  { %v729_v38 = vsel %vm13773_vm3, %v706_v23, %v707_v32  ;;  %v730_v39 = vsel %vm13773_vm3, %v705_v22, %v706_v23  ;;  %v731_v40 = vsel %vm13773_vm3, %v704_v21, %v705_v22  ;;  %v732_v41 = vsel %vm13773_vm3, %v703_v20, %v704_v21 }
   0xe   :  { %v501_v43 = vsel %vm13771_vm1, %v482_v36, %v483_v37  ;;  %v502_v44 = vsel %vm13771_vm1, %v481_v35, %v482_v36  ;;  %v503_v45 = vsel %vm13771_vm1, %v480_v34, %v481_v35  ;;  %v8469_v46 = vmax.f32 %v8396_v6, %v732_v41 }
   0xf   :  { %v8472_v47 = vmax.f32 %v8435_v28, %v503_v45  ;;  %v578_v48 = vmax.f32 %v465_v29, %v502_v44  ;;  %v8474_v49 = vmax.f32 %v466_v30, %v501_v43  ;;  %v802_v50 = vmax.f32 %v8398_v7, %v731_v40 }
  0x10   :  { %v803_v51 = vmax.f32 %v8400_v8, %v730_v39  ;;  %v804_v52 = vmax.f32 %v8404_v11, %v729_v38  ;;  %v817_v53 = vrot.slane %v8469_v46, 6  ;;  %v8480_v54 = vunpack.c.l.bf16 %v7164_v42  ;;  %v8519_v38 = vld [vmem:[%s8383_s17 + $0x30] sm:$0xff]  }
  0x11   :  { %v593_v55 = vrot.slane %v8472_v47, 4  ;;  %v594_v56 = vrot.slane %v578_v48, 4  ;;  %v595_v57 = vrot.slane %v8474_v49, 4  ;;  %v818_v58 = vrot.slane %v802_v50, 6 }
  0x12   :  { %v819_v59 = vrot.slane %v803_v51, 6  ;;  %v820_v60 = vrot.slane %v804_v52, 6  ;;  %v372_v61 = vrot.slane %v8445_v33, 1  ;;  %v373_v62 = vrot.slane %v8480_v54, 1 }
  0x13   :  { %v615_v63 = vsel %vm13769_vm2, %v594_v56, %v595_v57  ;;  %v616_v3 = vsel %vm13769_vm2, %v593_v55, %v594_v56  ;;  %v844_v4 = vsel %vm13770_vm4, %v817_v53, %v818_v58  ;;  %v708_v9 = vrot.slane %v8406_v12, 7 }
  0x14   :  { %v690_v10 = vmax.f32 %v8472_v47, %v616_v3  ;;  %v691_v11 = vmax.f32 %v578_v48, %v615_v63  ;;  %v842_v16 = vsel %vm13770_vm4, %v819_v59, %v820_v60  ;;  %v843_v17 = vsel %vm13770_vm4, %v818_v58, %v819_v59 }
  0x15   :  { %v8504_v18 = vmax.f32 %v802_v50, %v844_v4  ;;  %v916_v21 = vmax.f32 %v803_v51, %v843_v17  ;;  %v917_v22 = vmax.f32 %v804_v52, %v842_v16  ;;  %v385_v23 = vsel %vm13835_vm0, %v372_v61, %v373_v62 }
  0x16   :  { %v386_v24 = vsel %vm13835_vm0, %v371_v19, %v372_v61  ;;  %v8511_v25 = vmax.f32 %v8445_v33, %v385_v23  ;;  %v709_v26 = vrot.slane %v8408_v13, 7  ;;  %v728_v27 = vsel %vm13773_vm3, %v707_v32, %v708_v9 }
  0x17   :  { %v931_v29 = vrot.slane %v8504_v18, 4  ;;  %v932_v30 = vrot.slane %v916_v21, 4  ;;  %v933_v35 = vrot.slane %v917_v22, 4  ;;  %v468_v36 = vmax.f32 %v8410_v14, %v386_v24 }
  0x18   :  { %v485_v39 = vrot.slane %v8511_v25, 2  ;;  %v727_v19 = vsel %vm13773_vm3, %v708_v9, %v709_v26  ;;  %v805_v40 = vmax.f32 %v8406_v12, %v728_v27  ;;  %v8525_v41 = vunpack.c.h.bf16 %v7164_v42 }
  0x19   :  { %v954_v32 = vsel %vm13769_vm2, %v932_v30, %v933_v35  ;;  %v955_v43 = vsel %vm13769_vm2, %v931_v29, %v932_v30  ;;  %v484_v44 = vrot.slane %v468_v36, 2  ;;  %v806_v45 = vmax.f32 %v8408_v13, %v727_v19 }
  0x1a   :  { %v1028_v48 = vmax.f32 %v916_v21, %v955_v43  ;;  %v1029_v50 = vmax.f32 %v917_v22, %v954_v32  ;;  %v821_v51 = vrot.slane %v805_v40, 6  ;;  %v8535_v52 = vunpack.c.l.bf16 %v8519_v38 }
  0x1b   :  { %v499_v12 = vsel %vm13771_vm1, %v484_v44, %v485_v39  ;;  %v500_v42 = vsel %vm13771_vm1, %v483_v37, %v484_v44  ;;  %v822_v56 = vrot.slane %v806_v45, 6  ;;  %v374_v58 = vrot.slane %v8525_v41, 1 }
  0x1c   :  { %v8542_v59 = vmax.f32 %v690_v10, %v1028_v48  ;;  %v8544_v61 = vmax.f32 %v691_v11, %v1029_v50  ;;  %v580_v13 = vmax.f32 %v8440_v31, %v500_v42  ;;  %v8547_v63 = vmax.f32 %v468_v36, %v499_v12  ;;  %v7166_v50 = vld [vmem:[%s8383_s17 + $0x38] sm:$0xff]  }
  0x1d   :  { %v840_v3 = vsel %vm13770_vm4, %v821_v51, %v822_v56  ;;  %v841_v4 = vsel %vm13770_vm4, %v820_v60, %v821_v51  ;;  %v375_v9 = vrot.slane %v8535_v52, 1  ;;  %v384_v37 = vsel %vm13835_vm0, %v373_v62, %v374_v58 }
  0x1e   :  { %v7360_v10 = vpack.i.bf16 %v8544_v61, %v8542_v59  ;;  %v596_v11 = vrot.slane %v580_v13, 4  ;;  %v597_v16 = vrot.slane %v8547_v63, 4  ;;  %v918_v31 = vmax.f32 %v805_v40, %v841_v4 }
  0x1f   :  { %v919_v17 = vmax.f32 %v806_v45, %v840_v3  ;;  %v383_v21 = vsel %vm13835_vm0, %v374_v58, %v375_v9  ;;  %v470_v60 = vmax.f32 %v8480_v54, %v384_v37  ;;  %v710_v24 = vrot.slane %v8410_v14, 7 }
  0x20   :  { %7361 = vrot.lane.b32.xlu0 %v7360_v10, %s8348_s0  ;;  %7351 = vrot.lane.b32.xlu1 %v7360_v10, %s8349_s18  ;;  %v613_v62 = vsel %vm13769_vm2, %v596_v11, %v597_v16  ;;  %v614_v22 = vsel %vm13769_vm2, %v595_v57, %v596_v11  ;;  %v8573_v23 = vmax.f32 %v8525_v41, %v383_v21  ;;  %v934_v36 = vrot.slane %v918_v31, 4 }
  0x21   :  { %v692_v27 = vmax.f32 %v8474_v49, %v614_v22  ;;  %v693_v30 = vmax.f32 %v580_v13, %v613_v62  ;;  %v935_v19 = vrot.slane %v919_v17, 4  ;;  %v486_v40 = vrot.slane %v470_v60, 2 }
  0x22   :  { %v487_v32 = vrot.slane %v8573_v23, 2  ;;  %v711_v43 = vrot.slane %v8445_v33, 7  ;;  %v726_v44 = vsel %vm13773_vm3, %v709_v26, %v710_v24  ;;  %v953_v45 = vsel %vm13769_vm2, %v933_v35, %v934_v36 }
  0x23   :  { %v952_v57 = vsel %vm13769_vm2, %v934_v36, %v935_v19  ;;  %v807_v48 = vmax.f32 %v8410_v14, %v726_v44  ;;  %v8587_v49 = vunpack.c.l.bf16 %v8389_v2  ;;  %v1030_v51 = vmax.f32 %v918_v31, %v953_v45 }
  0x24   :  { %v1031_v12 = vmax.f32 %v919_v17, %v952_v57  ;;  %v497_v42 = vsel %vm13771_vm1, %v486_v40, %v487_v32  ;;  %v498_v26 = vsel %vm13771_vm1, %v485_v39, %v486_v40  ;;  %v725_v2 = vsel %vm13773_vm3, %v710_v24, %v711_v43 }
  0x25   :  { %v582_v58 = vmax.f32 %v8511_v25, %v498_v26  ;;  %v8597_v13 = vmax.f32 %v470_v60, %v497_v42  ;;  %v823_v14 = vrot.slane %v807_v48, 6  ;;  %v8603_v35 = vmax.f32 %v692_v27, %v1030_v51 }
  0x26   :  { %v8605_v3 = vmax.f32 %v693_v30, %v1031_v12  ;;  %v8608_v4 = vmax.f32 %v8445_v33, %v725_v2  ;;  %v8610_v37 = vunpack.c.h.bf16 %v7166_v50  ;;  %v365_v11 = vrot.slane %v8396_v6, 1 }
  0x27   :  { %v598_v39 = vrot.slane %v582_v58, 4  ;;  %v599_v25 = vrot.slane %v8597_v13, 4  ;;  %v839_v10 = vsel %vm13770_vm4, %v822_v56, %v823_v14  ;;  %v366_v22 = vrot.slane %v8398_v7, 1 }
  0x28   :  { %v7355_v31 = vpack.i.bf16 %v8605_v3, %v8603_v35  ;;  %v824_v17 = vrot.slane %v8608_v4, 6  ;;  %v920_v21 = vmax.f32 %v807_v48, %v839_v10  ;;  %v702_v56 = vrot.slane %v8587_v49, 7 }
  0x29   :  { %v611_v60 = vsel %vm13769_vm2, %v598_v39, %v599_v25  ;;  %v612_v62 = vsel %vm13769_vm2, %v597_v16, %v598_v39  ;;  %v391_v16 = vsel %vm13835_vm0, %v366_v22, %v367_v15  ;;  %v717_v44 = vrot.slane %v8610_v37, 7 }
  0x2a   :  { %7356 = vrot.lane.b32.xlu1 %v7355_v31, %s8349_s18  ;;  %v694_v24 = vmax.f32 %v8547_v63, %v612_v62  ;;  %v695_v27 = vmax.f32 %v582_v58, %v611_v60  ;;  %v838_v30 = vsel %vm13770_vm4, %v823_v14, %v824_v17  ;;  %v936_v36 = vrot.slane %v920_v21, 4 }
  0x2b   :  { %v8634_v40 = vmax.f32 %v8608_v4, %v838_v30  ;;  %v392_v63 = vsel %vm13835_vm0, %v365_v11, %v366_v22  ;;  %v463_v48 = vmax.f32 %v8398_v7, %v391_v16  ;;  %v733_v8 = vsel %vm13773_vm3, %v702_v56, %v703_v20 }
  0x2c   :  { %v951_v57 = vsel %vm13769_vm2, %v935_v19, %v936_v36  ;;  %v8648_v45 = vmax.f32 %v8396_v6, %v392_v63  ;;  %v734_v12 = vsel %vm13773_vm3, %v717_v44, %v702_v56  ;;  %vm13772_vm5 = vcmp.ge.s32.totalorder %v8386_v1, 1 }
  0x2d   :  { %v937_v15 = vrot.slane %v8634_v40, 4  ;;  %v1032_v51 = vmax.f32 %v920_v21, %v951_v57  ;;  %v479_v7 = vrot.slane %v463_v48, 2  ;;  %v783_v42 = vsel %vm13772_vm5, %v734_v12, 0.0 }
  0x2e   :  { %7366 = vrot.lane.b32.xlu1 %v7355_v31, %s8348_s0  ;;  %v478_v19 = vrot.slane %v8648_v45, 2  ;;  %v800_v20 = vmax.f32 %v8394_v5, %v733_v8  ;;  %v8673_v2 = vmax.f32 %v8587_v49, %v783_v42  ;;  %v8676_v14 = vunpack.c.h.bf16 %v8519_v38 }
  0x2f   :  { %v950_v26 = vsel %vm13769_vm2, %v936_v36, %v937_v15  ;;  %v8670_v58 = vmax.f32 %v694_v24, %v1032_v51  ;;  %v504_v10 = vsel %vm13771_vm1, %v479_v7, %v480_v34  ;;  %v8691_v22 = vunpack.c.l.bf16 %v7166_v50 }
  0x30   :  { %v1033_v39 = vmax.f32 %v8634_v40, %v950_v26  ;;  %v505_v31 = vsel %vm13771_vm1, %v478_v19, %v479_v7  ;;  %v816_v21 = vrot.slane %v800_v20, 6  ;;  %v576_v62 = vmax.f32 %v463_v48, %v504_v10 }
  0x31   :  { %v8688_v60 = vmax.f32 %v8648_v45, %v505_v31  ;;  %v815_v38 = vrot.slane %v8673_v2, 6  ;;  %v376_v34 = vrot.slane %v8676_v14, 1  ;;  %v712_v24 = vrot.slane %v8480_v54, 7 }
  0x32   :  { %v8693_v56 = vmax.f32 %v695_v27, %v1033_v39  ;;  %v845_v28 = vsel %vm13770_vm4, %v816_v21, %v817_v53  ;;  %v592_v36 = vrot.slane %v576_v62, 4  ;;  %v377_v53 = vrot.slane %v8691_v22, 1 }
  0x33   :  { %v591_v30 = vrot.slane %v8688_v60, 4  ;;  %v846_v50 = vsel %vm13770_vm4, %v815_v38, %v816_v21  ;;  %v914_v27 = vmax.f32 %v8469_v46, %v845_v28  ;;  %v382_v46 = vsel %vm13835_vm0, %v375_v9, %v376_v34 }
  0x34   :  { %v7370_v16 = vpack.i.bf16 %v8693_v56, %v8670_v58  ;;  %v8709_v63 = vmax.f32 %v800_v20, %v846_v50  ;;  %v617_v57 = vsel %vm13769_vm2, %v592_v36, %v593_v55  ;;  %v381_v55 = vsel %vm13835_vm0, %v376_v34, %v377_v53 }
  0x35   :  { %v618_v48 = vsel %vm13769_vm2, %v591_v30, %v592_v36  ;;  %v930_v8 = vrot.slane %v914_v27, 4  ;;  %v689_v12 = vmax.f32 %v576_v62, %v617_v57  ;;  %v472_v42 = vmax.f32 %v8535_v52, %v382_v46 }
  0x36   :  { %7371 = vrot.lane.b32.xlu0 %v7370_v16, %s8349_s18  ;;  %v688_v51 = vmax.f32 %v8688_v60, %v618_v48  ;;  %v929_v47 = vrot.slane %v8709_v63, 4  ;;  %v473_v20 = vmax.f32 %v8676_v14, %v381_v55  ;;  %v713_v9 = vrot.slane %v8525_v41, 7 }
  0x37   :  { %v956_v7 = vsel %vm13769_vm2, %v930_v8, %v931_v29  ;;  %v724_v10 = vsel %vm13773_vm3, %v711_v43, %v712_v24  ;;  %v8746_v29 = vadd.s32 120, %v8386_v1  ;;  %v488_v21 = vrot.slane %v472_v42, 2 }
  0x38   :  { %v957_v26 = vsel %vm13769_vm2, %v929_v47, %v930_v8  ;;  %v1027_v39 = vmax.f32 %v8504_v18, %v956_v7  ;;  %v489_v62 = vrot.slane %v473_v20, 2  ;;  %v723_v28 = vsel %vm13773_vm3, %v712_v24, %v713_v9 }
  0x39   :  { %13862 = vst [vmem:[#allocation11_spill] sm:$0xff] %v8746_v29  ;;  %v1026_v31 = vmax.f32 %v914_v27, %v957_v26  ;;  %v809_v18 = vmax.f32 %v8480_v54, %v724_v10  ;;  %v8755_v33 = vmax.f32 %v8525_v41, %v723_v28  ;;  %v363_v43 = vrot.slane %v8587_v49, 1 }
  0x3a   :  { %7381 = vrot.lane.b32.xlu0 %v7370_v16, %s8348_s0  ;;  %v8751_v34 = vmax.f32 %v689_v12, %v1027_v39  ;;  %v495_v50 = vsel %vm13771_vm1, %v488_v21, %v489_v62  ;;  %v496_v24 = vsel %vm13771_vm1, %v487_v32, %v488_v21  ;;  %v378_v27 = vrot.slane %v8610_v37, 1 }
  0x3b   :  { %v8758_v36 = vmax.f32 %v688_v51, %v1026_v31  ;;  %v584_v16 = vmax.f32 %v8573_v23, %v496_v24  ;;  %v8768_v54 = vmax.f32 %v472_v42, %v495_v50  ;;  %v825_v41 = vrot.slane %v809_v18, 6 }
  0x3c   :  { %v826_v57 = vrot.slane %v8755_v33, 6  ;;  %v380_v8 = vsel %vm13835_vm0, %v377_v53, %v378_v27  ;;  %v395_v46 = vsel %vm13835_vm0, %v378_v27, %v363_v43  ;;  %vm13774_vm6 = vcmp.lt.s32.totalorder %v8746_v29, 127 }
  0x3d   :  { %v8773_v48 = vpack.i.bf16 %v8751_v34, %v8758_v36  ;;  %v600_v32 = vrot.slane %v584_v16, 4  ;;  %v601_v23 = vrot.slane %v8768_v54, 4  ;;  %v837_v12 = vsel %vm13770_vm4, %v824_v17, %v825_v41 }
  0x3e   :  { %v836_v51 = vsel %vm13770_vm4, %v825_v41, %v826_v57  ;;  %v922_v53 = vmax.f32 %v809_v18, %v837_v12  ;;  %v459_v7 = vsel %vm13774_vm6, %v395_v46, 0.0  ;;  %v474_v42 = vmax.f32 %v8691_v22, %v380_v8 }
  0x3f   :  { %7391 = vrot.lane.b32.xlu0 %v8773_v48, %s8349_s18  ;;  %v8790_v55 = vmax.f32 %v8755_v33, %v836_v51  ;;  %v609_v26 = vsel %vm13769_vm2, %v600_v32, %v601_v23  ;;  %v610_v4 = vsel %vm13769_vm2, %v599_v25, %v600_v32  ;;  %v8802_v17 = vmax.f32 %v8610_v37, %v459_v7 }
  0x40   :  { %v714_v39 = vrot.slane %v8535_v52, 7  ;;  %v696_v10 = vmax.f32 %v8597_v13, %v610_v4  ;;  %v697_v31 = vmax.f32 %v584_v16, %v609_v26  ;;  %v938_v21 = vrot.slane %v922_v53, 4 }
  0x41   :  { %v939_v28 = vrot.slane %v8790_v55, 4  ;;  %v490_v18 = vrot.slane %v474_v42, 2  ;;  %v491_v33 = vrot.slane %v8802_v17, 2  ;;  %v715_v50 = vrot.slane %v8676_v14, 7 }
  0x42   :  { %v716_v24 = vrot.slane %v8691_v22, 7  ;;  %v949_v27 = vsel %vm13769_vm2, %v937_v15, %v938_v21  ;;  %v722_v13 = vsel %vm13773_vm3, %v713_v9, %v714_v39  ;;  %v364_v16 = vrot.slane %v8394_v5, 1 }
  0x43   :  { %v948_v25 = vsel %vm13769_vm2, %v938_v21, %v939_v28  ;;  %v1034_v41 = vmax.f32 %v922_v53, %v949_v27  ;;  %v493_v46 = vsel %vm13771_vm1, %v490_v18, %v491_v33  ;;  %v494_v32 = vsel %vm13771_vm1, %v489_v62, %v490_v18 }
  0x44   :  { %v1035_v8 = vmax.f32 %v8790_v55, %v948_v25  ;;  %v586_v51 = vmax.f32 %v473_v20, %v494_v32  ;;  %v8824_v12 = vmax.f32 %v474_v42, %v493_v46  ;;  %v720_v40 = vsel %vm13773_vm3, %v715_v50, %v716_v24 }
  0x45   :  { %v721_v15 = vsel %vm13773_vm3, %v714_v39, %v715_v50  ;;  %v8830_v9 = vmax.f32 %v696_v10, %v1034_v41  ;;  %v811_v55 = vmax.f32 %v8535_v52, %v722_v13  ;;  %v393_v20 = vsel %vm13835_vm0, %v364_v16, %v365_v11 }
  0x46   :  { %v8832_v53 = vmax.f32 %v697_v31, %v1035_v8  ;;  %v812_v7 = vmax.f32 %v8676_v14, %v721_v15  ;;  %v602_v26 = vrot.slane %v586_v51, 4  ;;  %v603_v62 = vrot.slane %v8824_v12, 4 }
  0x47   :  { %v813_v4 = vmax.f32 %v8691_v22, %v720_v40  ;;  %v827_v39 = vrot.slane %v811_v55, 6  ;;  %v394_v31 = vsel %vm13835_vm0, %v363_v43, %v364_v16  ;;  %v461_v6 = vmax.f32 %v8394_v5, %v393_v20 }
  0x48   :  { %v7375_v42 = vpack.i.bf16 %v8832_v53, %v8830_v9  ;;  %v828_v10 = vrot.slane %v812_v7, 6  ;;  %v607_v52 = vsel %vm13769_vm2, %v602_v26, %v603_v62  ;;  %v608_v14 = vsel %vm13769_vm2, %v601_v23, %v602_v26 }
  0x49   :  { %v835_v22 = vsel %vm13770_vm4, %v826_v57, %v827_v39  ;;  %v460_v50 = vmax.f32 %v8587_v49, %v394_v31  ;;  %v477_v25 = vrot.slane %v461_v6, 2  ;;  %v698_v23 = vmax.f32 %v8768_v54, %v608_v14 }
  0x4a   :  { %7376 = vrot.lane.b32.xlu1 %v7375_v42, %s8349_s18  ;;  %v834_v11 = vsel %vm13770_vm4, %v827_v39, %v828_v10  ;;  %v924_v21 = vmax.f32 %v811_v55, %v835_v22  ;;  %v699_v27 = vmax.f32 %v586_v51, %v607_v52  ;;  %v719_v5 = vsel %vm13773_vm3, %v716_v24, %v717_v44 }
  0x4b   :  { %v925_v18 = vmax.f32 %v812_v7, %v834_v11  ;;  %v829_v43 = vrot.slane %v813_v4, 6  ;;  %v476_v41 = vrot.slane %v460_v50, 2  ;;  %v506_v57 = vsel %vm13771_vm1, %v477_v25, %v478_v19 }
  0x4c   :  { %v940_v13 = vrot.slane %v924_v21, 4  ;;  %v574_v49 = vmax.f32 %v461_v6, %v506_v57  ;;  %v814_v54 = vmax.f32 %v8610_v37, %v719_v5  ;;  %vm13767_vm7 = vcmp.lt.s32.totalorder %v8746_v29, 126 }
  0x4d   :  { %v941_v16 = vrot.slane %v925_v18, 4  ;;  %v507_v24 = vsel %vm13771_vm1, %v476_v41, %v477_v25  ;;  %v508_v45 = vsel %vm13771_vm1, %v491_v33, %v476_v41  ;;  %vm13768_vm8 = vcmp.ge.s32.totalorder %v8386_v1, 2 }
  0x4e   :  { %7386 = vrot.lane.b32.xlu1 %v7375_v42, %s8348_s0  ;;  %v947_v44 = vsel %vm13769_vm2, %v939_v28, %v940_v13  ;;  %v573_v32 = vmax.f32 %v460_v50, %v507_v24  ;;  %v590_v51 = vrot.slane %v574_v49, 4  ;;  %v830_v40 = vrot.slane %v814_v54, 6 }
  0x4f   :  { %v946_v8 = vsel %vm13769_vm2, %v940_v13, %v941_v16  ;;  %v1036_v19 = vmax.f32 %v924_v21, %v947_v44  ;;  %v572_v37 = vsel %vm13767_vm7, %v508_v45, 0.0  ;;  %v833_v20 = vsel %vm13770_vm4, %v828_v10, %v829_v43 }
  0x50   :  { %v1037_v46 = vmax.f32 %v925_v18, %v946_v8  ;;  %v589_v28 = vrot.slane %v573_v32, 4  ;;  %v832_v33 = vsel %vm13770_vm4, %v829_v43, %v830_v40  ;;  %v847_v7 = vsel %vm13770_vm4, %v830_v40, %v815_v38 }
  0x51   :  { %v8880_v15 = vmax.f32 %v698_v23, %v1036_v19  ;;  %v588_v26 = vmax.f32 %v8802_v17, %v572_v37  ;;  %v896_v39 = vsel %vm13768_vm8, %v847_v7, 0.0  ;;  %vm13765_vm9 = vcmp.lt.s32.totalorder %v8746_v29, 124 }
  0x52   :  { %v8882_v55 = vmax.f32 %v699_v27, %v1037_v46  ;;  %7396 = vrot.lane.b32.xlu1 %v8773_v48, %s8348_s0  ;;  %v927_v48 = vmax.f32 %v814_v54, %v832_v33  ;;  %v619_v52 = vsel %vm13769_vm2, %v590_v51, %v591_v30  ;;  %v620_v38 = vsel %vm13769_vm2, %v589_v28, %v590_v51 }
  0x53   :  { %v912_v17 = vmax.f32 %v8673_v2, %v896_v39  ;;  %v604_v10 = vrot.slane %v588_v26, 4  ;;  %v926_v31 = vmax.f32 %v813_v4, %v833_v20  ;;  %vm13766_vm10 = vcmp.ge.s32.totalorder %v8386_v1, 4 }
  0x54   :  { %v7400_v42 = vpack.i.bf16 %v8882_v55, %v8880_v15  ;;  %v943_v14 = vrot.slane %v927_v48, 4  ;;  %v686_v30 = vmax.f32 %v573_v32, %v620_v38  ;;  %v687_v22 = vmax.f32 %v574_v49, %v619_v52 }
  0x55   :  { %v928_v6 = vrot.slane %v912_v17, 4  ;;  %v606_v11 = vsel %vm13769_vm2, %v603_v62, %v604_v10  ;;  %v621_v60 = vsel %vm13769_vm2, %v604_v10, %v589_v28  ;;  %v942_v2 = vrot.slane %v926_v31, 4 }
  0x56   :  { %7401 = vrot.lane.b32.xlu0 %v7400_v42, %s8349_s18  ;;  %v685_v21 = vsel %vm13765_vm9, %v621_v60, 0.0  ;;  %v700_v50 = vmax.f32 %v8824_v12, %v606_v11 }
  0x57   :  { %v958_v4 = vsel %vm13769_vm2, %v928_v6, %v929_v47  ;;  %v959_v18 = vsel %vm13769_vm2, %v943_v14, %v928_v6  ;;  %v701_v62 = vmax.f32 %v588_v26, %v685_v21  ;;  %v944_v27 = vsel %vm13769_vm2, %v942_v2, %v943_v14 }
  0x58   :  { %v1008_v25 = vsel %vm13766_vm10, %v959_v18, 0.0  ;;  %v1025_v23 = vmax.f32 %v8709_v63, %v958_v4  ;;  %v945_v5 = vsel %vm13769_vm2, %v941_v16, %v942_v2  ;;  %v1039_v47 = vmax.f32 %v927_v48, %v944_v27 }
  0x59   :  { %v1024_v43 = vmax.f32 %v912_v17, %v1008_v25  ;;  %v1038_v13 = vmax.f32 %v926_v31, %v945_v5  ;;  %v8947_v16 = vand.u32 127, %v34_v0 }
  0x5a   :  { %v8929_v41 = vmax.f32 %v687_v22, %v1025_v23  ;;  %v8935_v49 = vmax.f32 %v701_v62, %v1039_v47 }
  0x5b   :  { %v8931_v57 = vmax.f32 %v686_v30, %v1024_v43  ;;  %v8933_v12 = vmax.f32 %v700_v50, %v1038_v13  ;;  %vm13763_vm11 = vcmp.ge.s32.totalorder %v8947_v16, 1  ;;  %vm13764_vm12 = vcmp.lt.s32.totalorder %v8947_v16, 127 }
  0x5c   :  { %vm13762_vm13 = vcmp.lt.s32.totalorder %v8947_v16, 126  ;;  %vm13759_vm14 = vcmp.ge.s32.totalorder %v8947_v16, 2  ;;  %vm13761_vm15 = vcmp.lt.s32.totalorder %v8947_v16, 124 }
  0x5d   :  { %v7405_v63 = vpack.i.bf16 %v8929_v41, %v8931_v57  ;;  %v7420_v54 = vpack.i.bf16 %v8935_v49, %v8933_v12 }
  0x5f   :  { %7406 = vrot.lane.b32.xlu0 %v7405_v63, %s8349_s18  ;;  %7421 = vrot.lane.b32.xlu1 %v7420_v54, %s8349_s18 }
  0x63   :  { %7411 = vrot.lane.b32.xlu0 %v7405_v63, %s8348_s0  ;;  %7426 = vrot.lane.b32.xlu1 %v7420_v54, %s8348_s0 }
  0x67   :  { %7416 = vrot.lane.b32.xlu0 %v7400_v42, %s8348_s0 }
  0x92   :  { %v7362_v8 = vpop.permute.xlu0 %7361  ;;  %v7352_v44 = vpop.permute.xlu1 %7351 }
  0x93   :  { %v7364_v24 = vunpack.i.h.bf16 %v7362_v8  ;;  %v7363_v45 = vunpack.i.l.bf16 %v7362_v8  ;;  %v7354_v19 = vunpack.i.h.bf16 %v7352_v44  ;;  %v7353_v46 = vunpack.i.l.bf16 %v7352_v44 }
  0x95   :  { %v1297_v32 = vsel %vm13763_vm11, %v7364_v24, 0.0  ;;  %v1296_v51 = vsel %vm13763_vm11, %v7363_v45, 0.0  ;;  %v1096_v0 = vsel %vm13764_vm12, %v7354_v19, 0.0  ;;  %v1095_v40 = vsel %vm13764_vm12, %v7353_v46, 0.0 }
  0x96   :  { %v8960_v37 = vmax.f32 %v8542_v59, %v1095_v40  ;;  %v8963_v28 = vmax.f32 %v8544_v61, %v1096_v0  ;;  %v8968_v7 = vmax.f32 %v8542_v59, %v1296_v51  ;;  %v8971_v26 = vmax.f32 %v8544_v61, %v1297_v32 }
  0x98   :  { %v7430_v33 = vpack.i.bf16 %v8963_v28, %v8960_v37  ;;  %v7440_v42 = vpack.i.bf16 %v8971_v26, %v8968_v7 }
  0x9a   :  { %7431 = vrot.lane.b32.xlu0 %v7430_v33, %s8350_s19 }
  0x9c   :  { %v7357_v20 = vpop.permute.xlu1 %7356 }
  0x9d   :  { %v7359_v39 = vunpack.i.h.bf16 %v7357_v20  ;;  %v7358_v48 = vunpack.i.l.bf16 %v7357_v20 }
  0x9e   :  { %7441 = vrot.lane.b32.xlu0 %v7440_v42, %s8351_s20 }
  0x9f   :  { %v1098_v52 = vsel %vm13764_vm12, %v7359_v39, 0.0  ;;  %v1097_v59 = vsel %vm13764_vm12, %v7358_v48, 0.0 }
  0xa0   :  { %v7367_v61 = vpop.permute.xlu1 %7366  ;;  %v8982_v38 = vmax.f32 %v8603_v35, %v1097_v59  ;;  %v8985_v17 = vmax.f32 %v8605_v3, %v1098_v52 }
  0xa1   :  { %v7369_v10 = vunpack.i.h.bf16 %v7367_v61  ;;  %v7368_v14 = vunpack.i.l.bf16 %v7367_v61 }
  0xa2   :  { %v7435_v31 = vpack.i.bf16 %v8985_v17, %v8982_v38 }
  0xa3   :  { %v1299_v6 = vsel %vm13763_vm11, %v7369_v10, 0.0  ;;  %v1298_v11 = vsel %vm13763_vm11, %v7368_v14, 0.0 }
  0xa4   :  { %7436 = vrot.lane.b32.xlu1 %v7435_v31, %s8350_s19  ;;  %v8995_v60 = vmax.f32 %v8603_v35, %v1298_v11  ;;  %v8998_v30 = vmax.f32 %v8605_v3, %v1299_v6 }
  0xa6   :  { %v7445_v22 = vpack.i.bf16 %v8998_v30, %v8995_v60 }
  0xa8   :  { %v7372_v21 = vpop.permute.xlu0 %7371  ;;  %7446 = vrot.lane.b32.xlu1 %v7445_v22, %s8351_s20 }
  0xa9   :  { %v7374_v2 = vunpack.i.h.bf16 %v7372_v21  ;;  %v7373_v4 = vunpack.i.l.bf16 %v7372_v21 }
  0xab   :  { %v1100_v18 = vsel %vm13764_vm12, %v7374_v2, 0.0  ;;  %v1099_v50 = vsel %vm13764_vm12, %v7373_v4, 0.0 }
  0xac   :  { %v7382_v62 = vpop.permute.xlu0 %7381  ;;  %v9008_v35 = vmax.f32 %v8670_v58, %v1099_v50  ;;  %v9011_v3 = vmax.f32 %v8693_v56, %v1100_v18 }
  0xad   :  { %v7384_v25 = vunpack.i.h.bf16 %v7382_v62  ;;  %v7383_v23 = vunpack.i.l.bf16 %v7382_v62 }
  0xae   :  { %v7450_v27 = vpack.i.bf16 %v9011_v3, %v9008_v35 }
  0xaf   :  { %v1301_v5 = vsel %vm13763_vm11, %v7384_v25, 0.0  ;;  %v1300_v43 = vsel %vm13763_vm11, %v7383_v23, 0.0 }
  0xb0   :  { %7451 = vrot.lane.b32.xlu0 %v7450_v27, %s8350_s19  ;;  %v9021_v13 = vmax.f32 %v8670_v58, %v1300_v43  ;;  %v9024_v47 = vmax.f32 %v8693_v56, %v1301_v5 }
  0xb1   :  { %v7392_v54 = vpop.permute.xlu0 %7391 }
  0xb2   :  { %v7460_v63 = vpack.i.bf16 %v9024_v47, %v9021_v13  ;;  %v7394_v45 = vunpack.i.h.bf16 %v7392_v54  ;;  %v7393_v19 = vunpack.i.l.bf16 %v7392_v54 }
  0xb4   :  { %7461 = vrot.lane.b32.xlu0 %v7460_v63, %s8351_s20  ;;  %v1094_v20 = vsel %vm13764_vm12, %v7394_v45, 0.0  ;;  %v1093_v42 = vsel %vm13764_vm12, %v7393_v19, 0.0 }
  0xb5   :  { %v9059_v6 = vmax.f32 %v8758_v36, %v1093_v42  ;;  %v9062_v11 = vmax.f32 %v8751_v34, %v1094_v20 }
  0xb7   :  { %v7470_v50 = vpack.i.bf16 %v9062_v11, %v9059_v6 }
  0xbc   :  { %v7377_v8 = vpop.permute.xlu1 %7376 }
  0xbd   :  { %v7379_v44 = vunpack.i.h.bf16 %v7377_v8  ;;  %v7378_v24 = vunpack.i.l.bf16 %v7377_v8 }
  0xbf   :  { %v1102_v46 = vsel %vm13764_vm12, %v7379_v44, 0.0  ;;  %v1101_v58 = vsel %vm13764_vm12, %v7378_v24, 0.0 }
  0xc0   :  { %v7387_v32 = vpop.permute.xlu1 %7386  ;;  %v9034_v56 = vmax.f32 %v8830_v9, %v1101_v58  ;;  %v9037_v51 = vmax.f32 %v8832_v53, %v1102_v46 }
  0xc1   :  { %v7389_v0 = vunpack.i.h.bf16 %v7387_v32  ;;  %v7388_v40 = vunpack.i.l.bf16 %v7387_v32 }
  0xc2   :  { %v7455_v33 = vpack.i.bf16 %v9037_v51, %v9034_v56 }
  0xc3   :  { %v1303_v39 = vsel %vm13763_vm11, %v7389_v0, 0.0  ;;  %v1302_v48 = vsel %vm13763_vm11, %v7388_v40, 0.0 }
  0xc4   :  { %7456 = vrot.lane.b32.xlu1 %v7455_v33, %s8350_s19  ;;  %v7397_v52 = vpop.permute.xlu1 %7396  ;;  %v9051_v59 = vmax.f32 %v8830_v9, %v1302_v48  ;;  %v9054_v61 = vmax.f32 %v8832_v53, %v1303_v39 }
  0xc5   :  { %v7399_v10 = vunpack.i.h.bf16 %v7397_v52  ;;  %v7398_v14 = vunpack.i.l.bf16 %v7397_v52 }
  0xc6   :  { %v7465_v31 = vpack.i.bf16 %v9054_v61, %v9051_v59 }
  0xc7   :  { %v1295_v22 = vsel %vm13763_vm11, %v7399_v10, 0.0  ;;  %v1294_v9 = vsel %vm13763_vm11, %v7398_v14, 0.0 }
  0xc8   :  { %v7402_v21 = vpop.permute.xlu0 %7401  ;;  %7466 = vrot.lane.b32.xlu1 %v7465_v31, %s8351_s20  ;;  %v9070_v53 = vmax.f32 %v8758_v36, %v1294_v9  ;;  %v9073_v2 = vmax.f32 %v8751_v34, %v1295_v22 }
  0xc9   :  { %v7404_v4 = vunpack.i.h.bf16 %v7402_v21  ;;  %v7403_v18 = vunpack.i.l.bf16 %v7402_v21 }
  0xca   :  { %v7475_v34 = vpack.i.bf16 %v9073_v2, %v9070_v53 }
  0xcb   :  { %v1104_v62 = vsel %vm13764_vm12, %v7404_v4, 0.0  ;;  %v1103_v25 = vsel %vm13764_vm12, %v7403_v18, 0.0 }
  0xcc   :  { %v9082_v23 = vmax.f32 %v8880_v15, %v1103_v25  ;;  %v9085_v36 = vmax.f32 %v8882_v55, %v1104_v62  ;;  %7471 = vrot.lane.b32.xlu1 %v7470_v50, %s8350_s19 }
  0xce   :  { %v7480_v27 = vpack.i.bf16 %v9085_v36, %v9082_v23 }
  0xd0   :  { %7481 = vrot.lane.b32.xlu0 %v7480_v27, %s8350_s19  ;;  %7476 = vrot.lane.b32.xlu1 %v7475_v34, %s8351_s20 }
  0xd1   :  { %v7407_v5 = vpop.permute.xlu0 %7406  ;;  %v7422_v43 = vpop.permute.xlu1 %7421 }
  0xd2   :  { %v7409_v63 = vunpack.i.h.bf16 %v7407_v5  ;;  %v7408_v54 = vunpack.i.l.bf16 %v7407_v5  ;;  %v7424_v8 = vunpack.i.h.bf16 %v7422_v43  ;;  %v7423_v44 = vunpack.i.l.bf16 %v7422_v43 }
  0xd4   :  { %v1092_v24 = vsel %vm13764_vm12, %v7409_v63, 0.0  ;;  %v1091_v45 = vsel %vm13764_vm12, %v7408_v54, 0.0  ;;  %v1106_v19 = vsel %vm13764_vm12, %v7424_v8, 0.0  ;;  %v1105_v46 = vsel %vm13764_vm12, %v7423_v44, 0.0 }
  0xd5   :  { %v7412_v58 = vpop.permute.xlu0 %7411  ;;  %v9103_v32 = vmax.f32 %v8931_v57, %v1091_v45  ;;  %v9106_v0 = vmax.f32 %v8929_v41, %v1092_v24  ;;  %v7427_v40 = vpop.permute.xlu1 %7426  ;;  %v9109_v33 = vmax.f32 %v8933_v12, %v1105_v46  ;;  %v9112_v20 = vmax.f32 %v8935_v49, %v1106_v19 }
  0xd6   :  { %v7414_v42 = vunpack.i.h.bf16 %v7412_v58  ;;  %v7413_v39 = vunpack.i.l.bf16 %v7412_v58  ;;  %v7429_v48 = vunpack.i.h.bf16 %v7427_v40  ;;  %v7428_v52 = vunpack.i.l.bf16 %v7427_v40 }
  0xd7   :  { %v7485_v10 = vpack.i.bf16 %v9106_v0, %v9103_v32  ;;  %v7500_v14 = vpack.i.bf16 %v9112_v20, %v9109_v33 }
  0xd8   :  { %v1293_v31 = vsel %vm13763_vm11, %v7414_v42, 0.0  ;;  %v1292_v22 = vsel %vm13763_vm11, %v7413_v39, 0.0  ;;  %v1307_v9 = vsel %vm13763_vm11, %v7429_v48, 0.0  ;;  %v1306_v21 = vsel %vm13763_vm11, %v7428_v52, 0.0 }
  0xd9   :  { %v7417_v4 = vpop.permute.xlu0 %7416  ;;  %7486 = vrot.lane.b32.xlu0 %v7485_v10, %s8350_s19  ;;  %v9128_v18 = vmax.f32 %v8931_v57, %v1292_v22  ;;  %v9131_v50 = vmax.f32 %v8929_v41, %v1293_v31  ;;  %7501 = vrot.lane.b32.xlu1 %v7500_v14, %s8350_s19  ;;  %v9135_v62 = vmax.f32 %v8933_v12, %v1306_v21 }
  0xda   :  { %v7419_v25 = vunpack.i.h.bf16 %v7417_v4  ;;  %v7418_v34 = vunpack.i.l.bf16 %v7417_v4  ;;  %v9138_v27 = vmax.f32 %v8935_v49, %v1307_v9 }
  0xdb   :  { %v7490_v5 = vpack.i.bf16 %v9131_v50, %v9128_v18 }
  0xdc   :  { %v1305_v57 = vsel %vm13763_vm11, %v7419_v25, 0.0  ;;  %v1304_v41 = vsel %vm13763_vm11, %v7418_v34, 0.0  ;;  %v7505_v43 = vpack.i.bf16 %v9138_v27, %v9135_v62 }
  0xdd   :  { %7491 = vrot.lane.b32.xlu0 %v7490_v5, %s8351_s20  ;;  %v9150_v12 = vmax.f32 %v8880_v15, %v1304_v41  ;;  %v9153_v49 = vmax.f32 %v8882_v55, %v1305_v57 }
  0xde   :  { %7506 = vrot.lane.b32.xlu1 %v7505_v43, %s8351_s20 }
  0xdf   :  { %v7495_v63 = vpack.i.bf16 %v9153_v49, %v9150_v12 }
  0xe1   :  { %7496 = vrot.lane.b32.xlu0 %v7495_v63, %s8351_s20 }
 0x10c   :  { %v7432_v54 = vpop.permute.xlu0 %7431 }
 0x10d   :  { %v7434_v8 = vunpack.i.h.bf16 %v7432_v54  ;;  %v7433_v44 = vunpack.i.l.bf16 %v7432_v54 }
 0x10f   :  { %v1163_v24 = vsel %vm13762_vm13, %v7434_v8, 0.0  ;;  %v1162_v15 = vsel %vm13762_vm13, %v7433_v44, 0.0 }
 0x110   :  { %v7442_v55 = vpop.permute.xlu0 %7441  ;;  %v9166_v45 = vmax.f32 %v8960_v37, %v1162_v15  ;;  %v9169_v19 = vmax.f32 %v8963_v28, %v1163_v24 }
 0x111   :  { %v7444_v46 = vunpack.i.h.bf16 %v7442_v55  ;;  %v7443_v58 = vunpack.i.l.bf16 %v7442_v55 }
 0x112   :  { %v7510_v40 = vpack.i.bf16 %v9169_v19, %v9166_v45 }
 0x113   :  { %v1364_v42 = vsel %vm13759_vm14, %v7444_v46, 0.0  ;;  %v1363_v39 = vsel %vm13759_vm14, %v7443_v58, 0.0 }
 0x114   :  { %7511 = vrot.lane.b32.xlu0 %v7510_v40, %s8352_s21  ;;  %v9179_v37 = vmax.f32 %v8968_v7, %v1363_v39  ;;  %v9182_v28 = vmax.f32 %v8971_v26, %v1364_v42 }
 0x116   :  { %v7437_v48 = vpop.permute.xlu1 %7436  ;;  %v7520_v52 = vpack.i.bf16 %v9182_v28, %v9179_v37 }
 0x117   :  { %v7439_v10 = vunpack.i.h.bf16 %v7437_v48  ;;  %v7438_v14 = vunpack.i.l.bf16 %v7437_v48 }
 0x118   :  { %7521 = vrot.lane.b32.xlu0 %v7520_v52, %s8353_s22 }
 0x119   :  { %v1165_v31 = vsel %vm13762_vm13, %v7439_v10, 0.0  ;;  %v1164_v22 = vsel %vm13762_vm13, %v7438_v14, 0.0 }
 0x11a   :  { %v7447_v7 = vpop.permute.xlu1 %7446  ;;  %v9192_v9 = vmax.f32 %v8982_v38, %v1164_v22  ;;  %v9195_v26 = vmax.f32 %v8985_v17, %v1165_v31 }
 0x11b   :  { %v7449_v21 = vunpack.i.h.bf16 %v7447_v7  ;;  %v7448_v4 = vunpack.i.l.bf16 %v7447_v7 }
 0x11c   :  { %v7515_v25 = vpack.i.bf16 %v9195_v26, %v9192_v9 }
 0x11d   :  { %v1366_v34 = vsel %vm13759_vm14, %v7449_v21, 0.0  ;;  %v1365_v5 = vsel %vm13759_vm14, %v7448_v4, 0.0 }
 0x11e   :  { %7516 = vrot.lane.b32.xlu1 %v7515_v25, %s8352_s21  ;;  %v9205_v57 = vmax.f32 %v8995_v60, %v1365_v5  ;;  %v9208_v38 = vmax.f32 %v8998_v30, %v1366_v34 }
 0x120   :  { %v7525_v17 = vpack.i.bf16 %v9208_v38, %v9205_v57 }
 0x122   :  { %v7452_v41 = vpop.permute.xlu0 %7451  ;;  %7526 = vrot.lane.b32.xlu1 %v7525_v17, %s8353_s22 }
 0x123   :  { %v7454_v43 = vunpack.i.h.bf16 %v7452_v41  ;;  %v7453_v63 = vunpack.i.l.bf16 %v7452_v41 }
 0x125   :  { %v1167_v54 = vsel %vm13762_vm13, %v7454_v43, 0.0  ;;  %v1166_v8 = vsel %vm13762_vm13, %v7453_v63, 0.0 }
 0x126   :  { %v7462_v44 = vpop.permute.xlu0 %7461  ;;  %v9218_v60 = vmax.f32 %v9008_v35, %v1166_v8  ;;  %v9221_v30 = vmax.f32 %v9011_v3, %v1167_v54 }
 0x127   :  { %v7464_v24 = vunpack.i.h.bf16 %v7462_v44  ;;  %v7463_v15 = vunpack.i.l.bf16 %v7462_v44 }
 0x128   :  { %v7530_v55 = vpack.i.bf16 %v9221_v30, %v9218_v60 }
 0x129   :  { %v1368_v46 = vsel %vm13759_vm14, %v7464_v24, 0.0  ;;  %v1367_v58 = vsel %vm13759_vm14, %v7463_v15, 0.0 }
 0x12a   :  { %7531 = vrot.lane.b32.xlu0 %v7530_v55, %s8352_s21  ;;  %v9231_v40 = vmax.f32 %v9021_v13, %v1367_v58  ;;  %v9234_v35 = vmax.f32 %v9024_v47, %v1368_v46 }
 0x12c   :  { %v7540_v3 = vpack.i.bf16 %v9234_v35, %v9231_v40 }
 0x12e   :  { %7541 = vrot.lane.b32.xlu0 %v7540_v3, %s8353_s22 }
 0x136   :  { %v7457_v42 = vpop.permute.xlu1 %7456 }
 0x137   :  { %v7459_v39 = vunpack.i.h.bf16 %v7457_v42  ;;  %v7458_v48 = vunpack.i.l.bf16 %v7457_v42 }
 0x139   :  { %v1169_v52 = vsel %vm13762_vm13, %v7459_v39, 0.0  ;;  %v1168_v10 = vsel %vm13762_vm13, %v7458_v48, 0.0 }
 0x13a   :  { %v7467_v14 = vpop.permute.xlu1 %7466  ;;  %v9244_v13 = vmax.f32 %v9034_v56, %v1168_v10  ;;  %v9247_v47 = vmax.f32 %v9037_v51, %v1169_v52 }
 0x13b   :  { %v7469_v31 = vunpack.i.h.bf16 %v7467_v14  ;;  %v7468_v22 = vunpack.i.l.bf16 %v7467_v14 }
 0x13c   :  { %v7535_v7 = vpack.i.bf16 %v9247_v47, %v9244_v13 }
 0x13d   :  { %v1370_v21 = vsel %vm13759_vm14, %v7469_v31, 0.0  ;;  %v1369_v4 = vsel %vm13759_vm14, %v7468_v22, 0.0 }
 0x13e   :  { %v7472_v25 = vpop.permute.xlu1 %7471  ;;  %7536 = vrot.lane.b32.xlu1 %v7535_v7, %s8352_s21  ;;  %v9257_v56 = vmax.f32 %v9051_v59, %v1369_v4  ;;  %v9260_v51 = vmax.f32 %v9054_v61, %v1370_v21 }
 0x13f   :  { %v7474_v34 = vunpack.i.h.bf16 %v7472_v25  ;;  %v7473_v5 = vunpack.i.l.bf16 %v7472_v25 }
 0x140   :  { %v7545_v17 = vpack.i.bf16 %v9260_v51, %v9257_v56 }
 0x141   :  { %v1161_v41 = vsel %vm13762_vm13, %v7474_v34, 0.0  ;;  %v1160_v43 = vsel %vm13762_vm13, %v7473_v5, 0.0 }
 0x142   :  { %v7482_v63 = vpop.permute.xlu0 %7481  ;;  %v7477_v54 = vpop.permute.xlu1 %7476  ;;  %7546 = vrot.lane.b32.xlu1 %v7545_v17, %s8353_s22  ;;  %v9270_v59 = vmax.f32 %v9059_v6, %v1160_v43  ;;  %v9273_v61 = vmax.f32 %v9062_v11, %v1161_v41 }
 0x143   :  { %v7484_v8 = vunpack.i.h.bf16 %v7482_v63  ;;  %v7483_v44 = vunpack.i.l.bf16 %v7482_v63  ;;  %v7479_v24 = vunpack.i.h.bf16 %v7477_v54  ;;  %v7478_v15 = vunpack.i.l.bf16 %v7477_v54 }
 0x144   :  { %v7550_v55 = vpack.i.bf16 %v9273_v61, %v9270_v59 }
 0x145   :  { %v1171_v46 = vsel %vm13762_vm13, %v7484_v8, 0.0  ;;  %v1170_v58 = vsel %vm13762_vm13, %v7483_v44, 0.0  ;;  %v1362_v6 = vsel %vm13759_vm14, %v7479_v24, 0.0  ;;  %v1361_v11 = vsel %vm13759_vm14, %v7478_v15, 0.0 }
 0x146   :  { %v9286_v3 = vmax.f32 %v9082_v23, %v1170_v58  ;;  %v9289_v42 = vmax.f32 %v9085_v36, %v1171_v46  ;;  %7551 = vrot.lane.b32.xlu1 %v7550_v55, %s8352_s21  ;;  %v9293_v39 = vmax.f32 %v9070_v53, %v1361_v11  ;;  %v9296_v48 = vmax.f32 %v9073_v2, %v1362_v6 }
 0x148   :  { %v7560_v52 = vpack.i.bf16 %v9289_v42, %v9286_v3  ;;  %v7555_v10 = vpack.i.bf16 %v9296_v48, %v9293_v39 }
 0x14a   :  { %7561 = vrot.lane.b32.xlu0 %v7560_v52, %s8352_s21  ;;  %7556 = vrot.lane.b32.xlu1 %v7555_v10, %s8353_s22 }
 0x14b   :  { %v7487_v23 = vpop.permute.xlu0 %7486  ;;  %v7502_v36 = vpop.permute.xlu1 %7501 }
 0x14c   :  { %v7489_v14 = vunpack.i.h.bf16 %v7487_v23  ;;  %v7488_v31 = vunpack.i.l.bf16 %v7487_v23  ;;  %v7504_v22 = vunpack.i.h.bf16 %v7502_v36  ;;  %v7503_v53 = vunpack.i.l.bf16 %v7502_v36 }
 0x14e   :  { %v1159_v2 = vsel %vm13762_vm13, %v7489_v14, 0.0  ;;  %v1158_v7 = vsel %vm13762_vm13, %v7488_v31, 0.0  ;;  %v1173_v21 = vsel %vm13762_vm13, %v7504_v22, 0.0  ;;  %v1172_v4 = vsel %vm13762_vm13, %v7503_v53, 0.0 }
 0x14f   :  { %v7492_v25 = vpop.permute.xlu0 %7491  ;;  %v9313_v34 = vmax.f32 %v9103_v32, %v1158_v7  ;;  %v9316_v5 = vmax.f32 %v9106_v0, %v1159_v2  ;;  %v9319_v17 = vmax.f32 %v9109_v33, %v1172_v4  ;;  %v9322_v41 = vmax.f32 %v9112_v20, %v1173_v21 }
 0x150   :  { %v7494_v43 = vunpack.i.h.bf16 %v7492_v25  ;;  %v7493_v63 = vunpack.i.l.bf16 %v7492_v25  ;;  %v7507_v54 = vpop.permute.xlu1 %7506 }
 0x151   :  { %v7565_v8 = vpack.i.bf16 %v9316_v5, %v9313_v34  ;;  %v7509_v44 = vunpack.i.h.bf16 %v7507_v54  ;;  %v7508_v24 = vunpack.i.l.bf16 %v7507_v54  ;;  %v7580_v32 = vpack.i.bf16 %v9322_v41, %v9319_v17 }
 0x152   :  { %v1360_v0 = vsel %vm13759_vm14, %v7494_v43, 0.0  ;;  %v1359_v33 = vsel %vm13759_vm14, %v7493_v63, 0.0 }
 0x153   :  { %v7497_v15 = vpop.permute.xlu0 %7496  ;;  %7566 = vrot.lane.b32.xlu0 %v7565_v8, %s8352_s21  ;;  %v9334_v20 = vmax.f32 %v9128_v18, %v1359_v33  ;;  %v9337_v55 = vmax.f32 %v9131_v50, %v1360_v0  ;;  %v1374_v46 = vsel %vm13759_vm14, %v7509_v44, 0.0  ;;  %v1373_v58 = vsel %vm13759_vm14, %v7508_v24, 0.0  ;;  %7581 = vrot.lane.b32.xlu1 %v7580_v32, %s8352_s21 }
 0x154   :  { %v7499_v6 = vunpack.i.h.bf16 %v7497_v15  ;;  %v7498_v11 = vunpack.i.l.bf16 %v7497_v15  ;;  %v9345_v52 = vmax.f32 %v9135_v62, %v1373_v58  ;;  %v9348_v10 = vmax.f32 %v9138_v27, %v1374_v46 }
 0x155   :  { %v7570_v18 = vpack.i.bf16 %v9337_v55, %v9334_v20 }
 0x156   :  { %v1372_v50 = vsel %vm13759_vm14, %v7499_v6, 0.0  ;;  %v1371_v23 = vsel %vm13759_vm14, %v7498_v11, 0.0  ;;  %v7585_v36 = vpack.i.bf16 %v9348_v10, %v9345_v52  ;;  %vm13760_vm14 = vcmp.ge.s32.totalorder %v8947_v16, 4 }
 0x157   :  { %7571 = vrot.lane.b32.xlu0 %v7570_v18, %s8353_s22  ;;  %v9360_v62 = vmax.f32 %v9150_v12, %v1371_v23  ;;  %v9363_v27 = vmax.f32 %v9153_v49, %v1372_v50 }
 0x158   :  { %7586 = vrot.lane.b32.xlu1 %v7585_v36, %s8353_s22 }
 0x159   :  { %v7575_v14 = vpack.i.bf16 %v9363_v27, %v9360_v62 }
 0x15b   :  { %7576 = vrot.lane.b32.xlu0 %v7575_v14, %s8353_s22 }
 0x186   :  { %v7512_v31 = vpop.permute.xlu0 %7511 }
 0x187   :  { %v7514_v22 = vunpack.i.h.bf16 %v7512_v31  ;;  %v7513_v53 = vunpack.i.l.bf16 %v7512_v31 }
 0x189   :  { %v1230_v12 = vsel %vm13761_vm15, %v7514_v22, 0.0  ;;  %v1229_v49 = vsel %vm13761_vm15, %v7513_v53, 0.0 }
 0x18a   :  { %v7522_v2 = vpop.permute.xlu0 %7521  ;;  %v1246_v43 = vmax.f32 %v9169_v19, %v1230_v12  ;;  %v1245_v63 = vmax.f32 %v9166_v45, %v1229_v49 }
 0x18b   :  { %v7524_v7 = vunpack.i.h.bf16 %v7522_v2  ;;  %v7523_v21 = vunpack.i.l.bf16 %v7522_v2 }
 0x18d   :  { %v1431_v4 = vsel %vm13760_vm14, %v7524_v7, 0.0  ;;  %v1430_v25 = vsel %vm13760_vm14, %v7523_v21, 0.0 }
 0x18e   :  { %v1447_v54 = vmax.f32 %v9182_v28, %v1431_v4  ;;  %v1446_v8 = vmax.f32 %v9179_v37, %v1430_v25 }
 0x190   :  { %v9383_v44 = vmax.f32 %v1245_v63, %v1446_v8  ;;  %v9385_v24 = vmax.f32 %v1246_v43, %v1447_v54  ;;  %v7517_v32 = vpop.permute.xlu1 %7516 }
 0x191   :  { %v7519_v0 = vunpack.i.h.bf16 %v7517_v32  ;;  %v7518_v33 = vunpack.i.l.bf16 %v7517_v32 }
 0x192   :  { %v6606_v15 = vpack.c.bf16 %v9385_v24, %v9383_v44 }
 0x193   :  { %v1232_v19 = vsel %vm13761_vm15, %v7519_v0, 0.0  ;;  %v1231_v45 = vsel %vm13761_vm15, %v7518_v33, 0.0 }
 0x194   :  { %7168 = vst [vmem:[#allocation5 + $0x10] sm:$0xff] %v6606_v15   ;;  %v7527_v46 = vpop.permute.xlu1 %7526  ;;  %v1248_v11 = vmax.f32 %v9195_v26, %v1232_v19  ;;  %v1247_v18 = vmax.f32 %v9192_v9, %v1231_v45 }
 0x195   :  { %v7529_v28 = vunpack.i.h.bf16 %v7527_v46  ;;  %v7528_v37 = vunpack.i.l.bf16 %v7527_v46 }
 0x197   :  { %v1433_v58 = vsel %vm13760_vm14, %v7529_v28, 0.0  ;;  %v1432_v6 = vsel %vm13760_vm14, %v7528_v37, 0.0 }
 0x198   :  { %v1449_v50 = vmax.f32 %v9208_v38, %v1433_v58  ;;  %v1448_v23 = vmax.f32 %v9205_v57, %v1432_v6 }
 0x19a   :  { %v9401_v36 = vmax.f32 %v1247_v18, %v1448_v23  ;;  %v9403_v14 = vmax.f32 %v1248_v11, %v1449_v50 }
 0x19c   :  { %v7532_v31 = vpop.permute.xlu0 %7531  ;;  %v6611_v22 = vpack.c.bf16 %v9403_v14, %v9401_v36 }
 0x19d   :  { %v7534_v53 = vunpack.i.h.bf16 %v7532_v31  ;;  %v7533_v2 = vunpack.i.l.bf16 %v7532_v31 }
 0x19e   :  { %7169 = vst [vmem:[#allocation5 + $0x18] sm:$0xff] %v6611_v22  }
 0x19f   :  { %v1234_v26 = vsel %vm13761_vm15, %v7534_v53, 0.0  ;;  %v1233_v9 = vsel %vm13761_vm15, %v7533_v2, 0.0 }
 0x1a0   :  { %v7542_v12 = vpop.permute.xlu0 %7541  ;;  %v1250_v21 = vmax.f32 %v9221_v30, %v1234_v26  ;;  %v1249_v4 = vmax.f32 %v9218_v60, %v1233_v9  ;;  %v1554_v30 = vmax.f32 %v9385_v24, %v9383_v44 }
 0x1a1   :  { %v7544_v38 = vunpack.i.h.bf16 %v7542_v12  ;;  %v7543_v57 = vunpack.i.l.bf16 %v7542_v12 }
 0x1a2   :  { %v1555_v19 = vmax.f32 %v9401_v36, %v1554_v30 }
 0x1a3   :  { %v1435_v49 = vsel %vm13760_vm14, %v7544_v38, 0.0  ;;  %v1434_v7 = vsel %vm13760_vm14, %v7543_v57, 0.0 }
 0x1a4   :  { %v1451_v25 = vmax.f32 %v9234_v35, %v1435_v49  ;;  %v1450_v43 = vmax.f32 %v9231_v40, %v1434_v7  ;;  %v1556_v53 = vmax.f32 %v9403_v14, %v1555_v19 }
 0x1a6   :  { %v9419_v63 = vmax.f32 %v1249_v4, %v1450_v43  ;;  %v9421_v54 = vmax.f32 %v1250_v21, %v1451_v25 }
 0x1a8   :  { %v6616_v8 = vpack.c.bf16 %v9421_v54, %v9419_v63  ;;  %v1557_v26 = vmax.f32 %v9419_v63, %v1556_v53 }
 0x1aa   :  { %7170 = vst [vmem:[#allocation5 + $0x20] sm:$0xff] %v6616_v8   ;;  %v1558_v43 = vmax.f32 %v9421_v54, %v1557_v26 }
 0x1b0   :  { %v7537_v32 = vpop.permute.xlu1 %7536 }
 0x1b1   :  { %v7539_v0 = vunpack.i.h.bf16 %v7537_v32  ;;  %v7538_v33 = vunpack.i.l.bf16 %v7537_v32 }
 0x1b3   :  { %v1236_v60 = vsel %vm13761_vm15, %v7539_v0, 0.0  ;;  %v1235_v40 = vsel %vm13761_vm15, %v7538_v33, 0.0 }
 0x1b4   :  { %v7547_v15 = vpop.permute.xlu1 %7546  ;;  %v1252_v37 = vmax.f32 %v9247_v47, %v1236_v60  ;;  %v1251_v58 = vmax.f32 %v9244_v13, %v1235_v40 }
 0x1b5   :  { %v7549_v35 = vunpack.i.h.bf16 %v7547_v15  ;;  %v7548_v46 = vunpack.i.l.bf16 %v7547_v15 }
 0x1b7   :  { %v1437_v45 = vsel %vm13760_vm14, %v7549_v35, 0.0  ;;  %v1436_v28 = vsel %vm13760_vm14, %v7548_v46, 0.0 }
 0x1b8   :  { %v1453_v6 = vmax.f32 %v9260_v51, %v1437_v45  ;;  %v1452_v11 = vmax.f32 %v9257_v56, %v1436_v28  ;;  %v7552_v18 = vpop.permute.xlu1 %7551 }
 0x1b9   :  { %v7554_v50 = vunpack.i.h.bf16 %v7552_v18  ;;  %v7553_v22 = vunpack.i.l.bf16 %v7552_v18 }
 0x1ba   :  { %v9440_v23 = vmax.f32 %v1251_v58, %v1452_v11  ;;  %v9442_v31 = vmax.f32 %v1252_v37, %v1453_v6 }
 0x1bb   :  { %v1228_v13 = vsel %vm13761_vm15, %v7554_v50, 0.0  ;;  %v1227_v56 = vsel %vm13761_vm15, %v7553_v22, 0.0 }
 0x1bc   :  { %v6621_v2 = vpack.c.bf16 %v9442_v31, %v9440_v23  ;;  %v7557_v12 = vpop.permute.xlu1 %7556  ;;  %v1244_v38 = vmax.f32 %v9273_v61, %v1228_v13  ;;  %v7562_v7 = vpop.permute.xlu0 %7561  ;;  %v1243_v21 = vmax.f32 %v9270_v59, %v1227_v56  ;;  %v9470_v61 = vld [vmem:[%s13756_s1 + $0xc0] sm:$0xff]   ;;  %v1559_v0 = vmax.f32 %v9440_v23, %v1558_v43 }
 0x1bd   :  { %v7559_v47 = vunpack.i.h.bf16 %v7557_v12  ;;  %v7558_v51 = vunpack.i.l.bf16 %v7557_v12  ;;  %v6635_v15 = vunpack.c.l.bf16 %v9470_v61  ;;  %v7563_v45 = vunpack.i.l.bf16 %v7562_v7 }
 0x1be   :  { %7171 = vst [vmem:[#allocation5 + $0x28] sm:$0xff] %v6621_v2   ;;  %v1560_v28 = vmax.f32 %v9442_v31, %v1559_v0  ;;  %v6636_v37 = vunpack.c.h.bf16 %v9470_v61 }
 0x1bf   :  { %v1429_v9 = vsel %vm13760_vm14, %v7559_v47, 0.0  ;;  %v1428_v49 = vsel %vm13760_vm14, %v7558_v51, 0.0 }
 0x1c0   :  { %v1445_v57 = vmax.f32 %v9296_v48, %v1429_v9  ;;  %v1444_v4 = vmax.f32 %v9293_v39, %v1428_v49  ;;  %v7564_v48 = vunpack.i.h.bf16 %v7562_v7 }
 0x1c2   :  { %v9460_v25 = vmax.f32 %v1244_v38, %v1445_v57  ;;  %v9463_v8 = vmax.f32 %v1243_v21, %v1444_v4  ;;  %v1238_v19 = vsel %vm13761_vm15, %v7564_v48, 0.0 }
 0x1c4   :  { %v6601_v32 = vpack.c.bf16 %v9460_v25, %v9463_v8 }
 0x1c5   :  { %v7567_v59 = vpop.permute.xlu0 %7566  ;;  %v7582_v39 = vpop.permute.xlu1 %7581 }
 0x1c6   :  { %7167 = vst [vmem:[#allocation5 + $0x8] sm:$0xff] %v6601_v32   ;;  %v7569_v33 = vunpack.i.h.bf16 %v7567_v59  ;;  %v7568_v30 = vunpack.i.l.bf16 %v7567_v59  ;;  %v7584_v35 = vunpack.i.h.bf16 %v7582_v39  ;;  %v7583_v46 = vunpack.i.l.bf16 %v7582_v39  ;;  %v7190_v39 = vld [vmem:[%s13756_s1 + $0x140] sm:$0xff]  }
 0x1c8   :  { %v1226_v60 = vsel %vm13761_vm15, %v7569_v33, 0.0  ;;  %v1225_v40 = vsel %vm13761_vm15, %v7568_v30, 0.0  ;;  %v1240_v18 = vsel %vm13761_vm15, %v7584_v35, 0.0  ;;  %v1239_v50 = vsel %vm13761_vm15, %v7583_v46, 0.0 }
 0x1c9   :  { %v7572_v58 = vpop.permute.xlu0 %7571  ;;  %v1242_v53 = vmax.f32 %v9316_v5, %v1226_v60  ;;  %v1241_v2 = vmax.f32 %v9313_v34, %v1225_v40  ;;  %v1256_v51 = vmax.f32 %v9322_v41, %v1240_v18  ;;  %v1255_v26 = vmax.f32 %v9319_v17, %v1239_v50 }
 0x1ca   :  { %v7574_v6 = vunpack.i.h.bf16 %v7572_v58  ;;  %v7573_v11 = vunpack.i.l.bf16 %v7572_v58  ;;  %v7587_v22 = vpop.permute.xlu1 %7586  ;;  %v1254_v41 = vmax.f32 %v9289_v42, %v1238_v19  ;;  %v1237_v17 = vsel %vm13761_vm15, %v7563_v45, 0.0 }
 0x1cb   :  { %v7589_v12 = vunpack.i.h.bf16 %v7587_v22  ;;  %v7588_v13 = vunpack.i.l.bf16 %v7587_v22  ;;  %v1253_v59 = vmax.f32 %v9286_v3, %v1237_v17  ;;  %v1792_v19 = vmul.f32 2.0, %v9463_v8 }
 0x1cc   :  { %v1427_v47 = vsel %vm13760_vm14, %v7574_v6, 0.0  ;;  %v1426_v56 = vsel %vm13760_vm14, %v7573_v11, 0.0  ;;  %v6700_v58 = vunpack.c.h.bf16 %v7190_v39 }
 0x1cd   :  { %v1443_v9 = vmax.f32 %v9337_v55, %v1427_v47  ;;  %v1442_v38 = vmax.f32 %v9334_v20, %v1426_v56  ;;  %v7577_v57 = vpop.permute.xlu0 %7576  ;;  %v1441_v34 = vsel %vm13760_vm14, %v7589_v12, 0.0  ;;  %v1440_v5 = vsel %vm13760_vm14, %v7588_v13, 0.0 }
 0x1ce   :  { %v7579_v49 = vunpack.i.h.bf16 %v7577_v57  ;;  %v7578_v7 = vunpack.i.l.bf16 %v7577_v57  ;;  %v1457_v21 = vmax.f32 %v9348_v10, %v1441_v34  ;;  %v1456_v4 = vmax.f32 %v9345_v52, %v1440_v5  ;;  %v7176_v57 = vld [vmem:[%s13756_s1 + $0xd0] sm:$0xff]   ;;  %v7183_v5 = vld [vmem:[%s13756_s1 + $0x108] sm:$0xff]  }
 0x1cf   :  { %v9505_v55 = vmax.f32 %v1241_v2, %v1442_v38  ;;  %v9507_v20 = vmax.f32 %v1242_v53, %v1443_v9  ;;  %v7191_v53 = vld [vmem:[%s13756_s1 + $0x148] sm:$0xff]   ;;  %v1793_v12 = vmul.f32 2.0, %v9460_v25  ;;  %v1808_v13 = vsub.f32 1.0, %v1792_v19 }
 0x1d0   :  { %v1439_v43 = vsel %vm13760_vm14, %v7579_v49, 0.0  ;;  %v1438_v32 = vsel %vm13760_vm14, %v7578_v7, 0.0  ;;  %v9513_v61 = vmax.f32 %v1255_v26, %v1456_v4  ;;  %v9515_v10 = vmax.f32 %v1256_v51, %v1457_v21 }
 0x1d1   :  { %v1561_v52 = vmax.f32 %v9505_v55, %v1560_v28  ;;  %v6596_v42 = vpack.c.bf16 %v9507_v20, %v9505_v55  ;;  %v1790_v48 = vmul.f32 2.0, %v9505_v55  ;;  %v1791_v0 = vmul.f32 2.0, %v9507_v20 }
 0x1d2   :  { %v1455_v33 = vmax.f32 %v9363_v27, %v1439_v43  ;;  %v1454_v30 = vmax.f32 %v9360_v62, %v1438_v32  ;;  %v6631_v60 = vpack.c.bf16 %v9515_v10, %v9513_v61  ;;  %v6699_v28 = vunpack.c.l.bf16 %v7190_v39  ;;  %v7175_v62 = vld [vmem:[%s13756_s1 + $0xc8] sm:$0xff]   ;;  %v7182_v27 = vld [vmem:[%s13756_s1 + $0x100] sm:$0xff]  }
 0x1d3   :  { %v1562_v40 = vmax.f32 %v9507_v20, %v1561_v52  ;;  %6597 = vst [vmem:[#allocation5] sm:$0xff] %v6596_v42   ;;  %v1806_v35 = vsub.f32 1.0, %v1790_v48  ;;  %v1807_v46 = vsub.f32 1.0, %v1791_v0  ;;  %v6639_v22 = vunpack.c.l.bf16 %v7175_v62 }
 0x1d4   :  { %v9532_v45 = vmax.f32 %v1253_v59, %v1454_v30  ;;  %v9534_v3 = vmax.f32 %v1254_v41, %v1455_v33  ;;  %7173 = vst [vmem:[#allocation5 + $0x38] sm:$0xff] %v6631_v60   ;;  %v6667_v47 = vunpack.c.l.bf16 %v7182_v27  ;;  %v6668_v56 = vunpack.c.h.bf16 %v7182_v27  ;;  %v7192_v59 = vld [vmem:[%s13756_s1 + $0x150] sm:$0xff]  }
 0x1d5   :  { %v1855_v6 = vmul.f32 %v6635_v15, %v1806_v35  ;;  %v1856_v11 = vmul.f32 %v6636_v37, %v1807_v46  ;;  %v1563_v18 = vmax.f32 %v9463_v8, %v1562_v40  ;;  %v2004_v37 = vmul.f32 %v6699_v28, %v1806_v35 }
 0x1d6   :  { %v6626_v50 = vpack.c.bf16 %v9534_v3, %v9532_v45  ;;  %v2005_v51 = vmul.f32 %v6700_v58, %v1807_v46  ;;  %v6640_v9 = vunpack.c.h.bf16 %v7175_v62  ;;  %v6703_v38 = vunpack.c.l.bf16 %v7191_v53  ;;  %v7184_v58 = vld [vmem:[%s13756_s1 + $0x110] sm:$0xff]  }
 0x1d7   :  { %v1564_v2 = vmax.f32 %v9460_v25, %v1563_v18  ;;  %v1871_v15 = vadd.f32 %v1856_v11, %v1855_v6  ;;  %v1794_v34 = vmul.f32 2.0, %v9383_v44  ;;  %v1809_v49 = vsub.f32 1.0, %v1793_v12 }
 0x1d8   :  { %7172 = vst [vmem:[#allocation5 + $0x30] sm:$0xff] %v6626_v50   ;;  %v1857_v7 = vmul.f32 %v6639_v22, %v1808_v13  ;;  %v1928_v4 = vmul.f32 %v6667_v47, %v1806_v35  ;;  %v1929_v41 = vmul.f32 %v6668_v56, %v1807_v46  ;;  %v2020_v17 = vadd.f32 %v2005_v51, %v2004_v37 }
 0x1d9   :  { %v1565_v26 = vmax.f32 %v9532_v45, %v1564_v2  ;;  %v6643_v52 = vunpack.c.l.bf16 %v7176_v57  ;;  %v1795_v42 = vmul.f32 2.0, %v9385_v24  ;;  %v6671_v48 = vunpack.c.l.bf16 %v7183_v5  ;;  %v7177_v2 = vld [vmem:[%s13756_s1 + $0xd8] sm:$0xff]  }
 0x1da   :  { %v1872_v43 = vadd.f32 %v1871_v15, %v1857_v7  ;;  %v6704_v0 = vunpack.c.h.bf16 %v7191_v53  ;;  %v1810_v39 = vsub.f32 1.0, %v1794_v34  ;;  %v1858_v33 = vmul.f32 %v6640_v9, %v1809_v49  ;;  %v7193_v7 = vld [vmem:[%s13756_s1 + $0x158] sm:$0xff]  }
 0x1db   :  { %v1566_v21 = vmax.f32 %v9534_v3, %v1565_v26  ;;  %v2006_v30 = vmul.f32 %v6703_v38, %v1808_v13  ;;  %v1944_v40 = vadd.f32 %v1929_v41, %v1928_v4  ;;  %v6644_v35 = vunpack.c.h.bf16 %v7176_v57 }
 0x1dc   :  { %v1873_v46 = vadd.f32 %v1872_v43, %v1858_v33  ;;  %v6707_v62 = vunpack.c.l.bf16 %v7192_v59  ;;  %v1811_v27 = vsub.f32 1.0, %v1795_v42  ;;  %v6672_v6 = vunpack.c.h.bf16 %v7183_v5 }
 0x1dd   :  { %v1567_v32 = vmax.f32 %v9513_v61, %v1566_v21  ;;  %v2021_v19 = vadd.f32 %v2020_v17, %v2006_v30  ;;  %v1930_v11 = vmul.f32 %v6671_v48, %v1808_v13  ;;  %v1859_v18 = vmul.f32 %v6643_v52, %v1810_v39  ;;  %v7178_v17 = vld [vmem:[%s13756_s1 + $0xe0] sm:$0xff]  }
 0x1de   :  { %v1796_v50 = vmul.f32 2.0, %v9401_v36  ;;  %v2007_v22 = vmul.f32 %v6704_v0, %v1809_v49  ;;  %v6675_v47 = vunpack.c.l.bf16 %v7184_v58  ;;  %v6708_v51 = vunpack.c.h.bf16 %v7192_v59 }
 0x1df   :  { %v1568_v60 = vmax.f32 %v9515_v10, %v1567_v32  ;;  %v1945_v12 = vadd.f32 %v1944_v40, %v1930_v11  ;;  %v1874_v37 = vadd.f32 %v1873_v46, %v1859_v18  ;;  %v1797_v26 = vmul.f32 2.0, %v9403_v14 }
 0x1e0   :  { %v2022_v56 = vadd.f32 %v2021_v19, %v2007_v22  ;;  %v1931_v9 = vmul.f32 %v6672_v6, %v1809_v49  ;;  %v6647_v38 = vunpack.c.l.bf16 %v7177_v2  ;;  %v1860_v13 = vmul.f32 %v6644_v35, %v1811_v27  ;;  %v7185_v49 = vld [vmem:[%s13756_s1 + $0x118] sm:$0xff]  }
 0x1e1   :  { %v1569_v28 = vrot.slane %v1568_v60, 4  ;;  %v2008_v57 = vmul.f32 %v6707_v62, %v1810_v39  ;;  %v1812_v34 = vsub.f32 1.0, %v1796_v50  ;;  %v6676_v4 = vunpack.c.h.bf16 %v7184_v58 }
 0x1e2   :  { %v1946_v21 = vadd.f32 %v1945_v12, %v1931_v9  ;;  %v1875_v43 = vadd.f32 %v1874_v37, %v1860_v13  ;;  %v1932_v52 = vmul.f32 %v6675_v47, %v1810_v39  ;;  %v1813_v42 = vsub.f32 1.0, %v1797_v26 }
 0x1e3   :  { %v1570_v53 = vmax.f32 %v1568_v60, %v1569_v28  ;;  %v2023_v32 = vadd.f32 %v2022_v56, %v2008_v57  ;;  %v6648_v48 = vunpack.c.h.bf16 %v7177_v2  ;;  %v6711_v0 = vunpack.c.l.bf16 %v7193_v7 }
 0x1e4   :  { %v2009_v59 = vmul.f32 %v6708_v51, %v1811_v27  ;;  %v1798_v33 = vmul.f32 2.0, %v9419_v63  ;;  %v1861_v60 = vmul.f32 %v6647_v38, %v1812_v34  ;;  %v6651_v40 = vunpack.c.l.bf16 %v7178_v17 }
 0x1e5   :  { %v1571_v15 = vrot.slane %v1570_v53, 2  ;;  %v6712_v35 = vunpack.c.h.bf16 %v7193_v7  ;;  %v6679_v46 = vunpack.c.l.bf16 %v7185_v49  ;;  %v1947_v19 = vadd.f32 %v1946_v21, %v1932_v52  ;;  %v7186_v21 = vld [vmem:[%s13756_s1 + $0x120] sm:$0xff]  }
 0x1e6   :  { %v1933_v28 = vmul.f32 %v6676_v4, %v1811_v27  ;;  %v1876_v58 = vadd.f32 %v1875_v43, %v1861_v60  ;;  %v2024_v62 = vadd.f32 %v2023_v32, %v2009_v59  ;;  %v1862_v11 = vmul.f32 %v6648_v48, %v1813_v42  ;;  %v7194_v27 = vld [vmem:[%s13756_s1 + $0x160] sm:$0xff]  }
 0x1e7   :  { %v1572_v5 = vmax.f32 %v1570_v53, %v1571_v15  ;;  %v2010_v18 = vmul.f32 %v6711_v0, %v1812_v34  ;;  %v1799_v50 = vmul.f32 2.0, %v9421_v54  ;;  %v1814_v22 = vsub.f32 1.0, %v1798_v33 }
 0x1e8   :  { %v1948_v12 = vadd.f32 %v1947_v19, %v1933_v28  ;;  %v1877_v15 = vadd.f32 %v1876_v58, %v1862_v11  ;;  %v6652_v51 = vunpack.c.h.bf16 %v7178_v17  ;;  %v6715_v26 = vunpack.c.l.bf16 %v7194_v27  ;;  %v7180_v58 = vld [vmem:[%s13756_s1 + $0xf0] sm:$0xff]   ;;  %v7187_v11 = vld [vmem:[%s13756_s1 + $0x128] sm:$0xff]  }
 0x1e9   :  { %v1573_v41 = vrot.slane %v1572_v5, 1  ;;  %v2025_v37 = vadd.f32 %v2024_v62, %v2010_v18  ;;  %v2011_v9 = vmul.f32 %v6712_v35, %v1813_v42  ;;  %v6680_v38 = vunpack.c.h.bf16 %v7185_v49 }
 0x1ea   :  { %v1815_v13 = vsub.f32 1.0, %v1799_v50  ;;  %v1800_v57 = vmul.f32 2.0, %v9440_v23  ;;  %v1863_v7 = vmul.f32 %v6651_v40, %v1814_v22  ;;  %v1934_v4 = vmul.f32 %v6679_v46, %v1812_v34 }
 0x1eb   :  { %v1574_v30 = vmax.f32 %v1572_v5, %v1573_v41  ;;  %v7179_v5 = vld [vmem:[%s13756_s1 + $0xe8] sm:$0xff]   ;;  %v2026_v17 = vadd.f32 %v2025_v37, %v2011_v9  ;;  %v6716_v49 = vunpack.c.h.bf16 %v7194_v27  ;;  %v6683_v52 = vunpack.c.l.bf16 %v7186_v21 }
 0x1ec   :  { %v1878_v41 = vadd.f32 %v1877_v15, %v1863_v7  ;;  %v1949_v43 = vadd.f32 %v1948_v12, %v1934_v4  ;;  %v6655_v32 = vunpack.c.l.bf16 %v7179_v5  ;;  %v1935_v48 = vmul.f32 %v6680_v38, %v1813_v42  ;;  %v7181_v4 = vld [vmem:[%s13756_s1 + $0xf8] sm:$0xff]  }
 0x1ed   :  { %vm1575_vm14 = vcmp.gt.f32.partialorder %v1574_v30, 0.5  ;;  %v1816_v0 = vsub.f32 1.0, %v1800_v57  ;;  %v1801_v59 = vmul.f32 2.0, %v9442_v31  ;;  %v1864_v33 = vmul.f32 %v6652_v51, %v1815_v13  ;;  %v7195_v30 = vld [vmem:[%s13756_s1 + $0x168] sm:$0xff]  }
 0x1ee   :  { %v9584_v6 = vsel %vm1575_vm14, %v8947_v16, 4294967295  ;;  %v9587_v39 = vsel %vm1575_vm14, %v8947_v16, 1073741824  ;;  %v2012_v34 = vmul.f32 %v6715_v26, %v1814_v22  ;;  %v1950_v35 = vadd.f32 %v1949_v43, %v1935_v48  ;;  %v7196_v26 = vld [vmem:[%s13756_s1 + $0x170] sm:$0xff]  }
 0x1ef   :  { %v1642_v53 = vshra.s32 %v9584_v6, 16  ;;  %v1626_v2 = vshra.s32 %v9587_v39, 16  ;;  %v1879_v60 = vadd.f32 %v1878_v41, %v1864_v33  ;;  %v6656_v46 = vunpack.c.h.bf16 %v7179_v5  ;;  %v7188_v43 = vld [vmem:[%s13756_s1 + $0x130] sm:$0xff]  }
 0x1f0   :  { %v2027_v40 = vadd.f32 %v2026_v17, %v2012_v34  ;;  %v6719_v19 = vunpack.c.l.bf16 %v7195_v30  ;;  %v2013_v28 = vmul.f32 %v6716_v49, %v1815_v13  ;;  %v6684_v42 = vunpack.c.h.bf16 %v7186_v21  ;;  %v7197_v34 = vld [vmem:[%s13756_s1 + $0x178] sm:$0xff]  }
 0x1f1   :  { %v9595_v47 = vcvt.s32.f32 %v1642_v53  ;;  %v9597_v56 = vcvt.s32.f32 %v1626_v2  ;;  %v1865_v62 = vmul.f32 %v6655_v32, %v1816_v0  ;;  %v1936_v18 = vmul.f32 %v6683_v52, %v1814_v22 }
 0x1f2   :  { %v2028_v53 = vadd.f32 %v2027_v40, %v2013_v28  ;;  %v6659_v27 = vunpack.c.l.bf16 %v7180_v58  ;;  %v6687_v12 = vunpack.c.l.bf16 %v7187_v11  ;;  %v1803_v15 = vmul.f32 2.0, %v9534_v3 }
 0x1f3   :  { %1645 = vmax.xlane.f32.xlu1 %v9595_v47  ;;  %1629 = vmin.xlane.f32.xlu0 %v9597_v56  ;;  %v1880_v50 = vadd.f32 %v1879_v60, %v1865_v62  ;;  %v1951_v2 = vadd.f32 %v1950_v35, %v1936_v18  ;;  %v2014_v22 = vmul.f32 %v6719_v19, %v1816_v0  ;;  %v6660_v5 = vunpack.c.h.bf16 %v7180_v58  ;;  %v7189_v58 = vld [vmem:[%s13756_s1 + $0x138] sm:$0xff]  }
 0x1f4   :  { %v6723_v7 = vunpack.c.l.bf16 %v7196_v26  ;;  %v6688_v21 = vunpack.c.h.bf16 %v7187_v11  ;;  %v6663_v48 = vunpack.c.l.bf16 %v7181_v4  ;;  %v6664_v19 = vunpack.c.h.bf16 %v7181_v4 }
 0x1f5   :  { %v2029_v38 = vadd.f32 %v2028_v53, %v2014_v22  ;;  %v6727_v28 = vunpack.c.l.bf16 %v7197_v34  ;;  %v1641_v22 = vand.u32 65535, %v9584_v6 }
 0x1f7   :  { %1580 = vmax.xlane.f32.xlu1 %v9463_v8  ;;  %1576 = vmax.xlane.f32.xlu0 %v9505_v55  ;;  %v1802_v8 = vmul.f32 2.0, %v9532_v45  ;;  %v1817_v55 = vsub.f32 1.0, %v1801_v59  ;;  %v1805_v59 = vmul.f32 2.0, %v9515_v10 }
 0x1f9   :  { %v1818_v37 = vsub.f32 1.0, %v1802_v8  ;;  %v1866_v51 = vmul.f32 %v6656_v46, %v1817_v55 }
 0x1fb   :  { %1584 = vmax.xlane.f32.xlu1 %v9383_v44  ;;  %1578 = vmax.xlane.f32.xlu0 %v9507_v20  ;;  %v6720_v44 = vunpack.c.h.bf16 %v7195_v30  ;;  %v1937_v20 = vmul.f32 %v6684_v42, %v1815_v13  ;;  %v1881_v9 = vadd.f32 %v1880_v50, %v1866_v51  ;;  %v1938_v13 = vmul.f32 %v6687_v12, %v1816_v0 }
 0x1fc   :  { %v1867_v41 = vmul.f32 %v6659_v27, %v1818_v37  ;;  %v6691_v0 = vunpack.c.l.bf16 %v7188_v43  ;;  %v2016_v60 = vmul.f32 %v6723_v7, %v1818_v37  ;;  %v6692_v42 = vunpack.c.h.bf16 %v7188_v43 }
 0x1fd   :  { %v1952_v57 = vadd.f32 %v1951_v2, %v1937_v20  ;;  %v2015_v17 = vmul.f32 %v6720_v44, %v1817_v55  ;;  %v6728_v50 = vunpack.c.h.bf16 %v7197_v34  ;;  %v6695_v2 = vunpack.c.l.bf16 %v7189_v58 }
 0x1fe   :  { %v1882_v32 = vadd.f32 %v1881_v9, %v1867_v41  ;;  %v1625_v9 = vand.u32 65535, %v9587_v39 }
 0x1ff   :  { %1588 = vmax.xlane.f32.xlu1 %v9401_v36  ;;  %1582 = vmax.xlane.f32.xlu0 %v9460_v25  ;;  %v1804_v36 = vmul.f32 2.0, %v9513_v61  ;;  %v1819_v25 = vsub.f32 1.0, %v1803_v15  ;;  %v2030_v49 = vadd.f32 %v2029_v38, %v2015_v17  ;;  %v1953_v52 = vadd.f32 %v1952_v57, %v1938_v13 }
 0x200   :  { %v6696_v15 = vunpack.c.h.bf16 %v7189_v58 }
 0x201   :  { %v1820_v33 = vsub.f32 1.0, %v1804_v36  ;;  %v1868_v30 = vmul.f32 %v6660_v5, %v1819_v25  ;;  %v2031_v35 = vadd.f32 %v2030_v49, %v2016_v60  ;;  %v1627_v5 = vcvt.s32.f32 %v1625_v9 }
 0x202   :  { %v9697_v60 = vadd.s32 96, %v8386_v1 }
 0x203   :  { %1592 = vmax.xlane.f32.xlu1 %v9419_v63  ;;  %1586 = vmax.xlane.f32.xlu0 %v9385_v24  ;;  %v6724_v63 = vunpack.c.h.bf16 %v7196_v26  ;;  %v1939_v24 = vmul.f32 %v6688_v21, %v1817_v55  ;;  %v1883_v40 = vadd.f32 %v1882_v32, %v1868_v30  ;;  %v1940_v55 = vmul.f32 %v6691_v0, %v1818_v37 }
 0x204   :  { %v1942_v37 = vmul.f32 %v6695_v2, %v1820_v33  ;;  %v9672_v32 = vadd.s32 8, %v8386_v1  ;;  %v9693_v30 = vadd.s32 56, %v8386_v1  ;;  %13864 = vst [vmem:[#allocation13_spill] sm:$0xff] %v9697_v60 }
 0x205   :  { %v1954_v46 = vadd.f32 %v1953_v52, %v1939_v24  ;;  %v2017_v8 = vmul.f32 %v6724_v63, %v1819_v25  ;;  %v9677_v52 = vadd.s32 48, %v8386_v1  ;;  %v9683_v63 = vadd.s32 64, %v8386_v1 }
 0x206   :  { %v9687_v24 = vadd.s32 40, %v8386_v1 }
 0x207   :  { %1596 = vmax.xlane.f32.xlu1 %v9440_v23  ;;  %1590 = vmax.xlane.f32.xlu0 %v9403_v14  ;;  %v1821_v14 = vsub.f32 1.0, %v1805_v59  ;;  %v1869_v23 = vmul.f32 %v6663_v48, %v1820_v33  ;;  %v2032_v11 = vadd.f32 %v2031_v35, %v2017_v8  ;;  %v1955_v18 = vadd.f32 %v1954_v46, %v1940_v55 }
 0x208   :  { %v9680_v48 = vadd.s32 24, %v8386_v1  ;;  %v9705_v46 = vadd.s32 112, %v8386_v1 }
 0x209   :  { %v1884_v62 = vadd.f32 %v1883_v40, %v1869_v23  ;;  %v1870_v53 = vmul.f32 %v6664_v19, %v1821_v14  ;;  %v2019_v20 = vmul.f32 %v6728_v50, %v1821_v14  ;;  %v9700_v40 = vadd.s32 72, %v8386_v1 }
 0x20a   :  { %13866 = vst [vmem:[#allocation15_spill] sm:$0xff] %v9705_v46  ;;  %v9708_v19 = vadd.s32 88, %v8386_v1 }
 0x20b   :  { %1600 = vmax.xlane.f32.xlu1 %v9532_v45  ;;  %1594 = vmax.xlane.f32.xlu0 %v9421_v54  ;;  %v2018_v45 = vmul.f32 %v6727_v28, %v1820_v33  ;;  %v1941_v54 = vmul.f32 %v6692_v42, %v1819_v25  ;;  %v1885_v27 = vadd.f32 %v1884_v62, %v1870_v53  ;;  %v9690_v33 = vadd.s32 80, %v8386_v1 }
 0x20c   :  { %13865 = vst [vmem:[#allocation14_spill] sm:$0xff] %v9700_v40  ;;  %13867 = vst [vmem:[#allocation16_spill] sm:$0xff] %v9708_v19  ;;  %v9713_v42 = vadd.s32 104, %v8386_v1 }
 0x20d   :  { %v2033_v44 = vadd.f32 %v2032_v11, %v2018_v45  ;;  %v1956_v12 = vadd.f32 %v1955_v18, %v1941_v54  ;;  %13863 = vst [vmem:[#allocation12_spill] sm:$0xff] %v9690_v33 }
 0x20e   :  { %13868 = vst [vmem:[#allocation17_spill] sm:$0xff] %v9713_v42 }
 0x20f   :  { %1604 = vmax.xlane.f32.xlu1 %v9513_v61  ;;  %1598 = vmax.xlane.f32.xlu0 %v9442_v31  ;;  %v2034_v51 = vadd.f32 %v2033_v44, %v2019_v20  ;;  %v1957_v26 = vadd.f32 %v1956_v12, %v1942_v37  ;;  %v1943_v61 = vmul.f32 %v6696_v15, %v1821_v14 }
 0x211   :  { %v1958_v31 = vadd.f32 %v1957_v26, %v1943_v61 }
 0x213   :  { %1886 = vadd.xlane.f32.xlu1 %v1885_v27  ;;  %1602 = vmax.xlane.f32.xlu0 %v9534_v3  ;;  %v1643_v3 = vcvt.s32.f32 %v1641_v22 }
 0x217   :  { %2035 = vadd.xlane.f32.xlu1 %v2034_v51  ;;  %1606 = vmax.xlane.f32.xlu0 %v9515_v10 }
 0x21b   :  { %1959 = vadd.xlane.f32.xlu0 %v1958_v31 }
 0x280   :  { %v9655_v38 = vpop.xlane.xlu1 %1645  ;;  %v9657_v57 = vpop.xlane.xlu0 %1629 }
 0x281   :  { %vm1647_vm14 = vcmp.eq.f32.partialorder %v9595_v47, %v9655_v38  ;;  %vm1631_vm15 = vcmp.eq.f32.partialorder %v9597_v56, %v9657_v57  ;;  %v9666_v47 = vadd.s32 32, %v8386_v1  ;;  %v9669_v56 = vadd.s32 16, %v8386_v1 }
 0x282   :  { %v1648_v10 = vsel %vm1647_vm14, %v1643_v3, -inf  ;;  %v1632_v7 = vsel %vm1631_vm15, %v1627_v5, inf }
 0x283   :  { %1649 = vmax.xlane.f32.xlu1 %v1648_v10  ;;  %1633 = vmin.xlane.f32.xlu0 %v1632_v7 }
 0x284   :  { %v1577_v21 = vpop.xlane.xlu0 %1576  ;;  %v1581_v39 = vpop.xlane.xlu1 %1580 }
 0x285   :  { %vm1608_vm15 = vcmp.gt.f32.partialorder %v1577_v21, 0.5  ;;  %vm1610_vm11 = vcmp.gt.f32.partialorder %v1581_v39, 0.5 }
 0x286   :  { %v1656_v35 = vsel %vm1608_vm15, %v8386_v1, 1073741824  ;;  %v1712_v28 = vsel %vm1608_vm15, %v8386_v1, 4294967295  ;;  %v1658_v55 = vsel %vm1610_vm11, %v9669_v56, 1073741824  ;;  %v1714_v58 = vsel %vm1610_vm11, %v9669_v56, 4294967295 }
 0x288   :  { %v1579_v6 = vpop.xlane.xlu0 %1578  ;;  %v1585_v25 = vpop.xlane.xlu1 %1584 }
 0x289   :  { %vm1612_vm13 = vcmp.gt.f32.partialorder %v1585_v25, 0.5  ;;  %vm1609_vm12 = vcmp.gt.f32.partialorder %v1579_v6, 0.5 }
 0x28a   :  { %v1660_v0 = vsel %vm1612_vm13, %v9666_v47, 1073741824  ;;  %v1716_v34 = vsel %vm1612_vm13, %v9666_v47, 4294967295  ;;  %v1657_v62 = vsel %vm1609_vm12, %v9672_v32, 1073741824  ;;  %v1713_v11 = vsel %vm1609_vm12, %v9672_v32, 4294967295 }
 0x28b   :  { %vm1672_vm13 = vcmp.lt.s32.totalorder %v1656_v35, %v1660_v0  ;;  %vm1728_vm9 = vcmp.gt.s32.totalorder %v1712_v28, %v1716_v34 }
 0x28c   :  { %v1583_v13 = vpop.xlane.xlu0 %1582  ;;  %v1589_v41 = vpop.xlane.xlu1 %1588  ;;  %v9721_v18 = vsel %vm1672_vm13, %v1656_v35, %v1660_v0  ;;  %v9724_v53 = vsel %vm1728_vm9, %v1712_v28, %v1716_v34 }
 0x28d   :  { %vm1614_vm14 = vcmp.gt.f32.partialorder %v1589_v41, 0.5  ;;  %vm1611_vm7 = vcmp.gt.f32.partialorder %v1583_v13, 0.5 }
 0x28e   :  { %v1662_v14 = vsel %vm1614_vm14, %v9677_v52, 1073741824  ;;  %v1718_v23 = vsel %vm1614_vm14, %v9677_v52, 4294967295  ;;  %v1659_v2 = vsel %vm1611_vm7, %v9680_v48, 1073741824  ;;  %v1715_v15 = vsel %vm1611_vm7, %v9680_v48, 4294967295 }
 0x28f   :  { %vm1676_vm2 = vcmp.lt.s32.totalorder %v1658_v55, %v1662_v14  ;;  %vm1732_vm4 = vcmp.gt.s32.totalorder %v1714_v58, %v1718_v23 }
 0x290   :  { %v1587_v36 = vpop.xlane.xlu0 %1586  ;;  %v1593_v43 = vpop.xlane.xlu1 %1592  ;;  %v1677_v37 = vsel %vm1676_vm2, %v1658_v55, %v1662_v14  ;;  %v1733_v51 = vsel %vm1732_vm4, %v1714_v58, %v1718_v23 }
 0x291   :  { %vm1613_vm10 = vcmp.gt.f32.partialorder %v1587_v36, 0.5  ;;  %vm1616_vm15 = vcmp.gt.f32.partialorder %v1593_v43, 0.5 }
 0x292   :  { %v1661_v45 = vsel %vm1613_vm10, %v9687_v24, 1073741824  ;;  %v1664_v44 = vsel %vm1616_vm15, %v9683_v63, 1073741824  ;;  %v1720_v12 = vsel %vm1616_vm15, %v9683_v63, 4294967295  ;;  %v1717_v20 = vsel %vm1613_vm10, %v9687_v24, 4294967295 }
 0x293   :  { %vm1674_vm12 = vcmp.lt.s32.totalorder %v1657_v62, %v1661_v45  ;;  %vm1680_vm15 = vcmp.lt.s32.totalorder %v9721_v18, %v1664_v44  ;;  %vm1736_vm10 = vcmp.gt.s32.totalorder %v9724_v53, %v1720_v12  ;;  %vm1730_vm1 = vcmp.gt.s32.totalorder %v1713_v11, %v1717_v20 }
 0x294   :  { %v1591_v4 = vpop.xlane.xlu0 %1590  ;;  %v1597_v59 = vpop.xlane.xlu1 %1596  ;;  %v1675_v3 = vsel %vm1674_vm12, %v1657_v62, %v1661_v45  ;;  %v1731_v13 = vsel %vm1730_vm1, %v1713_v11, %v1717_v20  ;;  %v1681_v23 = vsel %vm1680_vm15, %v9721_v18, %v1664_v44  ;;  %v1737_v55 = vsel %vm1736_vm10, %v9724_v53, %v1720_v12 }
 0x295   :  { %vm1615_vm8 = vcmp.gt.f32.partialorder %v1591_v4, 0.5  ;;  %vm1618_vm11 = vcmp.gt.f32.partialorder %v1597_v59, 0.5 }
 0x296   :  { %v1663_v54 = vsel %vm1615_vm8, %v9693_v30, 1073741824  ;;  %v1719_v27 = vsel %vm1615_vm8, %v9693_v30, 4294967295  ;;  %v1666_v61 = vsel %vm1618_vm11, %v9690_v33, 1073741824  ;;  %v1722_v9 = vsel %vm1618_vm11, %v9690_v33, 4294967295 }
 0x297   :  { %vm1678_vm8 = vcmp.lt.s32.totalorder %v1659_v2, %v1663_v54  ;;  %vm1734_vm14 = vcmp.gt.s32.totalorder %v1715_v15, %v1719_v27  ;;  %vm1684_vm4 = vcmp.lt.s32.totalorder %v1677_v37, %v1666_v61  ;;  %vm1740_vm6 = vcmp.gt.s32.totalorder %v1733_v51, %v1722_v9 }
 0x298   :  { %v9663_v17 = vpop.xlane.xlu0 %1594  ;;  %v1601_v50 = vpop.xlane.xlu1 %1600  ;;  %v1679_v7 = vsel %vm1678_vm8, %v1659_v2, %v1663_v54  ;;  %v1735_v21 = vsel %vm1734_vm14, %v1715_v15, %v1719_v27  ;;  %v1685_v36 = vsel %vm1684_vm4, %v1677_v37, %v1666_v61  ;;  %v1741_v34 = vsel %vm1740_vm6, %v1733_v51, %v1722_v9 }
 0x299   :  { %vm1617_vm13 = vcmp.gt.f32.partialorder %v9663_v17, 0.5  ;;  %vm1620_vm12 = vcmp.gt.f32.partialorder %v1601_v50, 0.5 }
 0x29a   :  { %v1665_v10 = vsel %vm1617_vm13, %v9700_v40, 1073741824  ;;  %v1721_v6 = vsel %vm1617_vm13, %v9700_v40, 4294967295  ;;  %v1668_v59 = vsel %vm1620_vm12, %v9697_v60, 1073741824  ;;  %v1724_v28 = vsel %vm1620_vm12, %v9697_v60, 4294967295 }
 0x29b   :  { %vm1738_vm8 = vcmp.gt.s32.totalorder %v1731_v13, %v1721_v6  ;;  %vm1688_vm4 = vcmp.lt.s32.totalorder %v1681_v23, %v1668_v59  ;;  %vm1744_vm6 = vcmp.gt.s32.totalorder %v1737_v55, %v1724_v28 }
 0x29c   :  { %v9674_v49 = vpop.xlane.xlu0 %1598  ;;  %v1605_v31 = vpop.xlane.xlu1 %1604  ;;  %v1739_v14 = vsel %vm1738_vm8, %v1731_v13, %v1721_v6  ;;  %v1689_v2 = vsel %vm1688_vm4, %v1681_v23, %v1668_v59  ;;  %v1745_v54 = vsel %vm1744_vm6, %v1737_v55, %v1724_v28  ;;  %vm13870_vm4 = vcmp.lt.s32.totalorder %v8386_v1, 1 }
 0x29d   :  { %vm1619_vm9 = vcmp.gt.f32.partialorder %v9674_v49, 0.5  ;;  %vm1622_vm7 = vcmp.gt.f32.partialorder %v1605_v31, 0.5  ;;  %vm13871_vm6 = vmmov %vm13870_vm4 }
 0x29e   :  { %v1667_v22 = vsel %vm1619_vm9, %v9708_v19, 1073741824  ;;  %v1723_v5 = vsel %vm1619_vm9, %v9708_v19, 4294967295  ;;  %vm1682_vm9 = vcmp.lt.s32.totalorder %v1675_v3, %v1665_v10  ;;  %v1670_v4 = vsel %vm1622_vm7, %v9705_v46, 1073741824 }
 0x29f   :  { %vm1686_vm5 = vcmp.lt.s32.totalorder %v1679_v7, %v1667_v22  ;;  %vm1742_vm11 = vcmp.gt.s32.totalorder %v1735_v21, %v1723_v5  ;;  %v1726_v43 = vsel %vm1622_vm7, %v9705_v46, 4294967295  ;;  %v1683_v35 = vsel %vm1682_vm9, %v1675_v3, %v1665_v10 }
 0x2a0   :  { %v1603_v8 = vpop.xlane.xlu0 %1602  ;;  %v1687_v17 = vsel %vm1686_vm5, %v1679_v7, %v1667_v22  ;;  %v1743_v0 = vsel %vm1742_vm11, %v1735_v21, %v1723_v5  ;;  %vm1692_vm13 = vcmp.lt.s32.totalorder %v1685_v36, %v1670_v4  ;;  %v1887_v37 = vpop.xlane.xlu1 %1886 }
 0x2a1   :  { %vm1621_vm3 = vcmp.gt.f32.partialorder %v1603_v8, 0.5  ;;  %v1693_v62 = vsel %vm1692_vm13, %v1685_v36, %v1670_v4  ;;  %v1888_v22 = vrot.slane %v1887_v37, 4  ;;  %v1636_v36 = vcvt.f32.s32 %v9657_v57 }
 0x2a2   :  { %v1669_v41 = vsel %vm1621_vm3, %v9713_v42, 1073741824  ;;  %v1725_v49 = vsel %vm1621_vm3, %v9713_v42, 4294967295  ;;  %vm1748_vm3 = vcmp.gt.s32.totalorder %v1741_v34, %v1726_v43 }
 0x2a3   :  { %vm1746_vm5 = vcmp.gt.s32.totalorder %v1739_v14, %v1725_v49  ;;  %v1749_v50 = vsel %vm1748_vm3, %v1741_v34, %v1726_v43  ;;  %v1889_v21 = vadd.f32 %v1888_v22, %v1887_v37 }
 0x2a4   :  { %v1607_v26 = vpop.xlane.xlu0 %1606  ;;  %v1747_v45 = vsel %vm1746_vm5, %v1739_v14, %v1725_v49  ;;  %v2036_v61 = vpop.xlane.xlu1 %2035  ;;  %vm13869_vm5 = vcmp.lt.s32.totalorder %v8746_v29, 127 }
 0x2a5   :  { %vm1623_vm2 = vcmp.gt.f32.partialorder %v1607_v26, 0.5  ;;  %vm1752_vm15 = vcmp.gt.s32.totalorder %v1745_v54, %v1747_v45  ;;  %v2037_v5 = vrot.slane %v2036_v61, 4 }
 0x2a6   :  { %v1671_v39 = vsel %vm1623_vm2, %v8746_v29, 1073741824  ;;  %v1727_v25 = vsel %vm1623_vm2, %v8746_v29, 4294967295  ;;  %vm1690_vm2 = vcmp.lt.s32.totalorder %v1683_v35, %v1669_v41  ;;  %v1753_v20 = vsel %vm1752_vm15, %v1745_v54, %v1747_v45  ;;  %vm13875_vm15 = vmmov %vm13870_vm4 }
 0x2a7   :  { %vm1694_vm1 = vcmp.lt.s32.totalorder %v1687_v17, %v1671_v39  ;;  %vm1750_vm14 = vcmp.gt.s32.totalorder %v1743_v0, %v1727_v25  ;;  %v1691_v11 = vsel %vm1690_vm2, %v1683_v35, %v1669_v41  ;;  %v2038_v13 = vadd.f32 %v2037_v5, %v2036_v61 }
 0x2a8   :  { %v1695_v8 = vsel %vm1694_vm1, %v1687_v17, %v1671_v39  ;;  %v1751_v58 = vsel %vm1750_vm14, %v1743_v0, %v1727_v25  ;;  %vm1696_vm12 = vcmp.lt.s32.totalorder %v1689_v2, %v1691_v11  ;;  %v1960_v26 = vpop.xlane.xlu0 %1959  ;;  %v1890_v39 = vrot.slane %v1889_v21, 2 }
 0x2a9   :  { %vm1698_vm7 = vcmp.lt.s32.totalorder %v1693_v62, %v1695_v8  ;;  %vm1754_vm11 = vcmp.gt.s32.totalorder %v1749_v50, %v1751_v58  ;;  %v1697_v44 = vsel %vm1696_vm12, %v1689_v2, %v1691_v11  ;;  %v1961_v3 = vrot.slane %v1960_v26, 4  ;;  %vm13874_vm12 = vmmov %vm13870_vm4 }
 0x2aa   :  { %v1699_v18 = vsel %vm1698_vm7, %v1693_v62, %v1695_v8  ;;  %v1755_v27 = vsel %vm1754_vm11, %v1749_v50, %v1751_v58  ;;  %v1652_v41 = vcvt.f32.s32 %v9655_v38  ;;  %v2039_v43 = vrot.slane %v2038_v13, 2  ;;  %vm13872_vm7 = vmmov %vm13870_vm4 }
 0x2ab   :  { %vm1700_vm9 = vcmp.lt.s32.totalorder %v1697_v44, %v1699_v18  ;;  %vm1756_vm8 = vcmp.gt.s32.totalorder %v1753_v20, %v1755_v27  ;;  %v1962_v6 = vadd.f32 %v1961_v3, %v1960_v26  ;;  %v1891_v0 = vadd.f32 %v1890_v39, %v1889_v21 }
 0x2ac   :  { %v1701_v15 = vsel %vm1700_vm9, %v1697_v44, %v1699_v18  ;;  %v1757_v53 = vsel %vm1756_vm8, %v1753_v20, %v1755_v27  ;;  %v1637_v35 = vshll.u32 %v1636_v36, 16  ;;  %v1653_v55 = vshll.u32 %v1652_v41, 16  ;;  %vm13876_vm9 = vmmov %vm13870_vm4 }
 0x2ad   :  { %v1702_v12 = vrot.slane %v1701_v15, 4  ;;  %v1758_v51 = vrot.slane %v1757_v53, 4  ;;  %v1963_v4 = vrot.slane %v1962_v6, 2  ;;  %v2040_v58 = vadd.f32 %v2039_v43, %v2038_v13  ;;  %vm13877_vm8 = vmmov %vm13870_vm4 }
 0x2ae   :  { %v1892_v57 = vrot.slane %v1891_v0, 1  ;;  %vm13873_vm11 = vcmp.ge.s32.totalorder %v8386_v1, 1 }
 0x2af   :  { %vm1703_vm10 = vcmp.lt.s32.totalorder %v1701_v15, %v1702_v12  ;;  %vm1759_vm1 = vcmp.gt.s32.totalorder %v1757_v53, %v1758_v51  ;;  %v1964_v14 = vadd.f32 %v1963_v4, %v1962_v6  ;;  %v2041_v38 = vrot.slane %v2040_v58, 1 }
 0x2b0   :  { %v1704_v31 = vsel %vm1703_vm10, %v1701_v15, %v1702_v12  ;;  %v1760_v9 = vsel %vm1759_vm1, %v1757_v53, %v1758_v51  ;;  %v1893_v54 = vadd.f32 %v1892_v57, %v1891_v0  ;;  %vm13878_vm10 = vcmp.lt.s32.totalorder %v8386_v1, 6 }
 0x2b1   :  { %v1705_v10 = vrot.slane %v1704_v31, 2  ;;  %v1761_v7 = vrot.slane %v1760_v9, 2  ;;  %v1965_v50 = vrot.slane %v1964_v14, 1  ;;  %v2042_v27 = vadd.f32 %v2041_v38, %v2040_v58  ;;  %vm13879_vm1 = vmmov %vm13878_vm10 }
 0x2b3   :  { %vm1706_vm14 = vcmp.lt.s32.totalorder %v1704_v31, %v1705_v10  ;;  %vm1762_vm13 = vcmp.gt.s32.totalorder %v1760_v9, %v1761_v7  ;;  %v1966_v18 = vadd.f32 %v1965_v50, %v1964_v14 }
 0x2b4   :  { %v1707_v25 = vsel %vm1706_vm14, %v1704_v31, %v1705_v10  ;;  %v1763_v17 = vsel %vm1762_vm13, %v1760_v9, %v1761_v7  ;;  %vm13880_vm14 = vmmov %vm13879_vm1  ;;  %vm13881_vm13 = vcmp.lt.s32.totalorder %v8386_v1, 2 }
 0x2b5   :  { %v1708_v49 = vrot.slane %v1707_v25, 1  ;;  %v1764_v28 = vrot.slane %v1763_v17, 1 }
 0x2b7   :  { %vm1709_vm2 = vcmp.lt.s32.totalorder %v1707_v25, %v1708_v49  ;;  %vm1765_vm3 = vcmp.gt.s32.totalorder %v1763_v17, %v1764_v28 }
 0x2b8   :  { %v1710_v45 = vsel %vm1709_vm2, %v1707_v25, %v1708_v49  ;;  %v1766_v2 = vsel %vm1765_vm3, %v1763_v17, %v1764_v28  ;;  %vm13882_vm2 = vmmov %vm13881_vm13 }
 0x2b9   :  { %vm13883_vm3 = vmmov %vm13882_vm2 }
 0x310   :  { %v1650_v59 = vpop.xlane.xlu1 %1649  ;;  %v1634_v34 = vpop.xlane.xlu0 %1633 }
 0x311   :  { %v1651_v23 = vcvt.f32.s32 %v1650_v59  ;;  %v1635_v8 = vcvt.f32.s32 %v1634_v34 }
 0x313   :  { %v1638_v62 = vadd.s32 %v1637_v35, %v1635_v8  ;;  %v1654_v11 = vadd.s32 %v1653_v55, %v1651_v23 }
 0x315   :  { %7291 = vpush %v1638_v62 }
 0x316   :  { %7293 = vpush %v1654_v11 }
 0x317   :  { %7295 = vpush %v1710_v45 }
 0x318   :  { %7297 = vpush %v1766_v2 }
 0x319   :  { %7299 = vpush %v1893_v54 }
 0x31a   :  { %7301 = vpush %v1966_v18 }
 0x31b   :  { %7303 = vpush %v2042_v27 }
 0x346   :  { %s7292_s27 = spop %7291 }
 0x347   :  { %s7294_s28 = spop %7293 }
 0x348   :  { %p1768_p0 = scmp.ge.s32.totalorder %s7294_s28, 0  ;;  %s1777_s29 = ssub.s32 %s7294_s28, %s7292_s27 }
 0x349   :  { %s1778_s30 = sadd.s32 1, %s1777_s29  ;;  %s7296_s4 = spop %7295 }
 0x34a   :  { %s14512_s27 = smov (!%p1768_p0, %s7292_s27), 0  ;;  %s14514_s30 = smov (!%p1768_p0, %s1778_s30), 0 }
 0x34b   :  { %1772 = sst [smem:[#allocation8]] %s14512_s27  ;;  %s7298_s5 = spop %7297 }
 0x34c   :  { %1782 = sst [smem:[#allocation8 + $0x2]] %s14514_s30  ;;  %s1783_s6 = ssub.s32 %s7298_s5, %s7296_s4 }
 0x34d   :  { %s14516_s4 = smov (!%p1768_p0, %s7296_s4), 0  ;;  %s1784_s7 = sadd.s32 1, %s1783_s6 }
 0x34e   :  { %s7300_s8 = spop %7299  ;;  %1776 = sst [smem:[#allocation8 + $0x1]] %s14516_s4 }
 0x34f   :  { %s7302_s9 = spop %7301  ;;  %s14518_s7 = smov (!%p1768_p0, %s1784_s7), 0 }
 0x350   :  { %p1968_p1 = scmp.lt.f32.partialorder %s7302_s9, %s7300_s8  ;;  %1788 = sst [smem:[#allocation8 + $0x3]] %s14518_s7 }
 0x351   :  { %s7304_s10 = spop %7303 }
 0x352   :  { %s14520_s9 = smov (!%p1968_p1, %s7302_s9), %s7300_s8 }
 0x353   :  { %s1969_s11 = scalar_select %p1968_p1, 1, 0 }
 0x354   :  { %p2044_p2 = scmp.lt.f32.partialorder %s7304_s10, %s14520_s9 }
 0x356   :  { %s14522_s11 = smov (%p2044_p2, %s1969_s11), 2 }
 0x357   :  { %s6414_s12 = sshll.u32 %s14522_s11, 6 }
 0x358   :  { %s6079_s15 = scalar_lea.vmem %s13756_s1, %s6414_s12 }
 0x359   :  { %v7198_v44 = vld [vmem:[%s6079_s15 + $0xc0] sm:$0xff]   ;;  %v7199_v20 = vld [vmem:[%s6079_s15 + $0xc8] sm:$0xff]   ;;  %v7200_v15 = vld [vmem:[%s6079_s15 + $0xd0] sm:$0xff]  }
 0x35a   :  { %v9783_v53 = vunpack.c.l.bf16 %v7198_v44  ;;  %v9785_v12 = vunpack.c.h.bf16 %v7198_v44  ;;  %v9787_v37 = vunpack.c.l.bf16 %v7199_v20  ;;  %v9789_v51 = vunpack.c.h.bf16 %v7199_v20  ;;  %v7201_v26 = vld [vmem:[%s6079_s15 + $0xd8] sm:$0xff]   ;;  %v7202_v61 = vld [vmem:[%s6079_s15 + $0xe0] sm:$0xff]   ;;  %v7203_v31 = vld [vmem:[%s6079_s15 + $0xe8] sm:$0xff]  }
 0x35b   :  { %v9791_v22 = vunpack.c.l.bf16 %v7200_v15  ;;  %v9793_v9 = vunpack.c.h.bf16 %v7200_v15  ;;  %v9795_v3 = vunpack.c.l.bf16 %v7201_v26  ;;  %v6744_v5 = vunpack.c.h.bf16 %v7201_v26  ;;  %v7204_v10 = vld [vmem:[%s6079_s15 + $0xf0] sm:$0xff]   ;;  %v7205_v7 = vld [vmem:[%s6079_s15 + $0xf8] sm:$0xff]  }
 0x35c   :  { %v9797_v21 = vunpack.c.l.bf16 %v7202_v61  ;;  %v9799_v6 = vunpack.c.h.bf16 %v7202_v61  ;;  %v9801_v13 = vunpack.c.l.bf16 %v7203_v31  ;;  %v9803_v39 = vunpack.c.h.bf16 %v7203_v31 }
 0x35d   :  { %v9805_v36 = vunpack.c.l.bf16 %v7204_v10  ;;  %v9807_v25 = vunpack.c.h.bf16 %v7204_v10  ;;  %v9809_v4 = vunpack.c.l.bf16 %v7205_v7  ;;  %v9811_v41 = vunpack.c.h.bf16 %v7205_v7 }
 0x35e   :  { %v13776_v17 = vrot.slane %v9783_v53, 1  ;;  %v2094_v43 = vrot.slane %v9799_v6, 1  ;;  %v13783_v49 = vrot.slane %v9801_v13, 1  ;;  %v13779_v0 = vrot.slane %v9783_v53, 7 }
 0x35f   :  { %v13782_v59 = vrot.slane %v9807_v25, 1  ;;  %v13777_v34 = vrot.slane %v9809_v4, 1  ;;  %v13778_v35 = vrot.slane %v9811_v41, 1  ;;  %v13780_v28 = vrot.slane %v9785_v12, 7 }
 0x360   :  { %v2106_v14 = vsel %vm13835_vm0, %v2094_v43, %v13783_v49  ;;  %v13784_v23 = vrot.slane %v9787_v37, 7  ;;  %v13787_v8 = vrot.slane %v9789_v51, 7  ;;  %v2281_v55 = vrot.slane %v9791_v22, 7 }
 0x361   :  { %v2102_v58 = vsel %vm13835_vm0, %v13782_v59, %v13777_v34  ;;  %v2116_v62 = vsel %vm13835_vm0, %v13778_v35, %v13776_v17  ;;  %v9841_v11 = vmax.f32 %v9799_v6, %v2106_v14  ;;  %v13781_v57 = vrot.slane %v9797_v21, 7 }
 0x362   :  { %v2132_v50 = vsel %vm13869_vm5, %v2116_v62, 0.0  ;;  %v9847_v38 = vmax.f32 %v9807_v25, %v2102_v58  ;;  %v13775_v2 = vrot.slane %v9811_v41, 7  ;;  %v2304_v18 = vsel %vm13870_vm4, %v13787_v8, %v2281_v55 }
 0x363   :  { %v9852_v54 = vmax.f32 %v9811_v41, %v2132_v50  ;;  %v2306_v27 = vsel %vm13871_vm6, %v13780_v28, %v13784_v23  ;;  %v2091_v44 = vrot.slane %v9795_v3, 1  ;;  %v9875_v26 = vmax.f32 %v9791_v22, %v2304_v18 }
 0x364   :  { %v2308_v20 = vsel %vm13872_vm7, %v13775_v2, %v13779_v0  ;;  %v9872_v15 = vmax.f32 %v9787_v37, %v2306_v27  ;;  %v2092_v61 = vrot.slane %v6744_v5, 1  ;;  %v2093_v10 = vrot.slane %v9797_v21, 1 }
 0x365   :  { %v2309_v31 = vsel %vm13873_vm11, %v2308_v20, 0.0  ;;  %v13785_v7 = vrot.slane %v9841_v11, 2  ;;  %v2282_v14 = vrot.slane %v9793_v9, 7  ;;  %v2283_v50 = vrot.slane %v9795_v3, 7 }
 0x366   :  { %v9883_v58 = vmax.f32 %v9783_v53, %v2309_v31  ;;  %v2109_v62 = vsel %vm13835_vm0, %v2091_v44, %v2092_v61  ;;  %v2284_v18 = vrot.slane %v6744_v5, 7  ;;  %v2107_v27 = vsel %vm13835_vm0, %v2093_v10, %v2094_v43 }
 0x367   :  { %v2108_v20 = vsel %vm13835_vm0, %v2092_v61, %v2093_v10  ;;  %v2139_v2 = vmax.f32 %v9795_v3, %v2109_v62  ;;  %v2303_v17 = vsel %vm13874_vm12, %v2281_v55, %v2282_v14  ;;  %v2141_v31 = vmax.f32 %v9797_v21, %v2107_v27  ;;  %vm13890_vm12 = vmmov %vm13879_vm1 }
 0x368   :  { %v2140_v45 = vmax.f32 %v6744_v5, %v2108_v20  ;;  %v9900_v34 = vsel %vm13875_vm15, %v2284_v18, %v13781_v57  ;;  %v2301_v43 = vsel %vm13876_vm9, %v2283_v50, %v2284_v18  ;;  %v2302_v61 = vsel %vm13877_vm8, %v2282_v14, %v2283_v50  ;;  %vm13891_vm15 = vmmov %vm13879_vm1 }
 0x369   :  { %v2155_v35 = vrot.slane %v2139_v2, 2  ;;  %v2330_v10 = vmax.f32 %v9793_v9, %v2303_v17  ;;  %v9907_v62 = vmax.f32 %v6744_v5, %v2301_v43  ;;  %v2157_v20 = vrot.slane %v2141_v31, 2  ;;  %vm13893_vm9 = vmmov %vm13882_vm2 }
 0x36a   :  { %v2156_v55 = vrot.slane %v2140_v45, 2  ;;  %v2331_v27 = vmax.f32 %v9795_v3, %v2302_v61  ;;  %v2345_v0 = vrot.slane %v9875_v26, 6  ;;  %v13788_v59 = vrot.slane %v9791_v22, 1  ;;  %vm13895_vm8 = vmmov %vm13882_vm2 }
 0x36b   :  { %v2346_v28 = vrot.slane %v2330_v10, 6  ;;  %v13786_v57 = vrot.slane %v9907_v62, 6  ;;  %v2090_v18 = vrot.slane %v9793_v9, 1  ;;  %v2171_v17 = vsel %vm13878_vm10, %v2157_v20, %v13785_v7 }
 0x36c   :  { %v2172_v5 = vsel %vm13879_vm1, %v2156_v55, %v2157_v20  ;;  %v2173_v3 = vsel %vm13880_vm14, %v2155_v35, %v2156_v55  ;;  %v2347_v14 = vrot.slane %v2331_v27, 6  ;;  %v9922_v61 = vmax.f32 %v2141_v31, %v2171_v17 }
 0x36d   :  { %v2203_v50 = vmax.f32 %v2139_v2, %v2173_v3  ;;  %v2204_v43 = vmax.f32 %v2140_v45, %v2172_v5  ;;  %v2367_v49 = vsel %vm13881_vm13, %v2345_v0, %v2346_v28  ;;  %v2110_v55 = vsel %vm13835_vm0, %v2090_v18, %v2091_v44 }
 0x36e   :  { %v2365_v23 = vsel %vm13882_vm2, %v2347_v14, %v13786_v57  ;;  %v2366_v7 = vsel %vm13883_vm3, %v2346_v28, %v2347_v14  ;;  %v9932_v20 = vmax.f32 %v2330_v10, %v2367_v49  ;;  %v13789_v31 = vrot.slane %v9922_v61, 4  ;;  %vm13901_vm2 = vmmov %vm13872_vm7 }
 0x36f   :  { %v2219_v2 = vrot.slane %v2203_v50, 4  ;;  %v2220_v45 = vrot.slane %v2204_v43, 4  ;;  %v2395_v17 = vmax.f32 %v2331_v27, %v2366_v7  ;;  %v9938_v5 = vmax.f32 %v9907_v62, %v2365_v23  ;;  %vm13902_vm3 = vmmov %vm13901_vm2 }
 0x370   :  { %v2410_v3 = vrot.slane %v9932_v20, 4  ;;  %v2111_v28 = vsel %vm13835_vm0, %v13788_v59, %v2090_v18  ;;  %v2138_v49 = vmax.f32 %v9793_v9, %v2110_v55  ;;  %vm13884_vm5 = vcmp.lt.s32.totalorder %v8386_v1, 4 }
 0x371   :  { %v2236_v44 = vsel %vm13884_vm5, %v2220_v45, %v13789_v31  ;;  %vm13885_vm4 = vmmov %vm13884_vm5  ;;  %v2411_v10 = vrot.slane %v2395_v17, 4  ;;  %v9953_v23 = vmax.f32 %v9791_v22, %v2111_v28  ;;  %v13792_v57 = vrot.slane %v9938_v5, 4 }
 0x372   :  { %v2237_v7 = vsel %vm13885_vm4, %v2219_v2, %v2220_v45  ;;  %v2268_v14 = vmax.f32 %v2204_v43, %v2236_v44  ;;  %v2154_v8 = vrot.slane %v2138_v49, 2  ;;  %vm13886_vm6 = vmmov %vm13885_vm4  ;;  %v13887_v55 = vrot.slane %v9789_v51, 7 }
 0x373   :  { %v2267_v27 = vmax.f32 %v2203_v50, %v2237_v7  ;;  %v2430_v9 = vsel %vm13886_vm6, %v2410_v3, %v2411_v10  ;;  %v13793_v18 = vrot.slane %v9953_v23, 2  ;;  %v13888_v59 = vrot.slane %v9787_v37, 7  ;;  %vm13889_vm11 = vmmov %vm13885_vm4 }
 0x374   :  { %v2429_v50 = vsel %vm13889_vm11, %v2411_v10, %v13792_v57  ;;  %v2459_v43 = vmax.f32 %v2395_v17, %v2430_v9  ;;  %v2174_v44 = vsel %vm13890_vm12, %v2154_v8, %v2155_v35  ;;  %v2096_v28 = vrot.slane %v9803_v39, 1  ;;  %vm13897_vm10 = vmmov %vm13885_vm4 }
 0x375   :  { %v2305_v45 = vsel %vm13872_vm7, %v13888_v59, %v13887_v55  ;;  %v2460_v31 = vmax.f32 %v9938_v5, %v2429_v50  ;;  %v2175_v59 = vsel %vm13891_vm15, %v13793_v18, %v2154_v8  ;;  %v2202_v55 = vmax.f32 %v2138_v49, %v2174_v44  ;;  %vm13898_vm1 = vmmov %vm13885_vm4 }
 0x376   :  { %v2328_v7 = vmax.f32 %v9789_v51, %v2305_v45  ;;  %v9979_v42 = vmax.f32 %v2267_v27, %v2459_v43  ;;  %v9982_v10 = vmax.f32 %v9953_v23, %v2175_v59  ;;  %v2097_v35 = vrot.slane %v9805_v36, 1  ;;  %vm13899_vm14 = vmmov %vm13898_vm1 }
 0x377   :  { %v9985_v9 = vmax.f32 %v2268_v14, %v2460_v31  ;;  %v2218_v45 = vrot.slane %v2202_v55, 4  ;;  %v13892_v50 = vrot.slane %v9801_v13, 1  ;;  %v13894_v43 = vrot.slane %v9872_v15, 6  ;;  %vm13900_vm13 = vmmov %vm13898_vm1 }
 0x378   :  { %v2344_v17 = vrot.slane %v2328_v7, 6  ;;  %v13796_v49 = vrot.slane %v9982_v10, 4  ;;  %v13896_v31 = vrot.slane %v9807_v25, 1  ;;  %v2104_v8 = vsel %vm13835_vm0, %v2096_v28, %v2097_v35  ;;  %vm13904_vm5 = vmmov %vm13901_vm2 }
 0x379   :  { %v2105_v57 = vsel %vm13835_vm0, %v13892_v50, %v2096_v28  ;;  %v7595_v59 = vpack.i.bf16 %v9985_v9, %v9979_v42  ;;  %v2238_v50 = vsel %vm13897_vm10, %v2218_v45, %v2219_v2  ;;  %vm13906_vm4 = vmmov %vm13890_vm12 }
 0x37a   :  { %v2368_v27 = vsel %vm13893_vm9, %v2344_v17, %v2345_v0  ;;  %v2369_v44 = vsel %vm13895_vm8, %v13894_v43, %v2344_v17  ;;  %v2103_v14 = vsel %vm13835_vm0, %v2097_v35, %v13896_v31  ;;  %v2239_v17 = vsel %vm13898_vm1, %v13796_v49, %v2218_v45  ;;  %vm13907_vm6 = vmmov %vm13906_vm4 }
 0x37b   :  { %v10007_v18 = vmax.f32 %v2328_v7, %v2369_v44  ;;  %v2393_v0 = vmax.f32 %v9875_v26, %v2368_v27  ;;  %v2266_v43 = vmax.f32 %v2202_v55, %v2238_v50  ;;  %7596 = vrot.lane.b32.xlu0 %v7595_v59, %s8349_s18  ;;  %v2265_v31 = vmax.f32 %v9982_v10, %v2239_v17  ;;  %vm13908_vm7 = vmmov %vm13906_vm4 }
 0x37c   :  { %v2143_v7 = vmax.f32 %v9801_v13, %v2105_v57  ;;  %v2144_v26 = vmax.f32 %v9803_v39, %v2104_v8  ;;  %v2145_v27 = vmax.f32 %v9805_v36, %v2103_v14  ;;  %v2286_v44 = vrot.slane %v9799_v6, 7  ;;  %vm13910_vm11 = vmmov %vm13906_vm4 }
 0x37d   :  { %v13797_v60 = vrot.slane %v10007_v18, 4  ;;  %v2409_v2 = vrot.slane %v2393_v0, 4  ;;  %v2287_v55 = vrot.slane %v9801_v13, 7  ;;  %v13798_v50 = vrot.slane %v9803_v39, 7  ;;  %vm13911_vm12 = vmmov %vm13898_vm1 }
 0x37e   :  { %v2159_v45 = vrot.slane %v2143_v7, 2  ;;  %v2160_v17 = vrot.slane %v2144_v26, 2  ;;  %v2161_v14 = vrot.slane %v2145_v27, 2  ;;  %vm13913_vm15 = vmmov %vm13895_vm8 }
 0x37f   :  { %v2431_v28 = vsel %vm13899_vm14, %v2409_v2, %v2410_v3  ;;  %v2432_v35 = vsel %vm13900_vm13, %v13797_v60, %v2409_v2  ;;  %7606 = vrot.lane.b32.xlu0 %v7595_v59, %s8348_s0  ;;  %v2297_v3 = vsel %vm13901_vm2, %v2287_v55, %v13798_v50  ;;  %v2298_v49 = vsel %vm13902_vm3, %v2286_v44, %v2287_v55  ;;  %vm13914_vm9 = vmmov %vm13898_vm1 }
 0x380   :  { %v2457_v57 = vmax.f32 %v2393_v0, %v2432_v35  ;;  %v2458_v8 = vmax.f32 %v9932_v20, %v2431_v28  ;;  %v13903_v2 = vrot.slane %v9797_v21, 7  ;;  %v2333_v20 = vmax.f32 %v9797_v21, %v9900_v34  ;;  %vm13915_vm10 = vmmov %vm13895_vm8 }
 0x381   :  { %v13905_v59 = vrot.slane %v9847_v38, 2  ;;  %v2168_v55 = vsel %vm13907_vm6, %v2160_v17, %v2161_v14  ;;  %v2169_v50 = vsel %vm13908_vm7, %v2159_v45, %v2160_v17  ;;  %vm13916_vm1 = vmmov %vm13895_vm8 }
 0x382   :  { %v2299_v60 = vsel %vm13904_vm5, %v13903_v2, %v2286_v44  ;;  %v10045_v0 = vmax.f32 %v2265_v31, %v2457_v57  ;;  %v10047_v28 = vmax.f32 %v2266_v43, %v2458_v8  ;;  %v2208_v46 = vmax.f32 %v2144_v26, %v2168_v55  ;;  %vm13919_vm14 = vmmov %vm13901_vm2 }
 0x383   :  { %v2167_v35 = vsel %vm13906_vm4, %v2161_v14, %v13905_v59  ;;  %v2334_v21 = vmax.f32 %v9799_v6, %v2299_v60  ;;  %v2207_v43 = vmax.f32 %v2143_v7, %v2169_v50  ;;  %v2335_v31 = vmax.f32 %v9801_v13, %v2298_v49  ;;  %vm13920_vm13 = vmmov %vm13914_vm9 }
 0x384   :  { %v10057_v44 = vmax.f32 %v2145_v27, %v2167_v35  ;;  %v7590_v34 = vpack.i.bf16 %v10047_v28, %v10045_v0  ;;  %v2224_v57 = vrot.slane %v2208_v46, 4  ;;  %v10065_v2 = vmax.f32 %v9803_v39, %v2297_v3  ;;  %vm13922_vm2 = vmmov %vm13914_vm9 }
 0x385   :  { %v2349_v14 = vrot.slane %v2333_v20, 6  ;;  %v2223_v26 = vrot.slane %v2207_v43, 4  ;;  %v2350_v27 = vrot.slane %v2334_v21, 6  ;;  %v2351_v17 = vrot.slane %v2335_v31, 6  ;;  %vm13923_vm3 = vmmov %vm13922_vm2 }
 0x386   :  { %v13801_v8 = vrot.slane %v10057_v44, 4  ;;  %7591 = vrot.lane.b32.xlu1 %v7590_v34, %s8349_s18  ;;  %v13909_v60 = vrot.slane %v9841_v11, 2  ;;  %v2352_v49 = vrot.slane %v10065_v2, 6  ;;  %v13912_v50 = vrot.slane %v9907_v62, 6  ;;  %vm13925_vm5 = vmmov %vm13922_vm2 }
 0x387   :  { %v2233_v59 = vsel %vm13914_vm9, %v2223_v26, %v2224_v57  ;;  %v2363_v55 = vsel %vm13915_vm10, %v2349_v14, %v2350_v27  ;;  %vm13926_vm4 = vmmov %vm13922_vm2 }
 0x388   :  { %v2170_v6 = vsel %vm13910_vm11, %v13909_v60, %v2159_v45  ;;  %v2232_v13 = vsel %vm13911_vm12, %v2224_v57, %v13801_v8  ;;  %v2364_v3 = vsel %vm13913_vm15, %v13912_v50, %v2349_v14  ;;  %v2362_v45 = vsel %vm13895_vm8, %v2350_v27, %v2351_v17  ;;  %vm13928_vm6 = vmmov %vm13922_vm2 }
 0x389   :  { %v2206_v7 = vmax.f32 %v9841_v11, %v2170_v6  ;;  %v2272_v35 = vmax.f32 %v2208_v46, %v2232_v13  ;;  %v2271_v60 = vmax.f32 %v2207_v43, %v2233_v59  ;;  %v2361_v11 = vsel %vm13916_vm1, %v2351_v17, %v2352_v49  ;;  %vm13932_vm11 = vmmov %vm13908_vm7 }
 0x38a   :  { %v2398_v62 = vmax.f32 %v2334_v21, %v2363_v55  ;;  %v2399_v6 = vmax.f32 %v2335_v31, %v2362_v45  ;;  %7601 = vrot.lane.b32.xlu1 %v7590_v34, %s8348_s0  ;;  %v10094_v50 = vmax.f32 %v10065_v2, %v2361_v11  ;;  %v2397_v57 = vmax.f32 %v2333_v20, %v2364_v3  ;;  %vm13934_vm12 = vmmov %vm13916_vm1 }
 0x38b   :  { %v2222_v46 = vrot.slane %v2206_v7, 4  ;;  %v2087_v13 = vrot.slane %v9787_v37, 1  ;;  %v2088_v43 = vrot.slane %v9789_v51, 1  ;;  %v13917_v14 = vrot.slane %v9785_v12, 7  ;;  %vm13935_vm15 = vmmov %vm13916_vm1 }
 0x38c   :  { %v2414_v8 = vrot.slane %v2398_v62, 4  ;;  %v2415_v40 = vrot.slane %v2399_v6, 4  ;;  %v13918_v27 = vrot.slane %v9783_v53, 7  ;;  %v2416_v34 = vrot.slane %v10094_v50, 4  ;;  %vm13937_vm9 = vmmov %vm13919_vm14 }
 0x38d   :  { %v2234_v31 = vsel %vm13920_vm13, %v2222_v46, %v2223_v26  ;;  %v13921_v20 = vrot.slane %v9922_v61, 4  ;;  %v2413_v3 = vrot.slane %v2397_v57, 4  ;;  %v13924_v11 = vrot.slane %v9791_v22, 1  ;;  %vm13938_vm8 = vmmov %vm13937_vm9 }
 0x38e   :  { %v2307_v21 = vsel %vm13919_vm14, %v13918_v27, %v13917_v14  ;;  %v2426_v59 = vsel %vm13923_vm3, %v2414_v8, %v2415_v40  ;;  %v2270_v55 = vmax.f32 %v2206_v7, %v2234_v31  ;;  %v2425_v26 = vsel %vm13925_vm5, %v2415_v40, %v2416_v34  ;;  %vm13940_vm10 = vmmov %vm13922_vm2 }
 0x38f   :  { %v2235_v17 = vsel %vm13922_vm2, %v13921_v20, %v2222_v46  ;;  %v2112_v14 = vsel %vm13835_vm0, %v2088_v43, %v13924_v11  ;;  %v2463_v27 = vmax.f32 %v2399_v6, %v2426_v59  ;;  %v2427_v46 = vsel %vm13926_vm4, %v2413_v3, %v2414_v8  ;;  %vm13941_vm1 = vmmov %vm13922_vm2 }
 0x390   :  { %v2269_v45 = vmax.f32 %v9922_v61, %v2235_v17  ;;  %v13927_v20 = vrot.slane %v9938_v5, 4  ;;  %v2464_v7 = vmax.f32 %v10094_v50, %v2425_v26  ;;  %v2462_v31 = vmax.f32 %v2398_v62, %v2427_v46  ;;  %vm13943_vm14 = vmmov %vm13938_vm8 }
 0x391   :  { %v2113_v17 = vsel %vm13835_vm0, %v2087_v13, %v2088_v43  ;;  %v10133_v11 = vmax.f32 %v2271_v60, %v2463_v27  ;;  %v2136_v8 = vmax.f32 %v9789_v51, %v2112_v14  ;;  %v2326_v5 = vmax.f32 %v9785_v12, %v2307_v21  ;;  %vm13945_vm13 = vmmov %vm13941_vm1 }
 0x392   :  { %v2428_v61 = vsel %vm13928_vm6, %v13927_v20, %v2413_v3  ;;  %v10136_v40 = vmax.f32 %v9787_v37, %v2113_v17  ;;  %v10140_v6 = vmax.f32 %v2272_v35, %v2464_v7  ;;  %v13804_v62 = vrot.slane %v9883_v58, 6  ;;  %vm13946_vm2 = vmmov %vm13941_vm1 }
 0x393   :  { %v2461_v22 = vmax.f32 %v2397_v57, %v2428_v61  ;;  %v10144_v57 = vmax.f32 %v2270_v55, %v2462_v31  ;;  %v2152_v43 = vrot.slane %v2136_v8, 2  ;;  %v2342_v60 = vrot.slane %v2326_v5, 6  ;;  %vm13947_vm3 = vmmov %vm13908_vm7 }
 0x394   :  { %v2151_v59 = vrot.slane %v10136_v40, 2  ;;  %v13929_v26 = vrot.slane %v9811_v41, 1  ;;  %v13930_v27 = vrot.slane %v9809_v4, 1  ;;  %v7615_v35 = vpack.i.bf16 %v10140_v6, %v10133_v11  ;;  %vm13949_vm5 = vmmov %vm13947_vm3 }
 0x395   :  { %v10142_v3 = vmax.f32 %v2269_v45, %v2461_v22  ;;  %v13931_v45 = vrot.slane %v9953_v23, 2  ;;  %v13933_v46 = vrot.slane %v9872_v15, 6  ;;  %v2371_v61 = vsel %vm13935_vm15, %v13804_v62, %v2342_v60  ;;  %vm13952_vm4 = vmmov %vm13941_vm1 }
 0x396   :  { %v2101_v51 = vsel %vm13835_vm0, %v13930_v27, %v13929_v26  ;;  %v2177_v14 = vsel %vm13932_vm11, %v2151_v59, %v2152_v43  ;;  %7616 = vrot.lane.b32.xlu0 %v7615_v35, %s8349_s18  ;;  %v10179_v22 = vmax.f32 %v2326_v5, %v2371_v61  ;;  %v2290_v26 = vrot.slane %v9807_v25, 7  ;;  %vm13953_vm6 = vmmov %vm13934_vm12 }
 0x397   :  { %v7610_v21 = vpack.i.bf16 %v10144_v57, %v10142_v3  ;;  %v2176_v55 = vsel %vm13908_vm7, %v2152_v43, %v13931_v45  ;;  %v2370_v20 = vsel %vm13934_vm12, %v2342_v60, %v13933_v46  ;;  %v10177_v23 = vmax.f32 %v10136_v40, %v2177_v14  ;;  %vm13954_vm7 = vmmov %vm13953_vm6 }
 0x398   :  { %v2200_v7 = vmax.f32 %v2136_v8, %v2176_v55  ;;  %v2391_v31 = vmax.f32 %v9872_v15, %v2370_v20  ;;  %v2147_v17 = vmax.f32 %v9809_v4, %v2101_v51  ;;  %v2289_v43 = vrot.slane %v9805_v36, 7  ;;  %vm13955_vm11 = vmmov %vm13941_vm1 }
 0x399   :  { %7611 = vrot.lane.b32.xlu1 %v7610_v21, %s8349_s18  ;;  %v13805_v60 = vrot.slane %v10177_v23, 4  ;;  %v2406_v45 = vrot.slane %v10179_v22, 4  ;;  %v2164_v46 = vrot.slane %v9852_v54, 2  ;;  %v13936_v8 = vrot.slane %v9809_v4, 7  ;;  %vm13958_vm12 = vmmov %vm13938_vm8 }
 0x39a   :  { %v2216_v27 = vrot.slane %v2200_v7, 4  ;;  %v2407_v14 = vrot.slane %v2391_v31, 4  ;;  %v2163_v62 = vrot.slane %v2147_v17, 2  ;;  %v2295_v5 = vsel %vm13938_vm8, %v2289_v43, %v2290_v26  ;;  %7626 = vrot.lane.b32.xlu0 %v7615_v35, %s8348_s0  ;;  %vm13959_vm15 = vmmov %vm13947_vm3 }
 0x39b   :  { %v2294_v15 = vsel %vm13937_vm9, %v2290_v26, %v13936_v8  ;;  %v13939_v51 = vrot.slane %v9982_v10, 4  ;;  %v13942_v61 = vrot.slane %v9803_v39, 7  ;;  %v2086_v26 = vrot.slane %v9785_v12, 1  ;;  %vm13960_vm9 = vmmov %vm13953_vm6 }
 0x39c   :  { %v2241_v20 = vsel %vm13941_vm1, %v13805_v60, %v2216_v27  ;;  %v13944_v10 = vrot.slane %v10007_v18, 4  ;;  %v13951_v37 = vrot.slane %v10057_v44, 4  ;;  %v13957_v2 = vrot.slane %v9809_v4, 7  ;;  %vm13961_vm8 = vmmov %vm13941_vm1 }
 0x39d   :  { %7621 = vrot.lane.b32.xlu1 %v7610_v21, %s8348_s0  ;;  %v2240_v55 = vsel %vm13940_vm10, %v2216_v27, %v13939_v51  ;;  %v2296_v8 = vsel %vm13943_vm14, %v13942_v61, %v2289_v43  ;;  %v2263_v35 = vmax.f32 %v10177_v23, %v2241_v20  ;;  %v2434_v27 = vsel %vm13946_vm2, %v2406_v45, %v2407_v14  ;;  %vm13962_vm10 = vmmov %vm13941_vm1 }
 0x39e   :  { %v2264_v21 = vmax.f32 %v2200_v7, %v2240_v55  ;;  %v2433_v51 = vsel %vm13945_vm13, %v2407_v14, %v13944_v10  ;;  %v2455_v60 = vmax.f32 %v2391_v31, %v2434_v27  ;;  %v2165_v43 = vsel %vm13947_vm3, %v2163_v62, %v2164_v46  ;;  %vm13963_vm1 = vmmov %vm13947_vm3 }
 0x39f   :  { %v2456_v39 = vmax.f32 %v10007_v18, %v2433_v51  ;;  %v13948_v7 = vrot.slane %v9847_v38, 2  ;;  %v10228_v61 = vmax.f32 %v2147_v17, %v2165_v43  ;;  %v2337_v10 = vmax.f32 %v9805_v36, %v2296_v8  ;;  %vm13964_vm14 = vmmov %vm13953_vm6 }
 0x3a0   :  { %v2338_v31 = vmax.f32 %v9807_v25, %v2295_v5  ;;  %v10232_v14 = vmax.f32 %v2263_v35, %v2455_v60  ;;  %v2339_v51 = vmax.f32 %v9809_v4, %v2294_v15  ;;  %v2114_v27 = vsel %vm13835_vm0, %v2086_v26, %v2087_v13  ;;  %vm13966_vm13 = vmmov %vm13953_vm6 }
 0x3a1   :  { %v2166_v55 = vsel %vm13949_vm5, %v13948_v7, %v2163_v62  ;;  %v10234_v18 = vmax.f32 %v2264_v21, %v2456_v39  ;;  %v2353_v17 = vrot.slane %v2337_v10, 6  ;;  %v13950_v25 = vrot.slane %v9783_v53, 1  ;;  %vm13969_vm3 = vmmov %vm13952_vm4 }
 0x3a2   :  { %v2210_v20 = vmax.f32 %v9847_v38, %v2166_v55  ;;  %v2227_v38 = vrot.slane %v10228_v61, 4  ;;  %v2354_v43 = vrot.slane %v2338_v31, 6  ;;  %v2134_v15 = vmax.f32 %v9785_v12, %v2114_v27  ;;  %vm13970_vm5 = vmmov %vm13963_vm1 }
 0x3a3   :  { %v7635_v36 = vpack.i.bf16 %v10234_v18, %v10232_v14  ;;  %v2115_v60 = vsel %vm13835_vm0, %v13950_v25, %v2086_v26  ;;  %v2360_v8 = vsel %vm13954_vm7, %v2352_v49, %v2353_v17  ;;  %v13956_v7 = vrot.slane %v9811_v41, 7  ;;  %vm13973_vm7 = vmmov %vm13969_vm3 }
 0x3a4   :  { %v2226_v62 = vrot.slane %v2210_v20, 4  ;;  %v2359_v5 = vsel %vm13953_vm6, %v2353_v17, %v2354_v43  ;;  %v2401_v26 = vmax.f32 %v2337_v10, %v2360_v8  ;;  %v2150_v35 = vrot.slane %v2134_v15, 2  ;;  %vm13972_vm6 = vmmov %vm13969_vm3 }
 0x3a5   :  { %7636 = vrot.lane.b32.xlu0 %v7635_v36, %s8348_s0  ;;  %7631 = vrot.lane.b32.xlu1 %v7635_v36, %s8349_s18  ;;  %v2402_v21 = vmax.f32 %v2338_v31, %v2359_v5  ;;  %v2133_v39 = vmax.f32 %v9783_v53, %v2115_v60  ;;  %v2293_v49 = vsel %vm13958_vm12, %v13957_v2, %v13956_v7  ;;  %v2355_v55 = vrot.slane %v2339_v51, 6 }
 0x3a6   :  { %v2231_v13 = vsel %vm13952_vm4, %v13951_v37, %v2226_v62  ;;  %v2230_v12 = vsel %vm13955_vm11, %v2226_v62, %v2227_v38  ;;  %v2417_v17 = vrot.slane %v2401_v26, 4  ;;  %v2178_v10 = vsel %vm13959_vm15, %v2150_v35, %v2151_v59  ;;  %vm13974_vm11 = vmmov %vm13969_vm3 }
 0x3a7   :  { %v2273_v27 = vmax.f32 %v10057_v44, %v2231_v13  ;;  %v2340_v31 = vmax.f32 %v9811_v41, %v2293_v49  ;;  %v2418_v62 = vrot.slane %v2402_v21, 4  ;;  %v2149_v53 = vrot.slane %v2133_v39, 2  ;;  %vm13976_vm15 = vmmov %vm13969_vm3 }
 0x3a8   :  { %v2198_v36 = vmax.f32 %v2134_v15, %v2178_v10  ;;  %v2358_v4 = vsel %vm13960_vm9, %v2354_v43, %v2355_v55  ;;  %v2274_v25 = vmax.f32 %v2210_v20, %v2230_v12  ;;  %v2424_v44 = vsel %vm13961_vm8, %v2416_v34, %v2417_v17  ;;  %vm13977_vm9 = vmmov %vm13969_vm3 }
 0x3a9   :  { %v2356_v60 = vrot.slane %v2340_v31, 6  ;;  %v2403_v37 = vmax.f32 %v2339_v51, %v2358_v4  ;;  %v2423_v40 = vsel %vm13962_vm10, %v2417_v17, %v2418_v62  ;;  %v2465_v59 = vmax.f32 %v2401_v26, %v2424_v44  ;;  %vm13978_vm8 = vmmov %vm13969_vm3 }
 0x3aa   :  { %v2179_v41 = vsel %vm13963_vm1, %v2149_v53, %v2150_v35  ;;  %v2214_v13 = vrot.slane %v2198_v36, 4  ;;  %v2466_v15 = vmax.f32 %v2402_v21, %v2423_v40  ;;  %v13965_v50 = vrot.slane %v9883_v58, 6  ;;  %vm13979_vm10 = vmmov %vm13969_vm3 }
 0x3ab   :  { %v2197_v5 = vmax.f32 %v2133_v39, %v2179_v41  ;;  %v2357_v20 = vsel %vm13964_vm14, %v2355_v55, %v2356_v60  ;;  %v10294_v43 = vmax.f32 %v2273_v27, %v2465_v59  ;;  %vm13967_vm2 = vcmp.ge.s32.totalorder %v8386_v1, 2 }
 0x3ac   :  { %v2372_v34 = vsel %vm13966_vm13, %v2356_v60, %v13965_v50  ;;  %v2404_v8 = vmax.f32 %v2340_v31, %v2357_v20  ;;  %v10298_v12 = vmax.f32 %v2274_v25, %v2466_v15  ;;  %v13968_v21 = vrot.slane %v10177_v23, 4 }
 0x3ad   :  { %v2373_v51 = vsel %vm13967_vm2, %v2372_v34, 0.0  ;;  %v2213_v26 = vrot.slane %v2197_v5, 4  ;;  %v2180_v7 = vsel %vm13970_vm5, %v2164_v46, %v2149_v53  ;;  %v2419_v2 = vrot.slane %v2403_v37, 4 }
 0x3ae   :  { %v2389_v35 = vmax.f32 %v9883_v58, %v2373_v51  ;;  %v2242_v39 = vsel %vm13969_vm3, %v2214_v13, %v13968_v21  ;;  %v7640_v49 = vpack.i.bf16 %v10298_v12, %v10294_v43  ;;  %v2420_v27 = vrot.slane %v2404_v8, 4 }
 0x3af   :  { %vm13971_vm4 = vcmp.lt.s32.totalorder %v8746_v29, 126  ;;  %v2243_v58 = vsel %vm13972_vm6, %v2213_v26, %v2214_v13  ;;  %v2262_v10 = vmax.f32 %v2198_v36, %v2242_v39  ;;  %vm13975_vm12 = vcmp.ge.s32.totalorder %v8386_v1, 4 }
 0x3b0   :  { %v2405_v55 = vrot.slane %v2389_v35, 4  ;;  %v2196_v17 = vsel %vm13971_vm4, %v2180_v7, 0.0  ;;  %7641 = vrot.lane.b32.xlu1 %v7640_v49, %s8349_s18  ;;  %v2261_v44 = vmax.f32 %v2197_v5, %v2243_v58  ;;  %v2421_v36 = vsel %vm13977_vm9, %v2419_v2, %v2420_v27 }
 0x3b1   :  { %v2212_v23 = vmax.f32 %v9852_v54, %v2196_v17  ;;  %v2422_v54 = vsel %vm13976_vm15, %v2418_v62, %v2419_v2  ;;  %vm13980_vm1 = vcmp.lt.s32.totalorder %v8746_v29, 124  ;;  %v2468_v5 = vmax.f32 %v2404_v8, %v2421_v36 }
 0x3b2   :  { %v2435_v46 = vsel %vm13973_vm7, %v2405_v55, %v2406_v45  ;;  %v2436_v31 = vsel %vm13974_vm11, %v2420_v27, %v2405_v55  ;;  %v2467_v13 = vmax.f32 %v2403_v37, %v2422_v54  ;;  %vm13981_vm14 = vcmp.lt.s32.totalorder %v8947_v16, 127 }
 0x3b3   :  { %v2437_v53 = vsel %vm13975_vm12, %v2436_v31, 0.0  ;;  %v2454_v4 = vmax.f32 %v10179_v22, %v2435_v46  ;;  %v2228_v25 = vrot.slane %v2212_v23, 4  ;;  %vm13982_vm13 = vmmov %vm13981_vm14  ;;  %vm13983_vm2 = vcmp.ge.s32.totalorder %v8947_v16, 1 }
 0x3b4   :  { %v2453_v60 = vmax.f32 %v2389_v35, %v2437_v53  ;;  %vm13984_vm3 = vmmov %vm13983_vm2 }
 0x3b5   :  { %v10330_v40 = vmax.f32 %v2262_v10, %v2454_v4  ;;  %v2229_v45 = vsel %vm13978_vm8, %v2227_v38, %v2228_v25  ;;  %v2244_v59 = vsel %vm13979_vm10, %v2228_v25, %v2213_v26  ;;  %vm13985_vm5 = vmmov %vm13982_vm13 }
 0x3b6   :  { %v10338_v22 = vmax.f32 %v2261_v44, %v2453_v60  ;;  %v2260_v62 = vsel %vm13980_vm1, %v2244_v59, 0.0  ;;  %v2275_v41 = vmax.f32 %v10228_v61, %v2229_v45  ;;  %vm13986_vm4 = vmmov %vm13985_vm5 }
 0x3b7   :  { %v2276_v15 = vmax.f32 %v2212_v23, %v2260_v62  ;;  %vm13987_vm6 = vmmov %vm13983_vm2 }
 0x3b8   :  { %v7645_v20 = vpack.i.bf16 %v10330_v40, %v10338_v22  ;;  %v10345_v50 = vmax.f32 %v2275_v41, %v2467_v13  ;;  %vm13988_vm7 = vmmov %vm13983_vm2 }
 0x3b9   :  { %v10347_v34 = vmax.f32 %v2276_v15, %v2468_v5  ;;  %vm13989_vm11 = vmmov %vm13986_vm4 }
 0x3ba   :  { %7646 = vrot.lane.b32.xlu0 %v7645_v20, %s8349_s18  ;;  %7651 = vrot.lane.b32.xlu1 %v7645_v20, %s8348_s0  ;;  %vm13990_vm12 = vmmov %vm13986_vm4 }
 0x3bb   :  { %v7660_v38 = vpack.i.bf16 %v10347_v34, %v10345_v50  ;;  %vm13991_vm15 = vmmov %vm13986_vm4 }
 0x3bc   :  { %vm13992_vm9 = vmmov %vm13986_vm4 }
 0x3bd   :  { %vm13993_vm8 = vmmov %vm13983_vm2 }
 0x3be   :  { %7661 = vrot.lane.b32.xlu0 %v7660_v38, %s8349_s18  ;;  %7656 = vrot.lane.b32.xlu1 %v7640_v49, %s8348_s0  ;;  %vm13994_vm10 = vmmov %vm13983_vm2 }
 0x3bf   :  { %vm13995_vm1 = vmmov %vm13983_vm2 }
 0x3c2   :  { %7666 = vrot.lane.b32.xlu0 %v7660_v38, %s8348_s0 }
 0x3ed   :  { %v7597_v61 = vpop.permute.xlu0 %7596 }
 0x3ee   :  { %v7599_v37 = vunpack.i.h.bf16 %v7597_v61  ;;  %v7598_v51 = vunpack.i.l.bf16 %v7597_v61 }
 0x3f0   :  { %v2524_v8 = vsel %vm13981_vm14, %v7599_v37, 0.0  ;;  %v2523_v26 = vsel %vm13982_vm13, %v7598_v51, 0.0  ;;  %vm13996_vm14 = vmmov %vm13995_vm1 }
 0x3f1   :  { %v7607_v35 = vpop.permute.xlu0 %7606  ;;  %v10361_v21 = vmax.f32 %v9979_v42, %v2523_v26  ;;  %v10364_v39 = vmax.f32 %v9985_v9, %v2524_v8  ;;  %vm13997_vm13 = vmmov %vm13995_vm1 }
 0x3f2   :  { %v7609_v7 = vunpack.i.h.bf16 %v7607_v35  ;;  %v7608_v2 = vunpack.i.l.bf16 %v7607_v35 }
 0x3f3   :  { %v7675_v49 = vpack.i.bf16 %v10364_v39, %v10361_v21 }
 0x3f4   :  { %v2716_v55 = vsel %vm13983_vm2, %v7609_v7, 0.0  ;;  %v2715_v27 = vsel %vm13984_vm3, %v7608_v2, 0.0  ;;  %vm13998_vm2 = vmmov %vm13995_vm1 }
 0x3f5   :  { %7676 = vrot.lane.b32.xlu0 %v7675_v49, %s8350_s19  ;;  %v10374_v17 = vmax.f32 %v9979_v42, %v2715_v27  ;;  %v10377_v58 = vmax.f32 %v9985_v9, %v2716_v55  ;;  %vm13999_vm3 = vmmov %vm13986_vm4 }
 0x3f7   :  { %v7685_v31 = vpack.i.bf16 %v10377_v58, %v10374_v17 }
 0x3f8   :  { %v7592_v23 = vpop.permute.xlu1 %7591 }
 0x3f9   :  { %v7594_v10 = vunpack.i.h.bf16 %v7592_v23  ;;  %v7593_v46 = vunpack.i.l.bf16 %v7592_v23  ;;  %7686 = vrot.lane.b32.xlu0 %v7685_v31, %s8351_s20 }
 0x3fb   :  { %v2522_v53 = vsel %vm13985_vm5, %v7594_v10, 0.0  ;;  %v2521_v4 = vsel %vm13986_vm4, %v7593_v46, 0.0  ;;  %vm14000_vm5 = vmmov %vm13999_vm3 }
 0x3fc   :  { %v7602_v25 = vpop.permute.xlu1 %7601  ;;  %v10387_v42 = vmax.f32 %v10045_v0, %v2521_v4  ;;  %v10390_v9 = vmax.f32 %v10047_v28, %v2522_v53  ;;  %vm14001_vm4 = vmmov %vm13999_vm3 }
 0x3fd   :  { %v7604_v54 = vunpack.i.h.bf16 %v7602_v25  ;;  %v7603_v44 = vunpack.i.l.bf16 %v7602_v25 }
 0x3fe   :  { %v7670_v60 = vpack.i.bf16 %v10390_v9, %v10387_v42 }
 0x3ff   :  { %v2714_v36 = vsel %vm13987_vm6, %v7604_v54, 0.0  ;;  %v2713_v45 = vsel %vm13988_vm7, %v7603_v44, 0.0  ;;  %vm14002_vm6 = vmmov %vm13999_vm3 }
 0x400   :  { %7671 = vrot.lane.b32.xlu1 %v7670_v60, %s8350_s19  ;;  %v10400_v59 = vmax.f32 %v10045_v0, %v2713_v45  ;;  %v10403_v62 = vmax.f32 %v10047_v28, %v2714_v36  ;;  %vm14003_vm7 = vmmov %vm13999_vm3 }
 0x402   :  { %v7680_v41 = vpack.i.bf16 %v10403_v62, %v10400_v59 }
 0x404   :  { %7681 = vrot.lane.b32.xlu1 %v7680_v41, %s8351_s20 }
 0x408   :  { %v7617_v13 = vpop.permute.xlu0 %7616 }
 0x409   :  { %v7619_v5 = vunpack.i.h.bf16 %v7617_v13  ;;  %v7618_v20 = vunpack.i.l.bf16 %v7617_v13 }
 0x40b   :  { %v7612_v15 = vpop.permute.xlu1 %7611  ;;  %v2528_v37 = vsel %vm13989_vm11, %v7619_v5, 0.0  ;;  %v2527_v0 = vsel %vm13990_vm12, %v7618_v20, 0.0  ;;  %vm14004_vm11 = vmmov %vm13999_vm3 }
 0x40c   :  { %v7614_v38 = vunpack.i.h.bf16 %v7612_v15  ;;  %v7613_v61 = vunpack.i.l.bf16 %v7612_v15  ;;  %v7627_v8 = vpop.permute.xlu0 %7626  ;;  %v10423_v2 = vmax.f32 %v10133_v11, %v2527_v0  ;;  %v10426_v49 = vmax.f32 %v10140_v6, %v2528_v37  ;;  %vm14005_vm12 = vmmov %vm13995_vm1 }
 0x40d   :  { %v7629_v55 = vunpack.i.h.bf16 %v7627_v8  ;;  %v7628_v27 = vunpack.i.l.bf16 %v7627_v8 }
 0x40e   :  { %v2526_v28 = vsel %vm13991_vm15, %v7614_v38, 0.0  ;;  %v2525_v51 = vsel %vm13992_vm9, %v7613_v61, 0.0  ;;  %v7695_v31 = vpack.i.bf16 %v10426_v49, %v10423_v2  ;;  %vm14006_vm15 = vmmov %vm13995_vm1 }
 0x40f   :  { %v7622_v26 = vpop.permute.xlu1 %7621  ;;  %v10417_v35 = vmax.f32 %v10142_v3, %v2525_v51  ;;  %v10420_v7 = vmax.f32 %v10144_v57, %v2526_v28  ;;  %v2720_v53 = vsel %vm13993_vm8, %v7629_v55, 0.0  ;;  %v2719_v4 = vsel %vm13994_vm10, %v7628_v27, 0.0  ;;  %vm14007_vm9 = vmmov %vm13999_vm3 }
 0x410   :  { %v7624_v23 = vunpack.i.h.bf16 %v7622_v26  ;;  %v7623_v10 = vunpack.i.l.bf16 %v7622_v26  ;;  %7696 = vrot.lane.b32.xlu0 %v7695_v31, %s8350_s19  ;;  %v10449_v36 = vmax.f32 %v10133_v11, %v2719_v4  ;;  %v10452_v45 = vmax.f32 %v10140_v6, %v2720_v53  ;;  %vm14008_vm8 = vmmov %vm13999_vm3 }
 0x411   :  { %v7690_v46 = vpack.i.bf16 %v10420_v7, %v10417_v35  ;;  %vm14009_vm10 = vmmov %vm13995_vm1 }
 0x412   :  { %v2718_v25 = vsel %vm13995_vm1, %v7624_v23, 0.0  ;;  %v2717_v54 = vsel %vm13996_vm14, %v7623_v10, 0.0  ;;  %v7705_v13 = vpack.i.bf16 %v10452_v45, %v10449_v36  ;;  %vm14010_vm14 = vmmov %vm13995_vm1 }
 0x413   :  { %7691 = vrot.lane.b32.xlu1 %v7690_v46, %s8350_s19  ;;  %v10443_v44 = vmax.f32 %v10142_v3, %v2717_v54  ;;  %v10446_v60 = vmax.f32 %v10144_v57, %v2718_v25 }
 0x414   :  { %7706 = vrot.lane.b32.xlu0 %v7705_v13, %s8351_s20 }
 0x415   :  { %v7700_v41 = vpack.i.bf16 %v10446_v60, %v10443_v44 }
 0x417   :  { %v7637_v15 = vpop.permute.xlu0 %7636  ;;  %v7632_v5 = vpop.permute.xlu1 %7631  ;;  %7701 = vrot.lane.b32.xlu1 %v7700_v41, %s8351_s20 }
 0x418   :  { %v7639_v3 = vunpack.i.h.bf16 %v7637_v15  ;;  %v7638_v20 = vunpack.i.l.bf16 %v7637_v15  ;;  %v7634_v57 = vunpack.i.h.bf16 %v7632_v5  ;;  %v7633_v38 = vunpack.i.l.bf16 %v7632_v5 }
 0x41a   :  { %v2712_v11 = vsel %vm13997_vm13, %v7639_v3, 0.0  ;;  %v2711_v6 = vsel %vm13998_vm2, %v7638_v20, 0.0  ;;  %v2520_v61 = vsel %vm13999_vm3, %v7634_v57, 0.0  ;;  %v2519_v37 = vsel %vm14000_vm5, %v7633_v38, 0.0  ;;  %vm14011_vm13 = vmmov %vm13995_vm1 }
 0x41b   :  { %v10469_v0 = vmax.f32 %v10232_v14, %v2519_v37  ;;  %v10472_v28 = vmax.f32 %v10234_v18, %v2520_v61  ;;  %v10475_v51 = vmax.f32 %v10234_v18, %v2712_v11  ;;  %v10478_v8 = vmax.f32 %v10232_v14, %v2711_v6 }
 0x41c   :  { %vm14012_vm2 = vcmp.lt.s32.totalorder %v8947_v16, 126  ;;  %vm14014_vm5 = vcmp.ge.s32.totalorder %v8947_v16, 2 }
 0x41d   :  { %v7710_v26 = vpack.i.bf16 %v10472_v28, %v10469_v0  ;;  %v7715_v55 = vpack.i.bf16 %v10475_v51, %v10478_v8  ;;  %vm14013_vm3 = vmmov %vm14012_vm2 }
 0x41f   :  { %7711 = vrot.lane.b32.xlu0 %v7710_v26, %s8350_s19 }
 0x422   :  { %v7642_v27 = vpop.permute.xlu1 %7641 }
 0x423   :  { %7716 = vrot.lane.b32.xlu0 %v7715_v55, %s8351_s20  ;;  %v7644_v23 = vunpack.i.h.bf16 %v7642_v27  ;;  %v7643_v10 = vunpack.i.l.bf16 %v7642_v27 }
 0x425   :  { %v2530_v18 = vsel %vm14001_vm4, %v7644_v23, 0.0  ;;  %v2529_v14 = vsel %vm14002_vm6, %v7643_v10, 0.0  ;;  %vm14015_vm4 = vmmov %vm14014_vm5 }
 0x426   :  { %v10491_v46 = vmax.f32 %v10294_v43, %v2529_v14  ;;  %v10494_v31 = vmax.f32 %v10298_v12, %v2530_v18  ;;  %vm14016_vm6 = vmmov %vm14012_vm2 }
 0x428   :  { %v7720_v53 = vpack.i.bf16 %v10494_v31, %v10491_v46 }
 0x42a   :  { %7721 = vrot.lane.b32.xlu1 %v7720_v53, %s8350_s19 }
 0x42c   :  { %v7647_v4 = vpop.permute.xlu0 %7646  ;;  %v7652_v25 = vpop.permute.xlu1 %7651 }
 0x42d   :  { %v7649_v54 = vunpack.i.h.bf16 %v7647_v4  ;;  %v7648_v41 = vunpack.i.l.bf16 %v7647_v4  ;;  %v7654_v13 = vunpack.i.h.bf16 %v7652_v25  ;;  %v7653_v15 = vunpack.i.l.bf16 %v7652_v25 }
 0x42f   :  { %v2518_v5 = vsel %vm14003_vm7, %v7649_v54, 0.0  ;;  %v2517_v3 = vsel %vm14004_vm11, %v7648_v41, 0.0  ;;  %v2710_v20 = vsel %vm14005_vm12, %v7654_v13, 0.0  ;;  %v2709_v57 = vsel %vm14006_vm15, %v7653_v15, 0.0  ;;  %vm14017_vm7 = vmmov %vm14012_vm2 }
 0x430   :  { %v7662_v38 = vpop.permute.xlu0 %7661  ;;  %v7657_v11 = vpop.permute.xlu1 %7656  ;;  %v10508_v6 = vmax.f32 %v10338_v22, %v2517_v3  ;;  %v10511_v61 = vmax.f32 %v10330_v40, %v2518_v5  ;;  %v10514_v23 = vmax.f32 %v10330_v40, %v2710_v20  ;;  %v10517_v10 = vmax.f32 %v10338_v22, %v2709_v57  ;;  %vm14018_vm11 = vmmov %vm14015_vm4 }
 0x431   :  { %v7664_v37 = vunpack.i.h.bf16 %v7662_v38  ;;  %v7663_v26 = vunpack.i.l.bf16 %v7662_v38  ;;  %v7659_v55 = vunpack.i.h.bf16 %v7657_v11  ;;  %v7658_v27 = vunpack.i.l.bf16 %v7657_v11  ;;  %vm14019_vm12 = vmmov %vm14015_vm4 }
 0x432   :  { %v7725_v18 = vpack.i.bf16 %v10511_v61, %v10508_v6  ;;  %v7730_v20 = vpack.i.bf16 %v10514_v23, %v10517_v10  ;;  %vm14020_vm15 = vmmov %vm14012_vm2 }
 0x433   :  { %v2532_v14 = vsel %vm14007_vm9, %v7664_v37, 0.0  ;;  %v2531_v53 = vsel %vm14008_vm8, %v7663_v26, 0.0  ;;  %v2722_v4 = vsel %vm14009_vm10, %v7659_v55, 0.0  ;;  %v2721_v25 = vsel %vm13995_vm1, %v7658_v27, 0.0  ;;  %vm14021_vm9 = vmmov %vm14012_vm2 }
 0x434   :  { %v10530_v40 = vmax.f32 %v10347_v34, %v2532_v14  ;;  %v10533_v22 = vmax.f32 %v10345_v50, %v2531_v53  ;;  %v7667_v54 = vpop.permute.xlu0 %7666  ;;  %7726 = vrot.lane.b32.xlu1 %v7725_v18, %s8350_s19  ;;  %v10537_v15 = vmax.f32 %v10298_v12, %v2722_v4  ;;  %v10540_v5 = vmax.f32 %v10294_v43, %v2721_v25  ;;  %vm14022_vm8 = vmmov %vm14012_vm2 }
 0x435   :  { %v7669_v41 = vunpack.i.h.bf16 %v7667_v54  ;;  %v7668_v13 = vunpack.i.l.bf16 %v7667_v54  ;;  %vm14023_vm10 = vmmov %vm14012_vm2 }
 0x436   :  { %v7740_v3 = vpack.i.bf16 %v10530_v40, %v10533_v22  ;;  %v7735_v37 = vpack.i.bf16 %v10537_v15, %v10540_v5  ;;  %vm14024_vm1 = vmmov %vm14015_vm4 }
 0x437   :  { %v2724_v57 = vsel %vm14010_vm14, %v7669_v41, 0.0  ;;  %v2723_v38 = vsel %vm14011_vm13, %v7668_v13, 0.0  ;;  %vm14025_vm14 = vmmov %vm14024_vm1 }
 0x438   :  { %v10551_v11 = vmax.f32 %v10347_v34, %v2724_v57  ;;  %v10554_v12 = vmax.f32 %v10345_v50, %v2723_v38  ;;  %7741 = vrot.lane.b32.xlu0 %v7740_v3, %s8350_s19  ;;  %7731 = vrot.lane.b32.xlu1 %v7730_v20, %s8351_s20  ;;  %vm14026_vm13 = vmmov %vm14024_vm1 }
 0x43a   :  { %v7745_v43 = vpack.i.bf16 %v10551_v11, %v10554_v12 }
 0x43c   :  { %7746 = vrot.lane.b32.xlu0 %v7745_v43, %s8351_s20  ;;  %7736 = vrot.lane.b32.xlu1 %v7735_v37, %s8351_s20 }
 0x467   :  { %v7677_v26 = vpop.permute.xlu0 %7676 }
 0x468   :  { %v7679_v34 = vunpack.i.h.bf16 %v7677_v26  ;;  %v7678_v55 = vunpack.i.l.bf16 %v7677_v26 }
 0x46a   :  { %v2588_v50 = vsel %vm14012_vm2, %v7679_v34, 0.0  ;;  %v2587_v27 = vsel %vm14013_vm3, %v7678_v55, 0.0  ;;  %vm14027_vm2 = vmmov %vm14024_vm1 }
 0x46b   :  { %v10569_v18 = vmax.f32 %v10364_v39, %v2588_v50  ;;  %v10572_v14 = vmax.f32 %v10361_v21, %v2587_v27  ;;  %v7687_v53 = vpop.permute.xlu0 %7686 }
 0x46c   :  { %v7689_v4 = vunpack.i.h.bf16 %v7687_v53  ;;  %v7688_v25 = vunpack.i.l.bf16 %v7687_v53 }
 0x46d   :  { %v7755_v54 = vpack.i.bf16 %v10569_v18, %v10572_v14 }
 0x46e   :  { %v2780_v41 = vsel %vm14014_vm5, %v7689_v4, 0.0  ;;  %v2779_v13 = vsel %vm14015_vm4, %v7688_v25, 0.0  ;;  %vm14028_vm5 = vmmov %vm14013_vm3 }
 0x46f   :  { %v10581_v3 = vmax.f32 %v10377_v58, %v2780_v41  ;;  %v10584_v39 = vmax.f32 %v10374_v17, %v2779_v13  ;;  %7756 = vrot.lane.b32.xlu0 %v7755_v54, %s8352_s21  ;;  %vm14029_vm4 = vmmov %vm14024_vm1 }
 0x471   :  { %v7765_v38 = vpack.i.bf16 %v10581_v3, %v10584_v39 }
 0x472   :  { %v7672_v21 = vpop.permute.xlu1 %7671 }
 0x473   :  { %v7674_v20 = vunpack.i.h.bf16 %v7672_v21  ;;  %v7673_v57 = vunpack.i.l.bf16 %v7672_v21  ;;  %7766 = vrot.lane.b32.xlu0 %v7765_v38, %s8353_s22 }
 0x475   :  { %v2586_v43 = vsel %vm14016_vm6, %v7674_v20, 0.0  ;;  %v2585_v37 = vsel %vm14017_vm7, %v7673_v57, 0.0  ;;  %vm14030_vm6 = vmmov %vm14024_vm1 }
 0x476   :  { %v10595_v58 = vmax.f32 %v10390_v9, %v2586_v43  ;;  %v10598_v17 = vmax.f32 %v10387_v42, %v2585_v37  ;;  %v7682_v26 = vpop.permute.xlu1 %7681  ;;  %vm14031_vm7 = vmmov %vm14013_vm3 }
 0x477   :  { %v7684_v34 = vunpack.i.h.bf16 %v7682_v26  ;;  %v7683_v55 = vunpack.i.l.bf16 %v7682_v26 }
 0x478   :  { %v7750_v50 = vpack.i.bf16 %v10595_v58, %v10598_v17 }
 0x479   :  { %v2778_v27 = vsel %vm14018_vm11, %v7684_v34, 0.0  ;;  %v2777_v53 = vsel %vm14019_vm12, %v7683_v55, 0.0  ;;  %vm14032_vm11 = vmmov %vm14013_vm3 }
 0x47a   :  { %v10607_v4 = vmax.f32 %v10403_v62, %v2778_v27  ;;  %v10610_v9 = vmax.f32 %v10400_v59, %v2777_v53  ;;  %7751 = vrot.lane.b32.xlu1 %v7750_v50, %s8352_s21  ;;  %vm14033_vm12 = vmmov %vm14013_vm3 }
 0x47c   :  { %v7760_v42 = vpack.i.bf16 %v10607_v4, %v10610_v9 }
 0x47e   :  { %7761 = vrot.lane.b32.xlu1 %v7760_v42, %s8353_s22 }
 0x482   :  { %v7697_v54 = vpop.permute.xlu0 %7696 }
 0x483   :  { %v7699_v21 = vunpack.i.h.bf16 %v7697_v54  ;;  %v7698_v20 = vunpack.i.l.bf16 %v7697_v54 }
 0x485   :  { %v7692_v25 = vpop.permute.xlu1 %7691  ;;  %v2592_v57 = vsel %vm14022_vm8, %v7699_v21, 0.0  ;;  %v2591_v38 = vsel %vm14023_vm10, %v7698_v20, 0.0  ;;  %vm14036_vm8 = vmmov %vm14013_vm3 }
 0x486   :  { %v7694_v41 = vunpack.i.h.bf16 %v7692_v25  ;;  %v7693_v13 = vunpack.i.l.bf16 %v7692_v25  ;;  %v10631_v26 = vmax.f32 %v10426_v49, %v2592_v57  ;;  %v10634_v34 = vmax.f32 %v10423_v2, %v2591_v38  ;;  %v7707_v53 = vpop.permute.xlu0 %7706  ;;  %vm14037_vm10 = vmmov %vm14024_vm1 }
 0x487   :  { %v7709_v42 = vunpack.i.h.bf16 %v7707_v53  ;;  %v7708_v25 = vunpack.i.l.bf16 %v7707_v53 }
 0x488   :  { %v2590_v62 = vsel %vm14020_vm15, %v7694_v41, 0.0  ;;  %v2589_v59 = vsel %vm14021_vm9, %v7693_v13, 0.0  ;;  %v7775_v54 = vpack.i.bf16 %v10631_v26, %v10634_v34  ;;  %vm14034_vm15 = vmmov %vm14013_vm3 }
 0x489   :  { %v10625_v43 = vmax.f32 %v10420_v7, %v2590_v62  ;;  %v10628_v37 = vmax.f32 %v10417_v35, %v2589_v59  ;;  %v7702_v55 = vpop.permute.xlu1 %7701  ;;  %v2784_v13 = vsel %vm14026_vm13, %v7709_v42, 0.0  ;;  %v2783_v21 = vsel %vm14027_vm2, %v7708_v25, 0.0  ;;  %vm14035_vm9 = vmmov %vm14013_vm3 }
 0x48a   :  { %v7704_v50 = vunpack.i.h.bf16 %v7702_v55  ;;  %v7703_v27 = vunpack.i.l.bf16 %v7702_v55  ;;  %7776 = vrot.lane.b32.xlu0 %v7775_v54, %s8352_s21  ;;  %v10657_v20 = vmax.f32 %v10452_v45, %v2784_v13  ;;  %v10660_v62 = vmax.f32 %v10449_v36, %v2783_v21  ;;  %vm14039_vm13 = vmmov %vm14024_vm1 }
 0x48b   :  { %v7770_v7 = vpack.i.bf16 %v10625_v43, %v10628_v37  ;;  %vm14040_vm2 = vmmov %vm14024_vm1 }
 0x48c   :  { %v2782_v35 = vsel %vm14024_vm1, %v7704_v50, 0.0  ;;  %v2781_v49 = vsel %vm14025_vm14, %v7703_v27, 0.0  ;;  %vm14038_vm14 = vmmov %vm14024_vm1 }
 0x48d   :  { %v10645_v2 = vmax.f32 %v10446_v60, %v2782_v35  ;;  %v10648_v41 = vmax.f32 %v10443_v44, %v2781_v49  ;;  %7771 = vrot.lane.b32.xlu1 %v7770_v7, %s8352_s21  ;;  %v7785_v60 = vpack.i.bf16 %v10657_v20, %v10660_v62 }
 0x48f   :  { %v7780_v44 = vpack.i.bf16 %v10645_v2, %v10648_v41  ;;  %7786 = vrot.lane.b32.xlu0 %v7785_v60, %s8353_s22 }
 0x491   :  { %v7712_v59 = vpop.permute.xlu0 %7711  ;;  %7781 = vrot.lane.b32.xlu1 %v7780_v44, %s8353_s22 }
 0x492   :  { %v7714_v57 = vunpack.i.h.bf16 %v7712_v59  ;;  %v7713_v38 = vunpack.i.l.bf16 %v7712_v59 }
 0x494   :  { %v2584_v45 = vsel %vm14013_vm3, %v7714_v57, 0.0  ;;  %v2583_v36 = vsel %vm14028_vm5, %v7713_v38, 0.0  ;;  %vm14041_vm3 = vmmov %vm14024_vm1  ;;  %vm14042_vm5 = vcmp.lt.s32.totalorder %v8947_v16, 124 }
 0x495   :  { %v10673_v55 = vmax.f32 %v10472_v28, %v2584_v45  ;;  %v10676_v50 = vmax.f32 %v10469_v0, %v2583_v36  ;;  %v7717_v27 = vpop.permute.xlu0 %7716 }
 0x496   :  { %v7719_v53 = vunpack.i.h.bf16 %v7717_v27  ;;  %v7718_v42 = vunpack.i.l.bf16 %v7717_v27 }
 0x497   :  { %v7790_v25 = vpack.i.bf16 %v10673_v55, %v10676_v50 }
 0x498   :  { %v2776_v54 = vsel %vm14029_vm4, %v7719_v53, 0.0  ;;  %v2775_v7 = vsel %vm14030_vm6, %v7718_v42, 0.0  ;;  %vm14043_vm4 = vmmov %vm14042_vm5  ;;  %vm14044_vm6 = vcmp.ge.s32.totalorder %v8947_v16, 4 }
 0x499   :  { %v10685_v35 = vmax.f32 %v10475_v51, %v2776_v54  ;;  %v10688_v28 = vmax.f32 %v10478_v8, %v2775_v7  ;;  %7791 = vrot.lane.b32.xlu0 %v7790_v25, %s8352_s21 }
 0x49b   :  { %v7795_v0 = vpack.i.bf16 %v10685_v35, %v10688_v28 }
 0x49c   :  { %v7722_v49 = vpop.permute.xlu1 %7721 }
 0x49d   :  { %7796 = vrot.lane.b32.xlu0 %v7795_v0, %s8353_s22  ;;  %v7724_v13 = vunpack.i.h.bf16 %v7722_v49  ;;  %v7723_v21 = vunpack.i.l.bf16 %v7722_v49 }
 0x49f   :  { %v2594_v44 = vsel %vm14031_vm7, %v7724_v13, 0.0  ;;  %v2593_v51 = vsel %vm14032_vm11, %v7723_v21, 0.0  ;;  %vm14045_vm7 = vmmov %vm14044_vm6 }
 0x4a0   :  { %v10699_v60 = vmax.f32 %v10494_v31, %v2594_v44  ;;  %v10702_v8 = vmax.f32 %v10491_v46, %v2593_v51  ;;  %vm14046_vm11 = vmmov %vm14043_vm4 }
 0x4a2   :  { %v7800_v59 = vpack.i.bf16 %v10699_v60, %v10702_v8 }
 0x4a4   :  { %7801 = vrot.lane.b32.xlu1 %v7800_v59, %s8352_s21 }
 0x4a6   :  { %v7727_v57 = vpop.permute.xlu1 %7726 }
 0x4a7   :  { %v7729_v38 = vunpack.i.h.bf16 %v7727_v57  ;;  %v7728_v45 = vunpack.i.l.bf16 %v7727_v57 }
 0x4a9   :  { %v2582_v36 = vsel %vm14033_vm12, %v7729_v38, 0.0  ;;  %v2581_v27 = vsel %vm14034_vm15, %v7728_v45, 0.0  ;;  %vm14047_vm12 = vmmov %vm14043_vm4 }
 0x4aa   :  { %v7742_v53 = vpop.permute.xlu0 %7741  ;;  %v10712_v31 = vmax.f32 %v10511_v61, %v2582_v36  ;;  %v10715_v46 = vmax.f32 %v10508_v6, %v2581_v27  ;;  %v7732_v42 = vpop.permute.xlu1 %7731  ;;  %vm14048_vm15 = vmmov %vm14044_vm6 }
 0x4ab   :  { %v7744_v25 = vunpack.i.h.bf16 %v7742_v53  ;;  %v7743_v54 = vunpack.i.l.bf16 %v7742_v53  ;;  %v7734_v7 = vunpack.i.h.bf16 %v7732_v42  ;;  %v7733_v0 = vunpack.i.l.bf16 %v7732_v42 }
 0x4ac   :  { %v7805_v49 = vpack.i.bf16 %v10712_v31, %v10715_v46 }
 0x4ad   :  { %v2596_v13 = vsel %vm14035_vm9, %v7744_v25, 0.0  ;;  %v2595_v21 = vsel %vm14036_vm8, %v7743_v54, 0.0  ;;  %v2774_v61 = vsel %vm14037_vm10, %v7734_v7, 0.0  ;;  %v2773_v6 = vsel %vm14024_vm1, %v7733_v0, 0.0  ;;  %vm14049_vm9 = vmmov %vm14044_vm6 }
 0x4ae   :  { %v10728_v44 = vmax.f32 %v10530_v40, %v2596_v13  ;;  %v10731_v51 = vmax.f32 %v10533_v22, %v2595_v21  ;;  %v7747_v59 = vpop.permute.xlu0 %7746  ;;  %v10734_v57 = vmax.f32 %v10514_v23, %v2774_v61  ;;  %v10737_v38 = vmax.f32 %v10517_v10, %v2773_v6  ;;  %v7737_v45 = vpop.permute.xlu1 %7736  ;;  %7806 = vrot.lane.b32.xlu1 %v7805_v49, %s8352_s21  ;;  %vm14050_vm8 = vmmov %vm14043_vm4 }
 0x4af   :  { %v7749_v36 = vunpack.i.h.bf16 %v7747_v59  ;;  %v7748_v27 = vunpack.i.l.bf16 %v7747_v59  ;;  %v7739_v53 = vunpack.i.h.bf16 %v7737_v45  ;;  %v7738_v42 = vunpack.i.l.bf16 %v7737_v45  ;;  %vm14051_vm10 = vmmov %vm14043_vm4 }
 0x4b0   :  { %v7820_v40 = vpack.i.bf16 %v10728_v44, %v10731_v51  ;;  %v7810_v22 = vpack.i.bf16 %v10734_v57, %v10737_v38  ;;  %vm14052_vm1 = vmmov %vm14043_vm4 }
 0x4b1   :  { %v2788_v23 = vsel %vm14038_vm14, %v7749_v36, 0.0  ;;  %v2787_v10 = vsel %vm14039_vm13, %v7748_v27, 0.0  ;;  %v2786_v25 = vsel %vm14040_vm2, %v7739_v53, 0.0  ;;  %v2785_v54 = vsel %vm14041_vm3, %v7738_v42, 0.0  ;;  %vm14053_vm14 = vmmov %vm14052_vm1 }
 0x4b2   :  { %v10753_v7 = vmax.f32 %v10551_v11, %v2788_v23  ;;  %v10756_v0 = vmax.f32 %v10554_v12, %v2787_v10  ;;  %7821 = vrot.lane.b32.xlu0 %v7820_v40, %s8352_s21  ;;  %v10760_v49 = vmax.f32 %v10537_v15, %v2786_v25  ;;  %v10763_v13 = vmax.f32 %v10540_v5, %v2785_v54  ;;  %vm14054_vm13 = vmmov %vm14044_vm6 }
 0x4b3   :  { %7811 = vrot.lane.b32.xlu1 %v7810_v22, %s8353_s22  ;;  %vm14055_vm2 = vmmov %vm14044_vm6 }
 0x4b4   :  { %v7825_v21 = vpack.i.bf16 %v10753_v7, %v10756_v0  ;;  %v7815_v11 = vpack.i.bf16 %v10760_v49, %v10763_v13  ;;  %vm14056_vm3 = vmmov %vm14055_vm2 }
 0x4b6   :  { %7826 = vrot.lane.b32.xlu0 %v7825_v21, %s8353_s22 }
 0x4b7   :  { %7816 = vrot.lane.b32.xlu1 %v7815_v11, %s8353_s22 }
 0x4e1   :  { %v7757_v12 = vpop.permute.xlu0 %7756 }
 0x4e2   :  { %v7759_v61 = vunpack.i.h.bf16 %v7757_v12  ;;  %v7758_v6 = vunpack.i.l.bf16 %v7757_v12 }
 0x4e4   :  { %v2652_v5 = vsel %vm14042_vm5, %v7759_v61, 0.0  ;;  %v2651_v59 = vsel %vm14043_vm4, %v7758_v6, 0.0  ;;  %vm14057_vm5 = vmmov %vm14055_vm2 }
 0x4e5   :  { %v7767_v15 = vpop.permute.xlu0 %7766  ;;  %v2668_v42 = vmax.f32 %v10569_v18, %v2652_v5  ;;  %v2667_v40 = vmax.f32 %v10572_v14, %v2651_v59  ;;  %vm14058_vm4 = vmmov %vm14052_vm1 }
 0x4e6   :  { %v7769_v45 = vunpack.i.h.bf16 %v7767_v15  ;;  %v7768_v36 = vunpack.i.l.bf16 %v7767_v15 }
 0x4e8   :  { %v2844_v27 = vsel %vm14044_vm6, %v7769_v45, 0.0  ;;  %v2843_v53 = vsel %vm14045_vm7, %v7768_v36, 0.0  ;;  %vm14059_vm6 = vmmov %vm14052_vm1 }
 0x4e9   :  { %v2860_v22 = vmax.f32 %v10581_v3, %v2844_v27  ;;  %v2859_v23 = vmax.f32 %v10584_v39, %v2843_v53  ;;  %vm14060_vm7 = vmmov %vm14055_vm2 }
 0x4eb   :  { %v10784_v54 = vmax.f32 %v2667_v40, %v2859_v23  ;;  %v10786_v21 = vmax.f32 %v2668_v42, %v2860_v22 }
 0x4ec   :  { %v7752_v10 = vpop.permute.xlu1 %7751 }
 0x4ed   :  { %v7754_v25 = vunpack.i.h.bf16 %v7752_v10  ;;  %v7753_v11 = vunpack.i.l.bf16 %v7752_v10  ;;  %v6779_v12 = vpack.c.bf16 %v10786_v21, %v10784_v54 }
 0x4ef   :  { %v2650_v18 = vsel %vm14046_vm11, %v7754_v25, 0.0  ;;  %7208 = vst [vmem:[#allocation5 + $0x58] sm:$0xff] %v6779_v12   ;;  %v2649_v3 = vsel %vm14047_vm12, %v7753_v11, 0.0  ;;  %vm14061_vm11 = vmmov %vm14055_vm2 }
 0x4f0   :  { %v7762_v61 = vpop.permute.xlu1 %7761  ;;  %v2666_v15 = vmax.f32 %v10595_v58, %v2650_v18  ;;  %v2665_v45 = vmax.f32 %v10598_v17, %v2649_v3  ;;  %vm14062_vm12 = vmmov %vm14052_vm1 }
 0x4f1   :  { %v7764_v14 = vunpack.i.h.bf16 %v7762_v61  ;;  %v7763_v6 = vunpack.i.l.bf16 %v7762_v61 }
 0x4f3   :  { %v2842_v39 = vsel %vm14048_vm15, %v7764_v14, 0.0  ;;  %v2841_v59 = vsel %vm14049_vm9, %v7763_v6, 0.0  ;;  %vm14063_vm15 = vmmov %vm14052_vm1 }
 0x4f4   :  { %v2858_v5 = vmax.f32 %v10607_v4, %v2842_v39  ;;  %v2857_v36 = vmax.f32 %v10610_v9, %v2841_v59  ;;  %vm14064_vm9 = vmmov %vm14052_vm1 }
 0x4f6   :  { %v10802_v27 = vmax.f32 %v2666_v15, %v2858_v5  ;;  %v10804_v53 = vmax.f32 %v2665_v45, %v2857_v36 }
 0x4f8   :  { %v6774_v42 = vpack.c.bf16 %v10802_v27, %v10804_v53 }
 0x4fa   :  { %7207 = vst [vmem:[#allocation5 + $0x50] sm:$0xff] %v6774_v42  }
 0x4fc   :  { %v7777_v40 = vpop.permute.xlu0 %7776 }
 0x4fd   :  { %v7779_v58 = vunpack.i.h.bf16 %v7777_v40  ;;  %v7778_v23 = vunpack.i.l.bf16 %v7777_v40 }
 0x4ff   :  { %v7772_v22 = vpop.permute.xlu1 %7771  ;;  %v2656_v25 = vsel %vm14050_vm8, %v7779_v58, 0.0  ;;  %v2655_v17 = vsel %vm14051_vm10, %v7778_v23, 0.0  ;;  %vm14065_vm8 = vmmov %vm14052_vm1 }
 0x500   :  { %v7774_v4 = vunpack.i.h.bf16 %v7772_v22  ;;  %v7773_v10 = vunpack.i.l.bf16 %v7772_v22  ;;  %v2672_v39 = vmax.f32 %v10631_v26, %v2656_v25  ;;  %v2671_v15 = vmax.f32 %v10634_v34, %v2655_v17  ;;  %vm14066_vm10 = vmmov %vm14052_vm1 }
 0x501   :  { %v7787_v61 = vpop.permute.xlu0 %7786 }
 0x502   :  { %v2654_v9 = vsel %vm14052_vm1, %v7774_v4, 0.0  ;;  %v2653_v11 = vsel %vm14053_vm14, %v7773_v10, 0.0  ;;  %v7789_v18 = vunpack.i.h.bf16 %v7787_v61  ;;  %v7788_v14 = vunpack.i.l.bf16 %v7787_v61  ;;  %vm14067_vm14 = vmmov %vm14055_vm2 }
 0x503   :  { %v7782_v12 = vpop.permute.xlu1 %7781  ;;  %v2670_v5 = vmax.f32 %v10625_v43, %v2654_v9  ;;  %v2669_v59 = vmax.f32 %v10628_v37, %v2653_v11 }
 0x504   :  { %v7784_v6 = vunpack.i.h.bf16 %v7782_v12  ;;  %v7783_v3 = vunpack.i.l.bf16 %v7782_v12  ;;  %v2848_v45 = vsel %vm14054_vm13, %v7789_v18, 0.0  ;;  %v2847_v36 = vsel %vm14055_vm2, %v7788_v14, 0.0  ;;  %vm14068_vm13 = vmmov %vm14055_vm2 }
 0x505   :  { %v2864_v26 = vmax.f32 %v10657_v20, %v2848_v45  ;;  %v2863_v34 = vmax.f32 %v10660_v62, %v2847_v36 }
 0x506   :  { %v2846_v42 = vsel %vm14056_vm3, %v7784_v6, 0.0  ;;  %v2845_v40 = vsel %vm14057_vm5, %v7783_v3, 0.0  ;;  %vm14069_vm3 = vmmov %vm14055_vm2 }
 0x507   :  { %v2862_v43 = vmax.f32 %v10645_v2, %v2846_v42  ;;  %v2861_v37 = vmax.f32 %v10648_v41, %v2845_v40  ;;  %v10832_v22 = vmax.f32 %v2671_v15, %v2863_v34  ;;  %v10834_v58 = vmax.f32 %v2672_v39, %v2864_v26  ;;  %vm14070_vm5 = vmmov %vm14055_vm2 }
 0x509   :  { %v10836_v23 = vmax.f32 %v2669_v59, %v2861_v37  ;;  %v10838_v4 = vmax.f32 %v2670_v5, %v2862_v43  ;;  %v6789_v25 = vpack.c.bf16 %v10834_v58, %v10832_v22 }
 0x50b   :  { %v7792_v10 = vpop.permute.xlu0 %7791  ;;  %v6784_v20 = vpack.c.bf16 %v10838_v4, %v10836_v23  ;;  %7210 = vst [vmem:[#allocation5 + $0x68] sm:$0xff] %v6789_v25  }
 0x50c   :  { %v7794_v62 = vunpack.i.h.bf16 %v7792_v10  ;;  %v7793_v17 = vunpack.i.l.bf16 %v7792_v10 }
 0x50d   :  { %7209 = vst [vmem:[#allocation5 + $0x60] sm:$0xff] %v6784_v20  }
 0x50e   :  { %v2648_v41 = vsel %vm14058_vm4, %v7794_v62, 0.0  ;;  %v2647_v9 = vsel %vm14059_vm6, %v7793_v17, 0.0  ;;  %vm14071_vm4 = vmmov %vm14055_vm2 }
 0x50f   :  { %v7797_v2 = vpop.permute.xlu0 %7796  ;;  %v2664_v14 = vmax.f32 %v10673_v55, %v2648_v41  ;;  %v2663_v6 = vmax.f32 %v10676_v50, %v2647_v9  ;;  %v10865_v55 = vld [vmem:[%s13756_s1 + $0x180] sm:$0xff]  }
 0x510   :  { %v7799_v11 = vunpack.i.h.bf16 %v7797_v2  ;;  %v7798_v12 = vunpack.i.l.bf16 %v7797_v2  ;;  %v6803_v34 = vunpack.c.l.bf16 %v10865_v55  ;;  %v6804_v43 = vunpack.c.h.bf16 %v10865_v55 }
 0x512   :  { %v2840_v61 = vsel %vm14060_vm7, %v7799_v11, 0.0  ;;  %v2839_v18 = vsel %vm14061_vm11, %v7798_v12, 0.0 }
 0x513   :  { %v2856_v3 = vmax.f32 %v10685_v35, %v2840_v61  ;;  %v2855_v39 = vmax.f32 %v10688_v28, %v2839_v18  ;;  %v10870_v35 = vld [vmem:[%s13756_s1 + $0x1c0] sm:$0xff]  }
 0x514   :  { %v10875_v28 = vld [vmem:[%s13756_s1 + $0x200] sm:$0xff]   ;;  %v6835_v25 = vunpack.c.l.bf16 %v10870_v35  ;;  %v6836_v20 = vunpack.c.h.bf16 %v10870_v35 }
 0x515   :  { %v10856_v15 = vmax.f32 %v2663_v6, %v2855_v39  ;;  %v10858_v5 = vmax.f32 %v2664_v14, %v2856_v3  ;;  %v14072_v35 = vunpack.c.l.bf16 %v10875_v28 }
 0x516   :  { %v7802_v45 = vpop.permute.xlu1 %7801 }
 0x517   :  { %v6769_v59 = vpack.c.bf16 %v10858_v5, %v10856_v15  ;;  %v7804_v40 = vunpack.i.h.bf16 %v7802_v45  ;;  %v7803_v26 = vunpack.i.l.bf16 %v7802_v45  ;;  %v2968_v37 = vmax.f32 %v10856_v15, %v10784_v54 }
 0x518   :  { %v2969_v12 = vmax.f32 %v10858_v5, %v10786_v21  ;;  %v3204_v61 = vmul.f32 2.0, %v10856_v15 }
 0x519   :  { %7206 = vst [vmem:[#allocation5 + $0x48] sm:$0xff] %v6769_v59   ;;  %v2658_v6 = vsel %vm14064_vm9, %v7804_v40, 0.0  ;;  %v2657_v3 = vsel %vm14065_vm8, %v7803_v26, 0.0 }
 0x520   :  { %v7807_v36 = vpop.permute.xlu1 %7806 }
 0x521   :  { %v7809_v50 = vunpack.i.h.bf16 %v7807_v36  ;;  %v7808_v42 = vunpack.i.l.bf16 %v7807_v36 }
 0x523   :  { %v2646_v41 = vsel %vm14062_vm12, %v7809_v50, 0.0  ;;  %v2645_v9 = vsel %vm14063_vm15, %v7808_v42, 0.0 }
 0x524   :  { %v7822_v10 = vpop.permute.xlu0 %7821  ;;  %v2662_v45 = vmax.f32 %v10712_v31, %v2646_v41  ;;  %v2661_v36 = vmax.f32 %v10715_v46, %v2645_v9 }
 0x525   :  { %v7824_v17 = vunpack.i.h.bf16 %v7822_v10  ;;  %v7823_v2 = vunpack.i.l.bf16 %v7822_v10  ;;  %v7812_v11 = vpop.permute.xlu1 %7811 }
 0x526   :  { %v7814_v18 = vunpack.i.h.bf16 %v7812_v11  ;;  %v7813_v14 = vunpack.i.l.bf16 %v7812_v11 }
 0x527   :  { %v2660_v39 = vsel %vm14066_vm10, %v7824_v17, 0.0  ;;  %v2659_v59 = vsel %vm14052_vm1, %v7823_v2, 0.0 }
 0x528   :  { %v7827_v50 = vpop.permute.xlu0 %7826  ;;  %v2838_v42 = vsel %vm14067_vm14, %v7814_v18, 0.0  ;;  %v2837_v40 = vsel %vm14068_vm13, %v7813_v14, 0.0  ;;  %v2676_v2 = vmax.f32 %v10728_v44, %v2660_v39  ;;  %v2675_v31 = vmax.f32 %v10731_v51, %v2659_v59 }
 0x529   :  { %v7829_v10 = vunpack.i.h.bf16 %v7827_v50  ;;  %v7828_v11 = vunpack.i.l.bf16 %v7827_v50  ;;  %v2854_v26 = vmax.f32 %v10734_v57, %v2838_v42  ;;  %v2853_v17 = vmax.f32 %v10737_v38, %v2837_v40  ;;  %v7817_v62 = vpop.permute.xlu1 %7816 }
 0x52a   :  { %v7819_v41 = vunpack.i.h.bf16 %v7817_v62  ;;  %v7818_v46 = vunpack.i.l.bf16 %v7817_v62  ;;  %v2674_v40 = vmax.f32 %v10699_v60, %v2658_v6  ;;  %v2973_v60 = vmax.f32 %v2969_v12, %v10834_v58 }
 0x52b   :  { %v2852_v9 = vsel %vm14055_vm2, %v7829_v10, 0.0  ;;  %v2851_v18 = vsel %vm14069_vm3, %v7828_v11, 0.0  ;;  %v10913_v14 = vmax.f32 %v2661_v36, %v2853_v17  ;;  %v10915_v50 = vmax.f32 %v2662_v45, %v2854_v26 }
 0x52c   :  { %v2868_v57 = vmax.f32 %v10753_v7, %v2852_v9  ;;  %v2867_v38 = vmax.f32 %v10756_v0, %v2851_v18  ;;  %v2850_v44 = vsel %vm14070_vm5, %v7819_v41, 0.0  ;;  %v2849_v51 = vsel %vm14071_vm4, %v7818_v46, 0.0 }
 0x52d   :  { %v6764_v62 = vpack.c.bf16 %v10915_v50, %v10913_v14  ;;  %v2966_v39 = vmax.f32 %v10913_v14, %v10804_v53  ;;  %v2967_v59 = vmax.f32 %v10915_v50, %v10802_v27  ;;  %v3202_v45 = vmul.f32 2.0, %v10913_v14 }
 0x52e   :  { %v10930_v7 = vmax.f32 %v2675_v31, %v2867_v38  ;;  %v10932_v0 = vmax.f32 %v2676_v2, %v2868_v57  ;;  %v3203_v36 = vmul.f32 2.0, %v10915_v50  ;;  %v2866_v42 = vmax.f32 %v10760_v49, %v2850_v44  ;;  %v7214_v49 = vld [vmem:[%s13756_s1 + $0x188] sm:$0xff]  }
 0x52f   :  { %6765 = vst [vmem:[#allocation5 + $0x40] sm:$0xff] %v6764_v62   ;;  %v3218_v10 = vsub.f32 1.0, %v3202_v45  ;;  %v2865_v11 = vmax.f32 %v10763_v13, %v2849_v51  ;;  %v2971_v26 = vmax.f32 %v2967_v59, %v10838_v4  ;;  %v2673_v17 = vmax.f32 %v10702_v8, %v2657_v3  ;;  %v7222_v8 = vld [vmem:[%s13756_s1 + $0x1c8] sm:$0xff]  }
 0x530   :  { %v2972_v41 = vmax.f32 %v2968_v37, %v10832_v22  ;;  %v6799_v2 = vpack.c.bf16 %v10932_v0, %v10930_v7  ;;  %v3219_v31 = vsub.f32 1.0, %v3203_v36  ;;  %v6868_v6 = vunpack.c.h.bf16 %v10875_v28  ;;  %v7230_v59 = vld [vmem:[%s13756_s1 + $0x208] sm:$0xff]  }
 0x531   :  { %v10948_v46 = vmax.f32 %v2674_v40, %v2866_v42  ;;  %v2970_v13 = vmax.f32 %v2966_v39, %v10836_v23  ;;  %v3267_v3 = vmul.f32 %v6803_v34, %v3218_v10  ;;  %v10959_v12 = vmax.f32 %v2673_v17, %v2865_v11 }
 0x532   :  { %7212 = vst [vmem:[#allocation5 + $0x78] sm:$0xff] %v6799_v2   ;;  %v2976_v37 = vmax.f32 %v2972_v41, %v10930_v7  ;;  %v3268_v9 = vmul.f32 %v6804_v43, %v3219_v31  ;;  %v2977_v18 = vmax.f32 %v2973_v60, %v10932_v0  ;;  %v3340_v57 = vmul.f32 %v6835_v25, %v3218_v10  ;;  %v7223_v2 = vld [vmem:[%s13756_s1 + $0x1d0] sm:$0xff]  }
 0x533   :  { %v3341_v38 = vmul.f32 %v6836_v20, %v3219_v31  ;;  %v2975_v44 = vmax.f32 %v2971_v26, %v10948_v46  ;;  %v6807_v51 = vunpack.c.l.bf16 %v7214_v49  ;;  %v3205_v62 = vmul.f32 2.0, %v10858_v5 }
 0x534   :  { %v3220_v39 = vsub.f32 1.0, %v3204_v61  ;;  %v6794_v55 = vpack.c.bf16 %v10948_v46, %v10959_v12  ;;  %v6839_v34 = vunpack.c.l.bf16 %v7222_v8  ;;  %v2974_v43 = vmax.f32 %v2970_v13, %v10959_v12  ;;  %v7215_v61 = vld [vmem:[%s13756_s1 + $0x190] sm:$0xff]  }
 0x535   :  { %v3283_v25 = vadd.f32 %v3268_v9, %v3267_v3  ;;  %v3416_v20 = vmul.f32 %v14072_v35, %v3218_v10  ;;  %v3356_v45 = vadd.f32 %v3341_v38, %v3340_v57  ;;  %v3417_v36 = vmul.f32 %v6868_v6, %v3219_v31 }
 0x536   :  { %7211 = vst [vmem:[#allocation5 + $0x70] sm:$0xff] %v6794_v55   ;;  %v2978_v42 = vmax.f32 %v2974_v43, %v2975_v44  ;;  %v2979_v40 = vmax.f32 %v2976_v37, %v2977_v18  ;;  %v3206_v11 = vmul.f32 2.0, %v10804_v53  ;;  %v6808_v26 = vunpack.c.h.bf16 %v7214_v49 }
 0x537   :  { %v3221_v17 = vsub.f32 1.0, %v3205_v62  ;;  %v3269_v41 = vmul.f32 %v6807_v51, %v3220_v39  ;;  %v6840_v28 = vunpack.c.h.bf16 %v7222_v8  ;;  %v6871_v10 = vunpack.c.l.bf16 %v7230_v59  ;;  %v7231_v8 = vld [vmem:[%s13756_s1 + $0x210] sm:$0xff]  }
 0x538   :  { %v3342_v60 = vmul.f32 %v6839_v34, %v3220_v39  ;;  %v2980_v13 = vmax.f32 %v2978_v42, %v2979_v40  ;;  %v6811_v6 = vunpack.c.l.bf16 %v7215_v61  ;;  %v3432_v3 = vadd.f32 %v3417_v36, %v3416_v20 }
 0x539   :  { %v3284_v31 = vadd.f32 %v3283_v25, %v3269_v41  ;;  %v6843_v18 = vunpack.c.l.bf16 %v7223_v2  ;;  %v3207_v57 = vmul.f32 2.0, %v10802_v27  ;;  %v3222_v38 = vsub.f32 1.0, %v3206_v11 }
 0x53a   :  { %v3357_v37 = vadd.f32 %v3356_v45, %v3342_v60  ;;  %v2981_v9 = vrot.slane %v2980_v13, 4  ;;  %v3270_v49 = vmul.f32 %v6808_v26, %v3221_v17  ;;  %v6872_v44 = vunpack.c.h.bf16 %v7230_v59  ;;  %v7216_v59 = vld [vmem:[%s13756_s1 + $0x198] sm:$0xff]  }
 0x53b   :  { %v3343_v51 = vmul.f32 %v6840_v28, %v3221_v17  ;;  %v3418_v62 = vmul.f32 %v6871_v10, %v3220_v39  ;;  %v6812_v43 = vunpack.c.h.bf16 %v7215_v61  ;;  %v3208_v20 = vmul.f32 2.0, %v10784_v54  ;;  %v7224_v39 = vld [vmem:[%s13756_s1 + $0x1d8] sm:$0xff]  }
 0x53c   :  { %v2982_v55 = vmax.f32 %v2980_v13, %v2981_v9  ;;  %v3285_v34 = vadd.f32 %v3284_v31, %v3270_v49  ;;  %v6844_v36 = vunpack.c.h.bf16 %v7223_v2  ;;  %v3223_v42 = vsub.f32 1.0, %v3207_v57  ;;  %v7232_v10 = vld [vmem:[%s13756_s1 + $0x218] sm:$0xff]  }
 0x53d   :  { %v3358_v25 = vadd.f32 %v3357_v37, %v3343_v51  ;;  %v3433_v35 = vadd.f32 %v3432_v3, %v3418_v62  ;;  %v3271_v40 = vmul.f32 %v6811_v6, %v3222_v38  ;;  %v6875_v11 = vunpack.c.l.bf16 %v7231_v8 }
 0x53e   :  { %v2983_v45 = vrot.slane %v2982_v55, 2  ;;  %v3344_v26 = vmul.f32 %v6843_v18, %v3222_v38  ;;  %v3419_v41 = vmul.f32 %v6872_v44, %v3221_v17  ;;  %v3209_v2 = vmul.f32 2.0, %v10786_v21 }
 0x53f   :  { %v3286_v28 = vadd.f32 %v3285_v34, %v3271_v40  ;;  %v6815_v6 = vunpack.c.l.bf16 %v7216_v59  ;;  %v6847_v37 = vunpack.c.l.bf16 %v7224_v39  ;;  %v3224_v3 = vsub.f32 1.0, %v3208_v20 }
 0x540   :  { %v2984_v61 = vmax.f32 %v2982_v55, %v2983_v45  ;;  %v3434_v60 = vadd.f32 %v3433_v35, %v3419_v41  ;;  %v3359_v31 = vadd.f32 %v3358_v25, %v3344_v26  ;;  %v3272_v9 = vmul.f32 %v6812_v43, %v3223_v42 }
 0x541   :  { %v6876_v57 = vunpack.c.h.bf16 %v7231_v8  ;;  %v3345_v49 = vmul.f32 %v6844_v36, %v3223_v42  ;;  %v3420_v51 = vmul.f32 %v6875_v11, %v3222_v38  ;;  %v6816_v17 = vunpack.c.h.bf16 %v7216_v59  ;;  %v7217_v59 = vld [vmem:[%s13756_s1 + $0x1a0] sm:$0xff]  }
 0x542   :  { %v2985_v13 = vrot.slane %v2984_v61, 1  ;;  %v6848_v44 = vunpack.c.h.bf16 %v7224_v39  ;;  %v6879_v62 = vunpack.c.l.bf16 %v7232_v10  ;;  %v3287_v55 = vadd.f32 %v3286_v28, %v3272_v9  ;;  %v7225_v39 = vld [vmem:[%s13756_s1 + $0x1e0] sm:$0xff]  }
 0x543   :  { %v3225_v34 = vsub.f32 1.0, %v3209_v2  ;;  %v3360_v45 = vadd.f32 %v3359_v31, %v3345_v49  ;;  %v3435_v40 = vadd.f32 %v3434_v60, %v3420_v51  ;;  %v3273_v29 = vmul.f32 %v6815_v6, %v3224_v3 }
 0x544   :  { %v2986_v18 = vmax.f32 %v2984_v61, %v2985_v13  ;;  %v3346_v35 = vmul.f32 %v6847_v37, %v3224_v3  ;;  %v3421_v8 = vmul.f32 %v6876_v57, %v3223_v42  ;;  %v3210_v38 = vmul.f32 2.0, %v10836_v23 }
 0x545   :  { %v3288_v11 = vadd.f32 %v3287_v55, %v3273_v29  ;;  %v6880_v28 = vunpack.c.h.bf16 %v7232_v10  ;;  %v3422_v2 = vmul.f32 %v6879_v62, %v3224_v3  ;;  %v6819_v60 = vunpack.c.l.bf16 %v7217_v59  ;;  %v7233_v29 = vld [vmem:[%s13756_s1 + $0x220] sm:$0xff]   ;;  %v7218_v55 = vld [vmem:[%s13756_s1 + $0x1a8] sm:$0xff]  }
 0x546   :  { %vm2987_vm6 = vcmp.gt.f32.partialorder %v2986_v18, 0.5  ;;  %v3361_v42 = vadd.f32 %v3360_v45, %v3346_v35  ;;  %v3436_v61 = vadd.f32 %v3435_v40, %v3421_v8  ;;  %v6851_v13 = vunpack.c.l.bf16 %v7225_v39  ;;  %v7226_v40 = vld [vmem:[%s13756_s1 + $0x1e8] sm:$0xff]  }
 0x547   :  { %v10999_v25 = vsel %vm2987_vm6, %v8947_v16, 4294967295  ;;  %v11002_v20 = vsel %vm2987_vm6, %v8947_v16, 1073741824  ;;  %v3274_v31 = vmul.f32 %v6816_v17, %v3225_v34  ;;  %v3347_v6 = vmul.f32 %v6848_v44, %v3225_v34 }
 0x548   :  { %v3054_v43 = vshra.s32 %v10999_v25, 16  ;;  %v3038_v36 = vshra.s32 %v11002_v20, 16  ;;  %v3211_v37 = vmul.f32 2.0, %v10838_v4  ;;  %v3226_v9 = vsub.f32 1.0, %v3210_v38 }
 0x549   :  { %v3289_v57 = vadd.f32 %v3288_v11, %v3274_v31  ;;  %v3362_v49 = vadd.f32 %v3361_v42, %v3347_v6  ;;  %v3437_v51 = vadd.f32 %v3436_v61, %v3422_v2  ;;  %v3423_v10 = vmul.f32 %v6880_v28, %v3225_v34  ;;  %v7234_v42 = vld [vmem:[%s13756_s1 + $0x228] sm:$0xff]  }
 0x54a   :  { %v11013_v26 = vcvt.s32.f32 %v3054_v43  ;;  %v11015_v41 = vcvt.s32.f32 %v3038_v36  ;;  %v6820_v3 = vunpack.c.h.bf16 %v7217_v59  ;;  %v6852_v18 = vunpack.c.h.bf16 %v7225_v39 }
 0x54b   :  { %v6883_v62 = vunpack.c.l.bf16 %v7233_v29  ;;  %v3212_v17 = vmul.f32 2.0, %v10832_v22  ;;  %v3227_v44 = vsub.f32 1.0, %v3211_v37  ;;  %v3275_v45 = vmul.f32 %v6819_v60, %v3226_v9 }
 0x54c   :  { %3057 = vmax.xlane.f32.xlu0 %v11013_v26  ;;  %3041 = vmin.xlane.f32.xlu1 %v11015_v41  ;;  %v3348_v34 = vmul.f32 %v6851_v13, %v3226_v9  ;;  %v3438_v38 = vadd.f32 %v3437_v51, %v3423_v10  ;;  %v3213_v43 = vmul.f32 2.0, %v10834_v58  ;;  %v6823_v36 = vunpack.c.l.bf16 %v7218_v55 }
 0x54d   :  { %v3290_v35 = vadd.f32 %v3289_v57, %v3275_v45  ;;  %v6855_v59 = vunpack.c.l.bf16 %v7226_v40  ;;  %v3228_v39 = vsub.f32 1.0, %v3212_v17  ;;  %v3349_v11 = vmul.f32 %v6852_v18, %v3227_v44 }
 0x54e   :  { %v3363_v8 = vadd.f32 %v3362_v49, %v3348_v34  ;;  %v3424_v61 = vmul.f32 %v6883_v62, %v3226_v9  ;;  %v3229_v13 = vsub.f32 1.0, %v3213_v43  ;;  %v6824_v31 = vunpack.c.h.bf16 %v7218_v55  ;;  %v7227_v9 = vld [vmem:[%s13756_s1 + $0x1f0] sm:$0xff]  }
 0x54f   :  { %v6856_v6 = vunpack.c.h.bf16 %v7226_v40  ;;  %v6887_v37 = vunpack.c.l.bf16 %v7234_v42  ;;  %v3350_v57 = vmul.f32 %v6855_v59, %v3228_v39  ;;  %v6859_v17 = vunpack.c.l.bf16 %v7227_v9  ;;  %v7235_v40 = vld [vmem:[%s13756_s1 + $0x230] sm:$0xff]  }
 0x550   :  { %2988 = vmax.xlane.f32.xlu0 %v10913_v14  ;;  %2990 = vmax.xlane.f32.xlu1 %v10915_v50  ;;  %v6884_v14 = vunpack.c.h.bf16 %v7233_v29  ;;  %v3276_v50 = vmul.f32 %v6820_v3, %v3227_v44  ;;  %v3364_v2 = vadd.f32 %v3363_v8, %v3349_v11  ;;  %v3439_v60 = vadd.f32 %v3438_v38, %v3424_v61 }
 0x551   :  { %v3214_v29 = vmul.f32 2.0, %v10959_v12  ;;  %v3278_v62 = vmul.f32 %v6824_v31, %v3229_v13  ;;  %v3351_v45 = vmul.f32 %v6856_v6, %v3229_v13  ;;  %v6860_v43 = vunpack.c.h.bf16 %v7227_v9 }
 0x552   :  { %v3291_v28 = vadd.f32 %v3290_v35, %v3276_v50  ;;  %v3425_v49 = vmul.f32 %v6884_v14, %v3227_v44  ;;  %v3365_v10 = vadd.f32 %v3364_v2, %v3350_v57  ;;  %v3426_v44 = vmul.f32 %v6887_v37, %v3228_v39  ;;  %v7220_v14 = vld [vmem:[%s13756_s1 + $0x1b8] sm:$0xff]  }
 0x553   :  { %v3230_v55 = vsub.f32 1.0, %v3214_v29  ;;  %v6831_v2 = vunpack.c.l.bf16 %v7220_v14  ;;  %v7236_v37 = vld [vmem:[%s13756_s1 + $0x238] sm:$0xff]   ;;  %v6832_v57 = vunpack.c.h.bf16 %v7220_v14 }
 0x554   :  { %2992 = vmax.xlane.f32.xlu0 %v10856_v15  ;;  %2994 = vmax.xlane.f32.xlu1 %v10858_v5  ;;  %v7219_v15 = vld [vmem:[%s13756_s1 + $0x1b0] sm:$0xff]   ;;  %v3277_v5 = vmul.f32 %v6823_v36, %v3228_v39  ;;  %v3440_v3 = vadd.f32 %v3439_v60, %v3425_v49  ;;  %v3366_v35 = vadd.f32 %v3365_v10, %v3351_v45  ;;  %v6891_v36 = vunpack.c.l.bf16 %v7235_v40  ;;  %v7228_v39 = vld [vmem:[%s13756_s1 + $0x1f8] sm:$0xff]  }
 0x555   :  { %v6827_v18 = vunpack.c.l.bf16 %v7219_v15  ;;  %v6828_v38 = vunpack.c.h.bf16 %v7219_v15  ;;  %v3352_v11 = vmul.f32 %v6859_v17, %v3230_v55  ;;  %v6892_v60 = vunpack.c.h.bf16 %v7235_v40 }
 0x556   :  { %v3292_v51 = vadd.f32 %v3291_v28, %v3277_v5  ;;  %v3441_v8 = vadd.f32 %v3440_v3, %v3426_v44  ;;  %v3428_v29 = vmul.f32 %v6891_v36, %v3230_v55  ;;  %v6864_v49 = vunpack.c.h.bf16 %v7228_v39 }
 0x557   :  { %v3279_v50 = vmul.f32 %v6827_v18, %v3230_v55  ;;  %v3367_v61 = vadd.f32 %v3366_v35, %v3352_v11  ;;  %v6896_v55 = vunpack.c.h.bf16 %v7236_v37  ;;  %v3053_v35 = vand.u32 65535, %v10999_v25 }
 0x558   :  { %2996 = vmax.xlane.f32.xlu0 %v10804_v53  ;;  %2998 = vmax.xlane.f32.xlu1 %v10802_v27  ;;  %v6888_v53 = vunpack.c.h.bf16 %v7234_v42  ;;  %v3215_v27 = vmul.f32 2.0, %v10948_v46  ;;  %v3293_v34 = vadd.f32 %v3292_v51, %v3278_v62  ;;  %v6895_v51 = vunpack.c.l.bf16 %v7236_v37 }
 0x55a   :  { %v3427_v59 = vmul.f32 %v6888_v53, %v3229_v13  ;;  %v3294_v42 = vadd.f32 %v3293_v34, %v3279_v50 }
 0x55c   :  { %3000 = vmax.xlane.f32.xlu0 %v10784_v54  ;;  %3002 = vmax.xlane.f32.xlu1 %v10786_v21  ;;  %v3216_v54 = vmul.f32 2.0, %v10930_v7  ;;  %v3231_v21 = vsub.f32 1.0, %v3215_v27  ;;  %v3442_v28 = vadd.f32 %v3441_v8, %v3427_v59  ;;  %v3037_v8 = vand.u32 65535, %v11002_v20 }
 0x55e   :  { %v3232_v13 = vsub.f32 1.0, %v3216_v54  ;;  %v3280_v31 = vmul.f32 %v6828_v38, %v3231_v21  ;;  %v3353_v6 = vmul.f32 %v6860_v43, %v3231_v21  ;;  %v3443_v9 = vadd.f32 %v3442_v28, %v3428_v29 }
 0x55f   :  { %v3429_v3 = vmul.f32 %v6892_v60, %v3231_v21  ;;  %v3039_v43 = vcvt.s32.f32 %v3037_v8 }
 0x560   :  { %3004 = vmax.xlane.f32.xlu0 %v10836_v23  ;;  %3006 = vmax.xlane.f32.xlu1 %v10838_v4  ;;  %v3217_v23 = vmul.f32 2.0, %v10932_v0  ;;  %v6863_v4 = vunpack.c.l.bf16 %v7228_v39  ;;  %v3295_v15 = vadd.f32 %v3294_v42, %v3280_v31  ;;  %v3368_v5 = vadd.f32 %v3367_v61, %v3353_v6 }
 0x561   :  { %v3444_v17 = vadd.f32 %v3443_v9, %v3429_v3  ;;  %v3430_v45 = vmul.f32 %v6895_v51, %v3232_v13 }
 0x562   :  { %v3354_v10 = vmul.f32 %v6863_v4, %v3232_v13 }
 0x564   :  { %3008 = vmax.xlane.f32.xlu0 %v10832_v22  ;;  %3010 = vmax.xlane.f32.xlu1 %v10834_v58  ;;  %v3233_v22 = vsub.f32 1.0, %v3217_v23  ;;  %v3281_v58 = vmul.f32 %v6831_v2, %v3232_v13  ;;  %v3369_v62 = vadd.f32 %v3368_v5, %v3354_v10 }
 0x566   :  { %v3296_v18 = vadd.f32 %v3295_v15, %v3281_v58  ;;  %v3282_v53 = vmul.f32 %v6832_v57, %v3233_v22  ;;  %v3355_v27 = vmul.f32 %v6864_v49, %v3233_v22 }
 0x568   :  { %3012 = vmax.xlane.f32.xlu0 %v10959_v12  ;;  %3014 = vmax.xlane.f32.xlu1 %v10948_v46  ;;  %v3297_v40 = vadd.f32 %v3296_v18, %v3282_v53  ;;  %v3370_v44 = vadd.f32 %v3369_v62, %v3355_v27  ;;  %v3445_v12 = vadd.f32 %v3444_v17, %v3430_v45 }
 0x569   :  { %v3431_v46 = vmul.f32 %v6896_v55, %v3233_v22 }
 0x56b   :  { %v3446_v34 = vadd.f32 %v3445_v12, %v3431_v46 }
 0x56c   :  { %3016 = vmax.xlane.f32.xlu0 %v10930_v7  ;;  %3018 = vmax.xlane.f32.xlu1 %v10932_v0  ;;  %v3055_v0 = vcvt.s32.f32 %v3053_v35 }
 0x570   :  { %3298 = vadd.xlane.f32.xlu0 %v3297_v40  ;;  %3371 = vadd.xlane.f32.xlu1 %v3370_v44 }
 0x574   :  { %3447 = vadd.xlane.f32.xlu0 %v3446_v34 }
 0x5d9   :  { %v11074_v38 = vpop.xlane.xlu0 %3057  ;;  %v11076_v7 = vpop.xlane.xlu1 %3041 }
 0x5da   :  { %vm3059_vm7 = vcmp.eq.f32.partialorder %v11013_v26, %v11074_v38  ;;  %vm3043_vm11 = vcmp.eq.f32.partialorder %v11015_v41, %v11076_v7 }
 0x5db   :  { %v3060_v36 = vsel %vm3059_vm7, %v3055_v0, -inf  ;;  %v3044_v59 = vsel %vm3043_vm11, %v3039_v43, inf  ;;  %v14073_v0 = vld [vmem:[#allocation14_spill] sm:$0xff] }
 0x5dc   :  { %3061 = vmax.xlane.f32.xlu0 %v3060_v36  ;;  %3045 = vmin.xlane.f32.xlu1 %v3044_v59  ;;  %v14074_v59 = vld [vmem:[#allocation15_spill] sm:$0xff] }
 0x5dd   :  { %v2989_v54 = vpop.xlane.xlu0 %2988  ;;  %v2991_v25 = vpop.xlane.xlu1 %2990 }
 0x5de   :  { %vm3020_vm12 = vcmp.gt.f32.partialorder %v2989_v54, 0.5  ;;  %vm3021_vm9 = vcmp.gt.f32.partialorder %v2991_v25, 0.5  ;;  %v14075_v25 = vld [vmem:[#allocation11_spill] sm:$0xff] }
 0x5df   :  { %v3068_v41 = vsel %vm3020_vm12, %v8386_v1, 1073741824  ;;  %v3124_v23 = vsel %vm3020_vm12, %v8386_v1, 4294967295  ;;  %v3069_v60 = vsel %vm3021_vm9, %v9672_v32, 1073741824  ;;  %v3125_v31 = vsel %vm3021_vm9, %v9672_v32, 4294967295 }
 0x5e1   :  { %v2993_v21 = vpop.xlane.xlu0 %2992  ;;  %v2995_v20 = vpop.xlane.xlu1 %2994 }
 0x5e2   :  { %vm3022_vm1 = vcmp.gt.f32.partialorder %v2993_v21, 0.5  ;;  %vm3023_vm14 = vcmp.gt.f32.partialorder %v2995_v20, 0.5 }
 0x5e3   :  { %v3070_v9 = vsel %vm3022_vm1, %v9669_v56, 1073741824  ;;  %v3126_v57 = vsel %vm3022_vm1, %v9669_v56, 4294967295  ;;  %v3071_v49 = vsel %vm3023_vm14, %v9680_v48, 1073741824  ;;  %v3127_v58 = vsel %vm3023_vm14, %v9680_v48, 4294967295 }
 0x5e5   :  { %v2997_v14 = vpop.xlane.xlu0 %2996  ;;  %v2999_v50 = vpop.xlane.xlu1 %2998 }
 0x5e6   :  { %vm3024_vm15 = vcmp.gt.f32.partialorder %v2997_v14, 0.5  ;;  %vm3025_vm8 = vcmp.gt.f32.partialorder %v2999_v50, 0.5 }
 0x5e7   :  { %v3072_v2 = vsel %vm3024_vm15, %v9666_v47, 1073741824  ;;  %v3128_v4 = vsel %vm3024_vm15, %v9666_v47, 4294967295  ;;  %v3073_v13 = vsel %vm3025_vm8, %v9687_v24, 1073741824  ;;  %v3129_v6 = vsel %vm3025_vm8, %v9687_v24, 4294967295 }
 0x5e8   :  { %vm3084_vm2 = vcmp.lt.s32.totalorder %v3068_v41, %v3072_v2  ;;  %vm3140_vm3 = vcmp.gt.s32.totalorder %v3124_v23, %v3128_v4  ;;  %vm3086_vm5 = vcmp.lt.s32.totalorder %v3069_v60, %v3073_v13  ;;  %vm3142_vm4 = vcmp.gt.s32.totalorder %v3125_v31, %v3129_v6 }
 0x5e9   :  { %v3001_v39 = vpop.xlane.xlu0 %3000  ;;  %v3003_v11 = vpop.xlane.xlu1 %3002  ;;  %v3085_v10 = vsel %vm3084_vm2, %v3068_v41, %v3072_v2  ;;  %v3141_v3 = vsel %vm3140_vm3, %v3124_v23, %v3128_v4  ;;  %v3087_v18 = vsel %vm3086_vm5, %v3069_v60, %v3073_v13  ;;  %v3143_v62 = vsel %vm3142_vm4, %v3125_v31, %v3129_v6 }
 0x5ea   :  { %vm3026_vm10 = vcmp.gt.f32.partialorder %v3001_v39, 0.5  ;;  %vm3027_vm13 = vcmp.gt.f32.partialorder %v3003_v11, 0.5  ;;  %v14076_v11 = vld [vmem:[#allocation13_spill] sm:$0xff] }
 0x5eb   :  { %v3074_v37 = vsel %vm3026_vm10, %v9677_v52, 1073741824  ;;  %v3130_v29 = vsel %vm3026_vm10, %v9677_v52, 4294967295  ;;  %v3075_v51 = vsel %vm3027_vm13, %v9693_v30, 1073741824  ;;  %v3131_v22 = vsel %vm3027_vm13, %v9693_v30, 4294967295 }
 0x5ec   :  { %vm3088_vm6 = vcmp.lt.s32.totalorder %v3070_v9, %v3074_v37  ;;  %vm3144_vm7 = vcmp.gt.s32.totalorder %v3126_v57, %v3130_v29  ;;  %vm3090_vm15 = vcmp.lt.s32.totalorder %v3071_v49, %v3075_v51  ;;  %vm3146_vm9 = vcmp.gt.s32.totalorder %v3127_v58, %v3131_v22 }
 0x5ed   :  { %v3005_v42 = vpop.xlane.xlu0 %3004  ;;  %v3007_v61 = vpop.xlane.xlu1 %3006  ;;  %v3089_v17 = vsel %vm3088_vm6, %v3070_v9, %v3074_v37  ;;  %v3145_v53 = vsel %vm3144_vm7, %v3126_v57, %v3130_v29  ;;  %v3091_v46 = vsel %vm3090_vm15, %v3071_v49, %v3075_v51  ;;  %v3147_v34 = vsel %vm3146_vm9, %v3127_v58, %v3131_v22 }
 0x5ee   :  { %vm3028_vm11 = vcmp.gt.f32.partialorder %v3005_v42, 0.5  ;;  %vm3029_vm10 = vcmp.gt.f32.partialorder %v3007_v61, 0.5  ;;  %v14077_v61 = vld [vmem:[#allocation17_spill] sm:$0xff] }
 0x5ef   :  { %v3076_v45 = vsel %vm3028_vm11, %v9683_v63, 1073741824  ;;  %v3132_v40 = vsel %vm3028_vm11, %v9683_v63, 4294967295  ;;  %v3077_v43 = vsel %vm3029_vm10, %v14073_v0, 1073741824  ;;  %v3133_v36 = vsel %vm3029_vm10, %v14073_v0, 4294967295 }
 0x5f0   :  { %vm3092_vm13 = vcmp.lt.s32.totalorder %v3085_v10, %v3076_v45  ;;  %vm3148_vm2 = vcmp.gt.s32.totalorder %v3141_v3, %v3132_v40  ;;  %vm3150_vm15 = vcmp.gt.s32.totalorder %v3143_v62, %v3133_v36 }
 0x5f1   :  { %v3009_v28 = vpop.xlane.xlu0 %3008  ;;  %v3011_v26 = vpop.xlane.xlu1 %3010  ;;  %v3093_v4 = vsel %vm3092_vm13, %v3085_v10, %v3076_v45  ;;  %v3149_v13 = vsel %vm3148_vm2, %v3141_v3, %v3132_v40  ;;  %v3151_v31 = vsel %vm3150_vm15, %v3143_v62, %v3133_v36 }
 0x5f2   :  { %vm3030_vm12 = vcmp.gt.f32.partialorder %v3009_v28, 0.5  ;;  %vm3031_vm8 = vcmp.gt.f32.partialorder %v3011_v26, 0.5 }
 0x5f3   :  { %v3078_v44 = vsel %vm3030_vm12, %v9690_v33, 1073741824  ;;  %v3134_v12 = vsel %vm3030_vm12, %v9690_v33, 4294967295  ;;  %v3079_v35 = vsel %vm3031_vm8, %v9708_v19, 1073741824  ;;  %v3135_v8 = vsel %vm3031_vm8, %v9708_v19, 4294967295 }
 0x5f4   :  { %vm3096_vm3 = vcmp.lt.s32.totalorder %v3089_v17, %v3078_v44  ;;  %vm3152_vm5 = vcmp.gt.s32.totalorder %v3145_v53, %v3134_v12  ;;  %vm3098_vm4 = vcmp.lt.s32.totalorder %v3091_v46, %v3079_v35  ;;  %vm3154_vm6 = vcmp.gt.s32.totalorder %v3147_v34, %v3135_v8 }
 0x5f5   :  { %v3013_v15 = vpop.xlane.xlu0 %3012  ;;  %v3015_v5 = vpop.xlane.xlu1 %3014  ;;  %vm3094_vm12 = vcmp.lt.s32.totalorder %v3087_v18, %v3077_v43  ;;  %v3097_v20 = vsel %vm3096_vm3, %v3089_v17, %v3078_v44  ;;  %v3153_v14 = vsel %vm3152_vm5, %v3145_v53, %v3134_v12  ;;  %v3099_v26 = vsel %vm3098_vm4, %v3091_v46, %v3079_v35 }
 0x5f6   :  { %vm3032_vm7 = vcmp.gt.f32.partialorder %v3013_v15, 0.5  ;;  %vm3033_vm11 = vcmp.gt.f32.partialorder %v3015_v5, 0.5  ;;  %v3155_v41 = vsel %vm3154_vm6, %v3147_v34, %v3135_v8  ;;  %v3095_v60 = vsel %vm3094_vm12, %v3087_v18, %v3077_v43 }
 0x5f7   :  { %v3080_v42 = vsel %vm3032_vm7, %v14076_v11, 1073741824  ;;  %v3081_v28 = vsel %vm3033_vm11, %v14077_v61, 1073741824  ;;  %v3136_v23 = vsel %vm3032_vm7, %v14076_v11, 4294967295  ;;  %v3137_v2 = vsel %vm3033_vm11, %v14077_v61, 4294967295 }
 0x5f8   :  { %vm3102_vm3 = vcmp.lt.s32.totalorder %v3095_v60, %v3081_v28  ;;  %vm3156_vm5 = vcmp.gt.s32.totalorder %v3149_v13, %v3136_v23  ;;  %vm3158_vm4 = vcmp.gt.s32.totalorder %v3151_v31, %v3137_v2 }
 0x5f9   :  { %v3017_v27 = vpop.xlane.xlu0 %3016  ;;  %v3019_v55 = vpop.xlane.xlu1 %3018  ;;  %v3103_v9 = vsel %vm3102_vm3, %v3095_v60, %v3081_v28  ;;  %v3157_v57 = vsel %vm3156_vm5, %v3149_v13, %v3136_v23  ;;  %v3159_v49 = vsel %vm3158_vm4, %v3151_v31, %v3137_v2  ;;  %vm14078_vm3 = vcmp.lt.s32.totalorder %v14075_v25, 127 }
 0x5fa   :  { %vm3034_vm1 = vcmp.gt.f32.partialorder %v3017_v27, 0.5  ;;  %vm3035_vm14 = vcmp.gt.f32.partialorder %v3019_v55, 0.5  ;;  %vm3164_vm11 = vcmp.gt.s32.totalorder %v3157_v57, %v3159_v49  ;;  %vm14079_vm5 = vcmp.lt.s32.totalorder %v8386_v1, 1 }
 0x5fb   :  { %v3082_v54 = vsel %vm3034_vm1, %v14074_v59, 1073741824  ;;  %v3083_v21 = vsel %vm3035_vm14, %v14075_v25, 1073741824  ;;  %v3138_v50 = vsel %vm3034_vm1, %v14074_v59, 4294967295  ;;  %v3139_v39 = vsel %vm3035_vm14, %v14075_v25, 4294967295  ;;  %vm14080_vm4 = vmmov %vm14079_vm5 }
 0x5fc   :  { %vm3104_vm9 = vcmp.lt.s32.totalorder %v3097_v20, %v3082_v54  ;;  %vm3106_vm8 = vcmp.lt.s32.totalorder %v3099_v26, %v3083_v21  ;;  %vm3160_vm10 = vcmp.gt.s32.totalorder %v3153_v14, %v3138_v50  ;;  %vm3162_vm1 = vcmp.gt.s32.totalorder %v3155_v41, %v3139_v39 }
 0x5fd   :  { %vm3100_vm14 = vcmp.lt.s32.totalorder %v3093_v4, %v3080_v42  ;;  %v3105_v6 = vsel %vm3104_vm9, %v3097_v20, %v3082_v54  ;;  %v3107_v37 = vsel %vm3106_vm8, %v3099_v26, %v3083_v21  ;;  %v3161_v29 = vsel %vm3160_vm10, %v3153_v14, %v3138_v50  ;;  %v3299_v17 = vpop.xlane.xlu0 %3298  ;;  %v3372_v27 = vpop.xlane.xlu1 %3371 }
 0x5fe   :  { %v3163_v15 = vsel %vm3162_vm1, %v3155_v41, %v3139_v39  ;;  %v3101_v5 = vsel %vm3100_vm14, %v3093_v4, %v3080_v42  ;;  %vm3110_vm13 = vcmp.lt.s32.totalorder %v3105_v6, %v3107_v37  ;;  %v3165_v10 = vsel %vm3164_vm11, %v3157_v57, %v3159_v49  ;;  %vm14084_vm11 = vmmov %vm14080_vm4 }
 0x5ff   :  { %vm3166_vm6 = vcmp.gt.s32.totalorder %v3161_v29, %v3163_v15  ;;  %vm3108_vm7 = vcmp.lt.s32.totalorder %v3101_v5, %v3103_v9  ;;  %v3111_v51 = vsel %vm3110_vm13, %v3105_v6, %v3107_v37  ;;  %v3300_v40 = vrot.slane %v3299_v17, 4 }
 0x600   :  { %v3167_v22 = vsel %vm3166_vm6, %v3161_v29, %v3163_v15  ;;  %v3109_v58 = vsel %vm3108_vm7, %v3101_v5, %v3103_v9  ;;  %v3373_v12 = vrot.slane %v3372_v27, 4  ;;  %v3048_v21 = vcvt.f32.s32 %v11076_v7  ;;  %vm14082_vm6 = vmmov %vm14080_vm4 }
 0x601   :  { %vm3112_vm2 = vcmp.lt.s32.totalorder %v3109_v58, %v3111_v51  ;;  %vm3168_vm12 = vcmp.gt.s32.totalorder %v3165_v10, %v3167_v22  ;;  %v3448_v55 = vpop.xlane.xlu0 %3447  ;;  %v3301_v8 = vadd.f32 %v3300_v40, %v3299_v17  ;;  %v3064_v50 = vcvt.f32.s32 %v11074_v38  ;;  %vm14083_vm7 = vmmov %vm14080_vm4 }
 0x602   :  { %v3113_v3 = vsel %vm3112_vm2, %v3109_v58, %v3111_v51  ;;  %v3169_v18 = vsel %vm3168_vm12, %v3165_v10, %v3167_v22  ;;  %v3449_v46 = vrot.slane %v3448_v55, 4  ;;  %v3374_v43 = vadd.f32 %v3373_v12, %v3372_v27  ;;  %vm14085_vm2 = vmmov %vm14080_vm4 }
 0x603   :  { %v3114_v62 = vrot.slane %v3113_v3, 4  ;;  %v3170_v53 = vrot.slane %v3169_v18, 4  ;;  %v3302_v54 = vrot.slane %v3301_v8, 2  ;;  %v3049_v2 = vshll.u32 %v3048_v21, 16 }
 0x604   :  { %v3450_v36 = vadd.f32 %v3449_v46, %v3448_v55  ;;  %v3375_v14 = vrot.slane %v3374_v43, 2  ;;  %v3065_v6 = vshll.u32 %v3064_v50, 16  ;;  %vm14081_vm13 = vcmp.ge.s32.totalorder %v8386_v1, 1 }
 0x605   :  { %vm3115_vm15 = vcmp.lt.s32.totalorder %v3113_v3, %v3114_v62  ;;  %vm3171_vm9 = vcmp.gt.s32.totalorder %v3169_v18, %v3170_v53  ;;  %v3303_v26 = vadd.f32 %v3302_v54, %v3301_v8  ;;  %vm14086_vm12 = vcmp.lt.s32.totalorder %v8386_v1, 6 }
 0x606   :  { %v3116_v45 = vsel %vm3115_vm15, %v3113_v3, %v3114_v62  ;;  %v3172_v44 = vsel %vm3171_vm9, %v3169_v18, %v3170_v53  ;;  %v3451_v42 = vrot.slane %v3450_v36, 2  ;;  %v3376_v60 = vadd.f32 %v3375_v14, %v3374_v43  ;;  %vm14087_vm15 = vmmov %vm14086_vm12 }
 0x607   :  { %v3117_v34 = vrot.slane %v3116_v45, 2  ;;  %v3173_v35 = vrot.slane %v3172_v44, 2  ;;  %v3304_v7 = vrot.slane %v3303_v26, 1  ;;  %vm14088_vm9 = vmmov %vm14086_vm12 }
 0x608   :  { %v3452_v37 = vadd.f32 %v3451_v42, %v3450_v36  ;;  %v3377_v5 = vrot.slane %v3376_v60, 1 }
 0x609   :  { %vm3118_vm8 = vcmp.lt.s32.totalorder %v3116_v45, %v3117_v34  ;;  %vm3174_vm10 = vcmp.gt.s32.totalorder %v3172_v44, %v3173_v35  ;;  %v3305_v49 = vadd.f32 %v3304_v7, %v3303_v26 }
 0x60a   :  { %v3119_v20 = vsel %vm3118_vm8, %v3116_v45, %v3117_v34  ;;  %v3175_v39 = vsel %vm3174_vm10, %v3172_v44, %v3173_v35  ;;  %v3453_v38 = vrot.slane %v3452_v37, 1  ;;  %v3378_v51 = vadd.f32 %v3377_v5, %v3376_v60 }
 0x60b   :  { %v3120_v28 = vrot.slane %v3119_v20, 1  ;;  %v3176_v4 = vrot.slane %v3175_v39, 1  ;;  %vm14089_vm8 = vcmp.lt.s32.totalorder %v8386_v1, 2 }
 0x60c   :  { %v3454_v22 = vadd.f32 %v3453_v38, %v3452_v37  ;;  %vm14090_vm10 = vmmov %vm14089_vm8 }
 0x60d   :  { %vm3121_vm1 = vcmp.lt.s32.totalorder %v3119_v20, %v3120_v28  ;;  %vm3177_vm14 = vcmp.gt.s32.totalorder %v3175_v39, %v3176_v4 }
 0x60e   :  { %v3122_v9 = vsel %vm3121_vm1, %v3119_v20, %v3120_v28  ;;  %v3178_v57 = vsel %vm3177_vm14, %v3175_v39, %v3176_v4  ;;  %vm14091_vm1 = vmmov %vm14089_vm8  ;;  %vm14092_vm14 = vcmp.lt.s32.totalorder %v8386_v1, 4 }
 0x669   :  { %v3062_v41 = vpop.xlane.xlu0 %3061  ;;  %v3046_v23 = vpop.xlane.xlu1 %3045 }
 0x66a   :  { %v3063_v13 = vcvt.f32.s32 %v3062_v41  ;;  %v3047_v31 = vcvt.f32.s32 %v3046_v23 }
 0x66c   :  { %v3050_v29 = vadd.s32 %v3049_v2, %v3047_v31  ;;  %v3066_v15 = vadd.s32 %v3065_v6, %v3063_v13 }
 0x66e   :  { %7305 = vpush %v3050_v29 }
 0x66f   :  { %7307 = vpush %v3066_v15 }
 0x670   :  { %7309 = vpush %v3122_v9 }
 0x671   :  { %7311 = vpush %v3178_v57 }
 0x672   :  { %7313 = vpush %v3305_v49 }
 0x673   :  { %7315 = vpush %v3378_v51 }
 0x674   :  { %7317 = vpush %v3454_v22 }
 0x69f   :  { %s7306_s25 = spop %7305 }
 0x6a0   :  { %s7308_s26 = spop %7307 }
 0x6a1   :  { %p3180_p3 = scmp.ge.s32.totalorder %s7308_s26, 0  ;;  %s3189_s27 = ssub.s32 %s7308_s26, %s7306_s25 }
 0x6a2   :  { %s3190_s28 = sadd.s32 1, %s3189_s27  ;;  %s7310_s29 = spop %7309 }
 0x6a3   :  { %s14524_s25 = smov (!%p3180_p3, %s7306_s25), 0  ;;  %s14526_s28 = smov (!%p3180_p3, %s3190_s28), 0 }
 0x6a4   :  { %3184 = sst [smem:[#allocation8 + $0x4]] %s14524_s25  ;;  %s7312_s30 = spop %7311 }
 0x6a5   :  { %3194 = sst [smem:[#allocation8 + $0x6]] %s14526_s28  ;;  %s3195_s4 = ssub.s32 %s7312_s30, %s7310_s29 }
 0x6a6   :  { %s14528_s29 = smov (!%p3180_p3, %s7310_s29), 0  ;;  %s3196_s5 = sadd.s32 1, %s3195_s4 }
 0x6a7   :  { %s7314_s6 = spop %7313  ;;  %3188 = sst [smem:[#allocation8 + $0x5]] %s14528_s29 }
 0x6a8   :  { %s7316_s7 = spop %7315  ;;  %s14530_s5 = smov (!%p3180_p3, %s3196_s5), 0 }
 0x6a9   :  { %p3380_p4 = scmp.lt.f32.partialorder %s7316_s7, %s7314_s6  ;;  %3200 = sst [smem:[#allocation8 + $0x7]] %s14530_s5 }
 0x6aa   :  { %s7318_s8 = spop %7317 }
 0x6ab   :  { %s14532_s7 = smov (!%p3380_p4, %s7316_s7), %s7314_s6 }
 0x6ac   :  { %s3381_s9 = scalar_select %p3380_p4, 1, 0 }
 0x6ad   :  { %p3456_p5 = scmp.lt.f32.partialorder %s7318_s8, %s14532_s7 }
 0x6af   :  { %s14534_s9 = smov (%p3456_p5, %s3381_s9), 2 }
 0x6b0   :  { %s6431_s10 = sshll.u32 %s14534_s9, 6 }
 0x6b1   :  { %s6087_s13 = scalar_lea.vmem %s13756_s1, %s6431_s10 }
 0x6b2   :  { %v7237_v58 = vld [vmem:[%s6087_s13 + $0x180] sm:$0xff]   ;;  %v7238_v10 = vld [vmem:[%s6087_s13 + $0x188] sm:$0xff]   ;;  %v7239_v3 = vld [vmem:[%s6087_s13 + $0x190] sm:$0xff]  }
 0x6b3   :  { %v11133_v18 = vunpack.c.l.bf16 %v7237_v58  ;;  %v11135_v62 = vunpack.c.h.bf16 %v7237_v58  ;;  %v11137_v17 = vunpack.c.l.bf16 %v7238_v10  ;;  %v11139_v53 = vunpack.c.h.bf16 %v7238_v10  ;;  %v7240_v27 = vld [vmem:[%s6087_s13 + $0x198] sm:$0xff]   ;;  %v7241_v55 = vld [vmem:[%s6087_s13 + $0x1a0] sm:$0xff]   ;;  %v7242_v45 = vld [vmem:[%s6087_s13 + $0x1a8] sm:$0xff]  }
 0x6b4   :  { %v11141_v40 = vunpack.c.l.bf16 %v7239_v3  ;;  %v11143_v44 = vunpack.c.h.bf16 %v7239_v3  ;;  %v11145_v12 = vunpack.c.l.bf16 %v7240_v27  ;;  %v11147_v46 = vunpack.c.h.bf16 %v7240_v27  ;;  %v7243_v34 = vld [vmem:[%s6087_s13 + $0x1b0] sm:$0xff]   ;;  %v7244_v35 = vld [vmem:[%s6087_s13 + $0x1b8] sm:$0xff]  }
 0x6b5   :  { %v11149_v8 = vunpack.c.l.bf16 %v7241_v55  ;;  %v11151_v43 = vunpack.c.h.bf16 %v7241_v55  ;;  %v11153_v36 = vunpack.c.l.bf16 %v7242_v45  ;;  %v11155_v54 = vunpack.c.h.bf16 %v7242_v45 }
 0x6b6   :  { %v11157_v21 = vunpack.c.l.bf16 %v7243_v34  ;;  %v11159_v20 = vunpack.c.h.bf16 %v7243_v34  ;;  %v11161_v14 = vunpack.c.l.bf16 %v7244_v35  ;;  %v11163_v50 = vunpack.c.h.bf16 %v7244_v35 }
 0x6b7   :  { %v13808_v39 = vrot.slane %v11133_v18, 1  ;;  %v3504_v42 = vrot.slane %v11147_v46, 1  ;;  %v3505_v28 = vrot.slane %v11149_v8, 1  ;;  %v3508_v26 = vrot.slane %v11155_v54, 1 }
 0x6b8   :  { %v13815_v41 = vrot.slane %v11157_v21, 1  ;;  %v13816_v23 = vrot.slane %v11159_v20, 1  ;;  %v13810_v2 = vrot.slane %v11161_v14, 1  ;;  %v13811_v4 = vrot.slane %v11163_v50, 1 }
 0x6b9   :  { %v3520_v60 = vsel %vm13835_vm0, %v3504_v42, %v3505_v28  ;;  %v13812_v13 = vrot.slane %v11133_v18, 7  ;;  %v13814_v31 = vrot.slane %v11135_v62, 7  ;;  %v3691_v6 = vrot.slane %v11137_v17, 7 }
 0x6ba   :  { %v3514_v37 = vsel %vm13835_vm0, %v13816_v23, %v13810_v2  ;;  %v3516_v29 = vsel %vm13835_vm0, %v3508_v26, %v13815_v41  ;;  %v3528_v15 = vsel %vm13835_vm0, %v13811_v4, %v13808_v39  ;;  %v11199_v7 = vmax.f32 %v11147_v46, %v3520_v60 }
 0x6bb   :  { %v3544_v5 = vsel %vm14078_vm3, %v3528_v15, 0.0  ;;  %v11204_v38 = vmax.f32 %v11155_v54, %v3516_v29  ;;  %v11207_v9 = vmax.f32 %v11159_v20, %v3514_v37  ;;  %v13817_v57 = vrot.slane %v11145_v12, 7  ;;  %vm14093_vm3 = vmmov %vm14092_vm14 }
 0x6bc   :  { %v11211_v49 = vmax.f32 %v11163_v50, %v3544_v5  ;;  %v13818_v51 = vrot.slane %v11199_v7, 2  ;;  %v13809_v58 = vrot.slane %v11163_v50, 7  ;;  %v3718_v27 = vsel %vm14079_vm5, %v13814_v31, %v3691_v6  ;;  %vm14094_vm5 = vmmov %vm14093_vm3 }
 0x6bd   :  { %v13813_v55 = vrot.slane %v11141_v40, 1  ;;  %v11231_v35 = vmax.f32 %v11137_v17, %v3718_v27  ;;  %v3502_v60 = vrot.slane %v11143_v44, 1  ;;  %v3503_v29 = vrot.slane %v11145_v12, 1 }
 0x6be   :  { %v3720_v34 = vsel %vm14080_vm4, %v13809_v58, %v13812_v13  ;;  %v3692_v15 = vrot.slane %v11139_v53, 7  ;;  %v3693_v5 = vrot.slane %v11141_v40, 7  ;;  %v3694_v58 = vrot.slane %v11143_v44, 7  ;;  %vm14096_vm4 = vmmov %vm14085_vm2 }
 0x6bf   :  { %v3721_v37 = vsel %vm14081_vm13, %v3720_v34, 0.0  ;;  %v13820_v45 = vrot.slane %v11231_v35, 6  ;;  %v3523_v27 = vsel %vm13835_vm0, %v13813_v55, %v3502_v60  ;;  %v3521_v34 = vsel %vm13835_vm0, %v3503_v29, %v3504_v42  ;;  %vm14097_vm13 = vmmov %vm14093_vm3 }
 0x6c0   :  { %v11240_v39 = vmax.f32 %v11133_v18, %v3721_v37  ;;  %v3522_v22 = vsel %vm13835_vm0, %v3502_v60, %v3503_v29  ;;  %v11253_v2 = vmax.f32 %v11141_v40, %v3523_v27  ;;  %v3716_v37 = vsel %vm14082_vm6, %v3692_v15, %v3693_v5  ;;  %vm14098_vm6 = vmmov %vm14088_vm9 }
 0x6c1   :  { %v3550_v13 = vmax.f32 %v11143_v44, %v3522_v22  ;;  %v3551_v55 = vmax.f32 %v11145_v12, %v3521_v34  ;;  %v3714_v42 = vsel %vm14083_vm7, %v3694_v58, %v13817_v57  ;;  %v3715_v60 = vsel %vm14084_vm11, %v3693_v5, %v3694_v58  ;;  %vm14099_vm7 = vmmov %vm14085_vm2 }
 0x6c2   :  { %v13819_v31 = vrot.slane %v11253_v2, 2  ;;  %v3717_v29 = vsel %vm14085_vm2, %v3691_v6, %v3692_v15  ;;  %v3741_v27 = vmax.f32 %v11141_v40, %v3716_v37  ;;  %v11272_v34 = vmax.f32 %v11143_v44, %v3715_v60  ;;  %vm14100_vm11 = vmmov %vm14085_vm2 }
 0x6c3   :  { %v3566_v4 = vrot.slane %v3550_v13, 2  ;;  %v3567_v3 = vrot.slane %v3551_v55, 2  ;;  %v3740_v22 = vmax.f32 %v11139_v53, %v3717_v29  ;;  %v3506_v23 = vrot.slane %v11151_v43, 1  ;;  %vm14102_vm2 = vmmov %vm14098_vm6 }
 0x6c4   :  { %v3757_v41 = vrot.slane %v3741_v27, 6  ;;  %v3507_v10 = vrot.slane %v11153_v36, 1  ;;  %v3696_v57 = vrot.slane %v11147_v46, 7  ;;  %v13821_v29 = vrot.slane %v11272_v34, 6 }
 0x6c5   :  { %v3585_v6 = vsel %vm14086_vm12, %v3567_v3, %v13818_v51  ;;  %v3586_v58 = vsel %vm14087_vm15, %v3566_v4, %v3567_v3  ;;  %v3587_v44 = vsel %vm14088_vm9, %v13819_v31, %v3566_v4  ;;  %v3756_v15 = vrot.slane %v3740_v22, 6  ;;  %vm14103_vm12 = vmmov %vm14102_vm2 }
 0x6c6   :  { %v11288_v5 = vmax.f32 %v11253_v2, %v3587_v44  ;;  %v3614_v37 = vmax.f32 %v3550_v13, %v3586_v58  ;;  %v11290_v60 = vmax.f32 %v3551_v55, %v3585_v6  ;;  %v3517_v4 = vsel %vm13835_vm0, %v3507_v10, %v3508_v26  ;;  %vm14105_vm15 = vmmov %vm14102_vm2 }
 0x6c7   :  { %v3780_v51 = vsel %vm14089_vm8, %v3756_v15, %v3757_v41  ;;  %v3781_v3 = vsel %vm14090_vm10, %v13820_v45, %v3756_v15  ;;  %v3518_v13 = vsel %vm13835_vm0, %v3506_v23, %v3507_v10  ;;  %v3779_v44 = vsel %vm14091_vm1, %v3757_v41, %v13821_v29  ;;  %vm14106_vm9 = vmmov %vm14093_vm3 }
 0x6c8   :  { %v13824_v55 = vrot.slane %v11288_v5, 4  ;;  %v3630_v6 = vrot.slane %v3614_v37, 4  ;;  %v13822_v58 = vrot.slane %v11290_v60, 4  ;;  %v11311_v31 = vmax.f32 %v3740_v22, %v3781_v3  ;;  %vm14107_vm8 = vmmov %vm14093_vm3 }
 0x6c9   :  { %v3805_v15 = vmax.f32 %v3741_v27, %v3780_v51  ;;  %v11314_v45 = vmax.f32 %v11272_v34, %v3779_v44  ;;  %v3519_v26 = vsel %vm13835_vm0, %v3505_v28, %v3506_v23  ;;  %v3554_v27 = vmax.f32 %v11151_v43, %v3518_v13  ;;  %vm14108_vm10 = vmmov %vm14091_vm1 }
 0x6ca   :  { %v3650_v10 = vsel %vm14092_vm14, %v3630_v6, %v13822_v58  ;;  %v3651_v41 = vsel %vm14093_vm3, %v13824_v55, %v3630_v6  ;;  %v3553_v51 = vmax.f32 %v11149_v8, %v3519_v26  ;;  %v13826_v44 = vrot.slane %v11311_v31, 4  ;;  %vm14109_vm14 = vmmov %vm14091_vm1 }
 0x6cb   :  { %v3677_v22 = vmax.f32 %v11288_v5, %v3651_v41  ;;  %v3678_v3 = vmax.f32 %v3614_v37, %v3650_v10  ;;  %v3821_v28 = vrot.slane %v3805_v15, 4  ;;  %v13833_v23 = vrot.slane %v11314_v45, 4  ;;  %vm14111_vm3 = vmmov %vm14091_vm1 }
 0x6cc   :  { %v3555_v29 = vmax.f32 %v11153_v36, %v3517_v4  ;;  %v3569_v58 = vrot.slane %v3553_v51, 2  ;;  %v3570_v11 = vrot.slane %v3554_v27, 2  ;;  %v3697_v26 = vrot.slane %v11149_v8, 7 }
 0x6cd   :  { %v3844_v6 = vsel %vm14094_vm5, %v13826_v44, %v3821_v28  ;;  %v3698_v13 = vrot.slane %v11151_v43, 7  ;;  %v14095_v37 = vrot.slane %v11145_v12, 7  ;;  %v3843_v4 = vsel %vm14097_vm13, %v3821_v28, %v13833_v23 }
 0x6ce   :  { %v3869_v41 = vmax.f32 %v3805_v15, %v3844_v6  ;;  %v3571_v55 = vrot.slane %v3555_v29, 2  ;;  %v3583_v61 = vsel %vm14098_vm6, %v3569_v58, %v3570_v11  ;;  %v3870_v44 = vmax.f32 %v11314_v45, %v3843_v4  ;;  %vm14117_vm6 = vmmov %vm14099_vm7 }
 0x6cf   :  { %v3713_v10 = vsel %vm14096_vm4, %v14095_v37, %v3696_v57  ;;  %v11351_v59 = vmax.f32 %v3553_v51, %v3583_v61  ;;  %v3711_v0 = vsel %vm14099_vm7, %v3697_v26, %v3698_v13  ;;  %v3712_v37 = vsel %vm14100_vm11, %v3696_v57, %v3697_v26  ;;  %vm14115_vm4 = vmmov %vm14094_vm5 }
 0x6d0   :  { %v11357_v19 = vmax.f32 %v3677_v22, %v3869_v41  ;;  %v14101_v33 = vrot.slane %v11204_v38, 2  ;;  %v3582_v28 = vsel %vm14103_vm12, %v3570_v11, %v3571_v55  ;;  %v3743_v6 = vmax.f32 %v11145_v12, %v3714_v42  ;;  %vm14116_vm13 = vmmov %vm14115_vm4 }
 0x6d1   :  { %v11366_v61 = vmax.f32 %v3678_v3, %v3870_v44  ;;  %v3618_v51 = vmax.f32 %v3554_v27, %v3582_v28  ;;  %v3633_v23 = vrot.slane %v11351_v59, 4  ;;  %v3744_v57 = vmax.f32 %v11147_v46, %v3713_v10  ;;  %vm14118_vm7 = vmmov %vm14117_vm6 }
 0x6d2   :  { %v3581_v15 = vsel %vm14102_vm2, %v3571_v55, %v14101_v33  ;;  %v3745_v22 = vmax.f32 %v11149_v8, %v3712_v37  ;;  %v3746_v26 = vmax.f32 %v11151_v43, %v3711_v0  ;;  %v3759_v41 = vrot.slane %v3743_v6, 6  ;;  %vm14119_vm11 = vmmov %vm14115_vm4 }
 0x6d3   :  { %v11368_v4 = vmax.f32 %v3555_v29, %v3581_v15  ;;  %v7840_v33 = vpack.i.bf16 %v11366_v61, %v11357_v19  ;;  %v3634_v11 = vrot.slane %v3618_v51, 4  ;;  %v3760_v42 = vrot.slane %v3744_v57, 6  ;;  %vm14120_vm2 = vmmov %vm14115_vm4 }
 0x6d4   :  { %v3761_v55 = vrot.slane %v3745_v22, 6  ;;  %v3762_v27 = vrot.slane %v3746_v26, 6  ;;  %v14104_v29 = vrot.slane %v11199_v7, 2  ;;  %v3699_v43 = vrot.slane %v11153_v36, 7  ;;  %vm14122_vm12 = vmmov %vm14120_vm2 }
 0x6d5   :  { %v3635_v12 = vrot.slane %v11368_v4, 4  ;;  %7841 = vrot.lane.b32.xlu0 %v7840_v33, %s8348_s0  ;;  %7831 = vrot.lane.b32.xlu1 %v7840_v33, %s8349_s18  ;;  %v3647_v46 = vsel %vm14107_vm8, %v3633_v23, %v3634_v11  ;;  %v3777_v15 = vsel %vm14109_vm14, %v3759_v41, %v3760_v42  ;;  %vm14126_vm8 = vmmov %vm14091_vm1 }
 0x6d6   :  { %v3584_v3 = vsel %vm14105_vm15, %v14104_v29, %v3569_v58  ;;  %v3681_v44 = vmax.f32 %v11351_v59, %v3647_v46  ;;  %v3775_v58 = vsel %vm14108_vm10, %v3761_v55, %v3762_v27  ;;  %v3776_v37 = vsel %vm14091_vm1, %v3760_v42, %v3761_v55  ;;  %vm14127_vm10 = vmmov %vm14091_vm1 }
 0x6d7   :  { %v3646_v0 = vsel %vm14106_vm9, %v3634_v11, %v3635_v12  ;;  %v3616_v8 = vmax.f32 %v11199_v7, %v3584_v3  ;;  %v3809_v28 = vmax.f32 %v3745_v22, %v3776_v37  ;;  %v3810_v33 = vmax.f32 %v3746_v26, %v3775_v58  ;;  %vm14125_vm9 = vmmov %vm14105_vm15 }
 0x6d8   :  { %v3682_v10 = vmax.f32 %v3618_v51, %v3646_v0  ;;  %v3808_v11 = vmax.f32 %v3744_v57, %v3777_v15  ;;  %v14110_v7 = vrot.slane %v11272_v34, 6  ;;  %v14112_v59 = vrot.slane %v11159_v20, 1  ;;  %vm14130_vm1 = vmmov %vm14117_vm6 }
 0x6d9   :  { %v3632_v29 = vrot.slane %v3616_v8, 4  ;;  %v14113_v51 = vrot.slane %v11157_v21, 1  ;;  %v3700_v55 = vrot.slane %v11155_v54, 7  ;;  %v3825_v46 = vrot.slane %v3809_v28, 4  ;;  %vm14134_vm14 = vmmov %vm14120_vm2 }
 0x6da   :  { %v3778_v3 = vsel %vm14111_vm3, %v14110_v7, %v3759_v41  ;;  %v3826_v42 = vrot.slane %v3810_v33, 4  ;;  %v14114_v57 = vrot.slane %v11290_v60, 4  ;;  %v3824_v26 = vrot.slane %v3808_v11, 4  ;;  %vm14135_vm3 = vmmov %vm14120_vm2 }
 0x6db   :  { %v3515_v0 = vsel %vm13835_vm0, %v14113_v51, %v14112_v59  ;;  %v3648_v22 = vsel %vm14094_vm5, %v3632_v29, %v3633_v23  ;;  %v3807_v37 = vmax.f32 %v3743_v6, %v3778_v3  ;;  %v3709_v23 = vsel %vm14117_vm6, %v3699_v43, %v3700_v55  ;;  %vm14136_vm5 = vmmov %vm14120_vm2 }
 0x6dc   :  { %v3649_v34 = vsel %vm14115_vm4, %v14114_v57, %v3632_v29  ;;  %v3680_v58 = vmax.f32 %v3616_v8, %v3648_v22  ;;  %v3839_v15 = vsel %vm14116_vm13, %v3825_v46, %v3826_v42  ;;  %v3557_v7 = vmax.f32 %v11157_v21, %v3515_v0  ;;  %vm14137_vm4 = vmmov %vm14120_vm2 }
 0x6dd   :  { %v3679_v41 = vmax.f32 %v11290_v60, %v3649_v34  ;;  %v3710_v59 = vsel %vm14118_vm7, %v3698_v13, %v3699_v43  ;;  %v3840_v29 = vsel %vm14119_vm11, %v3824_v26, %v3825_v46  ;;  %v3874_v51 = vmax.f32 %v3810_v33, %v3839_v15  ;;  %vm14139_vm13 = vmmov %vm14126_vm8 }
 0x6de   :  { %v3823_v60 = vrot.slane %v3807_v37, 4  ;;  %v3747_v6 = vmax.f32 %v11153_v36, %v3710_v59  ;;  %v3873_v8 = vmax.f32 %v3809_v28, %v3840_v29  ;;  %v3573_v3 = vrot.slane %v3557_v7, 2  ;;  %vm14141_vm6 = vmmov %vm14126_vm8 }
 0x6df   :  { %v11429_v22 = vmax.f32 %v11155_v54, %v3709_v23  ;;  %v3499_v0 = vrot.slane %v11137_v17, 1  ;;  %v11432_v57 = vmax.f32 %v3682_v10, %v3874_v51  ;;  %v14121_v13 = vrot.slane %v11314_v45, 4  ;;  %vm14143_vm7 = vmmov %vm14130_vm1 }
 0x6e0   :  { %v3841_v34 = vsel %vm14120_vm2, %v3823_v60, %v3824_v26  ;;  %v3763_v33 = vrot.slane %v3747_v6, 6  ;;  %v11440_v46 = vmax.f32 %v3681_v44, %v3873_v8  ;;  %v14123_v15 = vrot.slane %v11207_v9, 2  ;;  %vm14145_vm11 = vmmov %vm14125_vm9 }
 0x6e1   :  { %v3842_v43 = vsel %vm14122_vm12, %v14121_v13, %v3823_v60  ;;  %v3872_v28 = vmax.f32 %v3808_v11, %v3841_v34  ;;  %v14124_v10 = vrot.slane %v11204_v38, 2  ;;  %v3764_v45 = vrot.slane %v11429_v22, 6  ;;  %vm14146_vm2 = vmmov %vm14125_vm9 }
 0x6e2   :  { %v3871_v36 = vmax.f32 %v3807_v37, %v3842_v43  ;;  %v3579_v23 = vsel %vm14105_vm15, %v3573_v3, %v14123_v15  ;;  %v3774_v44 = vsel %vm14126_vm8, %v3762_v27, %v3763_v33  ;;  %v7850_v11 = vpack.i.bf16 %v11432_v57, %v11440_v46  ;;  %vm14148_vm12 = vmmov %vm14146_vm2 }
 0x6e3   :  { %v3580_v26 = vsel %vm14125_vm9, %v14124_v10, %v3573_v3  ;;  %v11450_v59 = vmax.f32 %v3557_v7, %v3579_v23  ;;  %v11459_v29 = vmax.f32 %v3680_v58, %v3872_v28  ;;  %v3773_v7 = vsel %vm14127_vm10, %v3763_v33, %v3764_v45  ;;  %vm14150_vm15 = vmmov %vm14146_vm2 }
 0x6e4   :  { %v11457_v37 = vmax.f32 %v3679_v41, %v3871_v36  ;;  %v3620_v51 = vmax.f32 %v11204_v38, %v3580_v26  ;;  %v3811_v8 = vmax.f32 %v3747_v6, %v3774_v44  ;;  %7851 = vrot.lane.b32.xlu0 %v7850_v11, %s8349_s18  ;;  %v11471_v41 = vmax.f32 %v11429_v22, %v3773_v7  ;;  %vm14151_vm9 = vmmov %vm14130_vm1 }
 0x6e5   :  { %v3637_v60 = vrot.slane %v11450_v59, 4  ;;  %v3500_v58 = vrot.slane %v11139_v53, 1  ;;  %v14128_v34 = vrot.slane %v11135_v62, 7  ;;  %v14129_v13 = vrot.slane %v11133_v18, 7  ;;  %vm14152_vm8 = vmmov %vm14130_vm1 }
 0x6e6   :  { %v7835_v27 = vpack.i.bf16 %v11459_v29, %v11457_v37  ;;  %v3636_v3 = vrot.slane %v3620_v51, 4  ;;  %v3827_v38 = vrot.slane %v3811_v8, 4  ;;  %v14131_v6 = vrot.slane %v11163_v50, 1  ;;  %vm14154_vm10 = vmmov %vm14135_vm3 }
 0x6e7   :  { %v3719_v43 = vsel %vm14130_vm1, %v14129_v13, %v14128_v34  ;;  %v14132_v33 = vrot.slane %v11161_v14, 1  ;;  %v3828_v28 = vrot.slane %v11471_v41, 4  ;;  %v14133_v15 = vrot.slane %v11141_v40, 1  ;;  %vm14155_vm1 = vmmov %vm14135_vm3 }
 0x6e8   :  { %7836 = vrot.lane.b32.xlu1 %v7835_v27, %s8349_s18  ;;  %v3525_v10 = vsel %vm13835_vm0, %v3499_v0, %v3500_v58  ;;  %v3738_v26 = vmax.f32 %v11135_v62, %v3719_v43  ;;  %v3644_v44 = vsel %vm14134_vm14, %v3636_v3, %v3637_v60  ;;  %v3645_v40 = vsel %vm14135_vm3, %v3635_v12, %v3636_v3  ;;  %vm14157_vm14 = vmmov %vm14155_vm1 }
 0x6e9   :  { %v3513_v36 = vsel %vm13835_vm0, %v14132_v33, %v14131_v6  ;;  %v3524_v23 = vsel %vm13835_vm0, %v3500_v58, %v14133_v15  ;;  %v3838_v7 = vsel %vm14136_vm5, %v3826_v42, %v3827_v38  ;;  %v11508_v34 = vmax.f32 %v11137_v17, %v3525_v10  ;;  %7861 = vrot.lane.b32.xlu0 %v7850_v11, %s8348_s0  ;;  %vm14158_vm3 = vmmov %vm14155_vm1 }
 0x6ea   :  { %v3683_v58 = vmax.f32 %v11368_v4, %v3645_v40  ;;  %v3684_v13 = vmax.f32 %v3620_v51, %v3644_v44  ;;  %v3837_v43 = vsel %vm14137_vm4, %v3827_v38, %v3828_v28  ;;  %v3875_v6 = vmax.f32 %v3811_v8, %v3838_v7  ;;  %vm14159_vm5 = vmmov %vm14155_vm1 }
 0x6eb   :  { %v3876_v33 = vmax.f32 %v11471_v41, %v3837_v43  ;;  %v3548_v12 = vmax.f32 %v11139_v53, %v3524_v23  ;;  %v13834_v42 = vrot.slane %v11508_v34, 2  ;;  %v3754_v3 = vrot.slane %v3738_v26, 6  ;;  %vm14160_vm4 = vmmov %vm14155_vm1 }
 0x6ec   :  { %7846 = vrot.lane.b32.xlu1 %v7835_v27, %s8348_s0  ;;  %v11520_v15 = vmax.f32 %v3683_v58, %v3875_v6  ;;  %v3559_v4 = vmax.f32 %v11161_v14, %v3513_v36  ;;  %v3701_v11 = vrot.slane %v11157_v21, 7  ;;  %v3702_v51 = vrot.slane %v11159_v20, 7 }
 0x6ed   :  { %v11525_v10 = vmax.f32 %v3684_v13, %v3876_v33  ;;  %v3564_v8 = vrot.slane %v3548_v12, 2  ;;  %v14138_v38 = vrot.slane %v11231_v35, 6  ;;  %v14140_v23 = vrot.slane %v11240_v39, 6 }
 0x6ee   :  { %v3575_v40 = vrot.slane %v3559_v4, 2  ;;  %v14142_v7 = vrot.slane %v11161_v14, 7  ;;  %v14144_v43 = vrot.slane %v11253_v2, 2  ;;  %v14163_v22 = vrot.slane %v11163_v50, 7 }
 0x6ef   :  { %v3782_v53 = vsel %vm14139_vm13, %v3754_v3, %v14138_v38  ;;  %v3783_v27 = vsel %vm14141_vm6, %v14140_v23, %v3754_v3  ;;  %v7855_v13 = vpack.i.bf16 %v11525_v10, %v11520_v15  ;;  %v14149_v23 = vrot.slane %v11207_v9, 2  ;;  %vm14161_vm13 = vmmov %vm14141_vm6 }
 0x6f0   :  { %v11535_v44 = vmax.f32 %v3738_v26, %v3783_v27  ;;  %v3803_v36 = vmax.f32 %v11231_v35, %v3782_v53  ;;  %v3706_v58 = vsel %vm14143_vm7, %v3702_v51, %v14142_v7  ;;  %v3588_v6 = vsel %vm14145_vm11, %v3564_v8, %v14144_v43  ;;  %vm14165_vm11 = vmmov %vm14141_vm6 }
 0x6f1   :  { %v3589_v26 = vsel %vm14146_vm2, %v13834_v42, %v3564_v8  ;;  %v3612_v33 = vmax.f32 %v3548_v12, %v3588_v6  ;;  %7856 = vrot.lane.b32.xlu1 %v7855_v13, %s8349_s18  ;;  %v14147_v53 = vrot.slane %v11211_v49, 2  ;;  %v3578_v27 = vsel %vm14150_vm15, %v14149_v23, %v3575_v40  ;;  %vm14166_vm2 = vmmov %vm14155_vm1 }
 0x6f2   :  { %v11553_v35 = vmax.f32 %v11508_v34, %v3589_v26  ;;  %v3818_v3 = vrot.slane %v11535_v44, 4  ;;  %v3819_v38 = vrot.slane %v3803_v36, 4  ;;  %v3707_v8 = vsel %vm14151_vm9, %v3701_v11, %v3702_v51  ;;  %vm14169_vm9 = vmmov %vm14150_vm15 }
 0x6f3   :  { %v3577_v2 = vsel %vm14148_vm12, %v3575_v40, %v14147_v53  ;;  %v3708_v12 = vsel %vm14152_vm8, %v3700_v55, %v3701_v11  ;;  %v3628_v43 = vrot.slane %v3612_v33, 4  ;;  %v14153_v6 = vrot.slane %v11311_v31, 4  ;;  %vm14167_vm12 = vmmov %vm14155_vm1 }
 0x6f4   :  { %v3627_v7 = vrot.slane %v11553_v35, 4  ;;  %v3846_v40 = vsel %vm14155_vm1, %v3818_v3, %v3819_v38  ;;  %v3622_v54 = vmax.f32 %v11207_v9, %v3578_v27  ;;  %v11582_v23 = vmax.f32 %v3559_v4, %v3577_v2  ;;  %vm14171_vm8 = vmmov %vm14169_vm9 }
 0x6f5   :  { %v3845_v26 = vsel %vm14154_vm10, %v3819_v38, %v14153_v6  ;;  %v3867_v53 = vmax.f32 %v3803_v36, %v3846_v40  ;;  %v14156_v55 = vrot.slane %v11288_v5, 4  ;;  %v3749_v42 = vmax.f32 %v11157_v21, %v3708_v12  ;;  %7866 = vrot.lane.b32.xlu1 %v7855_v13, %s8348_s0  ;;  %vm14172_vm10 = vmmov %vm14141_vm6 }
 0x6f6   :  { %v3868_v51 = vmax.f32 %v11311_v31, %v3845_v26  ;;  %v3653_v6 = vsel %vm14158_vm3, %v3627_v7, %v3628_v43  ;;  %v3750_v36 = vmax.f32 %v11159_v20, %v3707_v8  ;;  %v3638_v9 = vrot.slane %v3622_v54, 4  ;;  %vm14174_vm1 = vmmov %vm14141_vm6 }
 0x6f7   :  { %v3652_v11 = vsel %vm14157_vm14, %v3628_v43, %v14156_v55  ;;  %v3675_v31 = vmax.f32 %v11553_v35, %v3653_v6  ;;  %v3639_v5 = vrot.slane %v11582_v23, 4  ;;  %v3751_v4 = vmax.f32 %v11161_v14, %v3706_v58 }
 0x6f8   :  { %v3676_v38 = vmax.f32 %v3612_v33, %v3652_v11  ;;  %v3765_v2 = vrot.slane %v3749_v42, 6  ;;  %v3766_v27 = vrot.slane %v3750_v36, 6  ;;  %v3498_v26 = vrot.slane %v11135_v62, 1 }
 0x6f9   :  { %v11599_v40 = vmax.f32 %v3675_v31, %v3867_v53  ;;  %v3642_v21 = vsel %vm14159_vm5, %v3638_v9, %v3639_v5  ;;  %v3643_v20 = vsel %vm14160_vm4, %v3637_v60, %v3638_v9  ;;  %v14162_v60 = vrot.slane %v11133_v18, 1  ;;  %vm14177_vm5 = vmmov %vm14166_vm2 }
 0x6fa   :  { %v11601_v43 = vmax.f32 %v3676_v38, %v3868_v51  ;;  %v3771_v58 = vsel %vm14161_vm13, %v3765_v2, %v3766_v27  ;;  %v3772_v13 = vsel %vm14141_vm6, %v3764_v45, %v3765_v2  ;;  %v3526_v53 = vsel %vm13835_vm0, %v3498_v26, %v3499_v0  ;;  %vm14178_vm4 = vmmov %vm14166_vm2 }
 0x6fb   :  { %v3813_v8 = vmax.f32 %v3749_v42, %v3772_v13  ;;  %v3814_v12 = vmax.f32 %v3750_v36, %v3771_v58  ;;  %v3527_v51 = vsel %vm13835_vm0, %v14162_v60, %v3498_v26  ;;  %v14164_v55 = vrot.slane %v11161_v14, 7  ;;  %vm14179_vm13 = vmmov %vm14166_vm2 }
 0x6fc   :  { %v7870_v33 = vpack.i.bf16 %v11601_v43, %v11599_v40  ;;  %v3767_v11 = vrot.slane %v3751_v4, 6  ;;  %v3545_v0 = vmax.f32 %v11133_v18, %v3527_v51  ;;  %v3546_v6 = vmax.f32 %v11135_v62, %v3526_v53  ;;  %vm14180_vm6 = vmmov %vm14166_vm2 }
 0x6fd   :  { %v3705_v45 = vsel %vm14143_vm7, %v14164_v55, %v14163_v22  ;;  %v3829_v42 = vrot.slane %v3813_v8, 4  ;;  %v3830_v17 = vrot.slane %v3814_v12, 4  ;;  %v3685_v36 = vmax.f32 %v11450_v59, %v3643_v20  ;;  %vm14181_vm7 = vmmov %vm14166_vm2 }
 0x6fe   :  { %7871 = vrot.lane.b32.xlu0 %v7870_v33, %s8349_s18  ;;  %7876 = vrot.lane.b32.xlu1 %v7870_v33, %s8348_s0  ;;  %v3686_v31 = vmax.f32 %v3622_v54, %v3642_v21  ;;  %v3752_v38 = vmax.f32 %v11163_v50, %v3705_v45  ;;  %v3770_v14 = vsel %vm14165_vm11, %v3766_v27, %v3767_v11  ;;  %v3561_v26 = vrot.slane %v3545_v0, 2  ;;  %vm14182_vm11 = vmmov %vm14166_vm2 }
 0x6ff   :  { %v3835_v9 = vsel %vm14166_vm2, %v3829_v42, %v3830_v17  ;;  %v3836_v2 = vsel %vm14167_vm12, %v3828_v28, %v3829_v42  ;;  %v3562_v18 = vrot.slane %v3546_v6, 2  ;;  %v3815_v59 = vmax.f32 %v3751_v4, %v3770_v14  ;;  %vm14184_vm12 = vmmov %vm14178_vm4 }
 0x700   :  { %v3877_v58 = vmax.f32 %v3813_v8, %v3836_v2  ;;  %v3878_v62 = vmax.f32 %v3814_v12, %v3835_v9  ;;  %v3768_v13 = vrot.slane %v3752_v38, 6  ;;  %v14168_v54 = vrot.slane %v11508_v34, 2 }
 0x701   :  { %v3591_v27 = vsel %vm14169_vm9, %v3561_v26, %v3562_v18  ;;  %v14170_v21 = vrot.slane %v11211_v49, 2  ;;  %v14173_v4 = vrot.slane %v11240_v39, 6  ;;  %vm14175_vm14 = vcmp.lt.s32.totalorder %v14075_v25, 126 }
 0x702   :  { %v3590_v50 = vsel %vm14150_vm15, %v3562_v18, %v14168_v54  ;;  %v11657_v28 = vmax.f32 %v3685_v36, %v3877_v58  ;;  %v11659_v20 = vmax.f32 %v3686_v31, %v3878_v62  ;;  %v3609_v33 = vmax.f32 %v3545_v0, %v3591_v27  ;;  %vm14185_vm15 = vmmov %vm14178_vm4 }
 0x703   :  { %v3592_v41 = vsel %vm14171_vm8, %v14170_v21, %v3561_v26  ;;  %v3610_v8 = vmax.f32 %v3546_v6, %v3590_v50  ;;  %v3769_v34 = vsel %vm14172_vm10, %v3767_v11, %v3768_v13  ;;  %v3784_v12 = vsel %vm14174_vm1, %v3768_v13, %v14173_v4 }
 0x704   :  { %v3608_v53 = vsel %vm14175_vm14, %v3592_v41, 0.0  ;;  %v3831_v60 = vrot.slane %v3815_v59, 4  ;;  %v7880_v51 = vpack.i.bf16 %v11659_v20, %v11657_v28  ;;  %v3625_v22 = vrot.slane %v3609_v33, 4 }
 0x705   :  { %v3626_v55 = vrot.slane %v3610_v8, 4  ;;  %vm14176_vm3 = vcmp.ge.s32.totalorder %v8386_v1, 2  ;;  %v3816_v11 = vmax.f32 %v3752_v38, %v3769_v34  ;;  %v3624_v0 = vmax.f32 %v11211_v49, %v3608_v53 }
 0x706   :  { %v3785_v45 = vsel %vm14176_vm3, %v3784_v12, 0.0  ;;  %7881 = vrot.lane.b32.xlu0 %v7880_v51, %s8349_s18  ;;  %v3834_v2 = vsel %vm14179_vm13, %v3830_v17, %v3831_v60  ;;  %vm14183_vm2 = vcmp.ge.s32.totalorder %v8386_v1, 4  ;;  %vm14186_vm9 = vcmp.lt.s32.totalorder %v14075_v25, 124 }
 0x707   :  { %v3801_v42 = vmax.f32 %v11240_v39, %v3785_v45  ;;  %v3654_v6 = vsel %vm14177_vm5, %v3626_v55, %v3627_v7  ;;  %v3832_v31 = vrot.slane %v3816_v11, 4  ;;  %v3655_v14 = vsel %vm14178_vm4, %v3625_v22, %v3626_v55 }
 0x708   :  { %v3640_v9 = vrot.slane %v3624_v0, 4  ;;  %v3674_v39 = vmax.f32 %v3610_v8, %v3654_v6  ;;  %vm14187_vm8 = vcmp.ge.s32.totalorder %v8947_v16, 1  ;;  %vm14189_vm1 = vcmp.lt.s32.totalorder %v8947_v16, 127 }
 0x709   :  { %v3817_v36 = vrot.slane %v3801_v42, 4  ;;  %v3833_v7 = vsel %vm14182_vm11, %v3831_v60, %v3832_v31  ;;  %vm14188_vm10 = vmmov %vm14187_vm8 }
 0x70a   :  { %v3641_v17 = vsel %vm14184_vm12, %v3639_v5, %v3640_v9  ;;  %v3656_v18 = vsel %vm14185_vm15, %v3640_v9, %v3625_v22  ;;  %v3880_v21 = vmax.f32 %v3816_v11, %v3833_v7  ;;  %vm14190_vm14 = vmmov %vm14189_vm1 }
 0x70b   :  { %v3847_v49 = vsel %vm14180_vm6, %v3817_v36, %v3818_v3  ;;  %v3848_v35 = vsel %vm14181_vm7, %v3832_v31, %v3817_v36  ;;  %v3673_v3 = vmax.f32 %v3609_v33, %v3655_v14  ;;  %v3672_v62 = vsel %vm14186_vm9, %v3656_v18, 0.0  ;;  %vm14191_vm3 = vmmov %vm14189_vm1 }
 0x70c   :  { %v3849_v38 = vsel %vm14183_vm2, %v3848_v35, 0.0  ;;  %v3866_v26 = vmax.f32 %v11535_v44, %v3847_v49  ;;  %v3687_v13 = vmax.f32 %v11582_v23, %v3641_v17  ;;  %v3688_v50 = vmax.f32 %v3624_v0, %v3672_v62  ;;  %vm14192_vm5 = vmmov %vm14189_vm1 }
 0x70d   :  { %v3865_v58 = vmax.f32 %v3801_v42, %v3849_v38  ;;  %v3879_v44 = vmax.f32 %v3815_v59, %v3834_v2  ;;  %vm14193_vm4 = vmmov %vm14189_vm1 }
 0x70e   :  { %v11704_v54 = vmax.f32 %v3674_v39, %v3866_v26  ;;  %v11712_v8 = vmax.f32 %v3688_v50, %v3880_v21  ;;  %vm14194_vm13 = vmmov %vm14189_vm1 }
 0x70f   :  { %v11706_v27 = vmax.f32 %v3673_v3, %v3865_v58  ;;  %v11710_v41 = vmax.f32 %v3687_v13, %v3879_v44  ;;  %vm14195_vm6 = vmmov %vm14187_vm8 }
 0x710   :  { %vm14196_vm7 = vmmov %vm14195_vm6 }
 0x711   :  { %v7890_v5 = vpack.i.bf16 %v11704_v54, %v11706_v27  ;;  %v7900_v23 = vpack.i.bf16 %v11712_v8, %v11710_v41  ;;  %vm14197_vm11 = vmmov %vm14195_vm6 }
 0x712   :  { %vm14198_vm2 = vmmov %vm14195_vm6 }
 0x713   :  { %7891 = vrot.lane.b32.xlu0 %v7890_v5, %s8348_s0  ;;  %7886 = vrot.lane.b32.xlu1 %v7890_v5, %s8349_s18  ;;  %vm14199_vm12 = vmmov %vm14189_vm1 }
 0x714   :  { %vm14200_vm15 = vmmov %vm14189_vm1 }
 0x715   :  { %vm14201_vm9 = vmmov %vm14198_vm2 }
 0x717   :  { %7896 = vrot.lane.b32.xlu0 %v7880_v51, %s8348_s0  ;;  %7901 = vrot.lane.b32.xlu1 %v7900_v23, %s8349_s18 }
 0x71b   :  { %7906 = vrot.lane.b32.xlu1 %v7900_v23, %s8348_s0 }
 0x747   :  { %v7842_v59 = vpop.permute.xlu0 %7841  ;;  %v7832_v33 = vpop.permute.xlu1 %7831 }
 0x748   :  { %v7844_v34 = vunpack.i.h.bf16 %v7842_v59  ;;  %v7843_v4 = vunpack.i.l.bf16 %v7842_v59  ;;  %v7834_v12 = vunpack.i.h.bf16 %v7832_v33  ;;  %v7833_v53 = vunpack.i.l.bf16 %v7832_v33 }
 0x74a   :  { %v4126_v60 = vsel %vm14187_vm8, %v7844_v34, 0.0  ;;  %v4125_v22 = vsel %vm14188_vm10, %v7843_v4, 0.0  ;;  %v3934_v55 = vsel %vm14189_vm1, %v7834_v12, 0.0  ;;  %v3933_v51 = vsel %vm14190_vm14, %v7833_v53, 0.0  ;;  %vm14202_vm8 = vmmov %vm14198_vm2 }
 0x74b   :  { %v11730_v45 = vmax.f32 %v11366_v61, %v3934_v55  ;;  %v11733_v42 = vmax.f32 %v11357_v19, %v3933_v51  ;;  %v11736_v11 = vmax.f32 %v11366_v61, %v4126_v60  ;;  %v11739_v0 = vmax.f32 %v11357_v19, %v4125_v22  ;;  %vm14203_vm10 = vmmov %vm14189_vm1 }
 0x74c   :  { %vm14204_vm14 = vmmov %vm14198_vm2 }
 0x74d   :  { %v7910_v6 = vpack.i.bf16 %v11730_v45, %v11733_v42  ;;  %v7920_v36 = vpack.i.bf16 %v11736_v11, %v11739_v0 }
 0x74f   :  { %7911 = vrot.lane.b32.xlu0 %v7910_v6, %s8350_s19 }
 0x753   :  { %7921 = vrot.lane.b32.xlu0 %v7920_v36, %s8351_s20 }
 0x756   :  { %v7852_v31 = vpop.permute.xlu0 %7851 }
 0x757   :  { %v7854_v14 = vunpack.i.h.bf16 %v7852_v31  ;;  %v7853_v9 = vunpack.i.l.bf16 %v7852_v31 }
 0x759   :  { %v3938_v61 = vsel %vm14191_vm3, %v7854_v14, 0.0  ;;  %v3937_v19 = vsel %vm14192_vm5, %v7853_v9, 0.0  ;;  %vm14205_vm3 = vmmov %vm14198_vm2 }
 0x75a   :  { %v7837_v2 = vpop.permute.xlu1 %7836  ;;  %v11752_v35 = vmax.f32 %v11432_v57, %v3938_v61  ;;  %v11755_v7 = vmax.f32 %v11440_v46, %v3937_v19  ;;  %vm14206_vm5 = vmmov %vm14189_vm1 }
 0x75b   :  { %v7839_v39 = vunpack.i.h.bf16 %v7837_v2  ;;  %v7838_v49 = vunpack.i.l.bf16 %v7837_v2  ;;  %v7862_v38 = vpop.permute.xlu0 %7861 }
 0x75c   :  { %v7864_v18 = vunpack.i.h.bf16 %v7862_v38  ;;  %v7863_v3 = vunpack.i.l.bf16 %v7862_v38  ;;  %v7930_v50 = vpack.i.bf16 %v11752_v35, %v11755_v7 }
 0x75d   :  { %v3936_v26 = vsel %vm14193_vm4, %v7839_v39, 0.0  ;;  %v3935_v17 = vsel %vm14194_vm13, %v7838_v49, 0.0  ;;  %vm14207_vm4 = vmmov %vm14189_vm1 }
 0x75e   :  { %v11762_v58 = vmax.f32 %v11459_v29, %v3936_v26  ;;  %v11765_v62 = vmax.f32 %v11457_v37, %v3935_v17  ;;  %v7847_v13 = vpop.permute.xlu1 %7846  ;;  %v4130_v44 = vsel %vm14195_vm6, %v7864_v18, 0.0  ;;  %v4129_v21 = vsel %vm14196_vm7, %v7863_v3, 0.0  ;;  %7931 = vrot.lane.b32.xlu0 %v7930_v50, %s8350_s19  ;;  %vm14208_vm13 = vmmov %vm14198_vm2 }
 0x75f   :  { %v7849_v5 = vunpack.i.h.bf16 %v7847_v13  ;;  %v7848_v23 = vunpack.i.l.bf16 %v7847_v13  ;;  %v11774_v59 = vmax.f32 %v11432_v57, %v4130_v44  ;;  %v11777_v33 = vmax.f32 %v11440_v46, %v4129_v21  ;;  %vm14209_vm6 = vmmov %vm14198_vm2 }
 0x760   :  { %v7915_v34 = vpack.i.bf16 %v11762_v58, %v11765_v62  ;;  %vm14210_vm7 = vmmov %vm14189_vm1 }
 0x761   :  { %v4128_v4 = vsel %vm14197_vm11, %v7849_v5, 0.0  ;;  %v4127_v12 = vsel %vm14198_vm2, %v7848_v23, 0.0  ;;  %v7940_v46 = vpack.i.bf16 %v11774_v59, %v11777_v33  ;;  %vm14211_vm11 = vmmov %vm14189_vm1 }
 0x762   :  { %v11787_v53 = vmax.f32 %v11459_v29, %v4128_v4  ;;  %v11790_v57 = vmax.f32 %v11457_v37, %v4127_v12  ;;  %7916 = vrot.lane.b32.xlu1 %v7915_v34, %s8350_s19 }
 0x763   :  { %v7857_v60 = vpop.permute.xlu1 %7856  ;;  %7941 = vrot.lane.b32.xlu0 %v7940_v46, %s8351_s20 }
 0x764   :  { %v7859_v22 = vunpack.i.h.bf16 %v7857_v60  ;;  %v7858_v55 = vunpack.i.l.bf16 %v7857_v60  ;;  %v7925_v51 = vpack.i.bf16 %v11787_v53, %v11790_v57 }
 0x766   :  { %v3940_v29 = vsel %vm14199_vm12, %v7859_v22, 0.0  ;;  %v3939_v37 = vsel %vm14200_vm15, %v7858_v55, 0.0  ;;  %7926 = vrot.lane.b32.xlu1 %v7925_v51, %s8351_s20  ;;  %vm14212_vm12 = vmmov %vm14198_vm2 }
 0x767   :  { %v11804_v6 = vmax.f32 %v11525_v10, %v3940_v29  ;;  %v11807_v36 = vmax.f32 %v11520_v15, %v3939_v37  ;;  %v7867_v31 = vpop.permute.xlu1 %7866  ;;  %vm14213_vm15 = vmmov %vm14189_vm1 }
 0x768   :  { %v7869_v14 = vunpack.i.h.bf16 %v7867_v31  ;;  %v7868_v9 = vunpack.i.l.bf16 %v7867_v31 }
 0x769   :  { %v7935_v2 = vpack.i.bf16 %v11804_v6, %v11807_v36 }
 0x76a   :  { %v4132_v61 = vsel %vm14201_vm9, %v7869_v14, 0.0  ;;  %v4131_v19 = vsel %vm14202_vm8, %v7868_v9, 0.0  ;;  %vm14214_vm9 = vmmov %vm14189_vm1 }
 0x76b   :  { %v11816_v39 = vmax.f32 %v11525_v10, %v4132_v61  ;;  %v11819_v49 = vmax.f32 %v11520_v15, %v4131_v19  ;;  %7936 = vrot.lane.b32.xlu1 %v7935_v2, %s8350_s19  ;;  %vm14215_vm8 = vmmov %vm14198_vm2 }
 0x76d   :  { %v7945_v17 = vpack.i.bf16 %v11816_v39, %v11819_v49 }
 0x76f   :  { %7946 = vrot.lane.b32.xlu1 %v7945_v17, %s8351_s20 }
 0x770   :  { %v7872_v38 = vpop.permute.xlu0 %7871  ;;  %v7877_v26 = vpop.permute.xlu1 %7876 }
 0x771   :  { %v7874_v18 = vunpack.i.h.bf16 %v7872_v38  ;;  %v7873_v3 = vunpack.i.l.bf16 %v7872_v38  ;;  %v7879_v13 = vunpack.i.h.bf16 %v7877_v26  ;;  %v7878_v50 = vunpack.i.l.bf16 %v7877_v26 }
 0x773   :  { %v3932_v10 = vsel %vm14203_vm10, %v7874_v18, 0.0  ;;  %v3931_v15 = vsel %vm14189_vm1, %v7873_v3, 0.0  ;;  %v4124_v44 = vsel %vm14204_vm14, %v7879_v13, 0.0  ;;  %v4123_v21 = vsel %vm14205_vm3, %v7878_v50, 0.0  ;;  %vm14216_vm10 = vmmov %vm14198_vm2 }
 0x774   :  { %v11834_v5 = vmax.f32 %v11601_v43, %v3932_v10  ;;  %v11837_v23 = vmax.f32 %v11599_v40, %v3931_v15  ;;  %v11840_v34 = vmax.f32 %v11601_v43, %v4124_v44  ;;  %v11843_v4 = vmax.f32 %v11599_v40, %v4123_v21 }
 0x775   :  { %vm14217_vm1 = vcmp.lt.s32.totalorder %v8947_v16, 126  ;;  %vm14219_vm3 = vcmp.ge.s32.totalorder %v8947_v16, 2 }
 0x776   :  { %v7950_v12 = vpack.i.bf16 %v11834_v5, %v11837_v23  ;;  %v7955_v55 = vpack.i.bf16 %v11840_v34, %v11843_v4  ;;  %vm14218_vm14 = vmmov %vm14217_vm1 }
 0x778   :  { %7951 = vrot.lane.b32.xlu1 %v7950_v12, %s8350_s19  ;;  %v7882_v46 = vpop.permute.xlu0 %7881 }
 0x779   :  { %v7884_v60 = vunpack.i.h.bf16 %v7882_v46  ;;  %v7883_v22 = vunpack.i.l.bf16 %v7882_v46 }
 0x77b   :  { %v3942_v51 = vsel %vm14206_vm5, %v7884_v60, 0.0  ;;  %v3941_v43 = vsel %vm14207_vm4, %v7883_v22, 0.0  ;;  %vm14220_vm5 = vmmov %vm14219_vm3 }
 0x77c   :  { %7956 = vrot.lane.b32.xlu1 %v7955_v55, %s8351_s20  ;;  %v11856_v40 = vmax.f32 %v11659_v20, %v3942_v51  ;;  %v11859_v29 = vmax.f32 %v11657_v28, %v3941_v43  ;;  %vm14221_vm4 = vmmov %vm14217_vm1 }
 0x77e   :  { %v7960_v37 = vpack.i.bf16 %v11856_v40, %v11859_v29 }
 0x780   :  { %7961 = vrot.lane.b32.xlu0 %v7960_v37, %s8350_s19 }
 0x785   :  { %v7892_v31 = vpop.permute.xlu0 %7891  ;;  %v7887_v14 = vpop.permute.xlu1 %7886 }
 0x786   :  { %v7894_v9 = vunpack.i.h.bf16 %v7892_v31  ;;  %v7893_v2 = vunpack.i.l.bf16 %v7892_v31  ;;  %v7889_v61 = vunpack.i.h.bf16 %v7887_v14  ;;  %v7888_v19 = vunpack.i.l.bf16 %v7887_v14 }
 0x788   :  { %v4122_v38 = vsel %vm14208_vm13, %v7894_v9, 0.0  ;;  %v4121_v26 = vsel %vm14209_vm6, %v7893_v2, 0.0  ;;  %v3930_v17 = vsel %vm14210_vm7, %v7889_v61, 0.0  ;;  %v3929_v18 = vsel %vm14211_vm11, %v7888_v19, 0.0  ;;  %vm14222_vm13 = vmmov %vm14217_vm1 }
 0x789   :  { %v7897_v3 = vpop.permute.xlu0 %7896  ;;  %v11873_v13 = vmax.f32 %v11704_v54, %v3930_v17  ;;  %v11876_v50 = vmax.f32 %v11706_v27, %v3929_v18  ;;  %v7902_v10 = vpop.permute.xlu1 %7901  ;;  %v11879_v46 = vmax.f32 %v11704_v54, %v4122_v38  ;;  %v11882_v60 = vmax.f32 %v11706_v27, %v4121_v26  ;;  %vm14223_vm6 = vmmov %vm14217_vm1 }
 0x78a   :  { %v7899_v15 = vunpack.i.h.bf16 %v7897_v3  ;;  %v7898_v44 = vunpack.i.l.bf16 %v7897_v3  ;;  %v7904_v21 = vunpack.i.h.bf16 %v7902_v10  ;;  %v7903_v12 = vunpack.i.l.bf16 %v7902_v10  ;;  %vm14224_vm7 = vmmov %vm14217_vm1 }
 0x78b   :  { %v7965_v22 = vpack.i.bf16 %v11873_v13, %v11876_v50  ;;  %v7970_v38 = vpack.i.bf16 %v11879_v46, %v11882_v60  ;;  %vm14225_vm11 = vmmov %vm14219_vm3 }
 0x78c   :  { %v4134_v55 = vsel %vm14198_vm2, %v7899_v15, 0.0  ;;  %v4133_v51 = vsel %vm14212_vm12, %v7898_v44, 0.0  ;;  %v3944_v43 = vsel %vm14213_vm15, %v7904_v21, 0.0  ;;  %v3943_v37 = vsel %vm14214_vm9, %v7903_v12, 0.0  ;;  %vm14226_vm2 = vmmov %vm14219_vm3 }
 0x78d   :  { %v11895_v54 = vmax.f32 %v11712_v8, %v3944_v43  ;;  %v11898_v27 = vmax.f32 %v11710_v41, %v3943_v37  ;;  %v7907_v31 = vpop.permute.xlu1 %7906  ;;  %7966 = vrot.lane.b32.xlu0 %v7965_v22, %s8350_s19  ;;  %v11902_v2 = vmax.f32 %v11659_v20, %v4134_v55  ;;  %v11905_v61 = vmax.f32 %v11657_v28, %v4133_v51  ;;  %vm14227_vm12 = vmmov %vm14226_vm2 }
 0x78e   :  { %v7909_v14 = vunpack.i.h.bf16 %v7907_v31  ;;  %v7908_v9 = vunpack.i.l.bf16 %v7907_v31  ;;  %vm14228_vm15 = vmmov %vm14226_vm2 }
 0x78f   :  { %v7980_v19 = vpack.i.bf16 %v11895_v54, %v11898_v27  ;;  %v7975_v3 = vpack.i.bf16 %v11902_v2, %v11905_v61  ;;  %vm14229_vm9 = vmmov %vm14217_vm1 }
 0x790   :  { %v4136_v26 = vsel %vm14215_vm8, %v7909_v14, 0.0  ;;  %v4135_v17 = vsel %vm14216_vm10, %v7908_v9, 0.0  ;;  %vm14230_vm8 = vmmov %vm14217_vm1 }
 0x791   :  { %v11916_v18 = vmax.f32 %v11712_v8, %v4136_v26  ;;  %v11919_v20 = vmax.f32 %v11710_v41, %v4135_v17  ;;  %7981 = vrot.lane.b32.xlu1 %v7980_v19, %s8350_s19  ;;  %7971 = vrot.lane.b32.xlu0 %v7970_v38, %s8351_s20  ;;  %vm14231_vm10 = vmmov %vm14226_vm2 }
 0x793   :  { %v7985_v28 = vpack.i.bf16 %v11916_v18, %v11919_v20 }
 0x795   :  { %7986 = vrot.lane.b32.xlu1 %v7985_v28, %s8351_s20  ;;  %7976 = vrot.lane.b32.xlu0 %v7975_v3, %s8351_s20 }
 0x7c1   :  { %v7912_v10 = vpop.permute.xlu0 %7911 }
 0x7c2   :  { %v7914_v8 = vunpack.i.h.bf16 %v7912_v10  ;;  %v7913_v15 = vunpack.i.l.bf16 %v7912_v10 }
 0x7c4   :  { %v3998_v41 = vsel %vm14217_vm1, %v7914_v8, 0.0  ;;  %v3997_v44 = vsel %vm14218_vm14, %v7913_v15, 0.0  ;;  %vm14232_vm1 = vmmov %vm14226_vm2 }
 0x7c5   :  { %v11934_v21 = vmax.f32 %v11730_v45, %v3998_v41  ;;  %v11937_v12 = vmax.f32 %v11733_v42, %v3997_v44  ;;  %v7922_v22 = vpop.permute.xlu0 %7921  ;;  %vm14233_vm14 = vmmov %vm14221_vm4 }
 0x7c6   :  { %v7924_v55 = vunpack.i.h.bf16 %v7922_v22  ;;  %v7923_v51 = vunpack.i.l.bf16 %v7922_v22 }
 0x7c7   :  { %v7990_v43 = vpack.i.bf16 %v11934_v21, %v11937_v12 }
 0x7c8   :  { %v4190_v37 = vsel %vm14219_vm3, %v7924_v55, 0.0  ;;  %v4189_v31 = vsel %vm14220_vm5, %v7923_v51, 0.0  ;;  %vm14234_vm3 = vmmov %vm14221_vm4 }
 0x7c9   :  { %v11946_v14 = vmax.f32 %v11736_v11, %v4190_v37  ;;  %v11949_v45 = vmax.f32 %v11739_v0, %v4189_v31  ;;  %7991 = vrot.lane.b32.xlu0 %v7990_v43, %s8352_s21  ;;  %vm14235_vm5 = vmmov %vm14232_vm1 }
 0x7cb   :  { %v8000_v42 = vpack.i.bf16 %v11946_v14, %v11949_v45 }
 0x7cd   :  { %8001 = vrot.lane.b32.xlu0 %v8000_v42, %s8353_s22 }
 0x7d0   :  { %v7932_v9 = vpop.permute.xlu0 %7931 }
 0x7d1   :  { %v7934_v19 = vunpack.i.h.bf16 %v7932_v9  ;;  %v7933_v38 = vunpack.i.l.bf16 %v7932_v9 }
 0x7d3   :  { %v4002_v11 = vsel %vm14221_vm4, %v7934_v19, 0.0  ;;  %v4001_v0 = vsel %vm14222_vm13, %v7933_v38, 0.0  ;;  %vm14236_vm4 = vmmov %vm14232_vm1 }
 0x7d4   :  { %v7917_v26 = vpop.permute.xlu1 %7916  ;;  %v11960_v3 = vmax.f32 %v11752_v35, %v4002_v11  ;;  %v11963_v10 = vmax.f32 %v11755_v7, %v4001_v0  ;;  %vm14237_vm13 = vmmov %vm14234_vm3 }
 0x7d5   :  { %v7919_v17 = vunpack.i.h.bf16 %v7917_v26  ;;  %v7918_v28 = vunpack.i.l.bf16 %v7917_v26  ;;  %v7942_v8 = vpop.permute.xlu0 %7941 }
 0x7d6   :  { %v7944_v44 = vunpack.i.h.bf16 %v7942_v8  ;;  %v7943_v22 = vunpack.i.l.bf16 %v7942_v8  ;;  %v8010_v7 = vpack.i.bf16 %v11960_v3, %v11963_v10 }
 0x7d7   :  { %v4000_v15 = vsel %vm14223_vm6, %v7919_v17, 0.0  ;;  %v3999_v41 = vsel %vm14224_vm7, %v7918_v28, 0.0  ;;  %vm14238_vm6 = vmmov %vm14234_vm3 }
 0x7d8   :  { %v11970_v55 = vmax.f32 %v11762_v58, %v4000_v15  ;;  %v11973_v51 = vmax.f32 %v11765_v62, %v3999_v41  ;;  %v7927_v35 = vpop.permute.xlu1 %7926  ;;  %v4194_v31 = vsel %vm14225_vm11, %v7944_v44, 0.0  ;;  %v4193_v42 = vsel %vm14226_vm2, %v7943_v22, 0.0  ;;  %8011 = vrot.lane.b32.xlu0 %v8010_v7, %s8352_s21  ;;  %vm14239_vm7 = vmmov %vm14234_vm3 }
 0x7d9   :  { %v7929_v43 = vunpack.i.h.bf16 %v7927_v35  ;;  %v7928_v37 = vunpack.i.l.bf16 %v7927_v35  ;;  %v11982_v9 = vmax.f32 %v11774_v59, %v4194_v31  ;;  %v11985_v58 = vmax.f32 %v11777_v33, %v4193_v42  ;;  %vm14240_vm11 = vmmov %vm14234_vm3 }
 0x7da   :  { %v7995_v62 = vpack.i.bf16 %v11970_v55, %v11973_v51  ;;  %vm14241_vm2 = vmmov %vm14234_vm3 }
 0x7db   :  { %v4192_v19 = vsel %vm14227_vm12, %v7929_v43, 0.0  ;;  %v4191_v38 = vsel %vm14228_vm15, %v7928_v37, 0.0  ;;  %v8020_v33 = vpack.i.bf16 %v11982_v9, %v11985_v58  ;;  %vm14242_vm12 = vmmov %vm14241_vm2 }
 0x7dc   :  { %v11995_v26 = vmax.f32 %v11787_v53, %v4192_v19  ;;  %v11998_v59 = vmax.f32 %v11790_v57, %v4191_v38  ;;  %7996 = vrot.lane.b32.xlu1 %v7995_v62, %s8352_s21  ;;  %vm14243_vm15 = vmmov %vm14232_vm1 }
 0x7dd   :  { %v7937_v17 = vpop.permute.xlu1 %7936  ;;  %8021 = vrot.lane.b32.xlu0 %v8020_v33, %s8353_s22 }
 0x7de   :  { %v7939_v28 = vunpack.i.h.bf16 %v7937_v17  ;;  %v7938_v11 = vunpack.i.l.bf16 %v7937_v17  ;;  %v8005_v0 = vpack.i.bf16 %v11995_v26, %v11998_v59 }
 0x7e0   :  { %v4004_v53 = vsel %vm14229_vm9, %v7939_v28, 0.0  ;;  %v4003_v57 = vsel %vm14230_vm8, %v7938_v11, 0.0  ;;  %8006 = vrot.lane.b32.xlu1 %v8005_v0, %s8353_s22  ;;  %vm14244_vm9 = vmmov %vm14232_vm1 }
 0x7e1   :  { %v12012_v8 = vmax.f32 %v11804_v6, %v4004_v53  ;;  %v12015_v15 = vmax.f32 %v11807_v36, %v4003_v57  ;;  %v7947_v41 = vpop.permute.xlu1 %7946  ;;  %vm14245_vm8 = vmmov %vm14232_vm1 }
 0x7e2   :  { %v7949_v44 = vunpack.i.h.bf16 %v7947_v41  ;;  %v7948_v22 = vunpack.i.l.bf16 %v7947_v41 }
 0x7e3   :  { %v8015_v35 = vpack.i.bf16 %v12012_v8, %v12015_v15 }
 0x7e4   :  { %v4196_v7 = vsel %vm14231_vm10, %v7949_v44, 0.0  ;;  %v4195_v43 = vsel %vm14232_vm1, %v7948_v22, 0.0  ;;  %vm14246_vm10 = vmmov %vm14232_vm1 }
 0x7e5   :  { %v12024_v37 = vmax.f32 %v11816_v39, %v4196_v7  ;;  %v12027_v6 = vmax.f32 %v11819_v49, %v4195_v43  ;;  %8016 = vrot.lane.b32.xlu1 %v8015_v35, %s8352_s21 }
 0x7e7   :  { %v8025_v31 = vpack.i.bf16 %v12024_v37, %v12027_v6 }
 0x7e9   :  { %8026 = vrot.lane.b32.xlu1 %v8025_v31, %s8353_s22 }
 0x7ea   :  { %v7952_v36 = vpop.permute.xlu1 %7951 }
 0x7eb   :  { %v7954_v42 = vunpack.i.h.bf16 %v7952_v36  ;;  %v7953_v62 = vunpack.i.l.bf16 %v7952_v36 }
 0x7ed   :  { %v3996_v19 = vsel %vm14233_vm14, %v7954_v42, 0.0  ;;  %v3995_v39 = vsel %vm14234_vm3, %v7953_v62, 0.0  ;;  %vm14247_vm14 = vmmov %vm14232_vm1  ;;  %vm14248_vm3 = vcmp.lt.s32.totalorder %v8947_v16, 124 }
 0x7ee   :  { %v12038_v38 = vmax.f32 %v11834_v5, %v3996_v19  ;;  %v12041_v49 = vmax.f32 %v11837_v23, %v3995_v39  ;;  %v7957_v33 = vpop.permute.xlu1 %7956 }
 0x7ef   :  { %v7959_v17 = vunpack.i.h.bf16 %v7957_v33  ;;  %v7958_v28 = vunpack.i.l.bf16 %v7957_v33 }
 0x7f0   :  { %v8030_v11 = vpack.i.bf16 %v12038_v38, %v12041_v49 }
 0x7f1   :  { %v4188_v0 = vsel %vm14235_vm5, %v7959_v17, 0.0  ;;  %v4187_v53 = vsel %vm14236_vm4, %v7958_v28, 0.0  ;;  %vm14249_vm5 = vmmov %vm14248_vm3  ;;  %vm14250_vm4 = vcmp.ge.s32.totalorder %v8947_v16, 4 }
 0x7f2   :  { %v12050_v57 = vmax.f32 %v11840_v34, %v4188_v0  ;;  %v12053_v5 = vmax.f32 %v11843_v4, %v4187_v53  ;;  %8031 = vrot.lane.b32.xlu1 %v8030_v11, %s8352_s21  ;;  %v7962_v23 = vpop.permute.xlu0 %7961 }
 0x7f3   :  { %v7964_v41 = vunpack.i.h.bf16 %v7962_v23  ;;  %v7963_v44 = vunpack.i.l.bf16 %v7962_v23 }
 0x7f4   :  { %v8035_v22 = vpack.i.bf16 %v12050_v57, %v12053_v5 }
 0x7f5   :  { %v4006_v35 = vsel %vm14237_vm13, %v7964_v41, 0.0  ;;  %v4005_v7 = vsel %vm14238_vm6, %v7963_v44, 0.0  ;;  %vm14251_vm13 = vmmov %vm14250_vm4 }
 0x7f6   :  { %8036 = vrot.lane.b32.xlu1 %v8035_v22, %s8353_s22  ;;  %v12064_v34 = vmax.f32 %v11856_v40, %v4006_v35  ;;  %v12067_v4 = vmax.f32 %v11859_v29, %v4005_v7  ;;  %vm14252_vm6 = vmmov %vm14248_vm3 }
 0x7f8   :  { %v8040_v43 = vpack.i.bf16 %v12064_v34, %v12067_v4 }
 0x7fa   :  { %8041 = vrot.lane.b32.xlu0 %v8040_v43, %s8352_s21 }
 0x7ff   :  { %v7967_v36 = vpop.permute.xlu0 %7966 }
 0x800   :  { %v7969_v31 = vunpack.i.h.bf16 %v7967_v36  ;;  %v7968_v42 = vunpack.i.l.bf16 %v7967_v36 }
 0x802   :  { %v3994_v62 = vsel %vm14239_vm7, %v7969_v31, 0.0  ;;  %v3993_v19 = vsel %vm14240_vm11, %v7968_v42, 0.0  ;;  %vm14253_vm7 = vmmov %vm14248_vm3 }
 0x803   :  { %v12077_v40 = vmax.f32 %v11873_v13, %v3994_v62  ;;  %v12080_v29 = vmax.f32 %v11876_v50, %v3993_v19  ;;  %v7982_v39 = vpop.permute.xlu1 %7981  ;;  %v7972_v33 = vpop.permute.xlu0 %7971  ;;  %vm14254_vm11 = vmmov %vm14248_vm3 }
 0x804   :  { %v7984_v17 = vunpack.i.h.bf16 %v7982_v39  ;;  %v7983_v28 = vunpack.i.l.bf16 %v7982_v39  ;;  %v7974_v11 = vunpack.i.h.bf16 %v7972_v33  ;;  %v7973_v0 = vunpack.i.l.bf16 %v7972_v33 }
 0x805   :  { %v8045_v53 = vpack.i.bf16 %v12077_v40, %v12080_v29 }
 0x806   :  { %v4008_v23 = vsel %vm14241_vm2, %v7984_v17, 0.0  ;;  %v4007_v41 = vsel %vm14242_vm12, %v7983_v28, 0.0  ;;  %v4186_v13 = vsel %vm14243_vm15, %v7974_v11, 0.0  ;;  %v4185_v50 = vsel %vm14244_vm9, %v7973_v0, 0.0  ;;  %vm14255_vm2 = vmmov %vm14248_vm3 }
 0x807   :  { %v12093_v44 = vmax.f32 %v11895_v54, %v4008_v23  ;;  %v12096_v22 = vmax.f32 %v11898_v27, %v4007_v41  ;;  %v12099_v35 = vmax.f32 %v11879_v46, %v4186_v13  ;;  %v12102_v7 = vmax.f32 %v11882_v60, %v4185_v50  ;;  %v7987_v43 = vpop.permute.xlu1 %7986  ;;  %v7977_v36 = vpop.permute.xlu0 %7976  ;;  %8046 = vrot.lane.b32.xlu0 %v8045_v53, %s8352_s21  ;;  %vm14256_vm12 = vmmov %vm14250_vm4 }
 0x808   :  { %v7989_v31 = vunpack.i.h.bf16 %v7987_v43  ;;  %v7988_v42 = vunpack.i.l.bf16 %v7987_v43  ;;  %v7979_v62 = vunpack.i.h.bf16 %v7977_v36  ;;  %v7978_v19 = vunpack.i.l.bf16 %v7977_v36  ;;  %vm14257_vm15 = vmmov %vm14250_vm4 }
 0x809   :  { %v8060_v54 = vpack.i.bf16 %v12093_v44, %v12096_v22  ;;  %v8050_v27 = vpack.i.bf16 %v12099_v35, %v12102_v7  ;;  %vm14258_vm9 = vmmov %vm14250_vm4 }
 0x80a   :  { %v4200_v46 = vsel %vm14245_vm8, %v7989_v31, 0.0  ;;  %v4199_v60 = vsel %vm14246_vm10, %v7988_v42, 0.0  ;;  %v4198_v39 = vsel %vm14232_vm1, %v7979_v62, 0.0  ;;  %v4197_v33 = vsel %vm14247_vm14, %v7978_v19, 0.0  ;;  %vm14259_vm8 = vmmov %vm14250_vm4 }
 0x80b   :  { %v12118_v17 = vmax.f32 %v11916_v18, %v4200_v46  ;;  %v12121_v28 = vmax.f32 %v11919_v20, %v4199_v60  ;;  %v12124_v11 = vmax.f32 %v11902_v2, %v4198_v39  ;;  %v12127_v0 = vmax.f32 %v11905_v61, %v4197_v33  ;;  %8061 = vrot.lane.b32.xlu1 %v8060_v54, %s8352_s21  ;;  %vm14260_vm10 = vmmov %vm14255_vm2 }
 0x80c   :  { %8051 = vrot.lane.b32.xlu0 %v8050_v27, %s8353_s22  ;;  %vm14261_vm1 = vmmov %vm14255_vm2 }
 0x80d   :  { %v8065_v53 = vpack.i.bf16 %v12118_v17, %v12121_v28  ;;  %v8055_v18 = vpack.i.bf16 %v12124_v11, %v12127_v0  ;;  %vm14262_vm14 = vmmov %vm14250_vm4 }
 0x80f   :  { %8066 = vrot.lane.b32.xlu1 %v8065_v53, %s8353_s22 }
 0x810   :  { %8056 = vrot.lane.b32.xlu0 %v8055_v18, %s8353_s22 }
 0x83b   :  { %v7992_v20 = vpop.permute.xlu0 %7991 }
 0x83c   :  { %v7994_v2 = vunpack.i.h.bf16 %v7992_v20  ;;  %v7993_v23 = vunpack.i.l.bf16 %v7992_v20 }
 0x83e   :  { %v4062_v61 = vsel %vm14248_vm3, %v7994_v2, 0.0  ;;  %v4061_v13 = vsel %vm14249_vm5, %v7993_v23, 0.0  ;;  %vm14263_vm3 = vmmov %vm14250_vm4 }
 0x83f   :  { %v8002_v41 = vpop.permute.xlu0 %8001  ;;  %v4078_v42 = vmax.f32 %v11934_v21, %v4062_v61  ;;  %v4077_v62 = vmax.f32 %v11937_v12, %v4061_v13  ;;  %vm14264_vm5 = vmmov %vm14261_vm1 }
 0x840   :  { %v8004_v50 = vunpack.i.h.bf16 %v8002_v41  ;;  %v8003_v43 = vunpack.i.l.bf16 %v8002_v41 }
 0x842   :  { %v4254_v36 = vsel %vm14250_vm4, %v8004_v50, 0.0  ;;  %v4253_v31 = vsel %vm14251_vm13, %v8003_v43, 0.0  ;;  %vm14265_vm4 = vmmov %vm14261_vm1 }
 0x843   :  { %v4270_v19 = vmax.f32 %v11946_v14, %v4254_v36  ;;  %v4269_v54 = vmax.f32 %v11949_v45, %v4253_v31  ;;  %vm14266_vm13 = vmmov %vm14263_vm3 }
 0x845   :  { %v12149_v27 = vmax.f32 %v4077_v62, %v4269_v54  ;;  %v12151_v46 = vmax.f32 %v4078_v42, %v4270_v19 }
 0x847   :  { %v6942_v60 = vpack.c.bf16 %v12151_v46, %v12149_v27 }
 0x849   :  { %7246 = vst [vmem:[#allocation5 + $0x90] sm:$0xff] %v6942_v60  }
 0x84a   :  { %v8012_v39 = vpop.permute.xlu0 %8011 }
 0x84b   :  { %v8014_v33 = vunpack.i.h.bf16 %v8012_v39  ;;  %v8013_v53 = vunpack.i.l.bf16 %v8012_v39 }
 0x84d   :  { %v4066_v12 = vsel %vm14252_vm6, %v8014_v33, 0.0  ;;  %v4065_v14 = vsel %vm14253_vm7, %v8013_v53, 0.0  ;;  %vm14267_vm6 = vmmov %vm14263_vm3 }
 0x84e   :  { %v7997_v18 = vpop.permute.xlu1 %7996  ;;  %v4082_v36 = vmax.f32 %v11960_v3, %v4066_v12  ;;  %v4081_v31 = vmax.f32 %v11963_v10, %v4065_v14  ;;  %vm14268_vm7 = vmmov %vm14261_vm1 }
 0x84f   :  { %v7999_v20 = vunpack.i.h.bf16 %v7997_v18  ;;  %v7998_v21 = vunpack.i.l.bf16 %v7997_v18  ;;  %v8022_v2 = vpop.permute.xlu0 %8021 }
 0x850   :  { %v8024_v23 = vunpack.i.h.bf16 %v8022_v2  ;;  %v8023_v41 = vunpack.i.l.bf16 %v8022_v2 }
 0x851   :  { %v4064_v61 = vsel %vm14254_vm11, %v7999_v20, 0.0  ;;  %v4063_v13 = vsel %vm14255_vm2, %v7998_v21, 0.0  ;;  %vm14269_vm11 = vmmov %vm14261_vm1 }
 0x852   :  { %v8007_v45 = vpop.permute.xlu1 %8006  ;;  %v4258_v42 = vsel %vm14256_vm12, %v8024_v23, 0.0  ;;  %v4257_v62 = vsel %vm14257_vm15, %v8023_v41, 0.0  ;;  %v4080_v3 = vmax.f32 %v11970_v55, %v4064_v61  ;;  %v4079_v10 = vmax.f32 %v11973_v51, %v4063_v13  ;;  %vm14270_vm2 = vmmov %vm14261_vm1 }
 0x853   :  { %v8009_v50 = vunpack.i.h.bf16 %v8007_v45  ;;  %v8008_v43 = vunpack.i.l.bf16 %v8007_v45  ;;  %v4274_v60 = vmax.f32 %v11982_v9, %v4258_v42  ;;  %v4273_v39 = vmax.f32 %v11985_v58, %v4257_v62  ;;  %vm14271_vm12 = vmmov %vm14261_vm1 }
 0x854   :  { %vm14272_vm15 = vmmov %vm14261_vm1 }
 0x855   :  { %v4256_v19 = vsel %vm14258_vm9, %v8009_v50, 0.0  ;;  %v4255_v54 = vsel %vm14259_vm8, %v8008_v43, 0.0  ;;  %v12179_v20 = vmax.f32 %v4081_v31, %v4273_v39  ;;  %v12181_v21 = vmax.f32 %v4082_v36, %v4274_v60  ;;  %vm14273_vm9 = vmmov %vm14261_vm1 }
 0x856   :  { %v4272_v33 = vmax.f32 %v11995_v26, %v4256_v19  ;;  %v4271_v53 = vmax.f32 %v11998_v59, %v4255_v54  ;;  %vm14274_vm8 = vmmov %vm14263_vm3 }
 0x857   :  { %v8017_v18 = vpop.permute.xlu1 %8016  ;;  %v6952_v55 = vpack.c.bf16 %v12181_v21, %v12179_v20 }
 0x858   :  { %v12183_v2 = vmax.f32 %v4079_v10, %v4271_v53  ;;  %v12185_v12 = vmax.f32 %v4080_v3, %v4272_v33  ;;  %v8019_v9 = vunpack.i.h.bf16 %v8017_v18  ;;  %v8018_v14 = vunpack.i.l.bf16 %v8017_v18 }
 0x859   :  { %7248 = vst [vmem:[#allocation5 + $0xa0] sm:$0xff] %v6952_v55  }
 0x85a   :  { %v6947_v51 = vpack.c.bf16 %v12185_v12, %v12183_v2  ;;  %v4068_v59 = vsel %vm14260_vm10, %v8019_v9, 0.0  ;;  %v4067_v45 = vsel %vm14261_vm1, %v8018_v14, 0.0  ;;  %vm14275_vm10 = vmmov %vm14263_vm3 }
 0x85b   :  { %v8027_v58 = vpop.permute.xlu1 %8026  ;;  %v4084_v13 = vmax.f32 %v12012_v8, %v4068_v59  ;;  %v4083_v50 = vmax.f32 %v12015_v15, %v4067_v45  ;;  %vm14276_vm1 = vmmov %vm14263_vm3 }
 0x85c   :  { %7247 = vst [vmem:[#allocation5 + $0x98] sm:$0xff] %v6947_v51   ;;  %v8029_v26 = vunpack.i.h.bf16 %v8027_v58  ;;  %v8028_v23 = vunpack.i.l.bf16 %v8027_v58 }
 0x85e   :  { %v4260_v41 = vsel %vm14262_vm14, %v8029_v26, 0.0  ;;  %v4259_v61 = vsel %vm14263_vm3, %v8028_v23, 0.0  ;;  %vm14277_vm14 = vmmov %vm14276_vm1 }
 0x85f   :  { %v4276_v43 = vmax.f32 %v12024_v37, %v4260_v41  ;;  %v4275_v36 = vmax.f32 %v12027_v6, %v4259_v61  ;;  %v12244_v41 = vld [vmem:[%s13756_s1 + $0x2c0] sm:$0xff]   ;;  %vm14278_vm3 = vmmov %vm14276_vm1 }
 0x861   :  { %v12203_v42 = vmax.f32 %v4083_v50, %v4275_v36  ;;  %v12205_v62 = vmax.f32 %v4084_v13, %v4276_v43 }
 0x863   :  { %v6957_v60 = vpack.c.bf16 %v12205_v62, %v12203_v42 }
 0x864   :  { %v8032_v31 = vpop.permute.xlu1 %8031 }
 0x865   :  { %v8034_v19 = vunpack.i.h.bf16 %v8032_v31  ;;  %v8033_v54 = vunpack.i.l.bf16 %v8032_v31  ;;  %7249 = vst [vmem:[#allocation5 + $0xa8] sm:$0xff] %v6957_v60   ;;  %v7035_v60 = vunpack.c.l.bf16 %v12244_v41 }
 0x867   :  { %v4060_v8 = vsel %vm14264_vm5, %v8034_v19, 0.0  ;;  %v4059_v37 = vsel %vm14265_vm4, %v8033_v54, 0.0  ;;  %vm14279_vm5 = vmmov %vm14276_vm1 }
 0x868   :  { %v8037_v39 = vpop.permute.xlu1 %8036  ;;  %v4076_v10 = vmax.f32 %v12038_v38, %v4060_v8  ;;  %v4075_v18 = vmax.f32 %v12041_v49, %v4059_v37  ;;  %v12235_v49 = vld [vmem:[%s13756_s1 + $0x240] sm:$0xff]  }
 0x869   :  { %v8039_v15 = vunpack.i.h.bf16 %v8037_v39  ;;  %v8038_v6 = vunpack.i.l.bf16 %v8037_v39  ;;  %v6971_v43 = vunpack.c.l.bf16 %v12235_v49  ;;  %v6972_v36 = vunpack.c.h.bf16 %v12235_v49 }
 0x86a   :  { %v7036_v39 = vunpack.c.h.bf16 %v12244_v41 }
 0x86b   :  { %v4252_v3 = vsel %vm14266_vm13, %v8039_v15, 0.0  ;;  %v4251_v53 = vsel %vm14267_vm6, %v8038_v6, 0.0 }
 0x86c   :  { %v4268_v33 = vmax.f32 %v12050_v57, %v4252_v3  ;;  %v4267_v9 = vmax.f32 %v12053_v5, %v4251_v53  ;;  %v8042_v58 = vpop.permute.xlu0 %8041  ;;  %v12230_v57 = vld [vmem:[%s13756_s1 + $0x248] sm:$0xff]  }
 0x86d   :  { %v8044_v26 = vunpack.i.h.bf16 %v8042_v58  ;;  %v8043_v38 = vunpack.i.l.bf16 %v8042_v58  ;;  %v6975_v61 = vunpack.c.l.bf16 %v12230_v57 }
 0x86e   :  { %v12221_v14 = vmax.f32 %v4076_v10, %v4268_v33  ;;  %v12223_v55 = vmax.f32 %v4075_v18, %v4267_v9 }
 0x86f   :  { %v12239_v5 = vsel %vm14268_vm7, %v8044_v26, 0.0  ;;  %v12249_v13 = vsel %vm14269_vm11, %v8043_v38, 0.0 }
 0x870   :  { %v6937_v51 = vpack.c.bf16 %v12221_v14, %v12223_v55  ;;  %v4381_v50 = vmax.f32 %v12221_v14, %v12185_v12  ;;  %v4086_v31 = vmax.f32 %v12064_v34, %v12239_v5  ;;  %v12258_v19 = vmul.f32 2.0, %v12221_v14 }
 0x871   :  { %v4085_v34 = vmax.f32 %v12067_v4, %v12249_v13  ;;  %v4380_v10 = vmax.f32 %v12223_v55, %v12183_v2  ;;  %v4616_v18 = vmul.f32 2.0, %v12223_v55 }
 0x872   :  { %7245 = vst [vmem:[#allocation5 + $0x88] sm:$0xff] %v6937_v51   ;;  %v12276_v58 = vmax.f32 %v4381_v50, %v12205_v62  ;;  %v4633_v41 = vsub.f32 1.0, %v12258_v19  ;;  %v7270_v19 = vld [vmem:[%s13756_s1 + $0x2d0] sm:$0xff]  }
 0x879   :  { %v8047_v59 = vpop.permute.xlu0 %8046 }
 0x87a   :  { %v8049_v45 = vunpack.i.h.bf16 %v8047_v59  ;;  %v8048_v23 = vunpack.i.l.bf16 %v8047_v59 }
 0x87c   :  { %v4058_v8 = vsel %vm14270_vm2, %v8049_v45, 0.0  ;;  %v4057_v15 = vsel %vm14271_vm12, %v8048_v23, 0.0 }
 0x87d   :  { %v8062_v54 = vpop.permute.xlu1 %8061  ;;  %v4074_v26 = vmax.f32 %v12077_v40, %v4058_v8  ;;  %v4073_v4 = vmax.f32 %v12080_v29, %v4057_v15 }
 0x87e   :  { %v8064_v37 = vunpack.i.h.bf16 %v8062_v54  ;;  %v8063_v6 = vunpack.i.l.bf16 %v8062_v54  ;;  %v8052_v3 = vpop.permute.xlu0 %8051 }
 0x87f   :  { %v8054_v33 = vunpack.i.h.bf16 %v8052_v3  ;;  %v8053_v53 = vunpack.i.l.bf16 %v8052_v3 }
 0x880   :  { %v4072_v9 = vsel %vm14272_vm15, %v8064_v37, 0.0  ;;  %v4071_v51 = vsel %vm14273_vm9, %v8063_v6, 0.0 }
 0x881   :  { %v4250_v38 = vsel %vm14274_vm8, %v8054_v33, 0.0  ;;  %v4249_v59 = vsel %vm14275_vm10, %v8053_v53, 0.0  ;;  %v8067_v5 = vpop.permute.xlu1 %8066  ;;  %v4088_v50 = vmax.f32 %v12093_v44, %v4072_v9  ;;  %v4087_v40 = vmax.f32 %v12096_v22, %v4071_v51 }
 0x882   :  { %v4266_v45 = vmax.f32 %v12099_v35, %v4250_v38  ;;  %v4265_v23 = vmax.f32 %v12102_v7, %v4249_v59  ;;  %v8069_v13 = vunpack.i.h.bf16 %v8067_v5  ;;  %v8068_v54 = vunpack.i.l.bf16 %v8067_v5  ;;  %v8057_v37 = vpop.permute.xlu0 %8056  ;;  %v7260_v59 = vld [vmem:[%s13756_s1 + $0x280] sm:$0xff]  }
 0x883   :  { %v8059_v8 = vunpack.i.h.bf16 %v8057_v37  ;;  %v8058_v29 = vunpack.i.l.bf16 %v8057_v37 }
 0x884   :  { %v12288_v15 = vmax.f32 %v4073_v4, %v4265_v23  ;;  %v12290_v6 = vmax.f32 %v4074_v26, %v4266_v45  ;;  %v4264_v3 = vsel %vm14276_vm1, %v8069_v13, 0.0  ;;  %v4263_v35 = vsel %vm14277_vm14, %v8068_v54, 0.0 }
 0x885   :  { %v4280_v7 = vmax.f32 %v12118_v17, %v4264_v3  ;;  %v4279_v33 = vmax.f32 %v12121_v28, %v4263_v35  ;;  %v4262_v44 = vsel %vm14278_vm3, %v8059_v8, 0.0  ;;  %v4261_v22 = vsel %vm14279_vm5, %v8058_v29, 0.0 }
 0x886   :  { %v6932_v53 = vpack.c.bf16 %v12290_v6, %v12288_v15  ;;  %v4378_v9 = vmax.f32 %v12288_v15, %v12149_v27  ;;  %v4379_v51 = vmax.f32 %v12290_v6, %v12151_v46  ;;  %v4614_v26 = vmul.f32 2.0, %v12288_v15 }
 0x887   :  { %v4615_v17 = vmul.f32 2.0, %v12290_v6  ;;  %v12310_v28 = vmax.f32 %v4087_v40, %v4279_v33  ;;  %v12312_v4 = vmax.f32 %v4088_v50, %v4280_v7  ;;  %v4278_v38 = vmax.f32 %v12124_v11, %v4262_v44  ;;  %v7269_v11 = vld [vmem:[%s13756_s1 + $0x2c8] sm:$0xff]  }
 0x888   :  { %6933 = vst [vmem:[#allocation5 + $0x80] sm:$0xff] %v6932_v53   ;;  %v4630_v5 = vsub.f32 1.0, %v4614_v26  ;;  %v4384_v45 = vmax.f32 %v4380_v10, %v12203_v42  ;;  %v4277_v23 = vmax.f32 %v12127_v0, %v4261_v22  ;;  %v4383_v13 = vmax.f32 %v4379_v51, %v12181_v21 }
 0x889   :  { %v4632_v54 = vsub.f32 1.0, %v4616_v18  ;;  %v4631_v37 = vsub.f32 1.0, %v4615_v17  ;;  %v6967_v50 = vpack.c.bf16 %v12312_v4, %v12310_v28  ;;  %v4382_v40 = vmax.f32 %v4378_v9, %v12179_v20 }
 0x88a   :  { %v4679_v8 = vmul.f32 %v6971_v43, %v4630_v5  ;;  %v4388_v29 = vmax.f32 %v4384_v45, %v12310_v28  ;;  %v4389_v10 = vmax.f32 %v12276_v58, %v12312_v4  ;;  %v12330_v0 = vmax.f32 %v4086_v31, %v4278_v38 }
 0x88b   :  { %v7003_v3 = vunpack.c.l.bf16 %v7260_v59  ;;  %v7004_v18 = vunpack.c.h.bf16 %v7260_v59  ;;  %v4680_v35 = vmul.f32 %v6972_v36, %v4631_v37  ;;  %7251 = vst [vmem:[#allocation5 + $0xb8] sm:$0xff] %v6967_v50   ;;  %v12334_v7 = vmax.f32 %v4085_v34, %v4277_v23  ;;  %v7254_v36 = vld [vmem:[%s13756_s1 + $0x250] sm:$0xff]  }
 0x88c   :  { %v6976_v33 = vunpack.c.h.bf16 %v12230_v57  ;;  %v4828_v43 = vmul.f32 %v7035_v60, %v4630_v5  ;;  %v4829_v44 = vmul.f32 %v7036_v39, %v4631_v37  ;;  %v4387_v58 = vmax.f32 %v4383_v13, %v12330_v0  ;;  %v7261_v60 = vld [vmem:[%s13756_s1 + $0x288] sm:$0xff]  }
 0x88d   :  { %v4618_v31 = vmul.f32 2.0, %v12149_v27  ;;  %v7039_v22 = vunpack.c.l.bf16 %v7269_v11  ;;  %v4695_v53 = vadd.f32 %v4680_v35, %v4679_v8  ;;  %v6962_v49 = vpack.c.bf16 %v12330_v0, %v12334_v7 }
 0x88e   :  { %v4681_v39 = vmul.f32 %v6975_v61, %v4632_v54  ;;  %v4386_v34 = vmax.f32 %v4382_v40, %v12334_v7  ;;  %v4391_v9 = vmax.f32 %v4388_v29, %v4389_v10  ;;  %v4752_v51 = vmul.f32 %v7003_v3, %v4630_v5 }
 0x88f   :  { %v4753_v26 = vmul.f32 %v7004_v18, %v4631_v37  ;;  %7250 = vst [vmem:[#allocation5 + $0xb0] sm:$0xff] %v6962_v49   ;;  %v4844_v38 = vadd.f32 %v4829_v44, %v4828_v43  ;;  %v6979_v45 = vunpack.c.l.bf16 %v7254_v36  ;;  %v4619_v23 = vmul.f32 2.0, %v12151_v46  ;;  %v7262_v18 = vld [vmem:[%s13756_s1 + $0x290] sm:$0xff]  }
 0x890   :  { %v4696_v17 = vadd.f32 %v4695_v53, %v4681_v39  ;;  %v4390_v59 = vmax.f32 %v4386_v34, %v4387_v58  ;;  %v7007_v13 = vunpack.c.l.bf16 %v7261_v60  ;;  %v7040_v50 = vunpack.c.h.bf16 %v7269_v11 }
 0x891   :  { %v4634_v57 = vsub.f32 1.0, %v4618_v31  ;;  %v4682_v61 = vmul.f32 %v6976_v33, %v4633_v41  ;;  %v4830_v8 = vmul.f32 %v7039_v22, %v4632_v54  ;;  %v4768_v29 = vadd.f32 %v4753_v26, %v4752_v51  ;;  %v7255_v33 = vld [vmem:[%s13756_s1 + $0x258] sm:$0xff]  }
 0x892   :  { %v4392_v40 = vmax.f32 %v4390_v59, %v4391_v9  ;;  %v6980_v5 = vunpack.c.h.bf16 %v7254_v36  ;;  %v7043_v35 = vunpack.c.l.bf16 %v7270_v19  ;;  %v4635_v43 = vsub.f32 1.0, %v4619_v23 }
 0x893   :  { %v4697_v37 = vadd.f32 %v4696_v17, %v4682_v61  ;;  %v4845_v10 = vadd.f32 %v4844_v38, %v4830_v8  ;;  %v7008_v11 = vunpack.c.h.bf16 %v7261_v60  ;;  %v4754_v44 = vmul.f32 %v7007_v13, %v4632_v54  ;;  %v7271_v54 = vld [vmem:[%s13756_s1 + $0x2d8] sm:$0xff]  }
 0x894   :  { %v4393_v3 = vrot.slane %v4392_v40, 4  ;;  %v4683_v58 = vmul.f32 %v6979_v45, %v4634_v57  ;;  %v4620_v31 = vmul.f32 2.0, %v12183_v2  ;;  %v4831_v22 = vmul.f32 %v7040_v50, %v4633_v41  ;;  %v7263_v61 = vld [vmem:[%s13756_s1 + $0x298] sm:$0xff]  }
 0x895   :  { %v4769_v49 = vadd.f32 %v4768_v29, %v4754_v44  ;;  %v7011_v36 = vunpack.c.l.bf16 %v7262_v18  ;;  %v7044_v51 = vunpack.c.h.bf16 %v7270_v19  ;;  %v4684_v26 = vmul.f32 %v6980_v5, %v4635_v43 }
 0x896   :  { %v4394_v53 = vmax.f32 %v4392_v40, %v4393_v3  ;;  %v4846_v39 = vadd.f32 %v4845_v10, %v4831_v22  ;;  %v4698_v9 = vadd.f32 %v4697_v37, %v4683_v58  ;;  %v6983_v17 = vunpack.c.l.bf16 %v7255_v33 }
 0x897   :  { %v4755_v38 = vmul.f32 %v7008_v11, %v4633_v41  ;;  %v4832_v60 = vmul.f32 %v7043_v35, %v4634_v57  ;;  %v4621_v59 = vmul.f32 2.0, %v12185_v12  ;;  %v4636_v45 = vsub.f32 1.0, %v4620_v31  ;;  %v7256_v41 = vld [vmem:[%s13756_s1 + $0x260] sm:$0xff]  }
 0x898   :  { %v4395_v34 = vrot.slane %v4394_v53, 2  ;;  %v7012_v50 = vunpack.c.h.bf16 %v7262_v18  ;;  %v4699_v19 = vadd.f32 %v4698_v9, %v4684_v26  ;;  %v4756_v29 = vmul.f32 %v7011_v36, %v4634_v57 }
 0x899   :  { %v4770_v13 = vadd.f32 %v4769_v49, %v4755_v38  ;;  %v4847_v40 = vadd.f32 %v4846_v39, %v4832_v60  ;;  %v6984_v5 = vunpack.c.h.bf16 %v7255_v33  ;;  %v7047_v37 = vunpack.c.l.bf16 %v7271_v54 }
 0x89a   :  { %v4396_v23 = vmax.f32 %v4394_v53, %v4395_v34  ;;  %v4622_v10 = vmul.f32 2.0, %v12179_v20  ;;  %v4833_v3 = vmul.f32 %v7044_v51, %v4635_v43  ;;  %v4637_v35 = vsub.f32 1.0, %v4621_v59 }
 0x89b   :  { %v4685_v11 = vmul.f32 %v6983_v17, %v4636_v45  ;;  %v7015_v44 = vunpack.c.l.bf16 %v7263_v61  ;;  %v7048_v58 = vunpack.c.h.bf16 %v7271_v54  ;;  %v6987_v31 = vunpack.c.l.bf16 %v7256_v41 }
 0x89c   :  { %v4397_v8 = vrot.slane %v4396_v23, 1  ;;  %v4771_v22 = vadd.f32 %v4770_v13, %v4756_v29  ;;  %v4757_v53 = vmul.f32 %v7012_v50, %v4635_v43  ;;  %v4848_v34 = vadd.f32 %v4847_v40, %v4833_v3  ;;  %v7272_v43 = vld [vmem:[%s13756_s1 + $0x2e0] sm:$0xff]  }
 0x89d   :  { %v4700_v49 = vadd.f32 %v4699_v19, %v4685_v11  ;;  %v4623_v9 = vmul.f32 2.0, %v12181_v21  ;;  %v4638_v39 = vsub.f32 1.0, %v4622_v10  ;;  %v4686_v36 = vmul.f32 %v6984_v5, %v4637_v35 }
 0x89e   :  { %v4398_v18 = vmax.f32 %v4396_v23, %v4397_v8  ;;  %v4834_v51 = vmul.f32 %v7047_v37, %v4636_v45  ;;  %v4772_v38 = vadd.f32 %v4771_v22, %v4757_v53  ;;  %v7016_v13 = vunpack.c.h.bf16 %v7263_v61  ;;  %v7257_v37 = vld [vmem:[%s13756_s1 + $0x268] sm:$0xff]   ;;  %v7264_v61 = vld [vmem:[%s13756_s1 + $0x2a0] sm:$0xff]  }
 0x89f   :  { %v4701_v59 = vadd.f32 %v4700_v49, %v4686_v36  ;;  %v4639_v50 = vsub.f32 1.0, %v4623_v9  ;;  %v6988_v8 = vunpack.c.h.bf16 %v7256_v41  ;;  %v7051_v19 = vunpack.c.l.bf16 %v7272_v43 }
 0x8a0   :  { %vm4399_vm4 = vcmp.gt.f32.partialorder %v4398_v18, 0.5  ;;  %v4849_v23 = vadd.f32 %v4848_v34, %v4834_v51  ;;  %v4758_v40 = vmul.f32 %v7015_v44, %v4636_v45  ;;  %v4835_v29 = vmul.f32 %v7048_v58, %v4637_v35 }
 0x8a1   :  { %v12379_v57 = vsel %vm4399_vm4, %v8947_v16, 4294967295  ;;  %v12382_v33 = vsel %vm4399_vm4, %v8947_v16, 1073741824  ;;  %v4624_v5 = vmul.f32 2.0, %v12203_v42  ;;  %v4687_v10 = vmul.f32 %v6987_v31, %v4638_v39  ;;  %v7273_v31 = vld [vmem:[%s13756_s1 + $0x2e8] sm:$0xff]  }
 0x8a2   :  { %v4466_v26 = vshra.s32 %v12379_v57, 16  ;;  %v4450_v17 = vshra.s32 %v12382_v33, 16  ;;  %v4850_v41 = vadd.f32 %v4849_v23, %v4835_v29  ;;  %v4773_v11 = vadd.f32 %v4772_v38, %v4758_v40  ;;  %v7265_v23 = vld [vmem:[%s13756_s1 + $0x2a8] sm:$0xff]  }
 0x8a3   :  { %v4702_v3 = vadd.f32 %v4701_v59, %v4687_v10  ;;  %v6991_v45 = vunpack.c.l.bf16 %v7257_v37  ;;  %v4688_v18 = vmul.f32 %v6988_v8, %v4639_v50  ;;  %v7052_v44 = vunpack.c.h.bf16 %v7272_v43 }
 0x8a4   :  { %v12389_v60 = vcvt.s32.f32 %v4466_v26  ;;  %v12391_v54 = vcvt.s32.f32 %v4450_v17  ;;  %v7019_v58 = vunpack.c.l.bf16 %v7264_v61  ;;  %v4759_v22 = vmul.f32 %v7016_v13, %v4637_v35 }
 0x8a5   :  { %v4625_v53 = vmul.f32 2.0, %v12205_v62  ;;  %v4640_v49 = vsub.f32 1.0, %v4624_v5  ;;  %v4836_v34 = vmul.f32 %v7051_v19, %v4638_v39  ;;  %v4703_v9 = vadd.f32 %v4702_v3, %v4688_v18  ;;  %v7274_v3 = vld [vmem:[%s13756_s1 + $0x2f0] sm:$0xff]  }
 0x8a6   :  { %4469 = vmax.xlane.f32.xlu1 %v12389_v60  ;;  %4453 = vmin.xlane.f32.xlu0 %v12391_v54  ;;  %v4774_v51 = vadd.f32 %v4773_v11, %v4759_v22  ;;  %v6992_v26 = vunpack.c.h.bf16 %v7257_v37  ;;  %v7055_v17 = vunpack.c.l.bf16 %v7273_v31  ;;  %v4837_v43 = vmul.f32 %v7052_v44, %v4639_v50  ;;  %v7259_v22 = vld [vmem:[%s13756_s1 + $0x278] sm:$0xff]  }
 0x8a7   :  { %v4851_v36 = vadd.f32 %v4850_v41, %v4836_v34  ;;  %v7020_v38 = vunpack.c.h.bf16 %v7264_v61  ;;  %v4641_v35 = vsub.f32 1.0, %v4625_v53  ;;  %v4626_v59 = vmul.f32 2.0, %v12334_v7 }
 0x8a8   :  { %v4760_v13 = vmul.f32 %v7019_v58, %v4638_v39  ;;  %v7056_v5 = vunpack.c.h.bf16 %v7273_v31  ;;  %v7023_v37 = vunpack.c.l.bf16 %v7265_v23  ;;  %v4838_v39 = vmul.f32 %v7055_v17, %v4640_v49  ;;  %v7266_v31 = vld [vmem:[%s13756_s1 + $0x2b0] sm:$0xff]  }
 0x8a9   :  { %v4852_v19 = vadd.f32 %v4851_v36, %v4837_v43  ;;  %v4761_v10 = vmul.f32 %v7020_v38, %v4639_v50  ;;  %v4690_v61 = vmul.f32 %v6992_v26, %v4641_v35  ;;  %v7059_v44 = vunpack.c.l.bf16 %v7274_v3 }
 0x8aa   :  { %4404 = vmax.xlane.f32.xlu1 %v12223_v55  ;;  %4400 = vmax.xlane.f32.xlu0 %v12288_v15  ;;  %v7258_v55 = vld [vmem:[%s13756_s1 + $0x270] sm:$0xff]   ;;  %v4689_v15 = vmul.f32 %v6991_v45, %v4640_v49  ;;  %v4775_v40 = vadd.f32 %v4774_v51, %v4760_v13  ;;  %v4839_v58 = vmul.f32 %v7056_v5, %v4641_v35  ;;  %v7024_v50 = vunpack.c.h.bf16 %v7265_v23  ;;  %v7267_v5 = vld [vmem:[%s13756_s1 + $0x2b8] sm:$0xff]  }
 0x8ab   :  { %v6995_v29 = vunpack.c.l.bf16 %v7258_v55  ;;  %v4853_v11 = vadd.f32 %v4852_v19, %v4838_v39  ;;  %v6996_v18 = vunpack.c.h.bf16 %v7258_v55  ;;  %v4762_v34 = vmul.f32 %v7023_v37, %v4640_v49  ;;  %v7275_v55 = vld [vmem:[%s13756_s1 + $0x2f8] sm:$0xff]  }
 0x8ac   :  { %v4704_v8 = vadd.f32 %v4703_v9, %v4689_v15  ;;  %v4776_v45 = vadd.f32 %v4775_v40, %v4761_v10  ;;  %v6999_v26 = vunpack.c.l.bf16 %v7259_v22  ;;  %v7027_v17 = vunpack.c.l.bf16 %v7266_v31 }
 0x8ad   :  { %v4854_v36 = vadd.f32 %v4853_v11, %v4839_v58  ;;  %v4629_v43 = vmul.f32 2.0, %v12312_v4  ;;  %v7063_v19 = vunpack.c.l.bf16 %v7275_v55  ;;  %v7028_v40 = vunpack.c.h.bf16 %v7266_v31 }
 0x8ae   :  { %4408 = vmax.xlane.f32.xlu1 %v12149_v27  ;;  %4402 = vmax.xlane.f32.xlu0 %v12290_v6  ;;  %v4627_v27 = vmul.f32 2.0, %v12330_v0  ;;  %v4642_v6 = vsub.f32 1.0, %v4626_v59  ;;  %v4705_v41 = vadd.f32 %v4704_v8, %v4690_v61  ;;  %v4777_v51 = vadd.f32 %v4776_v45, %v4762_v34 }
 0x8af   :  { %v7000_v8 = vunpack.c.h.bf16 %v7259_v22  ;;  %v7064_v61 = vunpack.c.h.bf16 %v7275_v55  ;;  %v7031_v39 = vunpack.c.l.bf16 %v7267_v5 }
 0x8b0   :  { %v4691_v53 = vmul.f32 %v6995_v29, %v4642_v6  ;;  %v4840_v49 = vmul.f32 %v7059_v44, %v4642_v6  ;;  %v4764_v29 = vmul.f32 %v7027_v17, %v4642_v6 }
 0x8b2   :  { %4412 = vmax.xlane.f32.xlu1 %v12183_v2  ;;  %4406 = vmax.xlane.f32.xlu0 %v12221_v14  ;;  %v4628_v2 = vmul.f32 2.0, %v12310_v28  ;;  %v4643_v14 = vsub.f32 1.0, %v4627_v27  ;;  %v4706_v9 = vadd.f32 %v4705_v41, %v4691_v53  ;;  %v4855_v23 = vadd.f32 %v4854_v36, %v4840_v49 }
 0x8b4   :  { %v4644_v38 = vsub.f32 1.0, %v4628_v2  ;;  %v4692_v59 = vmul.f32 %v6996_v18, %v4643_v14  ;;  %v7032_v18 = vunpack.c.h.bf16 %v7267_v5  ;;  %v4465_v2 = vand.u32 65535, %v12379_v57 }
 0x8b6   :  { %4416 = vmax.xlane.f32.xlu1 %v12179_v20  ;;  %4410 = vmax.xlane.f32.xlu0 %v12151_v46  ;;  %v7060_v20 = vunpack.c.h.bf16 %v7274_v3  ;;  %v4763_v46 = vmul.f32 %v7024_v50, %v4641_v35  ;;  %v4707_v15 = vadd.f32 %v4706_v9, %v4692_v59  ;;  %v4766_v44 = vmul.f32 %v7031_v39, %v4644_v38 }
 0x8b8   :  { %v4778_v13 = vadd.f32 %v4777_v51, %v4763_v46  ;;  %v4841_v35 = vmul.f32 %v7060_v20, %v4643_v14 }
 0x8ba   :  { %4420 = vmax.xlane.f32.xlu1 %v12203_v42  ;;  %4414 = vmax.xlane.f32.xlu0 %v12185_v12  ;;  %v4645_v12 = vsub.f32 1.0, %v4629_v43  ;;  %v4693_v42 = vmul.f32 %v6999_v26, %v4644_v38  ;;  %v4856_v10 = vadd.f32 %v4855_v23, %v4841_v35  ;;  %v4779_v27 = vadd.f32 %v4778_v13, %v4764_v29 }
 0x8bc   :  { %v4708_v37 = vadd.f32 %v4707_v15, %v4693_v42  ;;  %v4694_v3 = vmul.f32 %v7000_v8, %v4645_v12  ;;  %v4843_v6 = vmul.f32 %v7064_v61, %v4645_v12 }
 0x8be   :  { %4424 = vmax.xlane.f32.xlu1 %v12334_v7  ;;  %4418 = vmax.xlane.f32.xlu0 %v12181_v21  ;;  %v4842_v7 = vmul.f32 %v7063_v19, %v4644_v38  ;;  %v4765_v21 = vmul.f32 %v7028_v40, %v4643_v14  ;;  %v4709_v41 = vadd.f32 %v4708_v37, %v4694_v3  ;;  %v4449_v14 = vand.u32 65535, %v12382_v33 }
 0x8c0   :  { %v4857_v11 = vadd.f32 %v4856_v10, %v4842_v7  ;;  %v4780_v45 = vadd.f32 %v4779_v27, %v4765_v21  ;;  %v4451_v31 = vcvt.s32.f32 %v4449_v14 }
 0x8c2   :  { %4428 = vmax.xlane.f32.xlu1 %v12310_v28  ;;  %4422 = vmax.xlane.f32.xlu0 %v12205_v62  ;;  %v4858_v58 = vadd.f32 %v4857_v11, %v4843_v6  ;;  %v4781_v50 = vadd.f32 %v4780_v45, %v4766_v44  ;;  %v4767_v28 = vmul.f32 %v7032_v18, %v4645_v12  ;;  %v14280_v45 = vld [vmem:[#allocation12_spill] sm:$0xff] }
 0x8c3   :  { %v14281_v44 = vld [vmem:[#allocation16_spill] sm:$0xff] }
 0x8c4   :  { %v4782_v62 = vadd.f32 %v4781_v50, %v4767_v28 }
 0x8c6   :  { %4710 = vadd.xlane.f32.xlu1 %v4709_v41  ;;  %4426 = vmax.xlane.f32.xlu0 %v12330_v0  ;;  %v4467_v0 = vcvt.s32.f32 %v4465_v2  ;;  %v14282_v2 = vld [vmem:[#allocation14_spill] sm:$0xff] }
 0x8ca   :  { %4859 = vadd.xlane.f32.xlu1 %v4858_v58  ;;  %4430 = vmax.xlane.f32.xlu0 %v12312_v4 }
 0x8ce   :  { %4783 = vadd.xlane.f32.xlu0 %v4782_v62 }
 0x933   :  { %v12449_v22 = vpop.xlane.xlu1 %4469  ;;  %v12451_v53 = vpop.xlane.xlu0 %4453 }
 0x934   :  { %vm4471_vm13 = vcmp.eq.f32.partialorder %v12389_v60, %v12449_v22  ;;  %vm4455_vm6 = vcmp.eq.f32.partialorder %v12391_v54, %v12451_v53 }
 0x935   :  { %v4472_v4 = vsel %vm4471_vm13, %v4467_v0, -inf  ;;  %v4456_v34 = vsel %vm4455_vm6, %v4451_v31, inf }
 0x936   :  { %4473 = vmax.xlane.f32.xlu1 %v4472_v4  ;;  %4457 = vmin.xlane.f32.xlu0 %v4456_v34 }
 0x937   :  { %v4401_v9 = vpop.xlane.xlu0 %4400  ;;  %v4405_v33 = vpop.xlane.xlu1 %4404 }
 0x938   :  { %vm4432_vm11 = vcmp.gt.f32.partialorder %v4401_v9, 0.5  ;;  %vm4434_vm12 = vcmp.gt.f32.partialorder %v4405_v33, 0.5  ;;  %v14283_v33 = vld [vmem:[#allocation15_spill] sm:$0xff] }
 0x939   :  { %v4480_v55 = vsel %vm4432_vm11, %v8386_v1, 1073741824  ;;  %v4536_v49 = vsel %vm4432_vm11, %v8386_v1, 4294967295  ;;  %v4482_v8 = vsel %vm4434_vm12, %v9669_v56, 1073741824  ;;  %v4538_v19 = vsel %vm4434_vm12, %v9669_v56, 4294967295 }
 0x93b   :  { %v4403_v57 = vpop.xlane.xlu0 %4402  ;;  %v4409_v26 = vpop.xlane.xlu1 %4408 }
 0x93c   :  { %vm4436_vm7 = vcmp.gt.f32.partialorder %v4409_v26, 0.5  ;;  %vm4433_vm9 = vcmp.gt.f32.partialorder %v4403_v57, 0.5  ;;  %v14284_v26 = vld [vmem:[#allocation17_spill] sm:$0xff] }
 0x93d   :  { %v4484_v54 = vsel %vm4436_vm7, %v9666_v47, 1073741824  ;;  %v4540_v59 = vsel %vm4436_vm7, %v9666_v47, 4294967295  ;;  %v4481_v40 = vsel %vm4433_vm9, %v9672_v32, 1073741824  ;;  %v4537_v12 = vsel %vm4433_vm9, %v9672_v32, 4294967295 }
 0x93e   :  { %vm4496_vm15 = vcmp.lt.s32.totalorder %v4480_v55, %v4484_v54  ;;  %vm4552_vm8 = vcmp.gt.s32.totalorder %v4536_v49, %v4540_v59 }
 0x93f   :  { %v4407_v36 = vpop.xlane.xlu0 %4406  ;;  %v4413_v17 = vpop.xlane.xlu1 %4412  ;;  %v12469_v42 = vsel %vm4496_vm15, %v4480_v55, %v4484_v54  ;;  %v12472_v29 = vsel %vm4552_vm8, %v4536_v49, %v4540_v59  ;;  %v14285_v54 = vld [vmem:[#allocation13_spill] sm:$0xff] }
 0x940   :  { %vm4438_vm2 = vcmp.gt.f32.partialorder %v4413_v17, 0.5  ;;  %vm4435_vm1 = vcmp.gt.f32.partialorder %v4407_v36, 0.5 }
 0x941   :  { %v4486_v15 = vsel %vm4438_vm2, %v9677_v52, 1073741824  ;;  %v4542_v23 = vsel %vm4438_vm2, %v9677_v52, 4294967295  ;;  %v4483_v37 = vsel %vm4435_vm1, %v9680_v48, 1073741824  ;;  %v4539_v39 = vsel %vm4435_vm1, %v9680_v48, 4294967295 }
 0x942   :  { %vm4500_vm5 = vcmp.lt.s32.totalorder %v4482_v8, %v4486_v15  ;;  %vm4556_vm4 = vcmp.gt.s32.totalorder %v4538_v19, %v4542_v23 }
 0x943   :  { %v4411_v51 = vpop.xlane.xlu0 %4410  ;;  %v4417_v43 = vpop.xlane.xlu1 %4416  ;;  %v4501_v21 = vsel %vm4500_vm5, %v4482_v8, %v4486_v15  ;;  %v4557_v41 = vsel %vm4556_vm4, %v4538_v19, %v4542_v23 }
 0x944   :  { %vm4437_vm10 = vcmp.gt.f32.partialorder %v4411_v51, 0.5  ;;  %vm4440_vm3 = vcmp.gt.f32.partialorder %v4417_v43, 0.5 }
 0x945   :  { %v4485_v5 = vsel %vm4437_vm10, %v9687_v24, 1073741824  ;;  %v4488_v61 = vsel %vm4440_vm3, %v9683_v63, 1073741824  ;;  %v4544_v3 = vsel %vm4440_vm3, %v9683_v63, 4294967295  ;;  %v4541_v7 = vsel %vm4437_vm10, %v9687_v24, 4294967295 }
 0x946   :  { %vm4498_vm7 = vcmp.lt.s32.totalorder %v4481_v40, %v4485_v5  ;;  %vm4504_vm15 = vcmp.lt.s32.totalorder %v12469_v42, %v4488_v61  ;;  %vm4560_vm9 = vcmp.gt.s32.totalorder %v12472_v29, %v4544_v3  ;;  %vm4554_vm8 = vcmp.gt.s32.totalorder %v4537_v12, %v4541_v7 }
 0x947   :  { %v4415_v20 = vpop.xlane.xlu0 %4414  ;;  %v4421_v38 = vpop.xlane.xlu1 %4420  ;;  %v4499_v28 = vsel %vm4498_vm7, %v4481_v40, %v4485_v5  ;;  %v4555_v34 = vsel %vm4554_vm8, %v4537_v12, %v4541_v7  ;;  %v4505_v23 = vsel %vm4504_vm15, %v12469_v42, %v4488_v61  ;;  %v4561_v8 = vsel %vm4560_vm9, %v12472_v29, %v4544_v3 }
 0x948   :  { %vm4439_vm14 = vcmp.gt.f32.partialorder %v4415_v20, 0.5  ;;  %vm4442_vm13 = vcmp.gt.f32.partialorder %v4421_v38, 0.5 }
 0x949   :  { %v4487_v10 = vsel %vm4439_vm14, %v9693_v30, 1073741824  ;;  %v4543_v27 = vsel %vm4439_vm14, %v9693_v30, 4294967295  ;;  %v4490_v6 = vsel %vm4442_vm13, %v14280_v45, 1073741824  ;;  %v4546_v50 = vsel %vm4442_vm13, %v14280_v45, 4294967295 }
 0x94a   :  { %vm4502_vm11 = vcmp.lt.s32.totalorder %v4483_v37, %v4487_v10  ;;  %vm4558_vm2 = vcmp.gt.s32.totalorder %v4539_v39, %v4543_v27  ;;  %vm4508_vm1 = vcmp.lt.s32.totalorder %v4501_v21, %v4490_v6  ;;  %vm4564_vm4 = vcmp.gt.s32.totalorder %v4557_v41, %v4546_v50 }
 0x94b   :  { %v12457_v46 = vpop.xlane.xlu0 %4418  ;;  %v4425_v35 = vpop.xlane.xlu1 %4424  ;;  %v4503_v0 = vsel %vm4502_vm11, %v4483_v37, %v4487_v10  ;;  %v4559_v31 = vsel %vm4558_vm2, %v4539_v39, %v4543_v27  ;;  %v4509_v57 = vsel %vm4508_vm1, %v4501_v21, %v4490_v6  ;;  %v4565_v59 = vsel %vm4564_vm4, %v4557_v41, %v4546_v50 }
 0x94c   :  { %vm4441_vm12 = vcmp.gt.f32.partialorder %v12457_v46, 0.5  ;;  %vm4444_vm13 = vcmp.gt.f32.partialorder %v4425_v35, 0.5 }
 0x94d   :  { %v4489_v14 = vsel %vm4441_vm12, %v14282_v2, 1073741824  ;;  %v4545_v4 = vsel %vm4441_vm12, %v14282_v2, 4294967295  ;;  %v4492_v38 = vsel %vm4444_vm13, %v14285_v54, 1073741824  ;;  %v4548_v49 = vsel %vm4444_vm13, %v14285_v54, 4294967295 }
 0x94e   :  { %vm4562_vm7 = vcmp.gt.s32.totalorder %v4555_v34, %v4545_v4  ;;  %vm4512_vm1 = vcmp.lt.s32.totalorder %v4505_v23, %v4492_v38 }
 0x94f   :  { %v4423_v60 = vpop.xlane.xlu0 %4422  ;;  %v4429_v18 = vpop.xlane.xlu1 %4428  ;;  %v4563_v15 = vsel %vm4562_vm7, %v4555_v34, %v4545_v4  ;;  %v4513_v37 = vsel %vm4512_vm1, %v4505_v23, %v4492_v38 }
 0x950   :  { %vm4443_vm6 = vcmp.gt.f32.partialorder %v4423_v60, 0.5  ;;  %vm4446_vm14 = vcmp.gt.f32.partialorder %v4429_v18, 0.5 }
 0x951   :  { %v4491_v58 = vsel %vm4443_vm6, %v14281_v44, 1073741824  ;;  %v4547_v62 = vsel %vm4443_vm6, %v14281_v44, 4294967295  ;;  %vm4506_vm6 = vcmp.lt.s32.totalorder %v4499_v28, %v4489_v14  ;;  %v4494_v51 = vsel %vm4446_vm14, %v14283_v33, 1073741824 }
 0x952   :  { %vm4510_vm3 = vcmp.lt.s32.totalorder %v4503_v0, %v4491_v58  ;;  %vm4566_vm0 = vcmp.gt.s32.totalorder %v4559_v31, %v4547_v62  ;;  %v4550_v46 = vsel %vm4446_vm14, %v14283_v33, 4294967295  ;;  %v4507_v55 = vsel %vm4506_vm6, %v4499_v28, %v4489_v14 }
 0x953   :  { %v4427_v13 = vpop.xlane.xlu0 %4426  ;;  %v4511_v17 = vsel %vm4510_vm3, %v4503_v0, %v4491_v58  ;;  %v4567_v60 = vsel %vm4566_vm0, %v4559_v31, %v4547_v62  ;;  %vm4516_vm12 = vcmp.lt.s32.totalorder %v4509_v57, %v4494_v51  ;;  %vm4568_vm14 = vcmp.gt.s32.totalorder %v4561_v8, %v4548_v49  ;;  %v4711_v21 = vpop.xlane.xlu1 %4710 }
 0x954   :  { %vm4445_vm5 = vcmp.gt.f32.partialorder %v4427_v13, 0.5  ;;  %v4517_v40 = vsel %vm4516_vm12, %v4509_v57, %v4494_v51  ;;  %v4569_v10 = vsel %vm4568_vm14, %v4561_v8, %v4548_v49  ;;  %v4712_v58 = vrot.slane %v4711_v21, 4 }
 0x955   :  { %v4493_v20 = vsel %vm4445_vm5, %v14284_v26, 1073741824  ;;  %v4549_v43 = vsel %vm4445_vm5, %v14284_v26, 4294967295  ;;  %v4476_v57 = vcvt.f32.s32 %v12449_v22  ;;  %vm14289_vm14 = vcmp.lt.s32.totalorder %v14075_v25, 127 }
 0x956   :  { %vm4514_vm8 = vcmp.lt.s32.totalorder %v4507_v55, %v4493_v20  ;;  %vm4570_vm0 = vcmp.gt.s32.totalorder %v4563_v15, %v4549_v43  ;;  %v4713_v31 = vadd.f32 %v4712_v58, %v4711_v21 }
 0x957   :  { %v4431_v11 = vpop.xlane.xlu0 %4430  ;;  %v4515_v12 = vsel %vm4514_vm8, %v4507_v55, %v4493_v20  ;;  %v4571_v5 = vsel %vm4570_vm0, %v4563_v15, %v4549_v43  ;;  %v4860_v6 = vpop.xlane.xlu1 %4859  ;;  %v4460_v20 = vcvt.f32.s32 %v12451_v53  ;;  %v4477_v38 = vshll.u32 %v4476_v57, 16 }
 0x958   :  { %vm4447_vm10 = vcmp.gt.f32.partialorder %v4431_v11, 0.5  ;;  %vm4520_vm4 = vcmp.lt.s32.totalorder %v4513_v37, %v4515_v12  ;;  %vm4576_vm15 = vcmp.gt.s32.totalorder %v4569_v10, %v4571_v5  ;;  %v4861_v62 = vrot.slane %v4860_v6, 4 }
 0x959   :  { %v4495_v9 = vsel %vm4447_vm10, %v14075_v25, 1073741824  ;;  %v4551_v36 = vsel %vm4447_vm10, %v14075_v25, 4294967295  ;;  %vm4572_vm10 = vcmp.gt.s32.totalorder %v4565_v59, %v4550_v46  ;;  %v4521_v61 = vsel %vm4520_vm4, %v4513_v37, %v4515_v12 }
 0x95a   :  { %vm4518_vm11 = vcmp.lt.s32.totalorder %v4511_v17, %v4495_v9  ;;  %vm4574_vm2 = vcmp.gt.s32.totalorder %v4567_v60, %v4551_v36  ;;  %v4573_v35 = vsel %vm4572_vm10, %v4565_v59, %v4550_v46  ;;  %v4577_v7 = vsel %vm4576_vm15, %v4569_v10, %v4571_v5 }
 0x95b   :  { %v4519_v13 = vsel %vm4518_vm11, %v4511_v17, %v4495_v9  ;;  %v4575_v19 = vsel %vm4574_vm2, %v4567_v60, %v4551_v36  ;;  %v4784_v11 = vpop.xlane.xlu0 %4783  ;;  %v4862_v34 = vadd.f32 %v4861_v62, %v4860_v6  ;;  %v4714_v9 = vrot.slane %v4713_v31, 2 }
 0x95c   :  { %vm4522_vm3 = vcmp.lt.s32.totalorder %v4517_v40, %v4519_v13  ;;  %vm4578_vm5 = vcmp.gt.s32.totalorder %v4573_v35, %v4575_v19  ;;  %v4785_v28 = vrot.slane %v4784_v11, 4  ;;  %v4461_v23 = vshll.u32 %v4460_v20, 16 }
 0x95d   :  { %v4523_v42 = vsel %vm4522_vm3, %v4517_v40, %v4519_v13  ;;  %v4579_v27 = vsel %vm4578_vm5, %v4573_v35, %v4575_v19  ;;  %v4863_v17 = vrot.slane %v4862_v34, 2  ;;  %v4715_v60 = vadd.f32 %v4714_v9, %v4713_v31 }
 0x95e   :  { %vm4524_vm13 = vcmp.lt.s32.totalorder %v4521_v61, %v4523_v42  ;;  %vm4580_vm6 = vcmp.gt.s32.totalorder %v4577_v7, %v4579_v27  ;;  %v4786_v4 = vadd.f32 %v4785_v28, %v4784_v11  ;;  %vm14286_vm10 = vcmp.lt.s32.totalorder %v8386_v1, 7 }
 0x95f   :  { %v4525_v39 = vsel %vm4524_vm13, %v4521_v61, %v4523_v42  ;;  %v4581_v29 = vsel %vm4580_vm6, %v4577_v7, %v4579_v27  ;;  %v4864_v19 = vadd.f32 %v4863_v17, %v4862_v34  ;;  %v4716_v22 = vrot.slane %v4715_v60, 1  ;;  %vm14287_vm0 = vmmov %vm14286_vm10 }
 0x960   :  { %v4526_v3 = vrot.slane %v4525_v39, 4  ;;  %v4582_v41 = vrot.slane %v4581_v29, 4  ;;  %v4787_v36 = vrot.slane %v4786_v4, 2  ;;  %vm14288_vm1 = vmmov %vm14287_vm0  ;;  %vm14290_vm3 = vcmp.lt.s32.totalorder %v8386_v1, 1 }
 0x961   :  { %v4865_v53 = vrot.slane %v4864_v19, 1  ;;  %v4717_v10 = vadd.f32 %v4716_v22, %v4715_v60  ;;  %vm14291_vm5 = vmmov %vm14290_vm3  ;;  %vm14293_vm15 = vcmp.ge.s32.totalorder %v8386_v1, 1 }
 0x962   :  { %vm4527_vm9 = vcmp.lt.s32.totalorder %v4525_v39, %v4526_v3  ;;  %vm4583_vm7 = vcmp.gt.s32.totalorder %v4581_v29, %v4582_v41  ;;  %v4788_v15 = vadd.f32 %v4787_v36, %v4786_v4  ;;  %vm14292_vm4 = vmmov %vm14290_vm3 }
 0x963   :  { %v4528_v18 = vsel %vm4527_vm9, %v4525_v39, %v4526_v3  ;;  %v4584_v50 = vsel %vm4583_vm7, %v4581_v29, %v4582_v41  ;;  %v4866_v27 = vadd.f32 %v4865_v53, %v4864_v19  ;;  %vm14294_vm13 = vmmov %vm14287_vm0 }
 0x964   :  { %v4529_v14 = vrot.slane %v4528_v18, 2  ;;  %v4585_v0 = vrot.slane %v4584_v50, 2  ;;  %v4789_v35 = vrot.slane %v4788_v15, 1  ;;  %vm14295_vm6 = vmmov %vm14287_vm0 }
 0x965   :  { %vm14296_vm9 = vmmov %vm14287_vm0 }
 0x966   :  { %vm4530_vm11 = vcmp.lt.s32.totalorder %v4528_v18, %v4529_v14  ;;  %vm4586_vm2 = vcmp.gt.s32.totalorder %v4584_v50, %v4585_v0  ;;  %v4790_v42 = vadd.f32 %v4789_v35, %v4788_v15  ;;  %vm14297_vm7 = vmmov %vm14290_vm3 }
 0x967   :  { %v4531_v51 = vsel %vm4530_vm11, %v4528_v18, %v4529_v14  ;;  %v4587_v46 = vsel %vm4586_vm2, %v4584_v50, %v4585_v0  ;;  %vm14298_vm11 = vmmov %vm14290_vm3 }
 0x968   :  { %v4532_v43 = vrot.slane %v4531_v51, 1  ;;  %v4588_v49 = vrot.slane %v4587_v46, 1  ;;  %vm14299_vm2 = vmmov %vm14290_vm3 }
 0x96a   :  { %vm4533_vm12 = vcmp.lt.s32.totalorder %v4531_v51, %v4532_v43  ;;  %vm4589_vm8 = vcmp.gt.s32.totalorder %v4587_v46, %v4588_v49 }
 0x96b   :  { %v4534_v5 = vsel %vm4533_vm12, %v4531_v51, %v4532_v43  ;;  %v4590_v37 = vsel %vm4589_vm8, %v4587_v46, %v4588_v49  ;;  %vm14300_vm12 = vmmov %vm14299_vm2 }
 0x96c   :  { %vm14301_vm8 = vmmov %vm14299_vm2 }
 0x9c3   :  { %v4474_v59 = vpop.xlane.xlu1 %4473  ;;  %v4458_v55 = vpop.xlane.xlu0 %4457 }
 0x9c4   :  { %v4475_v13 = vcvt.f32.s32 %v4474_v59  ;;  %v4459_v8 = vcvt.f32.s32 %v4458_v55 }
 0x9c6   :  { %v4462_v40 = vadd.s32 %v4461_v23, %v4459_v8  ;;  %v4478_v12 = vadd.s32 %v4477_v38, %v4475_v13 }
 0x9c8   :  { %7319 = vpush %v4462_v40 }
 0x9c9   :  { %7321 = vpush %v4478_v12 }
 0x9ca   :  { %7323 = vpush %v4534_v5 }
 0x9cb   :  { %7325 = vpush %v4590_v37 }
 0x9cc   :  { %7327 = vpush %v4717_v10 }
 0x9cd   :  { %7329 = vpush %v4790_v42 }
 0x9ce   :  { %7331 = vpush %v4866_v27 }
 0x9f9   :  { %s7320_s23 = spop %7319 }
 0x9fa   :  { %s7322_s24 = spop %7321 }
 0x9fb   :  { %p4592_p6 = scmp.ge.s32.totalorder %s7322_s24, 0  ;;  %s4601_s25 = ssub.s32 %s7322_s24, %s7320_s23 }
 0x9fc   :  { %s4602_s26 = sadd.s32 1, %s4601_s25  ;;  %s7324_s27 = spop %7323 }
 0x9fd   :  { %s14536_s23 = smov (!%p4592_p6, %s7320_s23), 0  ;;  %s14538_s26 = smov (!%p4592_p6, %s4602_s26), 0 }
 0x9fe   :  { %4596 = sst [smem:[#allocation8 + $0x8]] %s14536_s23  ;;  %s7326_s28 = spop %7325 }
 0x9ff   :  { %4606 = sst [smem:[#allocation8 + $0xa]] %s14538_s26  ;;  %s4607_s29 = ssub.s32 %s7326_s28, %s7324_s27 }
 0xa00   :  { %s14540_s27 = smov (!%p4592_p6, %s7324_s27), 0  ;;  %s4608_s30 = sadd.s32 1, %s4607_s29 }
 0xa01   :  { %s7328_s4 = spop %7327  ;;  %4600 = sst [smem:[#allocation8 + $0x9]] %s14540_s27 }
 0xa02   :  { %s7330_s5 = spop %7329  ;;  %s14542_s30 = smov (!%p4592_p6, %s4608_s30), 0 }
 0xa03   :  { %p4792_p7 = scmp.lt.f32.partialorder %s7330_s5, %s7328_s4  ;;  %4612 = sst [smem:[#allocation8 + $0xb]] %s14542_s30 }
 0xa04   :  { %s7332_s6 = spop %7331 }
 0xa05   :  { %s14544_s5 = smov (!%p4792_p7, %s7330_s5), %s7328_s4 }
 0xa06   :  { %s4793_s7 = scalar_select %p4792_p7, 1, 0 }
 0xa07   :  { %p4868_p8 = scmp.lt.f32.partialorder %s7332_s6, %s14544_s5 }
 0xa09   :  { %s14546_s7 = smov (%p4868_p8, %s4793_s7), 2 }
 0xa0a   :  { %s6448_s8 = sshll.u32 %s14546_s7, 6 }
 0xa0b   :  { %s6095_s11 = scalar_lea.vmem %s13756_s1, %s6448_s8  ;;  %s8354_s1 = smov [#allocation5]  }
 0xa0c   :  { %v7276_v61 = vld [vmem:[%s6095_s11 + $0x240] sm:$0xff]   ;;  %v7277_v7 = vld [vmem:[%s6095_s11 + $0x248] sm:$0xff]   ;;  %v7278_v39 = vld [vmem:[%s6095_s11 + $0x250] sm:$0xff]  }
 0xa0d   :  { %v12528_v29 = vunpack.c.l.bf16 %v7276_v61  ;;  %v12530_v3 = vunpack.c.h.bf16 %v7276_v61  ;;  %v12532_v21 = vunpack.c.l.bf16 %v7277_v7  ;;  %v7279_v41 = vld [vmem:[%s6095_s11 + $0x258] sm:$0xff]   ;;  %v7280_v11 = vld [vmem:[%s6095_s11 + $0x260] sm:$0xff]   ;;  %v7281_v6 = vld [vmem:[%s6095_s11 + $0x268] sm:$0xff]   ;;  %v12534_v18 = vunpack.c.h.bf16 %v7277_v7 }
 0xa0e   :  { %v12536_v58 = vunpack.c.l.bf16 %v7278_v39  ;;  %v12538_v50 = vunpack.c.h.bf16 %v7278_v39  ;;  %v12540_v28 = vunpack.c.l.bf16 %v7279_v41  ;;  %v7282_v62 = vld [vmem:[%s6095_s11 + $0x270] sm:$0xff]   ;;  %v7283_v14 = vld [vmem:[%s6095_s11 + $0x278] sm:$0xff]   ;;  %v7080_v0 = vunpack.c.h.bf16 %v7279_v41 }
 0xa0f   :  { %v12542_v31 = vunpack.c.l.bf16 %v7280_v11  ;;  %v12544_v4 = vunpack.c.h.bf16 %v7280_v11  ;;  %v12546_v34 = vunpack.c.l.bf16 %v7281_v6  ;;  %v12548_v9 = vunpack.c.h.bf16 %v7281_v6 }
 0xa10   :  { %v12550_v57 = vunpack.c.h.bf16 %v7282_v62  ;;  %v12552_v36 = vunpack.c.l.bf16 %v7283_v14  ;;  %v12554_v51 = vunpack.c.h.bf16 %v7283_v14  ;;  %v13836_v20 = vrot.slane %v12528_v29, 1 }
 0xa11   :  { %v4918_v17 = vrot.slane %v12544_v4, 1  ;;  %v13842_v46 = vrot.slane %v12546_v34, 1  ;;  %v13840_v43 = vrot.slane %v12528_v29, 7  ;;  %v13841_v55 = vrot.slane %v12530_v3, 7 }
 0xa12   :  { %v13844_v60 = vrot.slane %v12550_v57, 1  ;;  %v13838_v38 = vrot.slane %v12552_v36, 1  ;;  %v13839_v59 = vrot.slane %v12554_v51, 1  ;;  %v5103_v15 = vrot.slane %v12532_v21, 7 }
 0xa13   :  { %v4930_v49 = vsel %vm14286_vm10, %v4918_v17, %v13842_v46  ;;  %v5104_v23 = vrot.slane %v12534_v18, 7  ;;  %v5105_v13 = vrot.slane %v12536_v58, 7  ;;  %v12571_v8 = vunpack.c.l.bf16 %v7282_v62 }
 0xa14   :  { %v4926_v19 = vsel %vm14287_vm0, %v13844_v60, %v13838_v38  ;;  %v4940_v40 = vsel %vm14288_vm1, %v13839_v59, %v13836_v20  ;;  %v12586_v12 = vmax.f32 %v12544_v4, %v4930_v49  ;;  %v13843_v53 = vrot.slane %v12542_v31, 7 }
 0xa15   :  { %v4956_v22 = vsel %vm14289_vm14, %v4940_v40, 0.0  ;;  %v12591_v35 = vmax.f32 %v12550_v57, %v4926_v19  ;;  %v13837_v5 = vrot.slane %v12554_v51, 7  ;;  %v5128_v42 = vsel %vm14290_vm3, %v5104_v23, %v5105_v13  ;;  %vm14306_vm3 = vmmov %vm14295_vm6 }
 0xa16   :  { %v12596_v37 = vmax.f32 %v12554_v51, %v4956_v22  ;;  %v5130_v27 = vsel %vm14291_vm5, %v13841_v55, %v5103_v15  ;;  %v13847_v61 = vrot.slane %v12586_v12, 2  ;;  %v12616_v41 = vmax.f32 %v12536_v58, %v5128_v42  ;;  %vm14307_vm5 = vmmov %vm14306_vm3 }
 0xa17   :  { %v5132_v7 = vsel %vm14292_vm4, %v13837_v5, %v13840_v43  ;;  %v12613_v39 = vmax.f32 %v12532_v21, %v5130_v27  ;;  %v4915_v62 = vrot.slane %v12540_v28, 1  ;;  %v4916_v14 = vrot.slane %v7080_v0, 1 }
 0xa18   :  { %v5133_v6 = vsel %vm14293_vm15, %v5132_v7, 0.0  ;;  %v4917_v22 = vrot.slane %v12542_v31, 1  ;;  %v5106_v27 = vrot.slane %v12538_v50, 7  ;;  %v5107_v20 = vrot.slane %v12540_v28, 7 }
 0xa19   :  { %v12624_v19 = vmax.f32 %v12528_v29, %v5133_v6  ;;  %v4933_v42 = vsel %vm14294_vm13, %v4915_v62, %v4916_v14  ;;  %v5108_v7 = vrot.slane %v7080_v0, 7  ;;  %v13848_v10 = vrot.slane %v12616_v41, 6 }
 0xa1a   :  { %v4931_v5 = vsel %vm14295_vm6, %v4917_v22, %v4918_v17  ;;  %v4932_v6 = vsel %vm14296_vm9, %v4916_v14, %v4917_v22  ;;  %v4963_v49 = vmax.f32 %v12540_v28, %v4933_v42  ;;  %v5126_v17 = vsel %vm14299_vm2, %v5106_v27, %v5107_v20 }
 0xa1b   :  { %v4964_v38 = vmax.f32 %v7080_v0, %v4932_v6  ;;  %v4965_v59 = vmax.f32 %v12542_v31, %v4931_v5  ;;  %v12643_v43 = vsel %vm14297_vm7, %v5108_v7, %v13843_v53  ;;  %v5125_v55 = vsel %vm14298_vm11, %v5107_v20, %v5108_v7 }
 0xa1c   :  { %v4979_v11 = vrot.slane %v4963_v49, 2  ;;  %v5127_v14 = vsel %vm14300_vm12, %v5105_v13, %v5106_v27  ;;  %v12651_v22 = vmax.f32 %v7080_v0, %v5125_v55  ;;  %v5155_v46 = vmax.f32 %v12540_v28, %v5126_v17 }
 0xa1d   :  { %v4980_v42 = vrot.slane %v4964_v38, 2  ;;  %v4981_v5 = vrot.slane %v4965_v59, 2  ;;  %v5154_v6 = vmax.f32 %v12538_v50, %v5127_v14  ;;  %v13845_v60 = vrot.slane %v12536_v58, 1 }
 0xa1e   :  { %v13846_v53 = vrot.slane %v12651_v22, 6  ;;  %v4914_v7 = vrot.slane %v12538_v50, 1  ;;  %v5129_v20 = vsel %vm14301_vm8, %v5103_v15, %v5104_v23  ;;  %vm14302_vm10 = vcmp.lt.s32.totalorder %v8386_v1, 6 }
 0xa1f   :  { %v4995_v0 = vsel %vm14302_vm10, %v4981_v5, %v13847_v61  ;;  %vm14303_vm0 = vmmov %vm14302_vm10  ;;  %v5170_v13 = vrot.slane %v5154_v6, 6  ;;  %v5171_v40 = vrot.slane %v5155_v46, 6  ;;  %vm14305_vm14 = vcmp.lt.s32.totalorder %v8386_v1, 2 }
 0xa20   :  { %v4996_v55 = vsel %vm14303_vm0, %v4980_v42, %v4981_v5  ;;  %vm14304_vm1 = vmmov %vm14303_vm0  ;;  %v12668_v14 = vmax.f32 %v4965_v59, %v4995_v0  ;;  %v4934_v23 = vsel %vm14306_vm3, %v4914_v7, %v4915_v62  ;;  %v4935_v5 = vsel %vm14307_vm5, %v13845_v60, %v4914_v7 }
 0xa21   :  { %v4997_v28 = vsel %vm14304_vm1, %v4979_v11, %v4980_v42  ;;  %v5028_v17 = vmax.f32 %v4964_v38, %v4996_v55  ;;  %v5191_v15 = vsel %vm14305_vm14, %v13848_v10, %v5170_v13  ;;  %v5152_v42 = vmax.f32 %v12534_v18, %v5129_v20  ;;  %vm14308_vm4 = vmmov %vm14305_vm14 }
 0xa22   :  { %v5027_v27 = vmax.f32 %v4963_v49, %v4997_v28  ;;  %v13851_v59 = vrot.slane %v12668_v14, 4  ;;  %v5189_v0 = vsel %vm14308_vm4, %v5171_v40, %v13846_v53  ;;  %vm14309_vm15 = vmmov %vm14308_vm4  ;;  %v12688_v62 = vmax.f32 %v5154_v6, %v5191_v15 }
 0xa23   :  { %v5044_v38 = vrot.slane %v5028_v17, 4  ;;  %v5190_v55 = vsel %vm14309_vm15, %v5170_v13, %v5171_v40  ;;  %v12691_v28 = vmax.f32 %v12651_v22, %v5189_v0  ;;  %v12694_v7 = vmax.f32 %v12536_v58, %v4935_v5  ;;  %vm14314_vm11 = vmmov %vm14303_vm0 }
 0xa24   :  { %v5043_v49 = vrot.slane %v5027_v27, 4  ;;  %vm14310_vm13 = vcmp.lt.s32.totalorder %v8386_v1, 4  ;;  %v5219_v53 = vmax.f32 %v5155_v46, %v5190_v55  ;;  %v4962_v61 = vmax.f32 %v12538_v50, %v4934_v23  ;;  %vm14315_vm2 = vmmov %vm14303_vm0 }
 0xa25   :  { %v5060_v20 = vsel %vm14310_vm13, %v5044_v38, %v13851_v59  ;;  %vm14311_vm6 = vmmov %vm14310_vm13  ;;  %v5234_v13 = vrot.slane %v12688_v62, 4  ;;  %v13853_v15 = vrot.slane %v12691_v28, 4  ;;  %v13858_v5 = vrot.slane %v12694_v7, 2 }
 0xa26   :  { %v5061_v60 = vsel %vm14311_vm6, %v5043_v49, %v5044_v38  ;;  %v5092_v6 = vmax.f32 %v5028_v17, %v5060_v20  ;;  %v5235_v0 = vrot.slane %v5219_v53, 4  ;;  %v4978_v10 = vrot.slane %v4962_v61, 2  ;;  %vm14312_vm9 = vmmov %vm14311_vm6 }
 0xa27   :  { %v5091_v40 = vmax.f32 %v5027_v27, %v5061_v60  ;;  %v5168_v26 = vrot.slane %v5152_v42, 6  ;;  %v4920_v54 = vrot.slane %v12548_v9, 1  ;;  %v4921_v59 = vrot.slane %v12571_v8, 1  ;;  %vm14313_vm7 = vmmov %vm14311_vm6 }
 0xa28   :  { %v5110_v38 = vrot.slane %v12544_v4, 7  ;;  %v5111_v46 = vrot.slane %v12546_v34, 7  ;;  %v5253_v50 = vsel %vm14312_vm9, %v5235_v0, %v13853_v15  ;;  %v5254_v60 = vsel %vm14313_vm7, %v5234_v13, %v5235_v0  ;;  %vm14317_vm12 = vmmov %vm14308_vm4 }
 0xa29   :  { %v4998_v27 = vsel %vm14314_vm11, %v4978_v10, %v4979_v11  ;;  %v4999_v17 = vsel %vm14315_vm2, %v13858_v5, %v4978_v10  ;;  %v5283_v23 = vmax.f32 %v5219_v53, %v5254_v60  ;;  %v5284_v55 = vmax.f32 %v12691_v28, %v5253_v50  ;;  %vm14319_vm8 = vmmov %vm14308_vm4 }
 0xa2a   :  { %v12724_v20 = vmax.f32 %v12694_v7, %v4999_v17  ;;  %v5026_v33 = vmax.f32 %v4962_v61, %v4998_v27  ;;  %v14316_v15 = vrot.slane %v12616_v41, 6  ;;  %v14318_v2 = vrot.slane %v12613_v39, 6  ;;  %vm14321_vm10 = vmmov %vm14306_vm3 }
 0xa2b   :  { %v14320_v44 = vrot.slane %v12550_v57, 1  ;;  %vm14322_vm0 = vmmov %vm14306_vm3  ;;  %v12740_v50 = vmax.f32 %v5091_v40, %v5283_v23  ;;  %v12742_v61 = vmax.f32 %v5092_v6, %v5284_v55  ;;  %vm14329_vm15 = vcmp.lt.s32.totalorder %v8386_v1, 1 }
 0xa2c   :  { %v5192_v0 = vsel %vm14317_vm12, %v5168_v26, %v14316_v15  ;;  %v5193_v11 = vsel %vm14319_vm8, %v14318_v2, %v5168_v26  ;;  %v4928_v10 = vsel %vm14322_vm0, %v4920_v54, %v4921_v59  ;;  %v13856_v60 = vrot.slane %v12724_v20, 4  ;;  %vm14324_vm1 = vmmov %vm14322_vm0 }
 0xa2d   :  { %v4927_v53 = vsel %vm14321_vm10, %v4921_v59, %v14320_v44  ;;  %v5042_v15 = vrot.slane %v5026_v33, 4  ;;  %v12745_v27 = vmax.f32 %v5152_v42, %v5193_v11  ;;  %v5217_v17 = vmax.f32 %v12616_v41, %v5192_v0  ;;  %vm14325_vm14 = vmmov %vm14311_vm6 }
 0xa2e   :  { %v14323_v2 = vrot.slane %v12546_v34, 1  ;;  %v4968_v44 = vmax.f32 %v12548_v9, %v4928_v10  ;;  %v8075_v59 = vpack.i.bf16 %v12742_v61, %v12740_v50  ;;  %vm14326_vm3 = vmmov %vm14311_vm6  ;;  %v4969_v0 = vmax.f32 %v12571_v8, %v4927_v53 }
 0xa2f   :  { %v5062_v40 = vsel %vm14325_vm14, %v5042_v15, %v5043_v49  ;;  %v5063_v42 = vsel %vm14326_vm3, %v13856_v60, %v5042_v15  ;;  %v13857_v23 = vrot.slane %v12745_v27, 4  ;;  %v5233_v55 = vrot.slane %v5217_v17, 4  ;;  %vm14327_vm5 = vmmov %vm14326_vm3 }
 0xa30   :  { %v4929_v26 = vsel %vm14324_vm1, %v14323_v2, %v4920_v54  ;;  %v5089_v41 = vmax.f32 %v12724_v20, %v5063_v42  ;;  %v5090_v6 = vmax.f32 %v5026_v33, %v5062_v40  ;;  %8076 = vrot.lane.b32.xlu0 %v8075_v59, %s8349_s18  ;;  %v4984_v11 = vrot.slane %v4968_v44, 2  ;;  %vm14328_vm4 = vmmov %vm14326_vm3 }
 0xa31   :  { %v4967_v54 = vmax.f32 %v12546_v34, %v4929_v26  ;;  %v5112_v49 = vrot.slane %v12548_v9, 7  ;;  %v5255_v10 = vsel %vm14327_vm5, %v5233_v55, %v5234_v13  ;;  %v5256_v33 = vsel %vm14328_vm4, %v13857_v23, %v5233_v55  ;;  %vm14331_vm13 = vmmov %vm14329_vm15 }
 0xa32   :  { %v5122_v15 = vsel %vm14329_vm15, %v5110_v38, %v5111_v46  ;;  %v14330_v2 = vrot.slane %v12542_v31, 7  ;;  %v5281_v53 = vmax.f32 %v5217_v17, %v5256_v33  ;;  %v5282_v40 = vmax.f32 %v12688_v62, %v5255_v10  ;;  %vm14332_vm6 = vmmov %vm14331_vm13 }
 0xa33   :  { %v4983_v42 = vrot.slane %v4967_v54, 2  ;;  %v4985_v60 = vrot.slane %v4969_v0, 2  ;;  %v5121_v13 = vsel %vm14332_vm6, %v5111_v46, %v5112_v49  ;;  %v5157_v55 = vmax.f32 %v12542_v31, %v12643_v43  ;;  %vm14334_vm9 = vmmov %vm14315_vm2 }
 0xa34   :  { %v5123_v26 = vsel %vm14331_vm13, %v14330_v2, %v5110_v38  ;;  %v5159_v5 = vmax.f32 %v12546_v34, %v5122_v15  ;;  %v12788_v45 = vmax.f32 %v5089_v41, %v5281_v53  ;;  %v12790_v38 = vmax.f32 %v5090_v6, %v5282_v40  ;;  %8086 = vrot.lane.b32.xlu0 %v8075_v59, %s8348_s0  ;;  %vm14335_vm7 = vmmov %vm14315_vm2 }
 0xa35   :  { %v5158_v23 = vmax.f32 %v12544_v4, %v5123_v26  ;;  %v14333_v62 = vrot.slane %v12591_v35, 2  ;;  %v4992_v46 = vsel %vm14335_vm7, %v4984_v11, %v4985_v60  ;;  %vm14336_vm11 = vmmov %vm14315_vm2  ;;  %v12804_v34 = vmax.f32 %v12548_v9, %v5121_v13 }
 0xa36   :  { %v4993_v31 = vsel %vm14336_vm11, %v4983_v42, %v4984_v11  ;;  %v5032_v4 = vmax.f32 %v4968_v44, %v4992_v46  ;;  %v8070_v59 = vpack.i.bf16 %v12790_v38, %v12788_v45  ;;  %v5173_v6 = vrot.slane %v5157_v55, 6  ;;  %vm14339_vm12 = vmmov %vm14319_vm8 }
 0xa37   :  { %v4991_v17 = vsel %vm14334_vm9, %v4985_v60, %v14333_v62  ;;  %v5031_v41 = vmax.f32 %v4967_v54, %v4993_v31  ;;  %v5174_v15 = vrot.slane %v5158_v23, 6  ;;  %v5175_v2 = vrot.slane %v5159_v5, 6  ;;  %vm14340_vm8 = vmmov %vm14326_vm3 }
 0xa38   :  { %v12801_v43 = vmax.f32 %v4969_v0, %v4991_v17  ;;  %v5048_v10 = vrot.slane %v5032_v4, 4  ;;  %8071 = vrot.lane.b32.xlu1 %v8070_v59, %s8349_s18  ;;  %v5176_v44 = vrot.slane %v12804_v34, 6  ;;  %v14337_v0 = vrot.slane %v12586_v12, 2  ;;  %vm14341_vm10 = vmmov %vm14339_vm12 }
 0xa39   :  { %v5047_v60 = vrot.slane %v5031_v41, 4  ;;  %v14338_v26 = vrot.slane %v12651_v22, 6  ;;  %v5186_v40 = vsel %vm14341_vm10, %v5174_v15, %v5175_v2  ;;  %vm14342_vm0 = vmmov %vm14341_vm10  ;;  %vm14349_vm4 = vcmp.lt.s32.totalorder %v8386_v1, 7 }
 0xa3a   :  { %v13860_v33 = vrot.slane %v12801_v43, 4  ;;  %v4994_v11 = vsel %vm14315_vm2, %v14337_v0, %v4983_v42  ;;  %v5187_v13 = vsel %vm14342_vm0, %v5173_v6, %v5174_v15  ;;  %vm14343_vm1 = vmmov %vm14326_vm3  ;;  %v5223_v0 = vmax.f32 %v5159_v5, %v5186_v40 }
 0xa3b   :  { %v5188_v54 = vsel %vm14339_vm12, %v14338_v26, %v5173_v6  ;;  %v5030_v62 = vmax.f32 %v12586_v12, %v4994_v11  ;;  %v5057_v42 = vsel %vm14343_vm1, %v5047_v60, %v5048_v10  ;;  %vm14344_vm14 = vmmov %vm14342_vm0  ;;  %v5222_v46 = vmax.f32 %v5158_v23, %v5187_v13 }
 0xa3c   :  { %v5056_v53 = vsel %vm14340_vm8, %v5048_v10, %v13860_v33  ;;  %v5185_v17 = vsel %vm14344_vm14, %v5175_v2, %v5176_v44  ;;  %v5095_v31 = vmax.f32 %v5031_v41, %v5057_v42  ;;  %8081 = vrot.lane.b32.xlu1 %v8070_v59, %s8348_s0  ;;  %v5221_v12 = vmax.f32 %v5157_v55, %v5188_v54  ;;  %vm14345_vm3 = vmmov %vm14343_vm1 }
 0xa3d   :  { %v5096_v22 = vmax.f32 %v5032_v4, %v5056_v53  ;;  %v12835_v26 = vmax.f32 %v12804_v34, %v5185_v17  ;;  %v5046_v33 = vrot.slane %v5030_v62, 4  ;;  %v5238_v6 = vrot.slane %v5222_v46, 4  ;;  %vm14347_vm5 = vmmov %vm14343_vm1 }
 0xa3e   :  { %v4911_v15 = vrot.slane %v12532_v21, 1  ;;  %v4912_v4 = vrot.slane %v12534_v18, 1  ;;  %v5239_v10 = vrot.slane %v5223_v0, 4  ;;  %v14346_v5 = vrot.slane %v12668_v14, 4  ;;  %vm14350_vm15 = vmmov %vm14343_vm1 }
 0xa3f   :  { %v13861_v11 = vrot.slane %v12835_v26, 4  ;;  %v5058_v23 = vsel %vm14345_vm3, %v5046_v33, %v5047_v60  ;;  %v5237_v53 = vrot.slane %v5221_v12, 4  ;;  %v14348_v55 = vrot.slane %v12536_v58, 1  ;;  %vm14351_vm13 = vmmov %vm14343_vm1 }
 0xa40   :  { %v5059_v41 = vsel %vm14347_vm5, %v14346_v5, %v5046_v33  ;;  %v5094_v59 = vmax.f32 %v5030_v62, %v5058_v23  ;;  %v5250_v60 = vsel %vm14351_vm13, %v5238_v6, %v5239_v10  ;;  %vm14352_vm6 = vmmov %vm14349_vm4  ;;  %v14354_v42 = vrot.slane %v12691_v28, 4 }
 0xa41   :  { %v5093_v2 = vmax.f32 %v12668_v14, %v5059_v41  ;;  %v4936_v54 = vsel %vm14349_vm4, %v4912_v4, %v14348_v55  ;;  %v5249_v40 = vsel %vm14350_vm15, %v5239_v10, %v13861_v11  ;;  %v4937_v14 = vsel %vm14352_vm6, %v4911_v15, %v4912_v4  ;;  %vm14353_vm9 = vmmov %vm14343_vm1 }
 0xa42   :  { %v4960_v33 = vmax.f32 %v12534_v18, %v4936_v54  ;;  %v5287_v13 = vmax.f32 %v5223_v0, %v5250_v60  ;;  %v5288_v58 = vmax.f32 %v12835_v26, %v5249_v40  ;;  %v5251_v62 = vsel %vm14353_vm9, %v5237_v53, %v5238_v6  ;;  %vm14355_vm7 = vmmov %vm14343_vm1 }
 0xa43   :  { %v5252_v17 = vsel %vm14355_vm7, %v14354_v42, %v5237_v53  ;;  %v5286_v10 = vmax.f32 %v5222_v46, %v5251_v62  ;;  %v12871_v5 = vmax.f32 %v12532_v21, %v4937_v14  ;;  %v14356_v0 = vrot.slane %v12530_v3, 7  ;;  %vm14361_vm2 = vmmov %vm14349_vm4 }
 0xa44   :  { %v5285_v23 = vmax.f32 %v5221_v12, %v5252_v17  ;;  %v4976_v41 = vrot.slane %v4960_v33, 2  ;;  %v12873_v4 = vmax.f32 %v5095_v31, %v5287_v13  ;;  %v12875_v18 = vmax.f32 %v5096_v22, %v5288_v58  ;;  %vm14366_vm10 = vmmov %vm14343_vm1 }
 0xa45   :  { %v14357_v55 = vrot.slane %v12528_v29, 7  ;;  %vm14358_vm11 = vcmp.lt.s32.totalorder %v8386_v1, 1  ;;  %v14359_v6 = vrot.slane %v12554_v51, 1  ;;  %v14360_v12 = vrot.slane %v12552_v36, 1  ;;  %vm14368_vm1 = vmmov %vm14342_vm0 }
 0xa46   :  { %v12889_v53 = vmax.f32 %v5093_v2, %v5285_v23  ;;  %v12891_v31 = vmax.f32 %v5094_v59, %v5286_v10  ;;  %v4975_v22 = vrot.slane %v12871_v5, 2  ;;  %v14362_v54 = vrot.slane %v12694_v7, 2  ;;  %vm14373_vm3 = vmmov %vm14358_vm11 }
 0xa47   :  { %v5131_v28 = vsel %vm14358_vm11, %v14357_v55, %v14356_v0  ;;  %v4925_v46 = vsel %vm14361_vm2, %v14360_v12, %v14359_v6  ;;  %vm14363_vm12 = vcmp.lt.s32.totalorder %v8386_v1, 6  ;;  %v5165_v60 = vrot.slane %v12624_v19, 6  ;;  %vm14377_vm15 = vmmov %vm14373_vm3 }
 0xa48   :  { %v5000_v40 = vsel %vm14363_vm12, %v4976_v41, %v14362_v54  ;;  %v8095_v14 = vpack.i.bf16 %v12875_v18, %v12873_v4  ;;  %v5150_v58 = vmax.f32 %v12530_v3, %v5131_v28  ;;  %v8090_v2 = vpack.i.bf16 %v12891_v31, %v12889_v53  ;;  %vm14364_vm8 = vmmov %vm14363_vm12 }
 0xa49   :  { %v5024_v13 = vmax.f32 %v4960_v33, %v5000_v40  ;;  %v5001_v59 = vsel %vm14364_vm8, %v4975_v22, %v4976_v41  ;;  %v4971_v7 = vmax.f32 %v12552_v36, %v4925_v46  ;;  %v5113_v23 = vrot.slane %v12571_v8, 7  ;;  %vm14370_vm14 = vmmov %vm14364_vm8 }
 0xa4a   :  { %8096 = vrot.lane.b32.xlu0 %v8095_v14, %s8349_s18  ;;  %v12911_v62 = vmax.f32 %v12871_v5, %v5001_v59  ;;  %v5166_v17 = vrot.slane %v5150_v58, 6  ;;  %8091 = vrot.lane.b32.xlu1 %v8090_v2, %s8349_s18  ;;  %v5114_v10 = vrot.slane %v12550_v57, 7  ;;  %v4910_v0 = vrot.slane %v12530_v3, 1  ;;  %vm14375_vm4 = vmmov %vm14364_vm8 }
 0xa4b   :  { %v5040_v42 = vrot.slane %v5024_v13, 4  ;;  %v4987_v33 = vrot.slane %v4971_v7, 2  ;;  %v14365_v55 = vrot.slane %v12724_v20, 4  ;;  %v14367_v6 = vrot.slane %v12613_v39, 6  ;;  %vm14378_vm13 = vmmov %vm14373_vm3 }
 0xa4c   :  { %v5039_v41 = vrot.slane %v12911_v62, 4  ;;  %v5195_v46 = vsel %vm14368_vm1, %v5165_v60, %v5166_v17  ;;  %v14369_v59 = vrot.slane %v12596_v37, 2  ;;  %v14372_v11 = vrot.slane %v12552_v36, 7  ;;  %vm14379_vm6 = vmmov %vm14373_vm3 }
 0xa4d   :  { %v5064_v28 = vsel %vm14366_vm10, %v5040_v42, %v14365_v55  ;;  %v5194_v12 = vsel %vm14342_vm0, %v5166_v17, %v14367_v6  ;;  %v12930_v54 = vmax.f32 %v5150_v58, %v5195_v46  ;;  %v14371_v55 = vrot.slane %v12554_v51, 7  ;;  %vm14381_vm9 = vmmov %vm14347_vm5 }
 0xa4e   :  { %v5215_v40 = vmax.f32 %v12613_v39, %v5194_v12  ;;  %v4989_v20 = vsel %vm14370_vm14, %v4987_v33, %v14369_v59  ;;  %8106 = vrot.lane.b32.xlu0 %v8095_v14, %s8348_s0  ;;  %v5065_v58 = vsel %vm14347_vm5, %v5039_v41, %v5040_v42  ;;  %v5088_v39 = vmax.f32 %v5024_v13, %v5064_v28  ;;  %vm14382_vm7 = vmmov %vm14347_vm5 }
 0xa4f   :  { %v5117_v6 = vsel %vm14373_vm3, %v14372_v11, %v14371_v55  ;;  %v14374_v17 = vrot.slane %v12591_v35, 2  ;;  %v12952_v46 = vmax.f32 %v4971_v7, %v4989_v20  ;;  %8101 = vrot.lane.b32.xlu1 %v8090_v2, %s8348_s0  ;;  %v5230_v59 = vrot.slane %v12930_v54, 4  ;;  %vm14383_vm11 = vmmov %vm14361_vm2 }
 0xa50   :  { %v5231_v11 = vrot.slane %v5215_v40, 4  ;;  %v14376_v55 = vrot.slane %v12552_v36, 7  ;;  %v5087_v42 = vmax.f32 %v12911_v62, %v5065_v58  ;;  %v5119_v7 = vsel %vm14378_vm13, %v5113_v23, %v5114_v10  ;;  %vm14385_vm2 = vmmov %vm14347_vm5 }
 0xa51   :  { %v4990_v12 = vsel %vm14375_vm4, %v14374_v17, %v4987_v33  ;;  %v5051_v28 = vrot.slane %v12952_v46, 4  ;;  %v5120_v2 = vsel %vm14379_vm6, %v5112_v49, %v5113_v23  ;;  %v4938_v49 = vsel %vm14383_vm11, %v4910_v0, %v4911_v15  ;;  %vm14387_vm12 = vmmov %vm14383_vm11 }
 0xa52   :  { %v12957_v14 = vmax.f32 %v12591_v35, %v4990_v12  ;;  %v5118_v13 = vsel %vm14377_vm15, %v5114_v10, %v14376_v55  ;;  %v14380_v35 = vrot.slane %v12745_v27, 4  ;;  %v5258_v20 = vsel %vm14382_vm7, %v5230_v59, %v5231_v11  ;;  %vm14388_vm8 = vmmov %vm14385_vm2 }
 0xa53   :  { %v5161_v17 = vmax.f32 %v12571_v8, %v5120_v2  ;;  %v5279_v10 = vmax.f32 %v5215_v40, %v5258_v20  ;;  %v5162_v12 = vmax.f32 %v12550_v57, %v5119_v7  ;;  %v14384_v23 = vrot.slane %v12801_v43, 4  ;;  %vm14389_vm10 = vmmov %vm14342_vm0 }
 0xa54   :  { %v5257_v33 = vsel %vm14381_vm9, %v5231_v11, %v14380_v35  ;;  %v5050_v58 = vrot.slane %v12957_v14, 4  ;;  %v5163_v11 = vmax.f32 %v12552_v36, %v5118_v13  ;;  %v14386_v8 = vrot.slane %v12528_v29, 1  ;;  %vm14390_vm1 = vmmov %vm14375_vm4 }
 0xa55   :  { %v5280_v9 = vmax.f32 %v12745_v27, %v5257_v33  ;;  %v5177_v35 = vrot.slane %v5161_v17, 6  ;;  %v12996_v40 = vmax.f32 %v5087_v42, %v5279_v10  ;;  %v5178_v7 = vrot.slane %v5162_v12, 6  ;;  %vm14391_vm14 = vmmov %vm14390_vm1 }
 0xa56   :  { %v5055_v55 = vsel %vm14385_vm2, %v14384_v23, %v5050_v58  ;;  %v4939_v27 = vsel %vm14387_vm12, %v14386_v8, %v4910_v0  ;;  %v5054_v21 = vsel %vm14388_vm8, %v5050_v58, %v5051_v28  ;;  %v4958_v0 = vmax.f32 %v12530_v3, %v4938_v49  ;;  %vm14393_vm3 = vmmov %vm14390_vm1 }
 0xa57   :  { %v12998_v57 = vmax.f32 %v5088_v39, %v5280_v9  ;;  %v5097_v15 = vmax.f32 %v12801_v43, %v5055_v55  ;;  %v5184_v36 = vsel %vm14389_vm10, %v5176_v44, %v5177_v35  ;;  %v4957_v13 = vmax.f32 %v12528_v29, %v4939_v27  ;;  %vm14394_vm5 = vmmov %vm14342_vm0 }
 0xa58   :  { %v5225_v42 = vmax.f32 %v5161_v17, %v5184_v36  ;;  %v5164_v2 = vmax.f32 %v12554_v51, %v5117_v6  ;;  %v5183_v33 = vsel %vm14342_vm0, %v5177_v35, %v5178_v7  ;;  %v4974_v20 = vrot.slane %v4958_v0, 2  ;;  %vm14396_vm4 = vmmov %vm14385_vm2 }
 0xa59   :  { %v8115_v39 = vpack.i.bf16 %v12998_v57, %v12996_v40  ;;  %v4973_v43 = vrot.slane %v4957_v13, 2  ;;  %v5179_v58 = vrot.slane %v5163_v11, 6  ;;  %v5098_v29 = vmax.f32 %v12957_v14, %v5054_v21  ;;  %vm14397_vm15 = vmmov %vm14342_vm0 }
 0xa5a   :  { %v5226_v34 = vmax.f32 %v5162_v12, %v5183_v33  ;;  %v5241_v3 = vrot.slane %v5225_v42, 4  ;;  %v5180_v44 = vrot.slane %v5164_v2, 6  ;;  %v5002_v51 = vsel %vm14390_vm1, %v4974_v20, %v4975_v22  ;;  %vm14398_vm13 = vmmov %vm14342_vm0 }
 0xa5b   :  { %8116 = vrot.lane.b32.xlu0 %v8115_v39, %s8348_s0  ;;  %8111 = vrot.lane.b32.xlu1 %v8115_v39, %s8349_s18  ;;  %v5003_v6 = vsel %vm14391_vm14, %v4973_v43, %v4974_v20  ;;  %v14392_v17 = vrot.slane %v12596_v37, 2  ;;  %v5182_v9 = vsel %vm14394_vm5, %v5178_v7, %v5179_v58  ;;  %v14395_v12 = vrot.slane %v12835_v26, 4  ;;  %vm14400_vm9 = vmmov %vm14385_vm2 }
 0xa5c   :  { %v5242_v14 = vrot.slane %v5226_v34, 4  ;;  %v5021_v49 = vmax.f32 %v4957_v13, %v5003_v6  ;;  %v5022_v23 = vmax.f32 %v4958_v0, %v5002_v51  ;;  %v5181_v55 = vsel %vm14397_vm15, %v5179_v58, %v5180_v44  ;;  %vm14402_vm11 = vmmov %vm14385_vm2 }
 0xa5d   :  { %v5004_v10 = vsel %vm14393_vm3, %v14392_v17, %v4973_v43  ;;  %v5248_v5 = vsel %vm14396_vm4, %v14395_v12, %v5241_v3  ;;  %v5196_v35 = vsel %vm14398_vm13, %v5180_v44, %v5165_v60  ;;  %vm14399_vm6 = vcmp.lt.s32.totalorder %v14075_v25, 126  ;;  %vm14403_vm12 = vmmov %vm14385_vm2 }
 0xa5e   :  { %v5289_v22 = vmax.f32 %v5225_v42, %v5248_v5  ;;  %v5020_v8 = vsel %vm14399_vm6, %v5004_v10, 0.0  ;;  %v5247_v26 = vsel %vm14400_vm9, %v5241_v3, %v5242_v14  ;;  %v5037_v27 = vrot.slane %v5021_v49, 4  ;;  %vm14404_vm8 = vmmov %vm14385_vm2 }
 0xa5f   :  { %v5038_v21 = vrot.slane %v5022_v23, 4  ;;  %vm14401_vm7 = vcmp.ge.s32.totalorder %v8386_v1, 2  ;;  %v5290_v36 = vmax.f32 %v5226_v34, %v5247_v26  ;;  %v5228_v39 = vmax.f32 %v5164_v2, %v5181_v55  ;;  %vm14405_vm10 = vmmov %vm14385_vm2 }
 0xa60   :  { %v5197_v7 = vsel %vm14401_vm7, %v5196_v35, 0.0  ;;  %v13047_v13 = vmax.f32 %v5097_v15, %v5289_v22  ;;  %v5036_v33 = vmax.f32 %v12596_v37, %v5020_v8  ;;  %v5227_v43 = vmax.f32 %v5163_v11, %v5182_v9  ;;  %vm14406_vm0 = vmmov %vm14385_vm2 }
 0xa61   :  { %v5213_v0 = vmax.f32 %v12624_v19, %v5197_v7  ;;  %v5066_v60 = vsel %vm14402_vm11, %v5038_v21, %v5039_v41  ;;  %v5067_v42 = vsel %vm14385_vm2, %v5037_v27, %v5038_v21  ;;  %v13057_v20 = vmax.f32 %v5098_v29, %v5290_v36  ;;  %vm14409_vm3 = vmmov %vm14406_vm0 }
 0xa62   :  { %v5244_v34 = vrot.slane %v5228_v39, 4  ;;  %v5052_v15 = vrot.slane %v5036_v33, 4  ;;  %v5243_v3 = vrot.slane %v5227_v43, 4  ;;  %v5085_v2 = vmax.f32 %v5021_v49, %v5067_v42  ;;  %vm14410_vm5 = vmmov %vm14406_vm0 }
 0xa63   :  { %v5229_v58 = vrot.slane %v5213_v0, 4  ;;  %v8120_v19 = vpack.i.bf16 %v13057_v20, %v13047_v13  ;;  %v5086_v62 = vmax.f32 %v5022_v23, %v5066_v60  ;;  %vm14407_vm1 = vcmp.ge.s32.totalorder %v8386_v1, 4 }
 0xa64   :  { %v5053_v29 = vsel %vm14405_vm10, %v5051_v28, %v5052_v15  ;;  %v5068_v44 = vsel %vm14406_vm0, %v5052_v15, %v5037_v27  ;;  %vm14408_vm14 = vcmp.lt.s32.totalorder %v14075_v25, 124  ;;  %v5246_v9 = vsel %vm14410_vm5, %v5242_v14, %v5243_v3 }
 0xa65   :  { %v5259_v41 = vsel %vm14403_vm12, %v5229_v58, %v5230_v59  ;;  %v5260_v37 = vsel %vm14404_vm8, %v5244_v34, %v5229_v58  ;;  %8121 = vrot.lane.b32.xlu1 %v8120_v19, %s8349_s18  ;;  %v5084_v59 = vsel %vm14408_vm14, %v5068_v44, 0.0  ;;  %v5099_v6 = vmax.f32 %v12952_v46, %v5053_v29 }
 0xa66   :  { %v5278_v11 = vmax.f32 %v12930_v54, %v5259_v41  ;;  %v5261_v51 = vsel %vm14407_vm1, %v5260_v37, 0.0  ;;  %v5245_v54 = vsel %vm14409_vm3, %v5243_v3, %v5244_v34  ;;  %v5100_v28 = vmax.f32 %v5036_v33, %v5084_v59 }
 0xa67   :  { %v5277_v17 = vmax.f32 %v5213_v0, %v5261_v51  ;;  %v5291_v5 = vmax.f32 %v5227_v43, %v5246_v9  ;;  %v5292_v49 = vmax.f32 %v5228_v39, %v5245_v54  ;;  %vm14411_vm4 = vcmp.lt.s32.totalorder %v8947_v16, 127 }
 0xa68   :  { %v13082_v10 = vmax.f32 %v5086_v62, %v5278_v11  ;;  %vm14412_vm15 = vmmov %vm14411_vm4  ;;  %vm14413_vm13 = vcmp.ge.s32.totalorder %v8947_v16, 1 }
 0xa69   :  { %v13086_v12 = vmax.f32 %v5085_v2, %v5277_v17  ;;  %v13090_v22 = vmax.f32 %v5099_v6, %v5291_v5  ;;  %v13092_v46 = vmax.f32 %v5100_v28, %v5292_v49  ;;  %vm14414_vm6 = vmmov %vm14413_vm13 }
 0xa6a   :  { %vm14415_vm9 = vmmov %vm14411_vm4 }
 0xa6b   :  { %v8125_v23 = vpack.i.bf16 %v13082_v10, %v13086_v12  ;;  %v8140_v55 = vpack.i.bf16 %v13092_v46, %v13090_v22  ;;  %vm14416_vm7 = vmmov %vm14411_vm4 }
 0xa6c   :  { %vm14417_vm11 = vmmov %vm14414_vm6 }
 0xa6d   :  { %8126 = vrot.lane.b32.xlu0 %v8125_v23, %s8349_s18  ;;  %8131 = vrot.lane.b32.xlu1 %v8125_v23, %s8348_s0  ;;  %vm14418_vm2 = vmmov %vm14414_vm6 }
 0xa6e   :  { %vm14419_vm12 = vmmov %vm14411_vm4 }
 0xa6f   :  { %vm14420_vm8 = vmmov %vm14411_vm4 }
 0xa70   :  { %vm14421_vm10 = vmmov %vm14411_vm4 }
 0xa71   :  { %8141 = vrot.lane.b32.xlu0 %v8140_v55, %s8349_s18  ;;  %8136 = vrot.lane.b32.xlu1 %v8120_v19, %s8348_s0  ;;  %vm14422_vm0 = vmmov %vm14411_vm4 }
 0xa72   :  { %vm14423_vm1 = vmmov %vm14418_vm2 }
 0xa73   :  { %vm14424_vm14 = vmmov %vm14423_vm1 }
 0xa74   :  { %vm14425_vm3 = vmmov %vm14423_vm1 }
 0xa75   :  { %8146 = vrot.lane.b32.xlu0 %v8140_v55, %s8348_s0  ;;  %vm14426_vm5 = vmmov %vm14423_vm1  ;;  %s6046_s0 = sshll.u32 %s8354_s1, 4  ;;  %s6047_s0 = int_to_ptr.vmem [resolvable:$true] %s6046_s0 }
 0xa76   :  { %s8310_s18 = scalar_lea.vmem %s6047_s0, 4096  ;;  %p8315_p10 = scmp.lt.s32.totalorder %s6047_s0, %s6047_s0 }
 0xa77   :  { %p8311_p9 = scmp.ne.s32.totalorder %s6047_s0, %s8310_s18  ;;  %p8316_p11 = scmp.lt.s32.totalorder %s8310_s18, %s8310_s18 }
 0xa79   :  { %p8317_p12 = por %p8316_p11, %p8315_p10 }
 0xa7b   :  { %p8318_p13 = pnand %p8317_p12, %p8311_p9 }
 0xaa2   :  { %v8077_v14 = vpop.permute.xlu0 %8076 }
 0xaa3   :  { %v8079_v35 = vunpack.i.h.bf16 %v8077_v14  ;;  %v8078_v8 = vunpack.i.l.bf16 %v8077_v14 }
 0xaa5   :  { %v5348_v26 = vsel %vm14411_vm4, %v8079_v35, 0.0  ;;  %v5347_v27 = vsel %vm14412_vm15, %v8078_v8, 0.0  ;;  %vm14427_vm4 = vmmov %vm14423_vm1 }
 0xaa6   :  { %v13106_v21 = vmax.f32 %v12742_v61, %v5348_v26  ;;  %v13109_v7 = vmax.f32 %v12740_v50, %v5347_v27  ;;  %v8087_v36 = vpop.permute.xlu0 %8086  ;;  %vm14428_vm15 = vmmov %vm14423_vm1 }
 0xaa7   :  { %v8089_v0 = vunpack.i.h.bf16 %v8087_v36  ;;  %v8088_v39 = vunpack.i.l.bf16 %v8087_v36 }
 0xaa8   :  { %v8155_v60 = vpack.i.bf16 %v13106_v21, %v13109_v7 }
 0xaa9   :  { %v5540_v42 = vsel %vm14413_vm13, %v8089_v0, 0.0  ;;  %v5539_v33 = vsel %vm14414_vm6, %v8088_v39, 0.0  ;;  %vm14429_vm13 = vmmov %vm14422_vm0 }
 0xaaa   :  { %v8072_v43 = vpop.permute.xlu1 %8071  ;;  %v13118_v58 = vmax.f32 %v12742_v61, %v5540_v42  ;;  %v13121_v34 = vmax.f32 %v12740_v50, %v5539_v33  ;;  %8156 = vrot.lane.b32.xlu0 %v8155_v60, %s8350_s19  ;;  %vm14430_vm6 = vmmov %vm14422_vm0 }
 0xaab   :  { %v8074_v15 = vunpack.i.h.bf16 %v8072_v43  ;;  %v8073_v3 = vunpack.i.l.bf16 %v8072_v43 }
 0xaac   :  { %v8165_v19 = vpack.i.bf16 %v13118_v58, %v13121_v34 }
 0xaad   :  { %v5346_v2 = vsel %vm14415_vm9, %v8074_v15, 0.0  ;;  %v5345_v62 = vsel %vm14416_vm7, %v8073_v3, 0.0  ;;  %vm14431_vm9 = vmmov %vm14422_vm0 }
 0xaae   :  { %v13131_v41 = vmax.f32 %v12790_v38, %v5346_v2  ;;  %v13134_v61 = vmax.f32 %v12788_v45, %v5345_v62  ;;  %v8082_v50 = vpop.permute.xlu1 %8081  ;;  %8166 = vrot.lane.b32.xlu0 %v8165_v19, %s8351_s20  ;;  %vm14432_vm7 = vmmov %vm14422_vm0 }
 0xaaf   :  { %v8084_v37 = vunpack.i.h.bf16 %v8082_v50  ;;  %v8083_v11 = vunpack.i.l.bf16 %v8082_v50 }
 0xab0   :  { %v8150_v29 = vpack.i.bf16 %v13131_v41, %v13134_v61 }
 0xab1   :  { %v5538_v44 = vsel %vm14417_vm11, %v8084_v37, 0.0  ;;  %v5537_v51 = vsel %vm14418_vm2, %v8083_v11, 0.0  ;;  %vm14433_vm11 = vmmov %vm14422_vm0 }
 0xab2   :  { %v13144_v59 = vmax.f32 %v12790_v38, %v5538_v44  ;;  %v13147_v6 = vmax.f32 %v12788_v45, %v5537_v51  ;;  %8151 = vrot.lane.b32.xlu1 %v8150_v29, %s8350_s19  ;;  %vm14434_vm2 = vmmov %vm14422_vm0 }
 0xab4   :  { %v8160_v54 = vpack.i.bf16 %v13144_v59, %v13147_v6 }
 0xab6   :  { %8161 = vrot.lane.b32.xlu1 %v8160_v54, %s8351_s20 }
 0xabc   :  { %v8097_v17 = vpop.permute.xlu0 %8096  ;;  %v8092_v5 = vpop.permute.xlu1 %8091 }
 0xabd   :  { %v8099_v28 = vunpack.i.h.bf16 %v8097_v17  ;;  %v8098_v9 = vunpack.i.l.bf16 %v8097_v17  ;;  %v8094_v49 = vunpack.i.h.bf16 %v8092_v5  ;;  %v8093_v23 = vunpack.i.l.bf16 %v8092_v5 }
 0xabf   :  { %v5352_v38 = vsel %vm14419_vm12, %v8099_v28, 0.0  ;;  %v5351_v45 = vsel %vm14420_vm8, %v8098_v9, 0.0  ;;  %v5350_v35 = vsel %vm14421_vm10, %v8094_v49, 0.0  ;;  %v5349_v8 = vsel %vm14422_vm0, %v8093_v23, 0.0  ;;  %vm14435_vm12 = vmmov %vm14423_vm1 }
 0xac0   :  { %v13158_v55 = vmax.f32 %v12875_v18, %v5352_v38  ;;  %v13161_v14 = vmax.f32 %v12873_v4, %v5351_v45  ;;  %v8107_v26 = vpop.permute.xlu0 %8106  ;;  %v13168_v27 = vmax.f32 %v12891_v31, %v5350_v35  ;;  %v13171_v36 = vmax.f32 %v12889_v53, %v5349_v8  ;;  %vm14436_vm8 = vmmov %vm14423_vm1 }
 0xac1   :  { %v8109_v0 = vunpack.i.h.bf16 %v8107_v26  ;;  %v8108_v39 = vunpack.i.l.bf16 %v8107_v26  ;;  %v8102_v60 = vpop.permute.xlu1 %8101  ;;  %vm14437_vm10 = vmmov %vm14422_vm0 }
 0xac2   :  { %v8175_v42 = vpack.i.bf16 %v13158_v55, %v13161_v14  ;;  %v8104_v33 = vunpack.i.h.bf16 %v8102_v60  ;;  %v8103_v43 = vunpack.i.l.bf16 %v8102_v60  ;;  %v8170_v15 = vpack.i.bf16 %v13168_v27, %v13171_v36 }
 0xac3   :  { %v5544_v3 = vsel %vm14423_vm1, %v8109_v0, 0.0  ;;  %v5543_v19 = vsel %vm14424_vm14, %v8108_v39, 0.0  ;;  %vm14438_vm14 = vmmov %vm14423_vm1 }
 0xac4   :  { %v13182_v2 = vmax.f32 %v12875_v18, %v5544_v3  ;;  %v13185_v62 = vmax.f32 %v12873_v4, %v5543_v19  ;;  %v5542_v50 = vsel %vm14425_vm3, %v8104_v33, 0.0  ;;  %v5541_v37 = vsel %vm14426_vm5, %v8103_v43, 0.0  ;;  %8176 = vrot.lane.b32.xlu0 %v8175_v42, %s8350_s19  ;;  %8171 = vrot.lane.b32.xlu1 %v8170_v15, %s8350_s19  ;;  %vm14439_vm3 = vmmov %vm14423_vm1 }
 0xac5   :  { %v13193_v11 = vmax.f32 %v12891_v31, %v5542_v50  ;;  %v13196_v29 = vmax.f32 %v12889_v53, %v5541_v37  ;;  %vm14440_vm5 = vmmov %vm14423_vm1 }
 0xac6   :  { %v8185_v4 = vpack.i.bf16 %v13182_v2, %v13185_v62 }
 0xac7   :  { %v8180_v18 = vpack.i.bf16 %v13193_v11, %v13196_v29 }
 0xac8   :  { %8186 = vrot.lane.b32.xlu0 %v8185_v4, %s8351_s20 }
 0xac9   :  { %8181 = vrot.lane.b32.xlu1 %v8180_v18, %s8351_s20 }
 0xacd   :  { %v8117_v44 = vpop.permute.xlu0 %8116  ;;  %v8112_v51 = vpop.permute.xlu1 %8111 }
 0xace   :  { %v8119_v54 = vunpack.i.h.bf16 %v8117_v44  ;;  %v8118_v31 = vunpack.i.l.bf16 %v8117_v44  ;;  %v8114_v17 = vunpack.i.h.bf16 %v8112_v51  ;;  %v8113_v28 = vunpack.i.l.bf16 %v8112_v51 }
 0xad0   :  { %v5536_v53 = vsel %vm14427_vm4, %v8119_v54, 0.0  ;;  %v5535_v9 = vsel %vm14428_vm15, %v8118_v31, 0.0  ;;  %v5344_v5 = vsel %vm14429_vm13, %v8114_v17, 0.0  ;;  %v5343_v49 = vsel %vm14430_vm6, %v8113_v28, 0.0 }
 0xad1   :  { %v13214_v23 = vmax.f32 %v12998_v57, %v5344_v5  ;;  %v13217_v38 = vmax.f32 %v12996_v40, %v5343_v49  ;;  %v13220_v45 = vmax.f32 %v12998_v57, %v5536_v53  ;;  %v13223_v35 = vmax.f32 %v12996_v40, %v5535_v9 }
 0xad2   :  { %vm14441_vm4 = vcmp.lt.s32.totalorder %v8947_v16, 126  ;;  %vm14443_vm13 = vcmp.ge.s32.totalorder %v8947_v16, 2 }
 0xad3   :  { %v8190_v8 = vpack.i.bf16 %v13214_v23, %v13217_v38  ;;  %v8195_v26 = vpack.i.bf16 %v13220_v45, %v13223_v35  ;;  %vm14442_vm15 = vmmov %vm14441_vm4 }
 0xad4   :  { %vm14444_vm6 = vmmov %vm14443_vm13 }
 0xad5   :  { %8191 = vrot.lane.b32.xlu0 %v8190_v8, %s8350_s19 }
 0xad7   :  { %v8122_v0 = vpop.permute.xlu1 %8121 }
 0xad8   :  { %v8124_v39 = vunpack.i.h.bf16 %v8122_v0  ;;  %v8123_v60 = vunpack.i.l.bf16 %v8122_v0 }
 0xad9   :  { %8196 = vrot.lane.b32.xlu0 %v8195_v26, %s8351_s20 }
 0xada   :  { %v5354_v57 = vsel %vm14431_vm9, %v8124_v39, 0.0  ;;  %v5353_v40 = vsel %vm14432_vm7, %v8123_v60, 0.0  ;;  %vm14445_vm9 = vmmov %vm14441_vm4 }
 0xadb   :  { %v13236_v42 = vmax.f32 %v13057_v20, %v5354_v57  ;;  %v13239_v33 = vmax.f32 %v13047_v13, %v5353_v40  ;;  %vm14446_vm7 = vmmov %vm14441_vm4 }
 0xadd   :  { %v8200_v43 = vpack.i.bf16 %v13236_v42, %v13239_v33 }
 0xadf   :  { %v8127_v15 = vpop.permute.xlu0 %8126  ;;  %v8132_v3 = vpop.permute.xlu1 %8131  ;;  %8201 = vrot.lane.b32.xlu1 %v8200_v43, %s8350_s19 }
 0xae0   :  { %v8129_v19 = vunpack.i.h.bf16 %v8127_v15  ;;  %v8128_v50 = vunpack.i.l.bf16 %v8127_v15  ;;  %v8134_v37 = vunpack.i.h.bf16 %v8132_v3  ;;  %v8133_v4 = vunpack.i.l.bf16 %v8132_v3 }
 0xae2   :  { %v5342_v18 = vsel %vm14433_vm11, %v8129_v19, 0.0  ;;  %v5341_v44 = vsel %vm14434_vm2, %v8128_v50, 0.0  ;;  %v5534_v51 = vsel %vm14435_vm12, %v8134_v37, 0.0  ;;  %v5533_v54 = vsel %vm14436_vm8, %v8133_v4, 0.0  ;;  %vm14447_vm11 = vmmov %vm14444_vm6 }
 0xae3   :  { %v13253_v31 = vmax.f32 %v13082_v10, %v5342_v18  ;;  %v13256_v17 = vmax.f32 %v13086_v12, %v5341_v44  ;;  %v8142_v28 = vpop.permute.xlu0 %8141  ;;  %v8137_v53 = vpop.permute.xlu1 %8136  ;;  %v13261_v0 = vmax.f32 %v13082_v10, %v5534_v51  ;;  %v13264_v39 = vmax.f32 %v13086_v12, %v5533_v54  ;;  %vm14448_vm2 = vmmov %vm14444_vm6 }
 0xae4   :  { %v8144_v9 = vunpack.i.h.bf16 %v8142_v28  ;;  %v8143_v5 = vunpack.i.l.bf16 %v8142_v28  ;;  %v8139_v49 = vunpack.i.h.bf16 %v8137_v53  ;;  %v8138_v8 = vunpack.i.l.bf16 %v8137_v53  ;;  %vm14449_vm12 = vmmov %vm14441_vm4 }
 0xae5   :  { %v8205_v26 = vpack.i.bf16 %v13253_v31, %v13256_v17  ;;  %v8210_v50 = vpack.i.bf16 %v13261_v0, %v13264_v39  ;;  %vm14450_vm8 = vmmov %vm14441_vm4 }
 0xae6   :  { %v5356_v60 = vsel %vm14437_vm10, %v8144_v9, 0.0  ;;  %v5355_v57 = vsel %vm14422_vm0, %v8143_v5, 0.0  ;;  %v5546_v40 = vsel %vm14423_vm1, %v8139_v49, 0.0  ;;  %v5545_v43 = vsel %vm14438_vm14, %v8138_v8, 0.0  ;;  %vm14451_vm10 = vmmov %vm14441_vm4 }
 0xae7   :  { %v13275_v15 = vmax.f32 %v13092_v46, %v5356_v60  ;;  %v13278_v10 = vmax.f32 %v13090_v22, %v5355_v57  ;;  %v8147_v12 = vpop.permute.xlu0 %8146  ;;  %8206 = vrot.lane.b32.xlu1 %v8205_v26, %s8350_s19  ;;  %v13286_v4 = vmax.f32 %v13057_v20, %v5546_v40  ;;  %v13289_v18 = vmax.f32 %v13047_v13, %v5545_v43  ;;  %vm14452_vm0 = vmmov %vm14441_vm4 }
 0xae8   :  { %v8149_v3 = vunpack.i.h.bf16 %v8147_v12  ;;  %v8148_v19 = vunpack.i.l.bf16 %v8147_v12  ;;  %vm14453_vm1 = vmmov %vm14448_vm2 }
 0xae9   :  { %v8220_v37 = vpack.i.bf16 %v13275_v15, %v13278_v10  ;;  %v8215_v13 = vpack.i.bf16 %v13286_v4, %v13289_v18  ;;  %vm14454_vm14 = vmmov %vm14453_vm1 }
 0xaea   :  { %v5548_v44 = vsel %vm14439_vm3, %v8149_v3, 0.0  ;;  %v5547_v51 = vsel %vm14440_vm5, %v8148_v19, 0.0  ;;  %vm14455_vm3 = vmmov %vm14453_vm1 }
 0xaeb   :  { %v13296_v54 = vmax.f32 %v13092_v46, %v5548_v44  ;;  %v13299_v28 = vmax.f32 %v13090_v22, %v5547_v51  ;;  %8221 = vrot.lane.b32.xlu0 %v8220_v37, %s8350_s19  ;;  %8211 = vrot.lane.b32.xlu1 %v8210_v50, %s8351_s20  ;;  %vm14456_vm5 = vmmov %vm14453_vm1 }
 0xaed   :  { %v8225_v20 = vpack.i.bf16 %v13296_v54, %v13299_v28 }
 0xaef   :  { %8226 = vrot.lane.b32.xlu0 %v8225_v20, %s8351_s20  ;;  %8216 = vrot.lane.b32.xlu1 %v8215_v13, %s8351_s20 }
 0xb1c   :  { %v8157_v53 = vpop.permute.xlu0 %8156 }
 0xb1d   :  { %v8159_v46 = vunpack.i.h.bf16 %v8157_v53  ;;  %v8158_v9 = vunpack.i.l.bf16 %v8157_v53 }
 0xb1f   :  { %v5412_v22 = vsel %vm14441_vm4, %v8159_v46, 0.0  ;;  %v5411_v5 = vsel %vm14442_vm15, %v8158_v9, 0.0  ;;  %vm14457_vm4 = vmmov %vm14452_vm0 }
 0xb20   :  { %v13314_v49 = vmax.f32 %v13106_v21, %v5412_v22  ;;  %v13317_v8 = vmax.f32 %v13109_v7, %v5411_v5  ;;  %v8167_v26 = vpop.permute.xlu0 %8166  ;;  %vm14458_vm15 = vmmov %vm14452_vm0 }
 0xb21   :  { %v8169_v60 = vunpack.i.h.bf16 %v8167_v26  ;;  %v8168_v57 = vunpack.i.l.bf16 %v8167_v26 }
 0xb22   :  { %v8235_v40 = vpack.i.bf16 %v13314_v49, %v13317_v8 }
 0xb23   :  { %v5604_v43 = vsel %vm14443_vm13, %v8169_v60, 0.0  ;;  %v5603_v12 = vsel %vm14444_vm6, %v8168_v57, 0.0  ;;  %vm14459_vm13 = vmmov %vm14453_vm1 }
 0xb24   :  { %v8152_v3 = vpop.permute.xlu1 %8151  ;;  %v13326_v19 = vmax.f32 %v13118_v58, %v5604_v43  ;;  %v13329_v21 = vmax.f32 %v13121_v34, %v5603_v12  ;;  %8236 = vrot.lane.b32.xlu0 %v8235_v40, %s8352_s21  ;;  %vm14460_vm6 = vmmov %vm14453_vm1 }
 0xb25   :  { %v8154_v7 = vunpack.i.h.bf16 %v8152_v3  ;;  %v8153_v50 = vunpack.i.l.bf16 %v8152_v3 }
 0xb26   :  { %v8245_v37 = vpack.i.bf16 %v13326_v19, %v13329_v21 }
 0xb27   :  { %v5410_v44 = vsel %vm14445_vm9, %v8154_v7, 0.0  ;;  %v5409_v51 = vsel %vm14446_vm7, %v8153_v50, 0.0  ;;  %vm14461_vm9 = vmmov %vm14452_vm0 }
 0xb28   :  { %v13339_v13 = vmax.f32 %v13131_v41, %v5410_v44  ;;  %v13342_v58 = vmax.f32 %v13134_v61, %v5409_v51  ;;  %v8162_v34 = vpop.permute.xlu1 %8161  ;;  %8246 = vrot.lane.b32.xlu0 %v8245_v37, %s8353_s22  ;;  %vm14462_vm7 = vmmov %vm14452_vm0 }
 0xb29   :  { %v8164_v20 = vunpack.i.h.bf16 %v8162_v34  ;;  %v8163_v53 = vunpack.i.l.bf16 %v8162_v34 }
 0xb2a   :  { %v8230_v46 = vpack.i.bf16 %v13339_v13, %v13342_v58 }
 0xb2b   :  { %v5602_v9 = vsel %vm14447_vm11, %v8164_v20, 0.0  ;;  %v5601_v22 = vsel %vm14448_vm2, %v8163_v53, 0.0  ;;  %vm14463_vm11 = vmmov %vm14452_vm0 }
 0xb2c   :  { %v13352_v41 = vmax.f32 %v13144_v59, %v5602_v9  ;;  %v13355_v61 = vmax.f32 %v13147_v6, %v5601_v22  ;;  %8231 = vrot.lane.b32.xlu1 %v8230_v46, %s8352_s21  ;;  %vm14464_vm2 = vmmov %vm14452_vm0 }
 0xb2e   :  { %v8240_v5 = vpack.i.bf16 %v13352_v41, %v13355_v61 }
 0xb30   :  { %8241 = vrot.lane.b32.xlu1 %v8240_v5, %s8353_s22 }
 0xb36   :  { %v8177_v26 = vpop.permute.xlu0 %8176  ;;  %v8172_v60 = vpop.permute.xlu1 %8171 }
 0xb37   :  { %v8179_v57 = vunpack.i.h.bf16 %v8177_v26  ;;  %v8178_v40 = vunpack.i.l.bf16 %v8177_v26  ;;  %v8174_v43 = vunpack.i.h.bf16 %v8172_v60  ;;  %v8173_v12 = vunpack.i.l.bf16 %v8172_v60 }
 0xb39   :  { %v5416_v59 = vsel %vm14449_vm12, %v8179_v57, 0.0  ;;  %v5415_v6 = vsel %vm14450_vm8, %v8178_v40, 0.0  ;;  %v5414_v3 = vsel %vm14451_vm10, %v8174_v43, 0.0  ;;  %v5413_v7 = vsel %vm14452_vm0, %v8173_v12, 0.0  ;;  %vm14465_vm12 = vmmov %vm14452_vm0 }
 0xb3a   :  { %v13370_v50 = vmax.f32 %v13158_v55, %v5416_v59  ;;  %v13373_v37 = vmax.f32 %v13161_v14, %v5415_v6  ;;  %v8187_v44 = vpop.permute.xlu0 %8186  ;;  %v13376_v51 = vmax.f32 %v13168_v27, %v5414_v3  ;;  %v13379_v34 = vmax.f32 %v13171_v36, %v5413_v7  ;;  %vm14466_vm8 = vmmov %vm14452_vm0 }
 0xb3b   :  { %v8182_v20 = vpop.permute.xlu1 %8181  ;;  %v8189_v53 = vunpack.i.h.bf16 %v8187_v44  ;;  %v8188_v46 = vunpack.i.l.bf16 %v8187_v44  ;;  %vm14467_vm10 = vmmov %vm14453_vm1 }
 0xb3c   :  { %v8255_v9 = vpack.i.bf16 %v13370_v50, %v13373_v37  ;;  %v8184_v22 = vunpack.i.h.bf16 %v8182_v20  ;;  %v8183_v5 = vunpack.i.l.bf16 %v8182_v20  ;;  %v8250_v55 = vpack.i.bf16 %v13376_v51, %v13379_v34  ;;  %vm14468_vm0 = vmmov %vm14453_vm1 }
 0xb3d   :  { %v5608_v14 = vsel %vm14453_vm1, %v8189_v53, 0.0  ;;  %v5607_v27 = vsel %vm14454_vm14, %v8188_v46, 0.0  ;;  %vm14469_vm1 = vmmov %vm14468_vm0 }
 0xb3e   :  { %v5606_v36 = vsel %vm14455_vm3, %v8184_v22, 0.0  ;;  %v5605_v26 = vsel %vm14456_vm5, %v8183_v5, 0.0  ;;  %v13394_v60 = vmax.f32 %v13182_v2, %v5608_v14  ;;  %v13397_v57 = vmax.f32 %v13185_v62, %v5607_v27  ;;  %8256 = vrot.lane.b32.xlu0 %v8255_v9, %s8352_s21  ;;  %8251 = vrot.lane.b32.xlu1 %v8250_v55, %s8352_s21  ;;  %vm14470_vm14 = vmmov %vm14468_vm0 }
 0xb3f   :  { %v13401_v40 = vmax.f32 %v13193_v11, %v5606_v36  ;;  %v13404_v43 = vmax.f32 %v13196_v29, %v5605_v26  ;;  %vm14471_vm3 = vmmov %vm14468_vm0 }
 0xb40   :  { %v8265_v12 = vpack.i.bf16 %v13394_v60, %v13397_v57  ;;  %vm14472_vm5 = vmmov %vm14468_vm0 }
 0xb41   :  { %v8260_v2 = vpack.i.bf16 %v13401_v40, %v13404_v43 }
 0xb42   :  { %8266 = vrot.lane.b32.xlu0 %v8265_v12, %s8353_s22 }
 0xb43   :  { %8261 = vrot.lane.b32.xlu1 %v8260_v2, %s8353_s22 }
 0xb47   :  { %v8192_v62 = vpop.permute.xlu0 %8191 }
 0xb48   :  { %v8194_v59 = vunpack.i.h.bf16 %v8192_v62  ;;  %v8193_v6 = vunpack.i.l.bf16 %v8192_v62 }
 0xb4a   :  { %v5408_v11 = vsel %vm14457_vm4, %v8194_v59, 0.0  ;;  %v5407_v29 = vsel %vm14458_vm15, %v8193_v6, 0.0  ;;  %vm14473_vm4 = vcmp.lt.s32.totalorder %v8947_v16, 124 }
 0xb4b   :  { %v13418_v3 = vmax.f32 %v13214_v23, %v5408_v11  ;;  %v13421_v7 = vmax.f32 %v13217_v38, %v5407_v29  ;;  %v8197_v44 = vpop.permute.xlu0 %8196  ;;  %vm14474_vm15 = vmmov %vm14473_vm4 }
 0xb4c   :  { %v8199_v20 = vunpack.i.h.bf16 %v8197_v44  ;;  %v8198_v53 = vunpack.i.l.bf16 %v8197_v44 }
 0xb4d   :  { %v8270_v46 = vpack.i.bf16 %v13418_v3, %v13421_v7 }
 0xb4e   :  { %v5600_v9 = vsel %vm14459_vm13, %v8199_v20, 0.0  ;;  %v5599_v22 = vsel %vm14460_vm6, %v8198_v53, 0.0  ;;  %vm14475_vm13 = vcmp.ge.s32.totalorder %v8947_v16, 4 }
 0xb4f   :  { %v13430_v5 = vmax.f32 %v13220_v45, %v5600_v9  ;;  %v13433_v23 = vmax.f32 %v13223_v35, %v5599_v22  ;;  %8271 = vrot.lane.b32.xlu0 %v8270_v46, %s8352_s21  ;;  %vm14476_vm6 = vmmov %vm14475_vm13 }
 0xb51   :  { %v8275_v38 = vpack.i.bf16 %v13430_v5, %v13433_v23  ;;  %v8202_v55 = vpop.permute.xlu1 %8201 }
 0xb52   :  { %v8204_v14 = vunpack.i.h.bf16 %v8202_v55  ;;  %v8203_v27 = vunpack.i.l.bf16 %v8202_v55 }
 0xb53   :  { %8276 = vrot.lane.b32.xlu0 %v8275_v38, %s8353_s22 }
 0xb54   :  { %v5418_v36 = vsel %vm14461_vm9, %v8204_v14, 0.0  ;;  %v5417_v45 = vsel %vm14462_vm7, %v8203_v27, 0.0  ;;  %vm14477_vm9 = vmmov %vm14473_vm4 }
 0xb55   :  { %v13444_v26 = vmax.f32 %v13236_v42, %v5418_v36  ;;  %v13447_v35 = vmax.f32 %v13239_v33, %v5417_v45  ;;  %vm14478_vm7 = vmmov %vm14473_vm4 }
 0xb57   :  { %v8280_v12 = vpack.i.bf16 %v13444_v26, %v13447_v35 }
 0xb59   :  { %v8207_v2 = vpop.permute.xlu1 %8206  ;;  %8281 = vrot.lane.b32.xlu1 %v8280_v12, %s8352_s21 }
 0xb5a   :  { %v8209_v62 = vunpack.i.h.bf16 %v8207_v2  ;;  %v8208_v59 = vunpack.i.l.bf16 %v8207_v2 }
 0xb5c   :  { %v5406_v6 = vsel %vm14463_vm11, %v8209_v62, 0.0  ;;  %v5405_v11 = vsel %vm14464_vm2, %v8208_v59, 0.0  ;;  %vm14479_vm11 = vmmov %vm14476_vm6 }
 0xb5d   :  { %v8222_v29 = vpop.permute.xlu0 %8221  ;;  %v13457_v42 = vmax.f32 %v13253_v31, %v5406_v6  ;;  %v13460_v33 = vmax.f32 %v13256_v17, %v5405_v11  ;;  %v8212_v44 = vpop.permute.xlu1 %8211  ;;  %vm14480_vm2 = vmmov %vm14476_vm6 }
 0xb5e   :  { %v8224_v20 = vunpack.i.h.bf16 %v8222_v29  ;;  %v8223_v53 = vunpack.i.l.bf16 %v8222_v29  ;;  %v8214_v46 = vunpack.i.h.bf16 %v8212_v44  ;;  %v8213_v9 = vunpack.i.l.bf16 %v8212_v44 }
 0xb5f   :  { %v8285_v22 = vpack.i.bf16 %v13457_v42, %v13460_v33 }
 0xb60   :  { %v5420_v38 = vsel %vm14465_vm12, %v8224_v20, 0.0  ;;  %v5419_v55 = vsel %vm14466_vm8, %v8223_v53, 0.0  ;;  %v5598_v31 = vsel %vm14467_vm10, %v8214_v46, 0.0  ;;  %v5597_v17 = vsel %vm14468_vm0, %v8213_v9, 0.0  ;;  %vm14481_vm12 = vmmov %vm14473_vm4 }
 0xb61   :  { %v13473_v14 = vmax.f32 %v13275_v15, %v5420_v38  ;;  %v13476_v27 = vmax.f32 %v13278_v10, %v5419_v55  ;;  %v8227_v36 = vpop.permute.xlu0 %8226  ;;  %v13479_v45 = vmax.f32 %v13261_v0, %v5598_v31  ;;  %v13482_v12 = vmax.f32 %v13264_v39, %v5597_v17  ;;  %v8217_v2 = vpop.permute.xlu1 %8216  ;;  %8286 = vrot.lane.b32.xlu1 %v8285_v22, %s8352_s21  ;;  %vm14482_vm8 = vmmov %vm14473_vm4 }
 0xb62   :  { %v8229_v62 = vunpack.i.h.bf16 %v8227_v36  ;;  %v8228_v59 = vunpack.i.l.bf16 %v8227_v36  ;;  %v8219_v6 = vunpack.i.h.bf16 %v8217_v2  ;;  %v8218_v11 = vunpack.i.l.bf16 %v8217_v2  ;;  %vm14483_vm10 = vmmov %vm14473_vm4 }
 0xb63   :  { %v8300_v15 = vpack.i.bf16 %v13473_v14, %v13476_v27  ;;  %v8290_v10 = vpack.i.bf16 %v13479_v45, %v13482_v12  ;;  %vm14484_vm0 = vmmov %vm14473_vm4 }
 0xb64   :  { %v5612_v0 = vsel %vm14469_vm1, %v8229_v62, 0.0  ;;  %v5611_v39 = vsel %vm14470_vm14, %v8228_v59, 0.0  ;;  %v5610_v29 = vsel %vm14471_vm3, %v8219_v6, 0.0  ;;  %v5609_v44 = vsel %vm14472_vm5, %v8218_v11, 0.0  ;;  %vm14485_vm1 = vmmov %vm14480_vm2 }
 0xb65   :  { %v13498_v20 = vmax.f32 %v13296_v54, %v5612_v0  ;;  %v13501_v53 = vmax.f32 %v13299_v28, %v5611_v39  ;;  %8301 = vrot.lane.b32.xlu0 %v8300_v15, %s8352_s21  ;;  %v13505_v46 = vmax.f32 %v13286_v4, %v5610_v29  ;;  %v13508_v9 = vmax.f32 %v13289_v18, %v5609_v44  ;;  %vm14486_vm14 = vmmov %vm14485_vm1 }
 0xb66   :  { %8291 = vrot.lane.b32.xlu1 %v8290_v10, %s8353_s22  ;;  %vm14487_vm3 = vmmov %vm14485_vm1 }
 0xb67   :  { %v8305_v22 = vpack.i.bf16 %v13498_v20, %v13501_v53  ;;  %v8295_v54 = vpack.i.bf16 %v13505_v46, %v13508_v9  ;;  %vm14488_vm5 = vmmov %vm14485_vm1 }
 0xb69   :  { %8306 = vrot.lane.b32.xlu0 %v8305_v22, %s8353_s22 }
 0xb6a   :  { %8296 = vrot.lane.b32.xlu1 %v8295_v54, %s8353_s22 }
 0xb96   :  { %v8237_v28 = vpop.permute.xlu0 %8236 }
 0xb97   :  { %v8239_v38 = vunpack.i.h.bf16 %v8237_v28  ;;  %v8238_v55 = vunpack.i.l.bf16 %v8237_v28 }
 0xb99   :  { %v5476_v18 = vsel %vm14473_vm4, %v8239_v38, 0.0  ;;  %v5475_v31 = vsel %vm14474_vm15, %v8238_v55, 0.0  ;;  %vm14489_vm4 = vmmov %vm14484_vm0 }
 0xb9a   :  { %v8247_v4 = vpop.permute.xlu0 %8246  ;;  %v5492_v59 = vmax.f32 %v13314_v49, %v5476_v18  ;;  %v5491_v6 = vmax.f32 %v13317_v8, %v5475_v31  ;;  %vm14490_vm15 = vmmov %vm14484_vm0 }
 0xb9b   :  { %v8249_v17 = vunpack.i.h.bf16 %v8247_v4  ;;  %v8248_v36 = vunpack.i.l.bf16 %v8247_v4 }
 0xb9d   :  { %v5668_v2 = vsel %vm14475_vm13, %v8249_v17, 0.0  ;;  %v5667_v62 = vsel %vm14476_vm6, %v8248_v36, 0.0  ;;  %vm14491_vm13 = vmmov %vm14485_vm1 }
 0xb9e   :  { %v8232_v11 = vpop.permute.xlu1 %8231  ;;  %v5684_v15 = vmax.f32 %v13326_v19, %v5668_v2  ;;  %v5683_v10 = vmax.f32 %v13329_v21, %v5667_v62  ;;  %vm14492_vm6 = vmmov %vm14485_vm1 }
 0xb9f   :  { %v8234_v0 = vunpack.i.h.bf16 %v8232_v11  ;;  %v8233_v39 = vunpack.i.l.bf16 %v8232_v11 }
 0xba0   :  { %v13529_v29 = vmax.f32 %v5491_v6, %v5683_v10  ;;  %v13531_v44 = vmax.f32 %v5492_v59, %v5684_v15 }
 0xba1   :  { %v5474_v49 = vsel %vm14477_vm9, %v8234_v0, 0.0  ;;  %v5473_v8 = vsel %vm14478_vm7, %v8233_v39, 0.0  ;;  %vm14493_vm9 = vmmov %vm14484_vm0 }
 0xba2   :  { %v7115_v22 = vpack.c.bf16 %v13531_v44, %v13529_v29  ;;  %v8242_v54 = vpop.permute.xlu1 %8241  ;;  %v5490_v55 = vmax.f32 %v13339_v13, %v5474_v49  ;;  %v5489_v4 = vmax.f32 %v13342_v58, %v5473_v8  ;;  %vm14494_vm7 = vmmov %vm14484_vm0 }
 0xba3   :  { %v8244_v28 = vunpack.i.h.bf16 %v8242_v54  ;;  %v8243_v19 = vunpack.i.l.bf16 %v8242_v54 }
 0xba4   :  { %7286 = vst [vmem:[#allocation5 + $0xd8] sm:$0xff] %v7115_v22  }
 0xba5   :  { %v5666_v21 = vsel %vm14479_vm11, %v8244_v28, 0.0  ;;  %v5665_v38 = vsel %vm14480_vm2, %v8243_v19, 0.0  ;;  %vm14495_vm11 = vmmov %vm14484_vm0 }
 0xba6   :  { %v5682_v18 = vmax.f32 %v13352_v41, %v5666_v21  ;;  %v5681_v31 = vmax.f32 %v13355_v61, %v5665_v38  ;;  %vm14496_vm2 = vmmov %vm14484_vm0 }
 0xba8   :  { %v13547_v17 = vmax.f32 %v5489_v4, %v5681_v31  ;;  %v13549_v36 = vmax.f32 %v5490_v55, %v5682_v18 }
 0xbaa   :  { %v7110_v2 = vpack.c.bf16 %v13549_v36, %v13547_v17 }
 0xbac   :  { %7285 = vst [vmem:[#allocation5 + $0xd0] sm:$0xff] %v7110_v2  }
 0xbb0   :  { %v8257_v62 = vpop.permute.xlu0 %8256  ;;  %v8252_v11 = vpop.permute.xlu1 %8251 }
 0xbb1   :  { %v8259_v59 = vunpack.i.h.bf16 %v8257_v62  ;;  %v8258_v6 = vunpack.i.l.bf16 %v8257_v62  ;;  %v8254_v15 = vunpack.i.h.bf16 %v8252_v11  ;;  %v8253_v13 = vunpack.i.l.bf16 %v8252_v11 }
 0xbb3   :  { %v5480_v58 = vsel %vm14481_vm12, %v8259_v59, 0.0  ;;  %v5479_v41 = vsel %vm14482_vm8, %v8258_v6, 0.0  ;;  %v5478_v22 = vsel %vm14483_vm10, %v8254_v15, 0.0  ;;  %v5477_v54 = vsel %vm14484_vm0, %v8253_v13, 0.0  ;;  %vm14497_vm12 = vmmov %vm14484_vm0 }
 0xbb4   :  { %v8267_v61 = vpop.permute.xlu0 %8266  ;;  %v5496_v28 = vmax.f32 %v13370_v50, %v5480_v58  ;;  %v5495_v19 = vmax.f32 %v13373_v37, %v5479_v41  ;;  %v5494_v50 = vmax.f32 %v13376_v51, %v5478_v22  ;;  %v5493_v37 = vmax.f32 %v13379_v34, %v5477_v54  ;;  %vm14498_vm8 = vmmov %vm14484_vm0 }
 0xbb5   :  { %v8269_v10 = vunpack.i.h.bf16 %v8267_v61  ;;  %v8268_v0 = vunpack.i.l.bf16 %v8267_v61  ;;  %v8262_v39 = vpop.permute.xlu1 %8261  ;;  %vm14499_vm10 = vmmov %vm14485_vm1 }
 0xbb6   :  { %v8264_v49 = vunpack.i.h.bf16 %v8262_v39  ;;  %v8263_v8 = vunpack.i.l.bf16 %v8262_v39  ;;  %vm14500_vm0 = vmmov %vm14485_vm1 }
 0xbb7   :  { %v5672_v21 = vsel %vm14485_vm1, %v8269_v10, 0.0  ;;  %v5671_v38 = vsel %vm14486_vm14, %v8268_v0, 0.0  ;;  %vm14501_vm1 = vmmov %vm14500_vm0 }
 0xbb8   :  { %v5688_v55 = vmax.f32 %v13394_v60, %v5672_v21  ;;  %v5687_v4 = vmax.f32 %v13397_v57, %v5671_v38  ;;  %v5670_v18 = vsel %vm14487_vm3, %v8264_v49, 0.0  ;;  %v5669_v31 = vsel %vm14488_vm5, %v8263_v8, 0.0  ;;  %vm14502_vm14 = vmmov %vm14500_vm0 }
 0xbb9   :  { %v5686_v2 = vmax.f32 %v13401_v40, %v5670_v18  ;;  %v5685_v62 = vmax.f32 %v13404_v43, %v5669_v31  ;;  %vm14503_vm3 = vmmov %vm14500_vm0 }
 0xbba   :  { %v13577_v59 = vmax.f32 %v5495_v19, %v5687_v4  ;;  %v13579_v6 = vmax.f32 %v5496_v28, %v5688_v55  ;;  %vm14504_vm5 = vmmov %vm14500_vm0 }
 0xbbb   :  { %v13581_v60 = vmax.f32 %v5493_v37, %v5685_v62  ;;  %v13583_v57 = vmax.f32 %v5494_v50, %v5686_v2 }
 0xbbc   :  { %v7125_v11 = vpack.c.bf16 %v13579_v6, %v13577_v59 }
 0xbbd   :  { %v7120_v51 = vpack.c.bf16 %v13583_v57, %v13581_v60 }
 0xbbe   :  { %7288 = vst [vmem:[#allocation5 + $0xe8] sm:$0xff] %v7125_v11  }
 0xbbf   :  { %7287 = vst [vmem:[#allocation5 + $0xe0] sm:$0xff] %v7120_v51  }
 0xbc1   :  { %v8272_v34 = vpop.permute.xlu0 %8271 }
 0xbc2   :  { %v8274_v40 = vunpack.i.h.bf16 %v8272_v34  ;;  %v8273_v15 = vunpack.i.l.bf16 %v8272_v34 }
 0xbc4   :  { %v5472_v13 = vsel %vm14489_vm4, %v8274_v40, 0.0  ;;  %v5471_v58 = vsel %vm14490_vm15, %v8273_v15, 0.0 }
 0xbc5   :  { %v8277_v43 = vpop.permute.xlu0 %8276  ;;  %v5488_v39 = vmax.f32 %v13418_v3, %v5472_v13  ;;  %v5487_v22 = vmax.f32 %v13421_v7, %v5471_v58 }
 0xbc6   :  { %v8279_v41 = vunpack.i.h.bf16 %v8277_v43  ;;  %v8278_v61 = vunpack.i.l.bf16 %v8277_v43 }
 0xbc8   :  { %v5664_v10 = vsel %vm14491_vm13, %v8279_v41, 0.0  ;;  %v5663_v0 = vsel %vm14492_vm6, %v8278_v61, 0.0 }
 0xbc9   :  { %v5680_v54 = vmax.f32 %v13430_v5, %v5664_v10  ;;  %v5679_v49 = vmax.f32 %v13433_v23, %v5663_v0 }
 0xbcb   :  { %v13601_v8 = vmax.f32 %v5487_v22, %v5679_v49  ;;  %v13603_v28 = vmax.f32 %v5488_v39, %v5680_v54  ;;  %v8282_v21 = vpop.permute.xlu1 %8281 }
 0xbcc   :  { %v8284_v38 = vunpack.i.h.bf16 %v8282_v21  ;;  %v8283_v5 = vunpack.i.l.bf16 %v8282_v21 }
 0xbcd   :  { %v7105_v19 = vpack.c.bf16 %v13603_v28, %v13601_v8  ;;  %v5792_v3 = vmax.f32 %v13601_v8, %v13529_v29  ;;  %v5793_v7 = vmax.f32 %v13603_v28, %v13531_v44 }
 0xbce   :  { %v5482_v23 = vsel %vm14493_vm9, %v8284_v38, 0.0  ;;  %v5481_v13 = vsel %vm14496_vm2, %v8283_v5, 0.0 }
 0xbcf   :  { %7284 = vst [vmem:[#allocation5 + $0xc8] sm:$0xff] %v7105_v19   ;;  %v5796_v51 = vmax.f32 %v5792_v3, %v13577_v59  ;;  %v5797_v34 = vmax.f32 %v5793_v7, %v13579_v6  ;;  %v5498_v43 = vmax.f32 %v13444_v26, %v5482_v23 }
 0xbd3   :  { %v8287_v55 = vpop.permute.xlu1 %8286 }
 0xbd4   :  { %v8289_v4 = vunpack.i.h.bf16 %v8287_v55  ;;  %v8288_v18 = vunpack.i.l.bf16 %v8287_v55 }
 0xbd6   :  { %v5470_v2 = vsel %vm14494_vm7, %v8289_v4, 0.0  ;;  %v5469_v62 = vsel %vm14495_vm11, %v8288_v18, 0.0 }
 0xbd7   :  { %v8302_v31 = vpop.permute.xlu0 %8301  ;;  %v5486_v61 = vmax.f32 %v13457_v42, %v5470_v2  ;;  %v5485_v10 = vmax.f32 %v13460_v33, %v5469_v62 }
 0xbd8   :  { %v8304_v50 = vunpack.i.h.bf16 %v8302_v31  ;;  %v8303_v37 = vunpack.i.l.bf16 %v8302_v31  ;;  %v8292_v11 = vpop.permute.xlu1 %8291 }
 0xbd9   :  { %v8294_v40 = vunpack.i.h.bf16 %v8292_v11  ;;  %v8293_v15 = vunpack.i.l.bf16 %v8292_v11 }
 0xbda   :  { %v5484_v58 = vsel %vm14497_vm12, %v8304_v50, 0.0  ;;  %v5483_v41 = vsel %vm14498_vm8, %v8303_v37, 0.0  ;;  %v5497_v37 = vmax.f32 %v13447_v35, %v5481_v13 }
 0xbdb   :  { %v8307_v0 = vpop.permute.xlu0 %8306  ;;  %v5662_v39 = vsel %vm14499_vm10, %v8294_v40, 0.0  ;;  %v5661_v26 = vsel %vm14500_vm0, %v8293_v15, 0.0  ;;  %v5500_v38 = vmax.f32 %v13473_v14, %v5484_v58  ;;  %v5499_v42 = vmax.f32 %v13476_v27, %v5483_v41 }
 0xbdc   :  { %v8309_v22 = vunpack.i.h.bf16 %v8307_v0  ;;  %v8308_v54 = vunpack.i.l.bf16 %v8307_v0  ;;  %v5678_v49 = vmax.f32 %v13479_v45, %v5662_v39  ;;  %v5677_v19 = vmax.f32 %v13482_v12, %v5661_v26  ;;  %v8297_v21 = vpop.permute.xlu1 %8296 }
 0xbdd   :  { %v8299_v55 = vunpack.i.h.bf16 %v8297_v21  ;;  %v8298_v33 = vunpack.i.l.bf16 %v8297_v21 }
 0xbde   :  { %v5676_v4 = vsel %vm14501_vm1, %v8309_v22, 0.0  ;;  %v5675_v18 = vsel %vm14502_vm14, %v8308_v54, 0.0  ;;  %v5693_v3 = vmax.f32 %v5485_v10, %v5677_v19  ;;  %v5694_v7 = vmax.f32 %v5486_v61, %v5678_v49 }
 0xbdf   :  { %v5692_v5 = vmax.f32 %v13498_v20, %v5676_v4  ;;  %v5691_v45 = vmax.f32 %v13501_v53, %v5675_v18  ;;  %v5674_v12 = vsel %vm14503_vm3, %v8299_v55, 0.0  ;;  %v5673_v14 = vsel %vm14504_vm5, %v8298_v33, 0.0 }
 0xbe0   :  { %v7100_v27 = vpack.c.bf16 %v5694_v7, %v5693_v3  ;;  %v5790_v23 = vmax.f32 %v5693_v3, %v13547_v17  ;;  %v5791_v31 = vmax.f32 %v5694_v7, %v13549_v36  ;;  %v5690_v50 = vmax.f32 %v13505_v46, %v5674_v12 }
 0xbe1   :  { %v5707_v2 = vmax.f32 %v5499_v42, %v5691_v45  ;;  %v5708_v62 = vmax.f32 %v5500_v38, %v5692_v5  ;;  %v5689_v20 = vmax.f32 %v13508_v9, %v5673_v14 }
 0xbe2   :  { %7101 = vst [vmem:[#allocation5 + $0xc0] sm:$0xff] %v7100_v27   ;;  %v5706_v53 = vmax.f32 %v5498_v43, %v5690_v50  ;;  %v5794_v11 = vmax.f32 %v5790_v23, %v13581_v60  ;;  %v5795_v40 = vmax.f32 %v5791_v31, %v13583_v57 }
 0xbe3   :  { %v7135_v15 = vpack.c.bf16 %v5708_v62, %v5707_v2  ;;  %v5800_v58 = vmax.f32 %v5796_v51, %v5707_v2  ;;  %v5801_v41 = vmax.f32 %v5797_v34, %v5708_v62  ;;  %v5705_v61 = vmax.f32 %v5497_v37, %v5689_v20 }
 0xbe4   :  { %v5799_v10 = vmax.f32 %v5795_v40, %v5706_v53 }
 0xbe5   :  { %7290 = vst [vmem:[#allocation5 + $0xf8] sm:$0xff] %v7135_v15   ;;  %v7130_v0 = vpack.c.bf16 %v5706_v53, %v5705_v61  ;;  %v5798_v46 = vmax.f32 %v5794_v11, %v5705_v61  ;;  %v5803_v39 = vmax.f32 %v5800_v58, %v5801_v41 }
 0xbe7   :  { %7289 = vst [vmem:[#allocation5 + $0xf0] sm:$0xff] %v7130_v0   ;;  %v5802_v35 = vmax.f32 %v5798_v46, %v5799_v10 }
 0xbe9   :  { %v5804_v13 = vmax.f32 %v5802_v35, %v5803_v39 }
 0xbeb   :  { %v5805_v26 = vrot.slane %v5804_v13, 4 }
 0xbed   :  { %v5806_v9 = vmax.f32 %v5804_v13, %v5805_v26 }
 0xbef   :  { %v5807_v22 = vrot.slane %v5806_v9, 2 }
 0xbf1   :  { %v5808_v43 = vmax.f32 %v5806_v9, %v5807_v22 }
 0xbf3   :  { %v5809_v54 = vrot.slane %v5808_v43, 1 }
 0xbf5   :  { %v5810_v49 = vmax.f32 %v5808_v43, %v5809_v54 }
 0xbf7   :  { %vm5811_vm4 = vcmp.gt.f32.partialorder %v5810_v49, 0.5 }
 0xbf8   :  { %v5876_v19 = vsel %vm5811_vm4, %v8947_v16, 4294967295  ;;  %v5860_v51 = vsel %vm5811_vm4, %v8947_v16, 1073741824 }
 0xbf9   :  { %v5878_v34 = vshra.s32 %v5876_v19, 16  ;;  %v5862_v21 = vshra.s32 %v5860_v51, 16  ;;  %v5877_v16 = vand.u32 65535, %v5876_v19 }
 0xbfb   :  { %v5880_v38 = vcvt.s32.f32 %v5878_v34  ;;  %v5864_v42 = vcvt.s32.f32 %v5862_v21 }
 0xbfd   :  { %5881 = vmax.xlane.f32.xlu0 %v5880_v38  ;;  %5865 = vmin.xlane.f32.xlu1 %v5864_v42 }
 0xc01   :  { %5812 = vmax.xlane.f32.xlu0 %v5693_v3  ;;  %5814 = vmax.xlane.f32.xlu1 %v5694_v7 }
 0xc05   :  { %5816 = vmax.xlane.f32.xlu0 %v13601_v8  ;;  %5818 = vmax.xlane.f32.xlu1 %v13603_v28 }
 0xc09   :  { %5820 = vmax.xlane.f32.xlu0 %v13547_v17  ;;  %5822 = vmax.xlane.f32.xlu1 %v13549_v36  ;;  %v5861_v17 = vand.u32 65535, %v5860_v51 }
 0xc0d   :  { %5824 = vmax.xlane.f32.xlu0 %v13529_v29  ;;  %5826 = vmax.xlane.f32.xlu1 %v13531_v44  ;;  %v5879_v29 = vcvt.s32.f32 %v5877_v16  ;;  %v5863_v44 = vcvt.s32.f32 %v5861_v17 }
 0xc11   :  { %5828 = vmax.xlane.f32.xlu0 %v13581_v60  ;;  %5830 = vmax.xlane.f32.xlu1 %v13583_v57 }
 0xc15   :  { %5832 = vmax.xlane.f32.xlu0 %v13577_v59  ;;  %5834 = vmax.xlane.f32.xlu1 %v13579_v6 }
 0xc19   :  { %5836 = vmax.xlane.f32.xlu0 %v5705_v61  ;;  %5838 = vmax.xlane.f32.xlu1 %v5706_v53 }
 0xc1d   :  { %5840 = vmax.xlane.f32.xlu0 %v5707_v2  ;;  %5842 = vmax.xlane.f32.xlu1 %v5708_v62 }
 0xc8a   :  { %v13665_v8 = vpop.xlane.xlu0 %5881  ;;  %v13667_v36 = vpop.xlane.xlu1 %5865 }
 0xc8b   :  { %vm5883_vm15 = vcmp.eq.f32.partialorder %v5880_v38, %v13665_v8  ;;  %vm5867_vm13 = vcmp.eq.f32.partialorder %v5864_v42, %v13667_v36 }
 0xc8c   :  { %v5884_v60 = vsel %vm5883_vm15, %v5879_v29, -inf  ;;  %v5868_v59 = vsel %vm5867_vm13, %v5863_v44, inf }
 0xc8d   :  { %5885 = vmax.xlane.f32.xlu1 %v5884_v60  ;;  %5869 = vmin.xlane.f32.xlu0 %v5868_v59 }
 0xc8e   :  { %v5813_v6 = vpop.xlane.xlu0 %5812  ;;  %v5815_v57 = vpop.xlane.xlu1 %5814 }
 0xc8f   :  { %vm5844_vm6 = vcmp.gt.f32.partialorder %v5813_v6, 0.5  ;;  %vm5845_vm7 = vcmp.gt.f32.partialorder %v5815_v57, 0.5 }
 0xc92   :  { %v5817_v28 = vpop.xlane.xlu0 %5816  ;;  %v5819_v55 = vpop.xlane.xlu1 %5818 }
 0xc96   :  { %v5821_v33 = vpop.xlane.xlu0 %5820  ;;  %v5823_v4 = vpop.xlane.xlu1 %5822 }
 0xc97   :  { %vm5848_vm9 = vcmp.gt.f32.partialorder %v5821_v33, 0.5  ;;  %vm5849_vm11 = vcmp.gt.f32.partialorder %v5823_v4, 0.5 }
 0xc9a   :  { %v5825_v18 = vpop.xlane.xlu0 %5824  ;;  %v5827_v3 = vpop.xlane.xlu1 %5826 }
 0xc9e   :  { %v13671_v7 = vpop.xlane.xlu0 %5828  ;;  %v13673_v5 = vpop.xlane.xlu1 %5830 }
 0xca2   :  { %v13675_v45 = vpop.xlane.xlu0 %5832  ;;  %v13677_v12 = vpop.xlane.xlu1 %5834 }
 0xca3   :  { %8321 = shalt.err (!%p8318_p13)
}
 0xca4   :  { %s8322_s21 = scalar_lea.hbm %s13757_s2, 4096 }
 0xca5   :  { %p8323_p0 = scmp.ne.s32.totalorder %s13757_s2, %s8322_s21  ;;  %p8326_p1 = scmp.lt.u32.totalorder %s8322_s21, %s13757_s2 }
 0xca7   :  { %p8328_p2 = pnand %p8326_p1, %p8323_p0 }
 0xca9   :  { %8331 = shalt.err (!%p8328_p2)
}
 0xcaa   :  { %s8355_s16 = smov 64   ;;  %v5892_v14 = vsel %vm5844_vm6, %v8386_v1, 1073741824  ;;  %vm5850_vm2 = vcmp.gt.f32.partialorder %v5825_v18, 0.5  ;;  %v5948_v27 = vsel %vm5844_vm6, %v8386_v1, 4294967295  ;;  %vm5846_vm12 = vcmp.gt.f32.partialorder %v5817_v28, 0.5  ;;  %v5837_v53 = vpop.xlane.xlu0 %5836  ;;  %v14505_v35 = vld [vmem:[#allocation12_spill] sm:$0xff] }
 0xcab   :  { %6052 = dma.vmem_to_hbm [thread:$0]  %s6047_s0, 4096, %s13757_s2, [#allocation6], %s8355_s16, %s8355_s16, %s8353_s22   ;;  %v5896_v23 = vsel %vm5848_vm9, %v9666_v47, 1073741824  ;;  %v5952_v31 = vsel %vm5848_vm9, %v9666_v47, 4294967295  ;;  %v5893_v50 = vsel %vm5845_vm7, %v9672_v32, 1073741824  ;;  %vm5847_vm8 = vcmp.gt.f32.partialorder %v5819_v55, 0.5  ;;  %v5839_v47 = vpop.xlane.xlu1 %5838 }
 0xcac   :  { %v5897_v37 = vsel %vm5849_vm11, %v9687_v24, 1073741824  ;;  %vm5851_vm10 = vcmp.gt.f32.partialorder %v5827_v3, 0.5  ;;  %v5949_v2 = vsel %vm5845_vm7, %v9672_v32, 4294967295  ;;  %v5953_v1 = vsel %vm5849_vm11, %v9687_v24, 4294967295  ;;  %v14506_v43 = vld [vmem:[#allocation16_spill] sm:$0xff]  ;;  %v14507_v19 = vld [vmem:[#allocation14_spill] sm:$0xff] }
 0xcad   :  { %v5898_v62 = vsel %vm5850_vm2, %v9677_v52, 1073741824  ;;  %v5954_v20 = vsel %vm5850_vm2, %v9677_v52, 4294967295  ;;  %v5894_v11 = vsel %vm5846_vm12, %v9669_v56, 1073741824  ;;  %v5950_v40 = vsel %vm5846_vm12, %v9669_v56, 4294967295  ;;  %v14509_v44 = vld [vmem:[#allocation13_spill] sm:$0xff]  ;;  %s6059_s26 = sshll.u32 %s13758_s3, 4  ;;  %s6060_s26 = int_to_ptr.vmem [resolvable:$true] %s6059_s26 }
 0xcae   :  { %vm5908_vm0 = vcmp.lt.s32.totalorder %v5892_v14, %v5896_v23  ;;  %vm5964_vm1 = vcmp.gt.s32.totalorder %v5948_v27, %v5952_v31  ;;  %v5895_v15 = vsel %vm5847_vm8, %v9680_v48, 1073741824  ;;  %vm5910_vm14 = vcmp.lt.s32.totalorder %v5893_v50, %v5897_v37  ;;  %v14510_v59 = vld [vmem:[#allocation17_spill] sm:$0xff]  ;;  %s8332_s3 = scalar_lea.vmem %s6060_s26, 16  ;;  %p8337_p5 = scmp.lt.s32.totalorder %s6060_s26, %s6060_s26 }
 0xcaf   :  { %v5899_v32 = vsel %vm5851_vm10, %v9693_v30, 1073741824  ;;  %v5955_v24 = vsel %vm5851_vm10, %v9693_v30, 4294967295  ;;  %v5951_v58 = vsel %vm5847_vm8, %v9680_v48, 4294967295  ;;  %vm5966_vm3 = vcmp.gt.s32.totalorder %v5949_v2, %v5953_v1  ;;  %v5841_v48 = vpop.xlane.xlu0 %5840  ;;  %v5843_v0 = vpop.xlane.xlu1 %5842  ;;  %p8333_p4 = scmp.ne.s32.totalorder %s6060_s26, %s8332_s3  ;;  %p8338_p6 = scmp.lt.s32.totalorder %s8332_s3, %s8332_s3 }
 0xcb0   :  { %vm5912_vm5 = vcmp.lt.s32.totalorder %v5894_v11, %v5898_v62  ;;  %vm5968_vm4 = vcmp.gt.s32.totalorder %v5950_v40, %v5954_v20  ;;  %v5909_v52 = vsel %vm5908_vm0, %v5892_v14, %v5896_v23  ;;  %v5965_v41 = vsel %vm5964_vm1, %v5948_v27, %v5952_v31 }
 0xcb1   :  { %vm5852_vm15 = vcmp.gt.f32.partialorder %v13671_v7, 0.5  ;;  %vm5854_vm13 = vcmp.gt.f32.partialorder %v13675_v45, 0.5  ;;  %vm5914_vm6 = vcmp.lt.s32.totalorder %v5895_v15, %v5899_v32  ;;  %vm5970_vm9 = vcmp.gt.s32.totalorder %v5951_v58, %v5955_v24  ;;  %p8339_p7 = por %p8338_p6, %p8337_p5 }
 0xcb2   :  { %v5911_v56 = vsel %vm5910_vm14, %v5893_v50, %v5897_v37  ;;  %vm5855_vm7 = vcmp.gt.f32.partialorder %v13677_v12, 0.5  ;;  %v5967_v61 = vsel %vm5966_vm3, %v5949_v2, %v5953_v1  ;;  %vm5853_vm11 = vcmp.gt.f32.partialorder %v13673_v5, 0.5 }
 0xcb3   :  { %v5913_v30 = vsel %vm5912_vm5, %v5894_v11, %v5898_v62  ;;  %v5969_v10 = vsel %vm5968_vm4, %v5950_v40, %v5954_v20  ;;  %v5900_v46 = vsel %vm5852_vm15, %v9683_v63, 1073741824  ;;  %v5956_v39 = vsel %vm5852_vm15, %v9683_v63, 4294967295  ;;  %v14508_v63 = vld [vmem:[#allocation15_spill] sm:$0xff]  ;;  %p8340_p8 = pnand %p8339_p7, %p8333_p4 }
 0xcb4   :  { %v5902_v13 = vsel %vm5854_vm13, %v14505_v35, 1073741824  ;;  %v5958_v26 = vsel %vm5854_vm13, %v14505_v35, 4294967295  ;;  %v5915_v9 = vsel %vm5914_vm6, %v5895_v15, %v5899_v32  ;;  %v5971_v22 = vsel %vm5970_vm9, %v5951_v58, %v5955_v24 }
 0xcb5   :  { %v5903_v54 = vsel %vm5855_vm7, %v14506_v43, 1073741824  ;;  %v5959_v49 = vsel %vm5855_vm7, %v14506_v43, 4294967295  ;;  %v5901_v51 = vsel %vm5853_vm11, %v14507_v19, 1073741824  ;;  %v5957_v34 = vsel %vm5853_vm11, %v14507_v19, 4294967295 }
 0xcb6   :  { %vm5858_vm2 = vcmp.gt.f32.partialorder %v5841_v48, 0.5  ;;  %vm5859_vm12 = vcmp.gt.f32.partialorder %v5843_v0, 0.5  ;;  %vm5916_vm8 = vcmp.lt.s32.totalorder %v5909_v52, %v5900_v46  ;;  %vm5972_vm10 = vcmp.gt.s32.totalorder %v5965_v41, %v5956_v39 }
 0xcb7   :  { %vm5920_vm0 = vcmp.lt.s32.totalorder %v5913_v30, %v5902_v13  ;;  %vm5976_vm1 = vcmp.gt.s32.totalorder %v5969_v10, %v5958_v26  ;;  %vm5922_vm14 = vcmp.lt.s32.totalorder %v5915_v9, %v5903_v54  ;;  %vm5978_vm3 = vcmp.gt.s32.totalorder %v5971_v22, %v5959_v49 }
 0xcb8   :  { %vm5856_vm5 = vcmp.gt.f32.partialorder %v5837_v53, 0.5  ;;  %vm5857_vm4 = vcmp.gt.f32.partialorder %v5839_v47, 0.5  ;;  %vm5918_vm15 = vcmp.lt.s32.totalorder %v5911_v56, %v5901_v51  ;;  %vm5974_vm13 = vcmp.gt.s32.totalorder %v5967_v61, %v5957_v34 }
 0xcb9   :  { %v5906_v21 = vsel %vm5858_vm2, %v14508_v63, 1073741824  ;;  %v5907_v38 = vsel %vm5859_vm12, %v14075_v25, 1073741824  ;;  %v5921_v42 = vsel %vm5920_vm0, %v5913_v30, %v5902_v13  ;;  %v5977_v16 = vsel %vm5976_vm1, %v5969_v10, %v5958_v26 }
 0xcba   :  { %v5962_v17 = vsel %vm5858_vm2, %v14508_v63, 4294967295  ;;  %v5963_v29 = vsel %vm5859_vm12, %v14075_v25, 4294967295  ;;  %v5904_v60 = vsel %vm5856_vm5, %v14509_v44, 1073741824  ;;  %v5905_v6 = vsel %vm5857_vm4, %v14510_v59, 1073741824 }
 0xcbb   :  { %v5923_v57 = vsel %vm5922_vm14, %v5915_v9, %v5903_v54  ;;  %v5979_v28 = vsel %vm5978_vm3, %v5971_v22, %v5959_v49  ;;  %v5960_v55 = vsel %vm5856_vm5, %v14509_v44, 4294967295  ;;  %v5961_v33 = vsel %vm5857_vm4, %v14510_v59, 4294967295 }
 0xcbc   :  { %vm5928_vm6 = vcmp.lt.s32.totalorder %v5921_v42, %v5906_v21  ;;  %vm5930_vm9 = vcmp.lt.s32.totalorder %v5923_v57, %v5907_v38  ;;  %v5917_v4 = vsel %vm5916_vm8, %v5909_v52, %v5900_v46  ;;  %v5919_v18 = vsel %vm5918_vm15, %v5911_v56, %v5901_v51 }
 0xcbd   :  { %vm5984_vm7 = vcmp.gt.s32.totalorder %v5977_v16, %v5962_v17  ;;  %vm5986_vm11 = vcmp.gt.s32.totalorder %v5979_v28, %v5963_v29  ;;  %v5973_v25 = vsel %vm5972_vm10, %v5965_v41, %v5956_v39  ;;  %vm5924_vm2 = vcmp.lt.s32.totalorder %v5917_v4, %v5904_v60 }
 0xcbe   :  { %v5975_v3 = vsel %vm5974_vm13, %v5967_v61, %v5957_v34  ;;  %vm5926_vm12 = vcmp.lt.s32.totalorder %v5919_v18, %v5905_v6  ;;  %vm5980_vm0 = vcmp.gt.s32.totalorder %v5973_v25, %v5960_v55  ;;  %v5929_v7 = vsel %vm5928_vm6, %v5921_v42, %v5906_v21 }
 0xcbf   :  { %vm5982_vm1 = vcmp.gt.s32.totalorder %v5975_v3, %v5961_v33  ;;  %v5931_v5 = vsel %vm5930_vm9, %v5923_v57, %v5907_v38  ;;  %v5985_v45 = vsel %vm5984_vm7, %v5977_v16, %v5962_v17  ;;  %v5987_v12 = vsel %vm5986_vm11, %v5979_v28, %v5963_v29 }
 0xcc0   :  { %v5925_v14 = vsel %vm5924_vm2, %v5917_v4, %v5904_v60  ;;  %v5927_v27 = vsel %vm5926_vm12, %v5919_v18, %v5905_v6  ;;  %v5981_v23 = vsel %vm5980_vm0, %v5973_v25, %v5960_v55  ;;  %v5983_v31 = vsel %vm5982_vm1, %v5975_v3, %v5961_v33 }
 0xcc1   :  { %vm5934_vm8 = vcmp.lt.s32.totalorder %v5929_v7, %v5931_v5  ;;  %vm5990_vm14 = vcmp.gt.s32.totalorder %v5985_v45, %v5987_v12  ;;  %vm5932_vm3 = vcmp.lt.s32.totalorder %v5925_v14, %v5927_v27  ;;  %vm5988_vm5 = vcmp.gt.s32.totalorder %v5981_v23, %v5983_v31 }
 0xcc2   :  { %v5935_v50 = vsel %vm5934_vm8, %v5929_v7, %v5931_v5  ;;  %v5991_v37 = vsel %vm5990_vm14, %v5985_v45, %v5987_v12  ;;  %v5933_v2 = vsel %vm5932_vm3, %v5925_v14, %v5927_v27  ;;  %v5989_v1 = vsel %vm5988_vm5, %v5981_v23, %v5983_v31 }
 0xcc3   :  { %vm5936_vm10 = vcmp.lt.s32.totalorder %v5933_v2, %v5935_v50  ;;  %vm5992_vm4 = vcmp.gt.s32.totalorder %v5989_v1, %v5991_v37  ;;  %v5888_v58 = vcvt.f32.s32 %v13665_v8  ;;  %v5872_v52 = vcvt.f32.s32 %v13667_v36 }
 0xcc4   :  { %v5937_v62 = vsel %vm5936_vm10, %v5933_v2, %v5935_v50  ;;  %v5993_v20 = vsel %vm5992_vm4, %v5989_v1, %v5991_v37 }
 0xcc5   :  { %v5938_v53 = vrot.slane %v5937_v62, 4  ;;  %v5994_v47 = vrot.slane %v5993_v20, 4  ;;  %v5889_v48 = vshll.u32 %v5888_v58, 16  ;;  %v5873_v0 = vshll.u32 %v5872_v52, 16 }
 0xcc7   :  { %vm5939_vm15 = vcmp.lt.s32.totalorder %v5937_v62, %v5938_v53  ;;  %vm5995_vm13 = vcmp.gt.s32.totalorder %v5993_v20, %v5994_v47 }
 0xcc8   :  { %v5940_v11 = vsel %vm5939_vm15, %v5937_v62, %v5938_v53  ;;  %v5996_v40 = vsel %vm5995_vm13, %v5993_v20, %v5994_v47 }
 0xcc9   :  { %v5941_v15 = vrot.slane %v5940_v11, 2  ;;  %v5997_v32 = vrot.slane %v5996_v40, 2 }
 0xccb   :  { %vm5942_vm6 = vcmp.lt.s32.totalorder %v5940_v11, %v5941_v15  ;;  %vm5998_vm9 = vcmp.gt.s32.totalorder %v5996_v40, %v5997_v32 }
 0xccc   :  { %v5943_v24 = vsel %vm5942_vm6, %v5940_v11, %v5941_v15  ;;  %v5999_v41 = vsel %vm5998_vm9, %v5996_v40, %v5997_v32 }
 0xccd   :  { %v5944_v56 = vrot.slane %v5943_v24, 1  ;;  %v6000_v10 = vrot.slane %v5999_v41, 1 }
 0xccf   :  { %vm5945_vm7 = vcmp.lt.s32.totalorder %v5943_v24, %v5944_v56  ;;  %vm6001_vm11 = vcmp.gt.s32.totalorder %v5999_v41, %v6000_v10 }
 0xcd0   :  { %v5946_v26 = vsel %vm5945_vm7, %v5943_v24, %v5944_v56  ;;  %v6002_v8 = vsel %vm6001_vm11, %v5999_v41, %v6000_v10 }
 0xd1a   :  { %v5886_v61 = vpop.xlane.xlu1 %5885  ;;  %v5870_v30 = vpop.xlane.xlu0 %5869 }
 0xd1b   :  { %v5887_v46 = vcvt.f32.s32 %v5886_v61  ;;  %v5871_v39 = vcvt.f32.s32 %v5870_v30 }
 0xd1d   :  { %v5874_v35 = vadd.s32 %v5873_v0, %v5871_v39  ;;  %v5890_v13 = vadd.s32 %v5889_v48, %v5887_v46 }
 0xd1f   :  { %7333 = vpush %v5874_v35 }
 0xd20   :  { %7335 = vpush %v5890_v13 }
 0xd21   :  { %7337 = vpush %v5946_v26 }
 0xd22   :  { %7339 = vpush %v6002_v8 }
 0xd50   :  { %s7334_s2 = spop %7333 }
 0xd51   :  { %s7336_s22 = spop %7335 }
 0xd52   :  { %p6004_p3 = scmp.ge.s32.totalorder %s7336_s22, 0  ;;  %s6013_s27 = ssub.s32 %s7336_s22, %s7334_s2 }
 0xd53   :  { %s6014_s28 = sadd.s32 1, %s6013_s27  ;;  %s7338_s29 = spop %7337 }
 0xd54   :  { %s14548_s2 = smov (!%p6004_p3, %s7334_s2), 0  ;;  %s14550_s28 = smov (!%p6004_p3, %s6014_s28), 0 }
 0xd55   :  { %6008 = sst [smem:[#allocation8 + $0xc]] %s14548_s2  ;;  %s7340_s30 = spop %7339 }
 0xd56   :  { %6018 = sst [smem:[#allocation8 + $0xe]] %s14550_s28  ;;  %s6019_s4 = ssub.s32 %s7340_s30, %s7338_s29 }
 0xd57   :  { %s14552_s29 = smov (!%p6004_p3, %s7338_s29), 0  ;;  %s6020_s5 = sadd.s32 1, %s6019_s4 }
 0xd58   :  { %6012 = sst [smem:[#allocation8 + $0xd]] %s14552_s29  ;;  %s14554_s5 = smov (!%p6004_p3, %s6020_s5), 0 }
 0xd59   :  { %6024 = sst [smem:[#allocation8 + $0xf]] %s14554_s5 }
 0xd5a   :  { %8343 = shalt.err (!%p8340_p8)
}
 0xd5b   :  { %s8356_s6 = smov [#allocation8]  }
 0xd5c   :  { %6062 = dma.smem_to_vmem %s8356_s6, 16, %s6060_s26, [#allocation7]  }
 0xd5d   :  { %8344 = dma.done.wait [#allocation6], 4096  }
 0xd5e   :  { %8345 = vsyncadd [#allocation6], 4294963200 }
 0xd5f   :  { %8346 = dma.done.wait [#allocation7], 16  }
 0xd60   :  { %8347 = vsyncadd [#allocation7], 4294967280 }
 0xd61   :  { %6069 = sfence }
 0xd62   :  { %6070 = vsyncpa [#allocation6], 1 }
 0xd63   :  { %6071 = vsyncpa [#allocation7], 1 }

</bundles_post_ra>
